<compile_context>
chip_gen: v6e
topology: v6e:2x2x1
jax: 0.10.0
libtpu: 0.0.40
codegen_flags: <defaults>
</compile_context>

<pallas_src>
import jax
import jax.numpy as jnp
import numpy as np
from jax import lax
from jax.experimental import pallas as pl
from jax.experimental.pallas import tpu as pltpu

EPS = 1e-5
LANES = 128


def _round_up(n, m):
    return ((n + m - 1) // m) * m


def _instance_norm(y, gamma, beta):
    """y: (H*W, Cp) f32 (one image, spatial flattened); gamma/beta: (1, Cp) f32.
    Single-pass (sum, sum-of-squares) biased-variance InstanceNorm + affine.
    (TODO(synk): switch to shifted two-pass if large H*W / tight tolerances
    expose cancellation; fine at 1e-3 here.)"""
    inv_n = 1.0 / y.shape[0]
    s = jnp.sum(y, axis=0, keepdims=True)
    ss = jnp.sum(y * y, axis=0, keepdims=True)
    mean = s * inv_n
    var = jnp.maximum(ss * inv_n - mean * mean, 0.0)      # biased, like PyTorch IN
    scale = lax.rsqrt(var + EPS) * gamma                  # (1, Cp)
    shift = beta - mean * scale                           # (1, Cp)
    return y * scale + shift


def _conv3x3(pad_ref, w_ref, H, W, Cp):
    """3x3 'same' conv as one im2col matmul.
    pad_ref: (H+2, Wp2, Cp) bf16 zero-bordered input; w_ref: (9*Cp, Cp) bf16.
    Taps are sliced directly from the ref (one live tap at a time) and are
    already bf16, so no f32 intermediate is materialized.
    Returns (H*W, Cp) f32 (MXU, f32 accumulation)."""
    taps = [pad_ref[dh:dh + H, dw:dw + W, :].reshape(H * W, Cp)
            for dh in range(3) for dw in range(3)]
    patches = jnp.concatenate(taps, axis=-1)              # (H*W, 9*Cp) bf16
    return jnp.dot(patches, w_ref[...], preferred_element_type=jnp.float32)


def residual_block_kernel(x_ref, w1_ref, g1_ref, b1_ref, w2_ref, g2_ref, b2_ref,
                          out_ref, pad_ref):
    # x_ref   : (1, H, W, Cp) f32   one image, channels padded to 128-multiple
    # w*_ref  : (9*Cp, Cp)    bf16  im2col-reshaped conv weights
    # g*/b*   : (1, Cp)       f32   InstanceNorm affine params (zero padded)
    # out_ref : (1, H, W, Cp) f32
    # pad_ref : VMEM scratch (H+2, Wp2, Cp) bf16, reused by both convs
    _, H, W, Cp = x_ref.shape

    # Build the 1-pixel halo in bf16 VMEM: zero only the border (interior is
    # fully overwritten below).  Done every step so it is megacore-safe.
    zero_row = jnp.zeros((1, pad_ref.shape[1], Cp), jnp.bfloat16)
    zero_col = jnp.zeros((H + 2, 1, Cp), jnp.bfloat16)
    pad_ref[0:1, :, :] = zero_row
    pad_ref[H + 1:H + 2, :, :] = zero_row
    pad_ref[:, 0:1, :] = zero_col
    pad_ref[:, W + 1:W + 2, :] = zero_col
    pad_ref[1:H + 1, 1:W + 1, :] = x_ref[0].astype(jnp.bfloat16)

    # conv1 -> IN1 -> ReLU
    h = _conv3x3(pad_ref, w1_ref, H, W, Cp)
    h = jnp.maximum(_instance_norm(h, g1_ref[...], b1_ref[...]), 0.0)

    # conv2 (reuse the scratch; its border is still zero) -> IN2
    pad_ref[1:H + 1, 1:W + 1, :] = h.reshape(H, W, Cp).astype(jnp.bfloat16)
    h = _conv3x3(pad_ref, w2_ref, H, W, Cp)
    h = _instance_norm(h, g2_ref[...], b2_ref[...])

    # residual add: re-read x from the input block instead of keeping it live
    out_ref[0] = x_ref[0] + h.reshape(H, W, Cp)


def residual_block(x_nchw, w1, g1, b1, w2, g2, b2):
    """x_nchw: (B, C, H, W) f32; w*: (3, 3, C, C) HWIO; g*/b*: (C,) f32.
    Returns (B, C, H, W) f32."""
    B, C, H, W = x_nchw.shape
    assert w1.shape == (3, 3, C, C) and w2.shape == (3, 3, C, C), \
        "the residual add requires dim_in == dim_out"
    Cp = max(LANES, _round_up(C, LANES))
    Wp2 = _round_up(W + 2, 16)   # bf16 sublane packing: 16 rows / vreg

    # NHWC, channels zero-padded to a multiple of 128 (lane-dense layout).
    # No spatial pad here: the halo is built inside the kernel.
    x = jnp.transpose(x_nchw, (0, 2, 3, 1))
    x = jnp.pad(x, ((0, 0), (0, 0), (0, 0), (0, Cp - C)))

    def pack_w(w):   # (3,3,C,C) HWIO -> (9*Cp, Cp) bf16 im2col weight matrix
        wp = jnp.zeros((3, 3, Cp, Cp), jnp.float32).at[:, :, :C, :C].set(w)
        return wp.reshape(9 * Cp, Cp).astype(jnp.bfloat16)

    def pack_p(p):   # (C,) -> (1, Cp) f32, zero padded
        return jnp.zeros((1, Cp), jnp.float32).at[0, :C].set(p.reshape(-1))

    # Explicit scoped-VMEM budget (estimate + headroom, clamped well under the
    # v7x 64 MiB physical limit).
    vmem_bytes = int(
        2 * 2 * H * W * Cp * 4            # in/out blocks, double-buffered f32
        + 2 * 2 * 9 * Cp * Cp * 2         # two weight blocks, double-buffered bf16
        + (H + 2) * Wp2 * Cp * 2          # bf16 halo scratch
        + 9 * H * W * Cp * 2              # bf16 im2col patches value
        + 3 * H * W * Cp * 4              # f32 conv-out / IN temporaries
        + (4 << 20))                      # headroom
    vmem_limit = min(max(vmem_bytes, 16 << 20), 48 << 20)

    out_nhwc = pl.pallas_call(
        residual_block_kernel,
        out_shape=jax.ShapeDtypeStruct((B, H, W, Cp), jnp.float32),
        grid_spec=pltpu.PrefetchScalarGridSpec(
            num_scalar_prefetch=0,
            grid=(B,),
            in_specs=[
                pl.BlockSpec((1, H, W, Cp), lambda b: (b, 0, 0, 0)),
                pl.BlockSpec((9 * Cp, Cp), lambda b: (0, 0)),
                pl.BlockSpec((1, Cp), lambda b: (0, 0)),
                pl.BlockSpec((1, Cp), lambda b: (0, 0)),
                pl.BlockSpec((9 * Cp, Cp), lambda b: (0, 0)),
                pl.BlockSpec((1, Cp), lambda b: (0, 0)),
                pl.BlockSpec((1, Cp), lambda b: (0, 0)),
            ],
            out_specs=pl.BlockSpec((1, H, W, Cp), lambda b: (b, 0, 0, 0)),
            scratch_shapes=[pltpu.VMEM((H + 2, Wp2, Cp), jnp.bfloat16)],
        ),
        compiler_params=pltpu.CompilerParams(
            dimension_semantics=("parallel",),
            vmem_limit_bytes=vmem_limit),
    )(x, pack_w(w1), pack_p(g1), pack_p(b1), pack_w(w2), pack_p(g2), pack_p(b2))

    return jnp.transpose(out_nhwc[..., :C], (0, 3, 1, 2))


def reference(x_nchw, w1, g1, b1, w2, g2, b2):
    """Pure-JAX reference matching the PyTorch module, evaluated with the same
    precision policy as the kernel (bf16 conv operands, f32 accumulation and
    f32 InstanceNorm statistics)."""
    x = jnp.transpose(x_nchw, (0, 2, 3, 1))

    def conv(h, w):
        return lax.conv_general_dilated(
            h.astype(jnp.bfloat16), w.astype(jnp.bfloat16),
            window_strides=(1, 1), padding="SAME",
            dimension_numbers=("NHWC", "HWIO", "NHWC"),
            preferred_element_type=jnp.float32)

    def inorm(h, g, b):
        m = jnp.mean(h, axis=(1, 2), keepdims=True)
        v = jnp.mean((h - m) ** 2, axis=(1, 2), keepdims=True)
        return (h - m) * lax.rsqrt(v + EPS) * g.reshape(1, 1, 1, -1) + b.reshape(1, 1, 1, -1)

    h = conv(x, w1)
    h = jnp.maximum(inorm(h, g1, b1), 0.0)
    h = conv(h, w2)
    h = inorm(h, g2, b2)
    return jnp.transpose(x + h, (0, 3, 1, 2))


if __name__ == "__main__":
    key = jax.random.PRNGKey(0)
    B, C, H, W = 2, 4, 16, 16          # dim_in == dim_out (required by residual add)
    ks = jax.random.split(key, 7)

    x = jax.random.normal(ks[0], (B, C, H, W), jnp.float32)
    # Conv weights (HWIO); InstanceNorm affine params perturbed from (1, 0) so
    # the affine path is exercised.
    w1 = 0.1 * jax.random.normal(ks[1], (3, 3, C, C), jnp.float32)
    w2 = 0.1 * jax.random.normal(ks[2], (3, 3, C, C), jnp.float32)
    g1 = 1.0 + 0.1 * jax.random.normal(ks[3], (C,), jnp.float32)
    b1 = 0.1 * jax.random.normal(ks[4], (C,), jnp.float32)
    g2 = 1.0 + 0.1 * jax.random.normal(ks[5], (C,), jnp.float32)
    b2 = 0.1 * jax.random.normal(ks[6], (C,), jnp.float32)

    out = jax.block_until_ready(residual_block(x, w1, g1, b1, w2, g2, b2))
    ref = jax.block_until_ready(reference(x, w1, g1, b1, w2, g2, b2))

    np.testing.assert_allclose(np.asarray(out), np.asarray(ref), rtol=1e-3, atol=1e-3)
    print("KERNEL_OK")
</pallas_src>

<mosaic_0001>
module attributes {stable_mosaic.version = 11 : i64} {
  func.func @residual_block_kernel(%arg0: i32, %arg1: memref<1x16x16x128xf32, #tpu.memory_space<vmem>>, %arg2: memref<1152x128xbf16, #tpu.memory_space<vmem>>, %arg3: memref<1x128xf32, #tpu.memory_space<vmem>>, %arg4: memref<1x128xf32, #tpu.memory_space<vmem>>, %arg5: memref<1152x128xbf16, #tpu.memory_space<vmem>>, %arg6: memref<1x128xf32, #tpu.memory_space<vmem>>, %arg7: memref<1x128xf32, #tpu.memory_space<vmem>>, %arg8: memref<1x16x16x128xf32, #tpu.memory_space<vmem>>, %arg9: memref<18x32x128xbf16, #tpu.memory_space<vmem>>) attributes {dimension_semantics = [#tpu.dimension_semantics<parallel>], iteration_bounds = array<i64: 2>, scalar_prefetch = 0 : i64, scratch_operands = 1 : i64, tpu.core_type = #tpu.core_type<tc>, window_params = [{transform_indices = @transform_0, window_bounds = array<i64: 1, 16, 16, 128>}, {pipeline_mode = #tpu.pipeline_mode<synchronous>, transform_indices = @transform_1, window_bounds = array<i64: 1152, 128>}, {pipeline_mode = #tpu.pipeline_mode<synchronous>, transform_indices = @transform_2, window_bounds = array<i64: 1, 128>}, {pipeline_mode = #tpu.pipeline_mode<synchronous>, transform_indices = @transform_3, window_bounds = array<i64: 1, 128>}, {pipeline_mode = #tpu.pipeline_mode<synchronous>, transform_indices = @transform_4, window_bounds = array<i64: 1152, 128>}, {pipeline_mode = #tpu.pipeline_mode<synchronous>, transform_indices = @transform_5, window_bounds = array<i64: 1, 128>}, {pipeline_mode = #tpu.pipeline_mode<synchronous>, transform_indices = @transform_6, window_bounds = array<i64: 1, 128>}, {transform_indices = @transform_7, window_bounds = array<i64: 1, 16, 16, 128>}]} {
    %cst = arith.constant 0.000000e+00 : bf16
    %0 = vector.broadcast %cst : bf16 to vector<1x32x128xbf16>
    %cst_0 = arith.constant 0.000000e+00 : bf16
    %1 = vector.broadcast %cst_0 : bf16 to vector<18x1x128xbf16>
    %c0 = arith.constant 0 : index
    %c0_1 = arith.constant 0 : index
    %c0_2 = arith.constant 0 : index
    %2 = vector.load %arg9[%c0, %c0_1, %c0_2] : memref<18x32x128xbf16, #tpu.memory_space<vmem>>, vector<1x32x128xbf16>
    tpu.vector_store %arg9[%c0, %c0_1, %c0_2], %0 {strides = array<i32>} : memref<18x32x128xbf16, #tpu.memory_space<vmem>>, vector<1x32x128xbf16>,
    %c17 = arith.constant 17 : index
    %c0_3 = arith.constant 0 : index
    %c0_4 = arith.constant 0 : index
    %3 = vector.load %arg9[%c17, %c0_3, %c0_4] : memref<18x32x128xbf16, #tpu.memory_space<vmem>>, vector<1x32x128xbf16>
    tpu.vector_store %arg9[%c17, %c0_3, %c0_4], %0 {strides = array<i32>} : memref<18x32x128xbf16, #tpu.memory_space<vmem>>, vector<1x32x128xbf16>,
    %c0_5 = arith.constant 0 : index
    %c0_6 = arith.constant 0 : index
    %c0_7 = arith.constant 0 : index
    %4 = vector.load %arg9[%c0_5, %c0_6, %c0_7] : memref<18x32x128xbf16, #tpu.memory_space<vmem>>, vector<18x1x128xbf16>
    tpu.vector_store %arg9[%c0_5, %c0_6, %c0_7], %1 {strides = array<i32>} : memref<18x32x128xbf16, #tpu.memory_space<vmem>>, vector<18x1x128xbf16>,
    %c0_8 = arith.constant 0 : index
    %c17_9 = arith.constant 17 : index
    %c0_10 = arith.constant 0 : index
    %5 = vector.load %arg9[%c0_8, %c17_9, %c0_10] : memref<18x32x128xbf16, #tpu.memory_space<vmem>>, vector<18x1x128xbf16>
    tpu.vector_store %arg9[%c0_8, %c17_9, %c0_10], %1 {strides = array<i32>} : memref<18x32x128xbf16, #tpu.memory_space<vmem>>, vector<18x1x128xbf16>,
    %c0_11 = arith.constant 0 : index
    %c0_12 = arith.constant 0 : index
    %c0_13 = arith.constant 0 : index
    %c0_14 = arith.constant 0 : index
    %6 = vector.load %arg1[%c0_11, %c0_12, %c0_13, %c0_14] : memref<1x16x16x128xf32, #tpu.memory_space<vmem>>, vector<1x16x16x128xf32>
    %7 = vector.shape_cast %6 : vector<1x16x16x128xf32> to vector<16x16x128xf32>
    %8 = arith.truncf %7 : vector<16x16x128xf32> to vector<16x16x128xbf16>
    %c1 = arith.constant 1 : index
    %c1_15 = arith.constant 1 : index
    %c0_16 = arith.constant 0 : index
    %9 = vector.load %arg9[%c1, %c1_15, %c0_16] : memref<18x32x128xbf16, #tpu.memory_space<vmem>>, vector<16x16x128xbf16>
    tpu.vector_store %arg9[%c1, %c1_15, %c0_16], %8 {strides = array<i32>} : memref<18x32x128xbf16, #tpu.memory_space<vmem>>, vector<16x16x128xbf16>,
    %c0_17 = arith.constant 0 : index
    %c0_18 = arith.constant 0 : index
    %c0_19 = arith.constant 0 : index
    %10 = vector.load %arg9[%c0_17, %c0_18, %c0_19] : memref<18x32x128xbf16, #tpu.memory_space<vmem>>, vector<16x16x128xbf16>
    %11 = vector.shape_cast %10 : vector<16x16x128xbf16> to vector<256x128xbf16>
    %c0_20 = arith.constant 0 : index
    %c1_21 = arith.constant 1 : index
    %c0_22 = arith.constant 0 : index
    %12 = vector.load %arg9[%c0_20, %c1_21, %c0_22] : memref<18x32x128xbf16, #tpu.memory_space<vmem>>, vector<16x16x128xbf16>
    %13 = vector.shape_cast %12 : vector<16x16x128xbf16> to vector<256x128xbf16>
    %c0_23 = arith.constant 0 : index
    %c2 = arith.constant 2 : index
    %c0_24 = arith.constant 0 : index
    %14 = vector.load %arg9[%c0_23, %c2, %c0_24] : memref<18x32x128xbf16, #tpu.memory_space<vmem>>, vector<16x16x128xbf16>
    %15 = vector.shape_cast %14 : vector<16x16x128xbf16> to vector<256x128xbf16>
    %c1_25 = arith.constant 1 : index
    %c0_26 = arith.constant 0 : index
    %c0_27 = arith.constant 0 : index
    %16 = vector.load %arg9[%c1_25, %c0_26, %c0_27] : memref<18x32x128xbf16, #tpu.memory_space<vmem>>, vector<16x16x128xbf16>
    %17 = vector.shape_cast %16 : vector<16x16x128xbf16> to vector<256x128xbf16>
    %c1_28 = arith.constant 1 : index
    %c1_29 = arith.constant 1 : index
    %c0_30 = arith.constant 0 : index
    %18 = vector.load %arg9[%c1_28, %c1_29, %c0_30] : memref<18x32x128xbf16, #tpu.memory_space<vmem>>, vector<16x16x128xbf16>
    %19 = vector.shape_cast %18 : vector<16x16x128xbf16> to vector<256x128xbf16>
    %c1_31 = arith.constant 1 : index
    %c2_32 = arith.constant 2 : index
    %c0_33 = arith.constant 0 : index
    %20 = vector.load %arg9[%c1_31, %c2_32, %c0_33] : memref<18x32x128xbf16, #tpu.memory_space<vmem>>, vector<16x16x128xbf16>
    %21 = vector.shape_cast %20 : vector<16x16x128xbf16> to vector<256x128xbf16>
    %c2_34 = arith.constant 2 : index
    %c0_35 = arith.constant 0 : index
    %c0_36 = arith.constant 0 : index
    %22 = vector.load %arg9[%c2_34, %c0_35, %c0_36] : memref<18x32x128xbf16, #tpu.memory_space<vmem>>, vector<16x16x128xbf16>
    %23 = vector.shape_cast %22 : vector<16x16x128xbf16> to vector<256x128xbf16>
    %c2_37 = arith.constant 2 : index
    %c1_38 = arith.constant 1 : index
    %c0_39 = arith.constant 0 : index
    %24 = vector.load %arg9[%c2_37, %c1_38, %c0_39] : memref<18x32x128xbf16, #tpu.memory_space<vmem>>, vector<16x16x128xbf16>
    %25 = vector.shape_cast %24 : vector<16x16x128xbf16> to vector<256x128xbf16>
    %c2_40 = arith.constant 2 : index
    %c2_41 = arith.constant 2 : index
    %c0_42 = arith.constant 0 : index
    %26 = vector.load %arg9[%c2_40, %c2_41, %c0_42] : memref<18x32x128xbf16, #tpu.memory_space<vmem>>, vector<16x16x128xbf16>
    %27 = vector.shape_cast %26 : vector<16x16x128xbf16> to vector<256x128xbf16>
    %28 = tpu.concatenate %11, %13, %15, %17, %19, %21, %23, %25, %27 in 1 : vector<256x128xbf16>, vector<256x128xbf16>, vector<256x128xbf16>, vector<256x128xbf16>, vector<256x128xbf16>, vector<256x128xbf16>, vector<256x128xbf16>, vector<256x128xbf16>, vector<256x128xbf16> -> vector<256x1152xbf16>
    %c0_43 = arith.constant 0 : index
    %c0_44 = arith.constant 0 : index
    %29 = vector.load %arg2[%c0_43, %c0_44] : memref<1152x128xbf16, #tpu.memory_space<vmem>>, vector<1152x128xbf16>
    %cst_45 = arith.constant dense<0.000000e+00> : vector<256x128xf32>
    %30 = tpu.matmul %28, %29, %cst_45 {dimension_numbers = #tpu.dot_dimension_numbers<[1], [0], [0], [1], [0, 0, 1, 1], [], []>} : vector<256x1152xbf16>, vector<1152x128xbf16>, vector<256x128xf32> -> vector<256x128xf32>
    %c0_46 = arith.constant 0 : index
    %c0_47 = arith.constant 0 : index
    %31 = vector.load %arg3[%c0_46, %c0_47] : memref<1x128xf32, #tpu.memory_space<vmem>>, vector<1x128xf32>
    %c0_48 = arith.constant 0 : index
    %c0_49 = arith.constant 0 : index
    %32 = vector.load %arg4[%c0_48, %c0_49] : memref<1x128xf32, #tpu.memory_space<vmem>>, vector<1x128xf32>
    %cst_50 = arith.constant dense<0.000000e+00> : vector<128xf32>
    %33 = vector.multi_reduction <add>, %30, %cst_50 [0] : vector<256x128xf32> to vector<128xf32>
    %34 = vector.shape_cast %33 : vector<128xf32> to vector<1x128xf32>
    %35 = arith.mulf %30, %30 : vector<256x128xf32>
    %cst_51 = arith.constant dense<0.000000e+00> : vector<128xf32>
    %36 = vector.multi_reduction <add>, %35, %cst_51 [0] : vector<256x128xf32> to vector<128xf32>
    %37 = vector.shape_cast %36 : vector<128xf32> to vector<1x128xf32>
    %cst_52 = arith.constant 3.906250e-03 : f32
    %38 = vector.broadcast %cst_52 : f32 to vector<1x128xf32>
    %39 = arith.mulf %34, %38 : vector<1x128xf32>
    %cst_53 = arith.constant 3.906250e-03 : f32
    %40 = vector.broadcast %cst_53 : f32 to vector<1x128xf32>
    %41 = arith.mulf %37, %40 : vector<1x128xf32>
    %42 = arith.mulf %39, %39 : vector<1x128xf32>
    %43 = arith.subf %41, %42 : vector<1x128xf32>
    %cst_54 = arith.constant 0.000000e+00 : f32
    %44 = vector.broadcast %cst_54 : f32 to vector<1x128xf32>
    %45 = arith.maximumf %43, %44 : vector<1x128xf32>
    %cst_55 = arith.constant 9.99999974E-6 : f32
    %46 = vector.broadcast %cst_55 : f32 to vector<1x128xf32>
    %47 = arith.addf %45, %46 : vector<1x128xf32>
    %48 = math.rsqrt %47 : vector<1x128xf32>
    %49 = arith.mulf %48, %31 : vector<1x128xf32>
    %50 = arith.mulf %39, %49 : vector<1x128xf32>
    %51 = arith.subf %32, %50 : vector<1x128xf32>
    %52 = vector.broadcast %49 : vector<1x128xf32> to vector<256x128xf32>
    %53 = arith.mulf %30, %52 : vector<256x128xf32>
    %54 = vector.broadcast %51 : vector<1x128xf32> to vector<256x128xf32>
    %55 = arith.addf %53, %54 : vector<256x128xf32>
    %cst_56 = arith.constant 0.000000e+00 : f32
    %56 = vector.broadcast %cst_56 : f32 to vector<256x128xf32>
    %57 = arith.maximumf %55, %56 : vector<256x128xf32>
    %58 = vector.shape_cast %57 : vector<256x128xf32> to vector<16x16x128xf32>
    %59 = arith.truncf %58 : vector<16x16x128xf32> to vector<16x16x128xbf16>
    %c1_57 = arith.constant 1 : index
    %c1_58 = arith.constant 1 : index
    %c0_59 = arith.constant 0 : index
    %60 = vector.load %arg9[%c1_57, %c1_58, %c0_59] : memref<18x32x128xbf16, #tpu.memory_space<vmem>>, vector<16x16x128xbf16>
    tpu.vector_store %arg9[%c1_57, %c1_58, %c0_59], %59 {strides = array<i32>} : memref<18x32x128xbf16, #tpu.memory_space<vmem>>, vector<16x16x128xbf16>,
    %c0_60 = arith.constant 0 : index
    %c0_61 = arith.constant 0 : index
    %c0_62 = arith.constant 0 : index
    %61 = vector.load %arg9[%c0_60, %c0_61, %c0_62] : memref<18x32x128xbf16, #tpu.memory_space<vmem>>, vector<16x16x128xbf16>
    %62 = vector.shape_cast %61 : vector<16x16x128xbf16> to vector<256x128xbf16>
    %c0_63 = arith.constant 0 : index
    %c1_64 = arith.constant 1 : index
    %c0_65 = arith.constant 0 : index
    %63 = vector.load %arg9[%c0_63, %c1_64, %c0_65] : memref<18x32x128xbf16, #tpu.memory_space<vmem>>, vector<16x16x128xbf16>
    %64 = vector.shape_cast %63 : vector<16x16x128xbf16> to vector<256x128xbf16>
    %c0_66 = arith.constant 0 : index
    %c2_67 = arith.constant 2 : index
    %c0_68 = arith.constant 0 : index
    %65 = vector.load %arg9[%c0_66, %c2_67, %c0_68] : memref<18x32x128xbf16, #tpu.memory_space<vmem>>, vector<16x16x128xbf16>
    %66 = vector.shape_cast %65 : vector<16x16x128xbf16> to vector<256x128xbf16>
    %c1_69 = arith.constant 1 : index
    %c0_70 = arith.constant 0 : index
    %c0_71 = arith.constant 0 : index
    %67 = vector.load %arg9[%c1_69, %c0_70, %c0_71] : memref<18x32x128xbf16, #tpu.memory_space<vmem>>, vector<16x16x128xbf16>
    %68 = vector.shape_cast %67 : vector<16x16x128xbf16> to vector<256x128xbf16>
    %c1_72 = arith.constant 1 : index
    %c1_73 = arith.constant 1 : index
    %c0_74 = arith.constant 0 : index
    %69 = vector.load %arg9[%c1_72, %c1_73, %c0_74] : memref<18x32x128xbf16, #tpu.memory_space<vmem>>, vector<16x16x128xbf16>
    %70 = vector.shape_cast %69 : vector<16x16x128xbf16> to vector<256x128xbf16>
    %c1_75 = arith.constant 1 : index
    %c2_76 = arith.constant 2 : index
    %c0_77 = arith.constant 0 : index
    %71 = vector.load %arg9[%c1_75, %c2_76, %c0_77] : memref<18x32x128xbf16, #tpu.memory_space<vmem>>, vector<16x16x128xbf16>
    %72 = vector.shape_cast %71 : vector<16x16x128xbf16> to vector<256x128xbf16>
    %c2_78 = arith.constant 2 : index
    %c0_79 = arith.constant 0 : index
    %c0_80 = arith.constant 0 : index
    %73 = vector.load %arg9[%c2_78, %c0_79, %c0_80] : memref<18x32x128xbf16, #tpu.memory_space<vmem>>, vector<16x16x128xbf16>
    %74 = vector.shape_cast %73 : vector<16x16x128xbf16> to vector<256x128xbf16>
    %c2_81 = arith.constant 2 : index
    %c1_82 = arith.constant 1 : index
    %c0_83 = arith.constant 0 : index
    %75 = vector.load %arg9[%c2_81, %c1_82, %c0_83] : memref<18x32x128xbf16, #tpu.memory_space<vmem>>, vector<16x16x128xbf16>
    %76 = vector.shape_cast %75 : vector<16x16x128xbf16> to vector<256x128xbf16>
    %c2_84 = arith.constant 2 : index
    %c2_85 = arith.constant 2 : index
    %c0_86 = arith.constant 0 : index
    %77 = vector.load %arg9[%c2_84, %c2_85, %c0_86] : memref<18x32x128xbf16, #tpu.memory_space<vmem>>, vector<16x16x128xbf16>
    %78 = vector.shape_cast %77 : vector<16x16x128xbf16> to vector<256x128xbf16>
    %79 = tpu.concatenate %62, %64, %66, %68, %70, %72, %74, %76, %78 in 1 : vector<256x128xbf16>, vector<256x128xbf16>, vector<256x128xbf16>, vector<256x128xbf16>, vector<256x128xbf16>, vector<256x128xbf16>, vector<256x128xbf16>, vector<256x128xbf16>, vector<256x128xbf16> -> vector<256x1152xbf16>
    %c0_87 = arith.constant 0 : index
    %c0_88 = arith.constant 0 : index
    %80 = vector.load %arg5[%c0_87, %c0_88] : memref<1152x128xbf16, #tpu.memory_space<vmem>>, vector<1152x128xbf16>
    %cst_89 = arith.constant dense<0.000000e+00> : vector<256x128xf32>
    %81 = tpu.matmul %79, %80, %cst_89 {dimension_numbers = #tpu.dot_dimension_numbers<[1], [0], [0], [1], [0, 0, 1, 1], [], []>} : vector<256x1152xbf16>, vector<1152x128xbf16>, vector<256x128xf32> -> vector<256x128xf32>
    %c0_90 = arith.constant 0 : index
    %c0_91 = arith.constant 0 : index
    %82 = vector.load %arg6[%c0_90, %c0_91] : memref<1x128xf32, #tpu.memory_space<vmem>>, vector<1x128xf32>
    %c0_92 = arith.constant 0 : index
    %c0_93 = arith.constant 0 : index
    %83 = vector.load %arg7[%c0_92, %c0_93] : memref<1x128xf32, #tpu.memory_space<vmem>>, vector<1x128xf32>
    %cst_94 = arith.constant dense<0.000000e+00> : vector<128xf32>
    %84 = vector.multi_reduction <add>, %81, %cst_94 [0] : vector<256x128xf32> to vector<128xf32>
    %85 = vector.shape_cast %84 : vector<128xf32> to vector<1x128xf32>
    %86 = arith.mulf %81, %81 : vector<256x128xf32>
    %cst_95 = arith.constant dense<0.000000e+00> : vector<128xf32>
    %87 = vector.multi_reduction <add>, %86, %cst_95 [0] : vector<256x128xf32> to vector<128xf32>
    %88 = vector.shape_cast %87 : vector<128xf32> to vector<1x128xf32>
    %cst_96 = arith.constant 3.906250e-03 : f32
    %89 = vector.broadcast %cst_96 : f32 to vector<1x128xf32>
    %90 = arith.mulf %85, %89 : vector<1x128xf32>
    %cst_97 = arith.constant 3.906250e-03 : f32
    %91 = vector.broadcast %cst_97 : f32 to vector<1x128xf32>
    %92 = arith.mulf %88, %91 : vector<1x128xf32>
    %93 = arith.mulf %90, %90 : vector<1x128xf32>
    %94 = arith.subf %92, %93 : vector<1x128xf32>
    %cst_98 = arith.constant 0.000000e+00 : f32
    %95 = vector.broadcast %cst_98 : f32 to vector<1x128xf32>
    %96 = arith.maximumf %94, %95 : vector<1x128xf32>
    %cst_99 = arith.constant 9.99999974E-6 : f32
    %97 = vector.broadcast %cst_99 : f32 to vector<1x128xf32>
    %98 = arith.addf %96, %97 : vector<1x128xf32>
    %99 = math.rsqrt %98 : vector<1x128xf32>
    %100 = arith.mulf %99, %82 : vector<1x128xf32>
    %101 = arith.mulf %90, %100 : vector<1x128xf32>
    %102 = arith.subf %83, %101 : vector<1x128xf32>
    %103 = vector.broadcast %100 : vector<1x128xf32> to vector<256x128xf32>
    %104 = arith.mulf %81, %103 : vector<256x128xf32>
    %105 = vector.broadcast %102 : vector<1x128xf32> to vector<256x128xf32>
    %106 = arith.addf %104, %105 : vector<256x128xf32>
    %c0_100 = arith.constant 0 : index
    %c0_101 = arith.constant 0 : index
    %c0_102 = arith.constant 0 : index
    %c0_103 = arith.constant 0 : index
    %107 = vector.load %arg1[%c0_100, %c0_101, %c0_102, %c0_103] : memref<1x16x16x128xf32, #tpu.memory_space<vmem>>, vector<1x16x16x128xf32>
    %108 = vector.shape_cast %107 : vector<1x16x16x128xf32> to vector<16x16x128xf32>
    %109 = vector.shape_cast %106 : vector<256x128xf32> to vector<16x16x128xf32>
    %110 = arith.addf %108, %109 : vector<16x16x128xf32>
    %c0_104 = arith.constant 0 : index
    %c0_105 = arith.constant 0 : index
    %c0_106 = arith.constant 0 : index
    %c0_107 = arith.constant 0 : index
    %111 = vector.load %arg8[%c0_104, %c0_105, %c0_106, %c0_107] : memref<1x16x16x128xf32, #tpu.memory_space<vmem>>, vector<1x16x16x128xf32>
    %112 = vector.shape_cast %111 : vector<1x16x16x128xf32> to vector<16x16x128xf32>
    %113 = vector.shape_cast %110 : vector<16x16x128xf32> to vector<1x16x16x128xf32>
    tpu.vector_store %arg8[%c0_104, %c0_105, %c0_106, %c0_107], %113 {strides = array<i32>} : memref<1x16x16x128xf32, #tpu.memory_space<vmem>>, vector<1x16x16x128xf32>,
    return
  }
  func.func @transform_0(%arg0: i32) -> (i32, i32, i32, i32) {
    %c0_i32 = arith.constant 0 : i32
    %c0_i32_0 = arith.constant 0 : i32
    %c0_i32_1 = arith.constant 0 : i32
    %c0_i32_2 = arith.constant 0 : i32
    return %arg0, %c0_i32, %c0_i32_0, %c0_i32_1 : i32, i32, i32, i32
  }
  func.func @transform_1(%arg0: i32) -> (i32, i32) {
    %c0_i32 = arith.constant 0 : i32
    %c0_i32_0 = arith.constant 0 : i32
    %c0_i32_1 = arith.constant 0 : i32
    return %c0_i32, %c0_i32_0 : i32, i32
  }
  func.func @transform_2(%arg0: i32) -> (i32, i32) {
    %c0_i32 = arith.constant 0 : i32
    %c0_i32_0 = arith.constant 0 : i32
    %c0_i32_1 = arith.constant 0 : i32
    return %c0_i32, %c0_i32_0 : i32, i32
  }
  func.func @transform_3(%arg0: i32) -> (i32, i32) {
    %c0_i32 = arith.constant 0 : i32
    %c0_i32_0 = arith.constant 0 : i32
    %c0_i32_1 = arith.constant 0 : i32
    return %c0_i32, %c0_i32_0 : i32, i32
  }
  func.func @transform_4(%arg0: i32) -> (i32, i32) {
    %c0_i32 = arith.constant 0 : i32
    %c0_i32_0 = arith.constant 0 : i32
    %c0_i32_1 = arith.constant 0 : i32
    return %c0_i32, %c0_i32_0 : i32, i32
  }
  func.func @transform_5(%arg0: i32) -> (i32, i32) {
    %c0_i32 = arith.constant 0 : i32
    %c0_i32_0 = arith.constant 0 : i32
    %c0_i32_1 = arith.constant 0 : i32
    return %c0_i32, %c0_i32_0 : i32, i32
  }
  func.func @transform_6(%arg0: i32) -> (i32, i32) {
    %c0_i32 = arith.constant 0 : i32
    %c0_i32_0 = arith.constant 0 : i32
    %c0_i32_1 = arith.constant 0 : i32
    return %c0_i32, %c0_i32_0 : i32, i32
  }
  func.func @transform_7(%arg0: i32) -> (i32, i32, i32, i32) {
    %c0_i32 = arith.constant 0 : i32
    %c0_i32_0 = arith.constant 0 : i32
    %c0_i32_1 = arith.constant 0 : i32
    %c0_i32_2 = arith.constant 0 : i32
    return %arg0, %c0_i32, %c0_i32_0, %c0_i32_1 : i32, i32, i32, i32
  }
}

</mosaic_0001>

<bundles_post_ra>
// kernel: tpu_custom_call.1
= control target key start
LH: loop header
LB: loop body
LE: loop exit
PB: predicated region body
PF: predicated region fallthrough
CT: control target
= control target key end

     0   :  { %s17055_s0 = inlined_call_operand.hbm [shape: f32[2,16,16,128], index: 0, kind: input, shape index: {}]   ;;  %s17056_s1 = inlined_call_operand.hbm [shape: bf16[1152,128], index: 1, kind: input, shape index: {}]   ;;  %s17057_s2 = inlined_call_operand.vmem [shape: f32[1,128], index: 2, kind: input, shape index: {}]   ;;  %s17058_s3 = inlined_call_operand.vmem [shape: f32[1,128], index: 3, kind: input, shape index: {}]   ;;  %s17059_s4 = inlined_call_operand.hbm [shape: bf16[1152,128], index: 4, kind: input, shape index: {}]   ;;  %s17060_s5 = inlined_call_operand.vmem [shape: f32[1,128], index: 5, kind: input, shape index: {}]   ;;  %s17061_s6 = inlined_call_operand.vmem [shape: f32[1,128], index: 6, kind: input, shape index: {}]   ;;  %s17062_s7 = inlined_call_operand.hbm [shape: f32[2,16,16,128], index: 7, kind: output, shape index: {}]  }
   0x1   :  { %17099 = sst [smem:[#allocation47_spill]] %s17056_s1 }
   0x2   :  { %12 = vsyncpa [#allocation4], 0 }
   0x3   :  { %14 = vsyncpa [#allocation4 + $0x1], 0 }
   0x4   :  { %15 = vsyncpa [#allocation7], 0 }
   0x5   :  { %16 = vsyncpa [#allocation5], 0 }
   0x6   :  { %18 = vsyncpa [#allocation5 + $0x1], 0  ;;  %s12137_s24 = smov 0   ;;  %s12139_s25 = smov 0  }
   0x7   :  { %s12141_s26 = smov 0   ;;  %s12143_s27 = smov 0  }
   0x8 LB: > { %s12158_s28 = sadd.s32 4294967295, %s12084_s27   ;;  %s9824_s29 = sadd.s32 4294967294, %s12084_s27   ;;  %s12084_s27 = sphi %s12143_s27, %s17446_s27   ;;  %s12080_s26 = sphi %s12141_s26, %s17445_s26   ;;  %s12076_s25 = sphi %s12139_s25, %s17444_s25   ;;  %s12072_s24 = sphi %s12137_s24, %s17443_s24  }
   0x9   : > { %p44_p0 = scmp.ne.s32.totalorder %s12076_s25, %s12072_s24  ;;  %p17063_p1 = scmp.eq.s32.totalorder %s12158_s28, 0 }
   0xa   : > { %p200_p3 = scmp.eq.s32.totalorder %s9824_s29, 1  ;;  %p9825_p5 = scmp.ge.s32.totalorder %s12084_s27, 1 }
   0xb   : > { %p12167_p4 = por %p17063_p1, %p44_p0  ;;  %p207_p7 = scmp.lt.s32.totalorder %s12084_s27, 3 }
   0xc   : > { %p12172_p6 = por %p200_p3, %p44_p0  ;;  %s12086_s10 = smov [#allocation6]  }
   0xd   : > { %s17100_s30 = scalar_select %p12167_p4, 1, 0 }
   0xe   : > { %s17101_s8 = scalar_select %p12172_p6, 1, 0 }
   0xf   : > { %p12177_p8 = pnand %p9825_p5, %p207_p7  ;;  %s219_s11 = sshll.u32 %s12086_s10, 4  ;;  %s220_s11 = int_to_ptr.vmem [resolvable:$true] %s219_s11 }
  0x10   : > { %s12087_s13 = smov [#allocation8]   ;;  %s11947_s15 = scalar_lea.vmem %s220_s11, 9216 }
  0x11   : > { %s17102_s9 = scalar_select %p12177_p8, 1, 0 }
  0x12   : > { %p11552_p9 = pneg %p12177_p8  ;;  %s238_s14 = sshll.u32 %s12087_s13, 4  ;;  %s239_s14 = int_to_ptr.vmem [resolvable:$true] %s238_s14 }
  0x13   : > { %p11948_p13 = scmp.ne.s32.totalorder %s220_s11, %s11947_s15  ;;  %p11955_p5 = scmp.lt.s32.totalorder %s220_s11, %s220_s11 }
  0x14   : > { %p12186_p11 = pnand %p11552_p9, %p17063_p1  ;;  %p11956_p7 = scmp.lt.s32.totalorder %s11947_s15, %s11947_s15 }
  0x16   : > { %p11938_p12 = pneg %p12186_p11  ;;  %p11957_p10 = por %p11956_p7, %p11955_p5 }
  0x18   : > { %p11950_p0 = pnand %p11948_p13, %p11938_p12 }
  0x1a   : > { %p11951_p3 = pneg %p11950_p0 }
  0x1c   : > { %p11958_p9 = pnand %p11957_p10, %p11951_p3 }
  0x1e   : > { %11961 = shalt.err (!%p11958_p9)
}
  0x1f   : > { %s12088_s16 = smov 64   ;;  %s12089_s17 = smov 4  }
  0x20   : > { %s17104_s1 = sld [smem:[#allocation47_spill]]  ;;  %s11973_s20 = scalar_lea.vmem %s239_s14, 9216 }
  0x21   : > { %p11974_p1 = scmp.ne.s32.totalorder %s239_s14, %s11973_s20  ;;  %p11981_p2 = scmp.lt.s32.totalorder %s239_s14, %s239_s14 }
  0x22   : > { %p11982_p6 = scmp.lt.s32.totalorder %s11973_s20, %s11973_s20 }
  0x23   : > { %p11976_p13 = pnand %p11974_p1, %p11938_p12 }
  0x24   : > { %p11983_p5 = por %p11982_p6, %p11981_p2 }
  0x25   : > { %p11977_p0 = pneg %p11976_p13 }
  0x26   : > { %11555 = dma.hbm_to_vmem [thread:$0]  (!%p12186_p11), %s17104_s1, 9216, %s220_s11, [#allocation7], %s12088_s16, %s12088_s16, %s12089_s17  }
  0x27   : > { %p11984_p10 = pnand %p11983_p5, %p11977_p0 }
  0x29   : > { %11987 = shalt.err (!%p11984_p10)
}
  0x2a   : > { %11558 = dma.hbm_to_vmem [thread:$0]  (!%p12186_p11), %s17059_s4, 9216, %s239_s14, [#allocation7], %s12088_s16, %s12088_s16, %s12089_s17  }
  0x2b   : > { %s12209_s23 = sadd.s32 1, %s12084_s27   ;;  %s31_s29 = sadd.s32 1, %s12080_s26 }
  0x2c   : > { %s28_s10 = ssub.s32 %s12084_s27, %s12209_s23  ;;  %p38_p1 = scmp.ne.s32.totalorder %s12080_s26, %s12076_s25 }
  0x2d   : > { %p29_p2 = scmp.eq.s32.totalorder %s28_s10, 0  ;;  %p39_p6 = scmp.eq.s32.totalorder %s12084_s27, 0 }
  0x2e   : > { %p17105_p12 = scmp.eq.s32.totalorder %s12158_s28, 1  ;;  %p11569_p7 = scmp.lt.s32.totalorder %s12084_s27, 2 }
  0x2f   : > { %s12225_s12 = scalar_select %p29_p2, %s12080_s26, %s31_s29  }
  0x30   : > { %p12219_p3 = por %p17105_p12, %p38_p1  ;;  %p40_p9 = por %p39_p6, %p38_p1 }
  0x31   : > { %s258_s13 = sand.u32 1, %s12080_s26   ;;  %s10434_s14 = sshll.u32 %s12084_s27, 12 }
  0x32   : > { %s17106_s11 = scalar_select %p12219_p3, 1, 0 }
  0x33   : > { %s9829_s15 = sshll.u32 %s258_s13, 8  ;;  %s12232_s18 = scalar_lea.hbm %s17055_s0, %s10434_s14 }
  0x34   : > { %s262_s19 = scalar_lea.vmem [#allocation3], %s9829_s15  ;;  %p12236_p11 = pnand %p11569_p7, %p40_p9 }
  0x35   : > { %s269_s20 = sshll.u32 %s262_s19, 4  ;;  %s12240_s22 = scalar_lea.sflag [#allocation4], %s258_s13  ;;  %s12234_s20 = int_to_ptr.vmem [resolvable:$true] %s269_s20 }
  0x36   : > { %s11988_s29 = scalar_lea.hbm %s12232_s18, 4096  ;;  %p11990_p0 = pneg %p12236_p11 }
  0x37   : > { %p11989_p13 = scmp.ne.s32.totalorder %s12232_s18, %s11988_s29  ;;  %s11993_s15 = scalar_lea.hbm %s17055_s0, 8192 }
  0x38   : > { %p11994_p1 = scmp.lt.s32.totalorder %s12232_s18, %s17055_s0  ;;  %p11995_p2 = scmp.lt.s32.totalorder %s11993_s15, %s11988_s29 }
  0x39   : > { %p11991_p5 = pnand %p11990_p0, %p11989_p13 }
  0x3a   : > { %p11996_p6 = por %p11995_p2, %p11994_p1 }
  0x3b   : > { %p11992_p10 = pneg %p11991_p5 }
  0x3d   : > { %p11997_p12 = pnand %p11996_p6, %p11992_p10 }
  0x3f   : > { %12000 = shalt.err (!%p11997_p12)
}
  0x40   : > { %s12001_s13 = scalar_lea.vmem %s12234_s20, 4096  ;;  %s12090_s19 = smov [#allocation3]  }
  0x41   : > { %p12002_p7 = scmp.ne.s32.totalorder %s12234_s20, %s12001_s13  ;;  %s12006_s1 = sshll.u32 %s12090_s19, 4  ;;  %s12007_s1 = int_to_ptr.vmem [resolvable:$false] %s12006_s1 }
  0x42   : > { %s12008_s10 = scalar_lea.vmem %s12007_s1, 8192  ;;  %p12009_p5 = scmp.lt.s32.totalorder %s12234_s20, %s12007_s1 }
  0x43   : > { %p12004_p9 = pnand %p12002_p7, %p11990_p0  ;;  %p12010_p3 = scmp.lt.s32.totalorder %s12008_s10, %s12001_s13 }
  0x45   : > { %p12005_p13 = pneg %p12004_p9  ;;  %p12011_p4 = por %p12010_p3, %p12009_p5 }
  0x47   : > { %p12012_p8 = pnand %p12011_p4, %p12005_p13 }
  0x49   : > { %12015 = shalt.err (!%p12012_p8)
}
  0x4a   : > { %s12091_s29 = smov 128   ;;  %s12092_s14 = smov 8  }
  0x4b   : > { %11562 = dma.hbm_to_vmem [thread:$0]  (!%p12236_p11), %s12232_s18, 4096, %s12234_s20, %s12240_s22, %s12091_s29, %s12091_s29, %s12092_s14  }
  0x4c   : > { %p17108_p0 = scmp.ne.s32.totalorder %s17102_s9, 0 }
  0x4e   : > { %281 = sbr.rel (%p17108_p0) target bundleno = 1520 (0x5f0), region = 48 }
  0x53   : > { %s12264_s15 = sand.u32 1, %s12076_s25   ;;  %p17109_p4 = scmp.ne.s32.totalorder %s17100_s30, 0 }
  0x54   : > { %s9833_s1 = sshll.u32 %s12264_s15, 8  ;;  %s284_s16 = scalar_lea.sflag [#allocation4], %s12264_s15 }
  0x55   : > { %s12270_s17 = scalar_lea.vmem [#allocation3], %s9833_s1 }
  0x56   : > { %12059 = dma.done.wait (%p17109_p4), %s284_s16, 4096  }
  0x57   : > { %12061 = vsyncadd (%p17109_p4), %s284_s16, 4294963200  ;;  %p17110_p8 = scmp.eq.s32.totalorder %s12158_s28, 0 }
  0x59   : > { %12063 = dma.done.wait (%p17110_p8), [#allocation7], 18432   ;;  %p17111_p3 = pmov %p17110_p8 }
  0x5a   : > { %v12093_v0 = vmov 0   ;;  %v11614_v1 = vld [vmem:[#allocation6 + $0x78] sm:$0xff]   ;;  %v11618_v5 = vld [vmem:[#allocation6 + $0x70] sm:$0xff]   ;;  %v11622_v9 = vld [vmem:[#allocation6 + $0x68] sm:$0xff]   ;;  %vm337_vm0 = vsmask.f32 256 }
  0x5b   : > { %12065 = vsyncadd (%p17111_p3), [#allocation7], 4294948864  ;;  %327 = vst [vmem:[#allocation2] sm:$0xf] %v12093_v0  ;;  %v11615_v2 = vld [vmem:[#allocation6 + $0xf8] sm:$0xff]   ;;  %10500 = vmatprep.subr.bf16.mxu0 %v11614_v1  ;;  %v11619_v6 = vld [vmem:[#allocation6 + $0xf0] sm:$0xff]  }
  0x5c   : > { %328 = vst [vmem:[#allocation2 + $0x4] sm:$0xf] %v12093_v0  ;;  %329 = vst [vmem:[#allocation2 + $0x8] sm:$0xf] %v12093_v0  ;;  %v11616_v3 = vld [vmem:[#allocation6 + $0x38] sm:$0xff]   ;;  %10612 = vmatprep.subr.bf16.mxu1 %v11615_v2  ;;  %v11620_v7 = vld [vmem:[#allocation6 + $0x30] sm:$0xff]  }
  0x5d   : > { %332 = vst [vmem:[#allocation2 + $0x110] sm:$0xf] %v12093_v0  ;;  %333 = vst [vmem:[#allocation2 + $0x114] sm:$0xf] %v12093_v0  ;;  %v11617_v4 = vld [vmem:[#allocation6 + $0xb8] sm:$0xff]   ;;  %10501 = vmatpush3.bf16.msra.mxu0 %v11616_v3  ;;  %v11621_v8 = vld [vmem:[#allocation6 + $0xb0] sm:$0xff]  }
  0x5e   : > { %334 = vst [vmem:[#allocation2 + $0x118] sm:$0xf] %v12093_v0  ;;  %10613 = vmatpush3.bf16.msra.mxu1 %v11617_v4  ;;  %10502 = vmatprep.subr.bf16.mxu0 %v11618_v5  ;;  %v11623_v10 = vld [vmem:[#allocation6 + $0xe8] sm:$0xff]   ;;  %vm393_vm1 = vsmask.f32 7938  ;;  %v11626_v13 = vld [vmem:[#allocation6 + $0x60] sm:$0xff]  }
  0x5f   : > { %10614 = vmatprep.subr.bf16.mxu1 %v11619_v6  ;;  %v11624_v11 = vld [vmem:[#allocation6 + $0x28] sm:$0xff]   ;;  %v11627_v14 = vld [vmem:[#allocation6 + $0xe0] sm:$0xff]   ;;  %v11630_v17 = vld [vmem:[#allocation6 + $0x58] sm:$0xff]   ;;  %vm336_vm2 = vcmask 1040384   ;;  %v17112_v24 = vmov 0  ;;  %v17115_v25 = vmov 0 }
  0x60   : > { %v11625_v12 = vld [vmem:[#allocation6 + $0xa8] sm:$0xff]   ;;  %v11628_v15 = vld [vmem:[#allocation6 + $0x20] sm:$0xff]   ;;  %v11631_v18 = vld [vmem:[#allocation6 + $0xd8] sm:$0xff]   ;;  %vm577_vm5 = vsmask.f32 4368  ;;  %vm1513_vm6 = vcmask 1042432  }
  0x61   : > { %10503 = vmatpush3.bf16.msra.mxu0 %v11620_v7  ;;  %v11629_v16 = vld [vmem:[#allocation6 + $0xa0] sm:$0xff]   ;;  %v11632_v19 = vld [vmem:[#allocation6 + $0x18] sm:$0xff]   ;;  %v11634_v21 = vld [vmem:[#allocation6 + $0x50] sm:$0xff]   ;;  %vm1514_vm7 = vcmask 1046532   ;;  %vm1062_vm8 = vsmask.f32 3328 }
  0x62   : > { %10615 = vmatpush3.bf16.msra.mxu1 %v11621_v8  ;;  %10504 = vmatprep.subr.bf16.mxu0 %v11622_v9  ;;  %v11633_v20 = vld [vmem:[#allocation6 + $0x98] sm:$0xff]   ;;  %v11635_v22 = vld [vmem:[#allocation6 + $0xd0] sm:$0xff]   ;;  %vm12281_vm3 = vmand %vm336_vm2, %vm337_vm0  ;;  %vm1063_vm9 = vsmask.f32 7440  ;;  %vm900_vm10 = vcmask 1043456   ;;  %v17118_v52 = vmov 0 }
  0x63   : > { %10616 = vmatprep.subr.bf16.mxu1 %v11623_v10  ;;  %v11636_v23 = vld [vmem:[#allocation6 + $0x10] sm:$0xff]   ;;  %v17113_v24 = vsel %vm12281_vm3, 4294967295, %v17112_v24  ;;  %vm12286_vm4 = vmand %vm336_vm2, %vm393_vm1  ;;  %v11638_v27 = vld [vmem:[#allocation6 + $0x48] sm:$0xff]   ;;  %v17121_v2 = vmov 0  ;;  %v17124_v8 = vmov 0  ;;  %s16866_s10 = scalar_lea.vmem [#allocation9], %s9833_s1 }
  0x64   : > { %17114 = vst [vmem:[#allocation13_spill] sm:$0xff] %v17113_v24  ;;  %v17116_v25 = vsel %vm12286_vm4, 4294967295, %v17115_v25  ;;  %v11637_v26 = vld [vmem:[#allocation6 + $0x90] sm:$0xff]   ;;  %v11639_v28 = vld [vmem:[#allocation6 + $0xc8] sm:$0xff]   ;;  %v11642_v31 = vld [vmem:[#allocation6 + $0x40] sm:$0xff]   ;;  %s10499_s29 = sshll.u32 %s12158_s28, 12 }
  0x65   : > { %10505 = vmatpush3.bf16.msra.mxu0 %v11624_v11  ;;  %17117 = vst [vmem:[#allocation14_spill] sm:$0xff] %v17116_v25  ;;  %v11640_v29 = vld [vmem:[#allocation6 + $0x8] sm:$0xff]   ;;  %v11643_v32 = vld [vmem:[#allocation6 + $0xc0] sm:$0xff]   ;;  %v342_v42 = vld [vmem:[#allocation2 + $0x10] sm:$0x1]  ;;  %s9732_s14 = sshll.u32 %s16866_s10, 4  ;;  %s16998_s16 = scalar_lea.hbm %s17062_s7, %s10499_s29  ;;  %s17000_s14 = int_to_ptr.vmem [resolvable:$true] %s9732_s14 }
  0x66   : > { %10617 = vmatpush3.bf16.msra.mxu1 %v11625_v12  ;;  %10506 = vmatprep.subr.bf16.mxu0 %v11626_v13  ;;  %v11641_v30 = vld [vmem:[#allocation6 + $0x88] sm:$0xff]   ;;  %v11644_v33 = vld [vmem:[#allocation6] sm:$0xff]   ;;  %v343_v43 = vsel %vm12281_vm3, 0, %v342_v42  ;;  %vm12307_vm11 = vmor %vm1513_vm6, %vm1514_vm7  ;;  %s12016_s30 = scalar_lea.vmem %s17000_s14, 4096  ;;  %p17440_p10 = scmp.ne.s32.totalorder %s17106_s11, 0 }
  0x67   : > { %10618 = vmatprep.subr.bf16.mxu1 %v11627_v14  ;;  %v11645_v34 = vld [vmem:[#allocation6 + $0x80] sm:$0xff]   ;;  %v395_v36 = vld [vmem:[#allocation2 + $0x8] sm:$0x1]  ;;  %344 = vst [vmem:[#allocation2 + $0x10] sm:$0x1] %v343_v43  ;;  %v17119_v52 = vsel %vm12307_vm11, 4294967295, %v17118_v52  ;;  %vm12316_vm12 = vmand %vm900_vm10, %vm393_vm1  ;;  %p12017_p11 = scmp.ne.s32.totalorder %s17000_s14, %s12016_s30 }
  0x68   : > { %v339_v35 = vld [vmem:[#allocation2] sm:$0x1]  ;;  %v12290_v37 = vld [vmem:[#allocation2 + $0x4] sm:$0xf]  ;;  %v396_v39 = vsel %vm12286_vm4, 0, %v395_v36  ;;  %v450_v45 = vld [vmem:[%s12270_s17 + $0x8] sm:$0xff] }
  0x69   : > { %10507 = vmatpush3.bf16.msra.mxu0 %v11628_v15  ;;  %v340_v38 = vsel %vm12281_vm3, 0, %v339_v35  ;;  %v1075_v40 = vshll.u32 %v12290_v37, 16  ;;  %v1079_v41 = vshrl.u32 %v12290_v37, 16  ;;  %397 = vst [vmem:[#allocation2 + $0x8] sm:$0x1] %v396_v39  ;;  %v449_v44 = vld [vmem:[%s12270_s17] sm:$0xff]  ;;  %v10436_v51 = vpack.c.bf16 %v450_v45, %v450_v45  ;;  %vm12330_vm13 = vmor %vm337_vm0, %vm577_vm5  ;;  %p12018_p1 = pnand %p12017_p11, %p17440_p10 }
  0x6a   : > { %10619 = vmatpush3.bf16.msra.mxu1 %v11629_v16  ;;  %10508 = vmatprep.subr.bf16.mxu0 %v11630_v17  ;;  %341 = vst [vmem:[#allocation2] sm:$0x1] %v340_v38  ;;  %v1449_v46 = vld [vmem:[#allocation2] sm:$0xe]  ;;  %v1518_v47 = vrot.slane %v12290_v37, 5  ;;  %v10435_v50 = vpack.c.bf16 %v449_v44, %v449_v44  ;;  %17120 = vst [vmem:[#allocation15_spill] sm:$0xff] %v17119_v52 }
  0x6b   : > { %10620 = vmatprep.subr.bf16.mxu1 %v11631_v18  ;;  %v12303_v48 = vrot.slane %v1075_v40, 5  ;;  %v1081_v49 = vrot.slane %v1079_v41, 4  ;;  %v9869_v53 = vrot.slane %v1449_v46, 9  ;;  %v11648_v55 = vld [vmem:[#allocation6 + $0x178] sm:$0xff]   ;;  %v588_v59 = vshrl.u32 %v10436_v51, 16  ;;  %v451_v60 = vld [vmem:[%s12270_s17 + $0x10] sm:$0xff]  ;;  %vm12343_vm14 = vmor %vm1062_vm8, %vm1063_vm9  ;;  %p12019_p2 = pneg %p12018_p1 }
  0x6c   : > { %v1520_v54 = vrot.slane %v1518_v47, 4  ;;  %v580_v57 = vshrl.u32 %v10435_v50, 16  ;;  %v583_v58 = vshll.u32 %v10435_v50, 16  ;;  %v591_v61 = vshll.u32 %v10436_v51, 16  ;;  %v398_v62 = vld [vmem:[#allocation2 + $0x18] sm:$0x1] }
  0x6d   : > { %10509 = vmatpush3.bf16.msra.mxu0 %v11632_v19  ;;  %v1082_v56 = vor.u32 %v1081_v49, %v12303_v48  ;;  %v345_v63 = vld [vmem:[#allocation2 + $0x20] sm:$0x1]  ;;  %v452_v0 = vld [vmem:[%s12270_s17 + $0x18] sm:$0xff]  ;;  %v10437_v1 = vpack.c.bf16 %v451_v60, %v451_v60  ;;  %v17122_v2 = vsel %vm12316_vm12, 4294967295, %v17121_v2  ;;  %v590_v4 = vrot.slane %v588_v59, 7  ;;  %v454_v38 = vld [vmem:[%s12270_s17 + $0x28] sm:$0xff] }
  0x6e   : > { %10621 = vmatpush3.bf16.msra.mxu1 %v11633_v20  ;;  %10510 = vmatprep.subr.bf16.mxu0 %v11634_v21  ;;  %17123 = vst [vmem:[#allocation16_spill] sm:$0xff] %v17122_v2  ;;  %v582_v3 = vrot.slane %v580_v57, 7  ;;  %v12322_v5 = vsel %vm12307_vm11, %v9869_v53, %v1518_v47  ;;  %v399_v6 = vsel %vm12286_vm4, 0, %v398_v62  ;;  %v17125_v8 = vsel %vm12330_vm13, 4294967295, %v17124_v8  ;;  %v401_v18 = vld [vmem:[#allocation2 + $0x28] sm:$0x1] }
  0x6f   : > { %10622 = vmatprep.subr.bf16.mxu1 %v11635_v22  ;;  %v12326_v7 = vrot.slane %v1082_v56, 4  ;;  %17126 = vst [vmem:[#allocation17_spill] sm:$0xff] %v17125_v8  ;;  %400 = vst [vmem:[#allocation2 + $0x18] sm:$0x1] %v399_v6  ;;  %v346_v9 = vsel %vm12281_vm3, 0, %v345_v63  ;;  %v10438_v10 = vpack.c.bf16 %v452_v0, %v452_v0  ;;  %v597_v11 = vshrl.u32 %v10437_v1, 16 }
  0x70   : > { %v1046_v13 = vld [vmem:[#allocation2 + $0x8] sm:$0x1]  ;;  %v585_v14 = vor.u32 %v583_v58, %v582_v3  ;;  %v586_v15 = vrot.slane %v582_v3, 4  ;;  %v593_v16 = vor.u32 %v591_v61, %v590_v4  ;;  %347 = vst [vmem:[#allocation2 + $0x20] sm:$0x1] %v346_v9  ;;  %v600_v17 = vshll.u32 %v10437_v1, 16 }
  0x71   : > { %10511 = vmatpush3.bf16.msra.mxu0 %v11636_v23  ;;  %v12336_v12 = vld [vmem:[#allocation2] sm:$0xf]  ;;  %v1085_v21 = vshll.u32 %v1046_v13, 16  ;;  %v1521_v22 = vrot.slane %v1046_v13, 5  ;;  %v902_v23 = vld [vmem:[#allocation2 + $0x10] sm:$0xf] }
  0x72   : > { %10623 = vmatpush3.bf16.msra.mxu1 %v11637_v26  ;;  %10512 = vmatprep.subr.bf16.mxu0 %v11638_v27  ;;  %v1066_v19 = vshrl.u32 %v12336_v12, 16  ;;  %v1069_v20 = vshll.u32 %v12336_v12, 16  ;;  %v348_v26 = vld [vmem:[#allocation2 + $0x30] sm:$0x1]  ;;  %v453_v27 = vld [vmem:[%s12270_s17 + $0x20] sm:$0xff]  ;;  %v9917_v36 = vcombine.low %v12336_v12, %v12290_v37  ;;  %v605_v42 = vshrl.u32 %v10438_v10, 16 }
  0x73   : > { %10624 = vmatprep.subr.bf16.mxu1 %v11639_v28  ;;  %v17127_v28 = vmov 0  ;;  %v1087_v35 = vrot.slane %v1085_v21, 5  ;;  %v12356_v39 = vsel %vm12307_vm11, %v1520_v54, %v1521_v22  ;;  %v608_v45 = vshll.u32 %v10438_v10, 16  ;;  %v404_v47 = vld [vmem:[#allocation2 + $0x38] sm:$0x1]  ;;  %s12094_s9 = smov [#allocation9]  }
  0x74   : > { %v17128_v28 = vsel %vm12343_vm14, 4294967295, %v17127_v28  ;;  %v402_v46 = vsel %vm12286_vm4, 0, %v401_v18  ;;  %v351_v49 = vld [vmem:[#allocation2 + $0x40] sm:$0x1]  ;;  %v12363_v50 = vrot.slane %v605_v42, 7  ;;  %v349_v51 = vsel %vm12281_vm3, 0, %v348_v26 }
  0x75   : > { %10513 = vmatpush3.bf16.msra.mxu0 %v11640_v29  ;;  %17129 = vst [vmem:[#allocation18_spill] sm:$0xff] %v17128_v28  ;;  %v594_v29 = vsel %vm12330_vm13, %v586_v15, %v593_v16  ;;  %v1088_v44 = vsel %vm12343_vm14, %v12326_v7, %v1087_v35  ;;  %403 = vst [vmem:[#allocation2 + $0x28] sm:$0x1] %v402_v46  ;;  %v12367_v53 = vpack.c.bf16 %v453_v27, %v453_v27  ;;  %v11649_v60 = vld [vmem:[#allocation6 + $0x138] sm:$0xff]   ;;  %v11654_v7 = vld [vmem:[#allocation6 + $0x170] sm:$0xff]   ;;  %s12020_s18 = sshll.u32 %s12094_s9, 4  ;;  %s12021_s18 = int_to_ptr.vmem [resolvable:$false] %s12020_s18 }
  0x76   : > { %10625 = vmatpush3.bf16.msra.mxu1 %v11641_v30  ;;  %10514 = vmatprep.subr.bf16.mxu0 %v11642_v31  ;;  %v595_v30 = vrot.slane %v590_v4, 4  ;;  %v903_v31 = vsel %vm12316_vm12, %v585_v14, %v902_v23  ;;  %905 = vst [vmem:[#allocation2 + $0x14] sm:$0xf] %v594_v29  ;;  %v906_v37 = vld [vmem:[#allocation2 + $0x18] sm:$0x1]  ;;  %v12369_v54 = vpack.c.bf16 %v454_v38, %v454_v38  ;;  %v405_v58 = vsel %vm12286_vm4, 0, %v404_v47  ;;  %p12023_p6 = scmp.lt.s32.totalorder %s17000_s14, %s12021_s18 }
  0x77   : > { %10626 = vmatprep.subr.bf16.mxu1 %v11643_v32  ;;  %v599_v32 = vrot.slane %v597_v11, 7  ;;  %904 = vst [vmem:[#allocation2 + $0x10] sm:$0xf] %v903_v31  ;;  %v909_v57 = vld [vmem:[#allocation2 + $0x20] sm:$0xf]  ;;  %v352_v59 = vsel %vm12281_vm3, 0, %v351_v49  ;;  %v610_v61 = vor.u32 %v608_v45, %v12363_v50  ;;  %v9949_v12 = vcombine.low %v12322_v5, %v12356_v39 }
  0x78   : > { %v907_v56 = vsel %vm12281_vm3, %v595_v30, %v906_v37  ;;  %350 = vst [vmem:[#allocation2 + $0x30] sm:$0x1] %v349_v51  ;;  %v612_v62 = vrot.slane %v12363_v50, 4  ;;  %v614_v0 = vshrl.u32 %v12367_v53, 16  ;;  %406 = vst [vmem:[#allocation2 + $0x38] sm:$0x1] %v405_v58 }
  0x79   : > { %10515 = vmatpush3.bf16.msra.mxu0 %v11644_v33  ;;  %v1068_v33 = vrot.slane %v1066_v19, 4  ;;  %v602_v40 = vor.u32 %v600_v17, %v599_v32  ;;  %v603_v41 = vrot.slane %v599_v32, 4  ;;  %908 = vst [vmem:[#allocation2 + $0x18] sm:$0x1] %v907_v56  ;;  %353 = vst [vmem:[#allocation2 + $0x40] sm:$0x1] %v352_v59 }
  0x7a   : > { %10627 = vmatpush3.bf16.msra.mxu1 %v11645_v34  ;;  %10724 = vmatprep.subr.bf16.mxu0 %v11648_v55  ;;  %v1071_v34 = vrot.slane %v1069_v20, 5  ;;  %v617_v3 = vshll.u32 %v12367_v53, 16  ;;  %v622_v4 = vshrl.u32 %v12369_v54, 16  ;;  %v625_v6 = vshll.u32 %v12369_v54, 16  ;;  %v455_v23 = vld [vmem:[%s12270_s17 + $0x30] sm:$0xff]  ;;  %v11661_v58 = vld [vmem:[#allocation6 + $0x128] sm:$0xff]  }
  0x7b   : > { %v910_v63 = vsel %vm12316_vm12, %v602_v40, %v909_v57  ;;  %v11655_v35 = vld [vmem:[#allocation6 + $0x130] sm:$0xff]   ;;  %s12022_s20 = scalar_lea.vmem %s12021_s18, 8192 }
  0x7c   : > { %v1072_v43 = vor.u32 %v1071_v34, %v1068_v33  ;;  %911 = vst [vmem:[#allocation2 + $0x20] sm:$0xf] %v910_v63  ;;  %v913_v42 = vld [vmem:[#allocation2 + $0x28] sm:$0x1]  ;;  %p12024_p12 = scmp.lt.s32.totalorder %s12022_s20, %s12016_s30 }
  0x7d   : > { %v1629_v11 = vld [vmem:[#allocation2 + $0x14] sm:$0xf] }
  0x7e   : > { %v1073_v55 = vrot.slane %v1072_v43, 4  ;;  %v1628_v10 = vld [vmem:[#allocation2 + $0x10] sm:$0xf]  ;;  %v1686_v16 = vshll.u32 %v1629_v11, 16  ;;  %v1690_v17 = vshrl.u32 %v1629_v11, 16  ;;  %v12404_v43 = vpack.c.bf16 %v455_v23, %v455_v23  ;;  %p12025_p7 = por %p12024_p12, %p12023_p6 }
  0x7f   : > { %v12390_v13 = vld [vmem:[#allocation2 + $0x10] sm:$0xf]  ;;  %v1677_v14 = vshrl.u32 %v1628_v10, 16  ;;  %v1680_v15 = vshll.u32 %v1628_v10, 16  ;;  %v12394_v18 = vld [vmem:[#allocation2 + $0x14] sm:$0xf]  ;;  %v9965_v19 = vcombine.low %v1628_v10, %v1629_v11 }
  0x80   : > { %v1078_v1 = vsel %vm12343_vm14, %v1073_v55, %v12303_v48  ;;  %v611_v48 = vsel %vm12330_vm13, %v603_v41, %v610_v61  ;;  %v1090_v20 = vshrl.u32 %v12390_v13, 16  ;;  %v1093_v21 = vshll.u32 %v12390_v13, 16  ;;  %v1450_v22 = vld [vmem:[#allocation2 + $0x10] sm:$0xe]  ;;  %v1047_v40 = vld [vmem:[#allocation2 + $0x18] sm:$0x1]  ;;  %p12026_p9 = pnand %p12025_p7, %p12019_p2 }
  0x81   : > { %v9933_v9 = vcombine.low %v1078_v1, %v1088_v44  ;;  %912 = vst [vmem:[#allocation2 + $0x24] sm:$0xf] %v611_v48  ;;  %v1099_v5 = vshll.u32 %v12394_v18, 16  ;;  %v1679_v26 = vrot.slane %v1677_v14, 4  ;;  %v1682_v27 = vrot.slane %v1680_v15, 5  ;;  %4238 = vmatprep.mubr.bf16.mxu1 %v9965_v19  ;;  %v11660_v44 = vld [vmem:[#allocation6 + $0x168] sm:$0xff]  }
  0x82   : > { %v12400_v29 = vrot.slane %v1686_v16, 5  ;;  %v1692_v30 = vrot.slane %v1690_v17, 4  ;;  %v1092_v31 = vrot.slane %v1090_v20, 4  ;;  %v1095_v32 = vrot.slane %v1093_v21, 5  ;;  %4239 = vmatmul.mubr.bf16.vlgmr.msra.gmra.mxu1 %v9949_v12 }
  0x83   : > { %4077 = vmatprep.mubr.bf16.mxu0 %v9933_v9  ;;  %v1101_v33 = vrot.slane %v1099_v5, 5  ;;  %v1103_v34 = vshrl.u32 %v12394_v18, 16  ;;  %v1683_v38 = vor.u32 %v1682_v27, %v1679_v26  ;;  %v9870_v41 = vrot.slane %v1450_v22, 9  ;;  %v12406_v47 = vld [vmem:[#allocation2 + $0x20] sm:$0xf] }
  0x84   : > { %4078 = vmatmul.mubr.bf16.vlgmr.msra.gmra.mxu0 %v9917_v36  ;;  %v1693_v39 = vor.u32 %v1692_v30, %v12400_v29  ;;  %v1096_v36 = vor.u32 %v1095_v32, %v1092_v31  ;;  %v1109_v46 = vshll.u32 %v1047_v40, 16  ;;  %v1525_v49 = vrot.slane %v12394_v18, 5  ;;  %v12416_v57 = vld [vmem:[#allocation2 + $0x20] sm:$0xf]  ;;  %v916_v22 = vld [vmem:[#allocation2 + $0x30] sm:$0xf] }
  0x85   : > { %10725 = vmatpush3.bf16.msra.mxu0 %v11649_v60  ;;  %v1105_v45 = vrot.slane %v1103_v34, 4  ;;  %v12409_v37 = vrot.slane %v1683_v38, 4  ;;  %v1701_v55 = vshrl.u32 %v12406_v47, 16  ;;  %v9918_v56 = vcombine.low %v12390_v13, %v12394_v18  ;;  %v456_v18 = vld [vmem:[%s12270_s17 + $0x38] sm:$0xff] }
  0x86   : > { %10726 = vmatprep.subr.bf16.mxu0 %v11654_v7  ;;  %v12411_v51 = vrot.slane %v1693_v39, 4  ;;  %v1097_v59 = vrot.slane %v1096_v36, 4  ;;  %v1111_v61 = vrot.slane %v1109_v46, 5  ;;  %v1526_v1 = vsel %vm12307_vm11, %v9870_v41, %v1525_v49  ;;  %v920_v34 = vld [vmem:[#allocation2 + $0x38] sm:$0x1] }
  0x87   : > { %v1106_v60 = vor.u32 %v1105_v45, %v1101_v33  ;;  %v1527_v10 = vrot.slane %v1525_v49, 4  ;;  %v1528_v11 = vrot.slane %v1047_v40, 5  ;;  %v914_v12 = vsel %vm12281_vm3, %v612_v62, %v913_v42  ;;  %v354_v41 = vld [vmem:[#allocation2 + $0x50] sm:$0x1]  ;;  %v11666_v42 = vld [vmem:[#allocation6 + $0x160] sm:$0xff]  }
  0x88   : > { %v1631_v63 = vld [vmem:[#allocation2 + $0x24] sm:$0xf]  ;;  %v1102_v13 = vsel %vm12343_vm14, %v1097_v59, %v1101_v33  ;;  %915 = vst [vmem:[#allocation2 + $0x28] sm:$0x1] %v914_v12  ;;  %v1114_v14 = vshrl.u32 %v12416_v57, 16  ;;  %v1117_v15 = vshll.u32 %v12416_v57, 16 }
  0x89   : > { %v12420_v7 = vld [vmem:[#allocation2 + $0x24] sm:$0xf]  ;;  %10727 = vmatpush3.bf16.msra.mxu0 %v11655_v35  ;;  %v9966_v9 = vcombine.low %v12406_v47, %v1631_v63  ;;  %v1107_v48 = vrot.slane %v1106_v60, 4  ;;  %v1529_v16 = vsel %vm12307_vm11, %v1527_v10, %v1528_v11  ;;  %v616_v62 = vrot.slane %v614_v0, 7  ;;  %v1451_v33 = vld [vmem:[#allocation2 + $0x20] sm:$0xe] }
  0x8a   : > { %10728 = vmatprep.subr.bf16.mxu0 %v11660_v44  ;;  %v1123_v17 = vshll.u32 %v12420_v7, 16  ;;  %v1127_v50 = vshrl.u32 %v12420_v7, 16  ;;  %v9950_v20 = vcombine.low %v1526_v1, %v1529_v16  ;;  %v1116_v21 = vrot.slane %v1114_v14, 4  ;;  %v11667_v44 = vld [vmem:[#allocation6 + $0x120] sm:$0xff]  }
  0x8b   : > { %4246 = vmatprep.mubr.bf16.mxu1 %v9966_v9  ;;  %v1112_v19 = vsel %vm12343_vm14, %v1107_v48, %v1111_v61  ;;  %v1119_v5 = vrot.slane %v1117_v15, 5  ;;  %v619_v30 = vor.u32 %v617_v3, %v616_v62  ;;  %v620_v32 = vrot.slane %v616_v62, 4  ;;  %v407_v3 = vld [vmem:[#allocation2 + $0x48] sm:$0x1] }
  0x8c   : > { %v9934_v23 = vcombine.low %v1102_v13, %v1112_v19  ;;  %v12440_v26 = vrot.slane %v1123_v17, 5  ;;  %v1129_v27 = vrot.slane %v1127_v50, 4  ;;  %4247 = vmatmul.mubr.bf16.gmra.mxu1 %v9950_v20  ;;  %v624_v0 = vrot.slane %v622_v4, 7  ;;  %v923_v13 = vld [vmem:[#allocation2 + $0x40] sm:$0xf]  ;;  %v458_v62 = vld [vmem:[%s12270_s17 + $0x48] sm:$0xff] }
  0x8d   : > { %10729 = vmatpush3.bf16.msra.mxu0 %v11661_v58  ;;  %v1120_v31 = vor.u32 %v1119_v5, %v1116_v21  ;;  %v10442_v35 = vpack.c.bf16 %v456_v18, %v456_v18  ;;  %v1704_v38 = vshll.u32 %v12406_v47, 16  ;;  %v917_v40 = vsel %vm12316_vm12, %v619_v30, %v916_v22  ;;  %v459_v5 = vld [vmem:[%s12270_s17 + $0x50] sm:$0xff]  ;;  %v11672_v22 = vld [vmem:[#allocation6 + $0x158] sm:$0xff]  }
  0x8e   : > { %4085 = vmatprep.mubr.bf16.mxu0 %v9934_v23  ;;  %v1130_v39 = vor.u32 %v1129_v27, %v12440_v26  ;;  %v1532_v53 = vrot.slane %v12420_v7, 5  ;;  %v627_v4 = vor.u32 %v625_v6, %v624_v0  ;;  %v629_v45 = vrot.slane %v624_v0, 4  ;;  %918 = vst [vmem:[#allocation2 + $0x30] sm:$0xf] %v917_v40  ;;  %10730 = vmatprep.subr.bf16.mxu0 %v11666_v42  ;;  %v11673_v0 = vld [vmem:[#allocation6 + $0x1f8] sm:$0xff]  }
  0x8f   : > { %4086 = vmatmul.mubr.bf16.gmra.mxu0 %v9918_v56  ;;  %v1121_v36 = vrot.slane %v1120_v31, 4  ;;  %v631_v46 = vshrl.u32 %v12404_v43, 16  ;;  %v1048_v49 = vld [vmem:[#allocation2 + $0x28] sm:$0x1]  ;;  %v9919_v59 = vcombine.low %v12416_v57, %v12420_v7  ;;  %v9871_v60 = vrot.slane %v1451_v33, 9  ;;  %v457_v57 = vld [vmem:[%s12270_s17 + $0x40] sm:$0xff]  ;;  %10836 = vmatprep.subr.bf16.mxu1 %v11673_v0 }
  0x90   : > { %v1131_v58 = vrot.slane %v1130_v39, 4  ;;  %v634_v61 = vshll.u32 %v12404_v43, 16  ;;  %v1133_v63 = vshll.u32 %v1048_v49, 16  ;;  %v628_v56 = vsel %vm12330_vm13, %v620_v32, %v627_v4  ;;  %v410_v7 = vld [vmem:[#allocation2 + $0x58] sm:$0x1] }
  0x91   : > { %v1534_v54 = vrot.slane %v1532_v53, 4  ;;  %v1535_v6 = vrot.slane %v1048_v49, 5  ;;  %10731 = vmatpush3.bf16.msra.mxu0 %v11667_v44  ;;  %919 = vst [vmem:[#allocation2 + $0x34] sm:$0xf] %v628_v56  ;;  %v921_v1 = vsel %vm12281_vm3, %v629_v45, %v920_v34  ;;  %v633_v9 = vrot.slane %v631_v46, 7  ;;  %v11674_v44 = vld [vmem:[#allocation6 + $0x118] sm:$0xff]  }
  0x92   : > { %v639_v10 = vshrl.u32 %v10442_v35, 16  ;;  %v642_v11 = vshll.u32 %v10442_v35, 16  ;;  %v1126_v43 = vsel %vm12343_vm14, %v1121_v36, %v12440_v26  ;;  %v1135_v12 = vrot.slane %v1133_v63, 5  ;;  %922 = vst [vmem:[#allocation2 + $0x38] sm:$0x1] %v921_v1  ;;  %10732 = vmatprep.subr.bf16.mxu0 %v11672_v22 }
  0x93   : > { %v408_v48 = vsel %vm12286_vm4, 0, %v407_v3  ;;  %v355_v14 = vsel %vm12281_vm3, 0, %v354_v41  ;;  %v1533_v15 = vsel %vm12307_vm11, %v9871_v60, %v1532_v53  ;;  %v636_v16 = vor.u32 %v634_v61, %v633_v9 }
  0x94   : > { %v637_v17 = vrot.slane %v633_v9, 4  ;;  %v641_v50 = vrot.slane %v639_v10, 7  ;;  %409 = vst [vmem:[#allocation2 + $0x48] sm:$0x1] %v408_v48  ;;  %356 = vst [vmem:[#allocation2 + $0x50] sm:$0x1] %v355_v14  ;;  %v1136_v18 = vsel %vm12343_vm14, %v1131_v58, %v1135_v12  ;;  %v1536_v19 = vsel %vm12307_vm11, %v1534_v54, %v1535_v6 }
  0x95   : > { %v12476_v20 = vpack.c.bf16 %v457_v57, %v457_v57  ;;  %v411_v21 = vsel %vm12286_vm4, 0, %v410_v7  ;;  %v9935_v23 = vcombine.low %v1126_v43, %v1136_v18  ;;  %v12481_v26 = vld [vmem:[#allocation2 + $0x30] sm:$0xf]  ;;  %v924_v32 = vsel %vm12316_vm12, %v636_v16, %v923_v13  ;;  %10733 = vmatpush3.bf16.msra.mxu0 %v11674_v44 }
  0x96   : > { %v12483_v27 = vld [vmem:[#allocation2 + $0x30] sm:$0xf]  ;;  %v644_v30 = vor.u32 %v642_v11, %v641_v50  ;;  %v646_v31 = vrot.slane %v641_v50, 4  ;;  %412 = vst [vmem:[#allocation2 + $0x58] sm:$0x1] %v411_v21  ;;  %v9951_v4 = vcombine.low %v1533_v15, %v1536_v19  ;;  %v12497_v58 = vpack.c.bf16 %v458_v62, %v458_v62  ;;  %v11675_v11 = vld [vmem:[#allocation6 + $0x1b8] sm:$0xff]  }
  0x97   : > { %v1138_v35 = vshrl.u32 %v12483_v27, 16  ;;  %v1141_v39 = vshll.u32 %v12483_v27, 16  ;;  %925 = vst [vmem:[#allocation2 + $0x40] sm:$0xf] %v924_v32  ;;  %v1452_v40 = vld [vmem:[#allocation2 + $0x30] sm:$0xe]  ;;  %4093 = vmatprep.mubr.bf16.mxu0 %v9935_v23  ;;  %v12502_v54 = vpack.c.bf16 %v459_v5, %v459_v5  ;;  %10837 = vmatpush3.bf16.msra.mxu1 %v11675_v11 }
  0x98   : > { %v645_v53 = vsel %vm12330_vm13, %v637_v17, %v644_v30  ;;  %v9872_v3 = vrot.slane %v1452_v40, 9  ;;  %v648_v41 = vshrl.u32 %v12476_v20, 16  ;;  %v651_v42 = vshll.u32 %v12476_v20, 16  ;;  %v1633_v36 = vld [vmem:[#allocation2 + $0x34] sm:$0xf]  ;;  %4094 = vmatmul.mubr.bf16.gmra.mxu0 %v9919_v59  ;;  %v460_v11 = vld [vmem:[%s12270_s17 + $0x58] sm:$0xff] }
  0x99   : > { %v12495_v45 = vld [vmem:[#allocation2 + $0x34] sm:$0xf]  ;;  %v1140_v46 = vrot.slane %v1138_v35, 4  ;;  %v1143_v49 = vrot.slane %v1141_v39, 5  ;;  %926 = vst [vmem:[#allocation2 + $0x44] sm:$0xf] %v645_v53  ;;  %v9967_v60 = vcombine.low %v12481_v26, %v1633_v36 }
  0x9a   : > { %v1049_v61 = vld [vmem:[#allocation2 + $0x38] sm:$0x1]  ;;  %v1147_v63 = vshll.u32 %v12495_v45, 16  ;;  %v1151_v56 = vshrl.u32 %v12495_v45, 16  ;;  %v1539_v1 = vrot.slane %v12495_v45, 5  ;;  %v650_v12 = vrot.slane %v648_v41, 7 }
  0x9b   : > { %v1144_v6 = vor.u32 %v1143_v49, %v1140_v46  ;;  %v1157_v59 = vshll.u32 %v1049_v61, 16  ;;  %v1542_v9 = vrot.slane %v1049_v61, 5  ;;  %v927_v10 = vld [vmem:[#allocation2 + $0x48] sm:$0x1]  ;;  %4254 = vmatprep.mubr.bf16.mxu1 %v9967_v60  ;;  %v9920_v48 = vcombine.low %v12483_v27, %v12495_v45  ;;  %v930_v16 = vld [vmem:[#allocation2 + $0x50] sm:$0xf] }
  0x9c   : > { %v1149_v57 = vrot.slane %v1147_v63, 5  ;;  %v1153_v7 = vrot.slane %v1151_v56, 4  ;;  %v928_v43 = vsel %vm12281_vm3, %v646_v31, %v927_v10  ;;  %4255 = vmatmul.mubr.bf16.gmra.mxu1 %v9951_v4  ;;  %v1540_v14 = vsel %vm12307_vm11, %v9872_v3, %v1539_v1  ;;  %v11680_v56 = vld [vmem:[#allocation6 + $0x150] sm:$0xff]  }
  0x9d   : > { %v1145_v13 = vrot.slane %v1144_v6, 4  ;;  %v1541_v15 = vrot.slane %v1539_v1, 4  ;;  %929 = vst [vmem:[#allocation2 + $0x48] sm:$0x1] %v928_v43  ;;  %v1159_v50 = vrot.slane %v1157_v59, 5  ;;  %v653_v19 = vor.u32 %v651_v42, %v650_v12  ;;  %10734 = vmatprep.subr.bf16.mxu0 %v11680_v56 }
  0x9e   : > { %v1154_v17 = vor.u32 %v1153_v7, %v1149_v57  ;;  %v12511_v62 = vld [vmem:[#allocation2 + $0x40] sm:$0xf]  ;;  %v656_v20 = vshrl.u32 %v12497_v58, 16  ;;  %v654_v23 = vrot.slane %v650_v12, 4  ;;  %v659_v45 = vshll.u32 %v12497_v58, 16 }
  0x9f   : > { %v12513_v18 = vld [vmem:[#allocation2 + $0x40] sm:$0xf]  ;;  %v1150_v21 = vsel %vm12343_vm14, %v1145_v13, %v1149_v57  ;;  %v1543_v22 = vsel %vm12307_vm11, %v1541_v15, %v1542_v9  ;;  %v931_v39 = vsel %vm12316_vm12, %v653_v19, %v930_v16  ;;  %v934_v63 = vld [vmem:[#allocation2 + $0x58] sm:$0x1] }
  0xa0   : > { %v1453_v27 = vld [vmem:[#allocation2 + $0x40] sm:$0xe]  ;;  %v1155_v30 = vrot.slane %v1154_v17, 4  ;;  %v1635_v31 = vld [vmem:[#allocation2 + $0x44] sm:$0xf]  ;;  %v9952_v32 = vcombine.low %v1540_v14, %v1543_v22  ;;  %v1162_v35 = vshrl.u32 %v12513_v18, 16 }
  0xa1   : > { %v12521_v0 = vld [vmem:[#allocation2 + $0x44] sm:$0xf]  ;;  %v9968_v40 = vcombine.low %v12511_v62, %v1635_v31  ;;  %v1165_v53 = vshll.u32 %v12513_v18, 16  ;;  %932 = vst [vmem:[#allocation2 + $0x50] sm:$0xf] %v931_v39  ;;  %v658_v4 = vrot.slane %v656_v20, 7 }
  0xa2   : > { %v1171_v3 = vshll.u32 %v12521_v0, 16  ;;  %v1175_v41 = vshrl.u32 %v12521_v0, 16  ;;  %v357_v42 = vld [vmem:[#allocation2 + $0x60] sm:$0x1]  ;;  %v1160_v44 = vsel %vm12343_vm14, %v1155_v30, %v1159_v50  ;;  %v1164_v36 = vrot.slane %v1162_v35, 4  ;;  %v11681_v20 = vld [vmem:[#allocation6 + $0x1f0] sm:$0xff]  }
  0xa3   : > { %v9936_v46 = vcombine.low %v1150_v21, %v1160_v44  ;;  %4262 = vmatprep.mubr.bf16.mxu1 %v9968_v40  ;;  %v1167_v49 = vrot.slane %v1165_v53, 5  ;;  %v661_v1 = vor.u32 %v659_v45, %v658_v4  ;;  %v663_v9 = vrot.slane %v658_v4, 4  ;;  %v461_v12 = vld [vmem:[%s12270_s17 + $0x60] sm:$0xff]  ;;  %10838 = vmatprep.subr.bf16.mxu1 %v11681_v20 }
  0xa4   : > { %v1173_v60 = vrot.slane %v1171_v3, 5  ;;  %v1177_v61 = vrot.slane %v1175_v41, 4  ;;  %v1050_v59 = vld [vmem:[#allocation2 + $0x48] sm:$0x1]  ;;  %v9873_v10 = vrot.slane %v1453_v27, 9  ;;  %4263 = vmatmul.mubr.bf16.gmra.mxu1 %v9952_v32  ;;  %v1546_v43 = vrot.slane %v12521_v0, 5 }
  0xa5   : > { %4101 = vmatprep.mubr.bf16.mxu0 %v9936_v46  ;;  %v1168_v57 = vor.u32 %v1167_v49, %v1164_v36  ;;  %v1181_v58 = vshll.u32 %v1050_v59, 16  ;;  %v662_v13 = vsel %vm12330_vm13, %v654_v23, %v661_v1  ;;  %v1549_v14 = vrot.slane %v1050_v59, 5  ;;  %v413_v32 = vld [vmem:[#allocation2 + $0x68] sm:$0x1]  ;;  %v463_v3 = vld [vmem:[%s12270_s17 + $0x70] sm:$0xff] }
  0xa6   : > { %v1178_v7 = vor.u32 %v1177_v61, %v1173_v60  ;;  %4102 = vmatmul.mubr.bf16.gmra.mxu0 %v9920_v48  ;;  %v935_v15 = vsel %vm12281_vm3, %v663_v9, %v934_v63  ;;  %v358_v16 = vsel %vm12281_vm3, 0, %v357_v42  ;;  %933 = vst [vmem:[#allocation2 + $0x54] sm:$0xf] %v662_v13  ;;  %v10446_v48 = vpack.c.bf16 %v460_v11, %v460_v11 }
  0xa7   : > { %v1169_v17 = vrot.slane %v1168_v57, 4  ;;  %v1183_v19 = vrot.slane %v1181_v58, 5  ;;  %936 = vst [vmem:[#allocation2 + $0x58] sm:$0x1] %v935_v15  ;;  %359 = vst [vmem:[#allocation2 + $0x60] sm:$0x1] %v358_v16  ;;  %v9921_v22 = vcombine.low %v12513_v18, %v12521_v0  ;;  %v1547_v23 = vsel %vm12307_vm11, %v9873_v10, %v1546_v43 }
  0xa8   : > { %v1179_v50 = vrot.slane %v1178_v7, 4  ;;  %v12543_v21 = vld [vmem:[#allocation2 + $0x50] sm:$0xf]  ;;  %v1548_v27 = vrot.slane %v1546_v43, 4  ;;  %v665_v31 = vshrl.u32 %v12502_v54, 16  ;;  %v462_v0 = vld [vmem:[%s12270_s17 + $0x68] sm:$0xff]  ;;  %v12564_v36 = vpack.c.bf16 %v461_v12, %v461_v12 }
  0xa9   : > { %v12549_v30 = vld [vmem:[#allocation2 + $0x50] sm:$0xf]  ;;  %v1174_v35 = vsel %vm12343_vm14, %v1169_v17, %v1173_v60  ;;  %v668_v46 = vshll.u32 %v12502_v54, 16  ;;  %v673_v49 = vshrl.u32 %v10446_v48, 16  ;;  %v676_v56 = vshll.u32 %v10446_v48, 16  ;;  %v464_v7 = vld [vmem:[%s12270_s17 + $0x78] sm:$0xff] }
  0xaa   : > { %v1184_v39 = vsel %vm12343_vm14, %v1179_v50, %v1183_v19  ;;  %v12558_v18 = vld [vmem:[#allocation2 + $0x50] sm:$0xe]  ;;  %v1186_v42 = vshrl.u32 %v12549_v30, 16  ;;  %v1189_v44 = vshll.u32 %v12549_v30, 16  ;;  %v1550_v4 = vsel %vm12307_vm11, %v1548_v27, %v1549_v14  ;;  %v360_v57 = vld [vmem:[#allocation2 + $0x70] sm:$0x1] }
  0xab   : > { %v9937_v41 = vcombine.low %v1174_v35, %v1184_v39  ;;  %v667_v45 = vrot.slane %v665_v31, 7  ;;  %v11682_v60 = vld [vmem:[#allocation6 + $0x110] sm:$0xff]   ;;  %v9874_v59 = vrot.slane %v12558_v18, 9  ;;  %v675_v10 = vrot.slane %v673_v49, 7 }
  0xac   : > { %v1188_v61 = vrot.slane %v1186_v42, 4  ;;  %v1191_v63 = vrot.slane %v1189_v44, 5  ;;  %v414_v11 = vsel %vm12286_vm4, 0, %v413_v32  ;;  %10735 = vmatpush3.bf16.msra.mxu0 %v11682_v60  ;;  %v11683_v58 = vld [vmem:[#allocation6 + $0x1b0] sm:$0xff]   ;;  %v9953_v54 = vcombine.low %v1547_v23, %v1550_v4  ;;  %v363_v4 = vld [vmem:[#allocation2 + $0x80] sm:$0x1] }
  0xad   : > { %4109 = vmatprep.mubr.bf16.mxu0 %v9937_v41  ;;  %v670_v1 = vor.u32 %v668_v46, %v667_v45  ;;  %v671_v9 = vrot.slane %v667_v45, 4  ;;  %v1637_v43 = vld [vmem:[#allocation2 + $0x54] sm:$0xf]  ;;  %415 = vst [vmem:[#allocation2 + $0x68] sm:$0x1] %v414_v11  ;;  %v12575_v15 = vpack.c.bf16 %v462_v0, %v462_v0  ;;  %v12577_v16 = vpack.c.bf16 %v463_v3, %v463_v3  ;;  %v11688_v45 = vld [vmem:[#allocation6 + $0x148] sm:$0xff]  }
  0xae   : > { %4110 = vmatmul.mubr.bf16.gmra.mxu0 %v9921_v22  ;;  %v12573_v12 = vld [vmem:[#allocation2 + $0x54] sm:$0xf]  ;;  %v1051_v13 = vld [vmem:[#allocation2 + $0x58] sm:$0x1]  ;;  %v1192_v14 = vor.u32 %v1191_v63, %v1188_v61  ;;  %v9969_v17 = vcombine.low %v12543_v21, %v1637_v43  ;;  %v937_v20 = vld [vmem:[#allocation2 + $0x60] sm:$0xf]  ;;  %10839 = vmatpush3.bf16.msra.mxu1 %v11683_v58  ;;  %v678_v23 = vor.u32 %v676_v56, %v675_v10 }
  0xaf   : > { %v1195_v50 = vshll.u32 %v12573_v12, 16  ;;  %v1199_v19 = vshrl.u32 %v12573_v12, 16  ;;  %v1205_v48 = vshll.u32 %v1051_v13, 16  ;;  %v938_v27 = vsel %vm12316_vm12, %v670_v1, %v937_v20  ;;  %v416_v0 = vld [vmem:[#allocation2 + $0x78] sm:$0x1]  ;;  %10736 = vmatprep.subr.bf16.mxu0 %v11688_v45  ;;  %v465_v58 = vld [vmem:[%s12270_s17 + $0x80] sm:$0xff] }
  0xb0   : > { %v1193_v22 = vrot.slane %v1192_v14, 4  ;;  %v12584_v31 = vpack.c.bf16 %v464_v7, %v464_v7  ;;  %4270 = vmatprep.mubr.bf16.mxu1 %v9969_v17  ;;  %v680_v18 = vrot.slane %v675_v10, 4  ;;  %939 = vst [vmem:[#allocation2 + $0x60] sm:$0xf] %v938_v27  ;;  %v679_v3 = vsel %vm12330_vm13, %v671_v9, %v678_v23  ;;  %v11689_v10 = vld [vmem:[#allocation6 + $0x1e8] sm:$0xff]  }
  0xb1   : > { %v1197_v32 = vrot.slane %v1195_v50, 5  ;;  %v1201_v35 = vrot.slane %v1199_v19, 4  ;;  %v1207_v39 = vrot.slane %v1205_v48, 5  ;;  %4271 = vmatmul.mubr.bf16.gmra.mxu1 %v9953_v54  ;;  %v1553_v41 = vrot.slane %v12573_v12, 5  ;;  %940 = vst [vmem:[#allocation2 + $0x64] sm:$0xf] %v679_v3  ;;  %10840 = vmatprep.subr.bf16.mxu1 %v11689_v10 }
  0xb2   : > { %v1556_v42 = vrot.slane %v1051_v13, 5  ;;  %v361_v44 = vsel %vm12281_vm3, 0, %v360_v57  ;;  %v9922_v49 = vcombine.low %v12549_v30, %v12573_v12  ;;  %v682_v60 = vshrl.u32 %v12564_v36, 16  ;;  %v466_v43 = vld [vmem:[%s12270_s17 + $0x88] sm:$0xff]  ;;  %v467_v48 = vld [vmem:[%s12270_s17 + $0x90] sm:$0xff] }
  0xb3   : > { %v1202_v46 = vor.u32 %v1201_v35, %v1197_v32  ;;  %362 = vst [vmem:[#allocation2 + $0x70] sm:$0x1] %v361_v44  ;;  %v685_v61 = vshll.u32 %v12564_v36, 16  ;;  %v1198_v63 = vsel %vm12343_vm14, %v1193_v22, %v1197_v32  ;;  %v1555_v56 = vrot.slane %v1553_v41, 4  ;;  %v11691_v10 = vld [vmem:[#allocation6 + $0x1a8] sm:$0xff]  }
  0xb4   : > { %v690_v1 = vshrl.u32 %v12575_v15, 16  ;;  %v693_v9 = vshll.u32 %v12575_v15, 16  ;;  %v941_v57 = vld [vmem:[#allocation2 + $0x68] sm:$0x1]  ;;  %v684_v7 = vrot.slane %v682_v60, 7  ;;  %v417_v30 = vsel %vm12286_vm4, 0, %v416_v0  ;;  %10841 = vmatpush3.bf16.msra.mxu1 %v11691_v10 }
  0xb5   : > { %v1203_v11 = vrot.slane %v1202_v46, 4  ;;  %v364_v36 = vsel %vm12281_vm3, 0, %v363_v4  ;;  %v1554_v54 = vsel %vm12307_vm11, %v9874_v59, %v1553_v41  ;;  %v942_v12 = vsel %vm12281_vm3, %v680_v18, %v941_v57  ;;  %418 = vst [vmem:[#allocation2 + $0x78] sm:$0x1] %v417_v30  ;;  %v11690_v59 = vld [vmem:[#allocation6 + $0x108] sm:$0xff]  }
  0xb6   : > { %v692_v13 = vrot.slane %v690_v1, 7  ;;  %365 = vst [vmem:[#allocation2 + $0x80] sm:$0x1] %v364_v36  ;;  %v699_v14 = vshrl.u32 %v12577_v16, 16  ;;  %v1557_v17 = vsel %vm12307_vm11, %v1555_v56, %v1556_v42  ;;  %943 = vst [vmem:[#allocation2 + $0x68] sm:$0x1] %v942_v12  ;;  %v687_v50 = vor.u32 %v685_v61, %v684_v7  ;;  %10737 = vmatpush3.bf16.msra.mxu0 %v11690_v59 }
  0xb7   : > { %v1208_v15 = vsel %vm12343_vm14, %v1203_v11, %v1207_v39  ;;  %v688_v19 = vrot.slane %v684_v7, 4  ;;  %v12615_v22 = vld [vmem:[#allocation2 + $0x60] sm:$0xf]  ;;  %v9954_v44 = vcombine.low %v1554_v54, %v1557_v17  ;;  %v12629_v60 = vpack.c.bf16 %v465_v58, %v465_v58  ;;  %v419_v30 = vld [vmem:[#allocation2 + $0x88] sm:$0x1]  ;;  %v468_v36 = vld [vmem:[%s12270_s17 + $0x98] sm:$0xff] }
  0xb8   : > { %v9938_v20 = vcombine.low %v1198_v63, %v1208_v15  ;;  %v12617_v23 = vld [vmem:[#allocation2 + $0x60] sm:$0xf]  ;;  %v695_v27 = vor.u32 %v693_v9, %v692_v13  ;;  %v697_v32 = vrot.slane %v692_v13, 4  ;;  %v12619_v35 = vrot.slane %v699_v14, 7  ;;  %v1639_v42 = vld [vmem:[#allocation2 + $0x64] sm:$0xf] }
  0xb9   : > { %v1210_v0 = vshrl.u32 %v12617_v23, 16  ;;  %v1213_v3 = vshll.u32 %v12617_v23, 16  ;;  %v1455_v41 = vld [vmem:[#allocation2 + $0x60] sm:$0xe]  ;;  %v12625_v4 = vld [vmem:[#allocation2 + $0x64] sm:$0xf]  ;;  %v12631_v61 = vpack.c.bf16 %v466_v43, %v466_v43  ;;  %v9970_v63 = vcombine.low %v12615_v22, %v1639_v42 }
  0xba   : > { %4117 = vmatprep.mubr.bf16.mxu0 %v9938_v20  ;;  %v696_v45 = vsel %vm12330_vm13, %v688_v19, %v695_v27  ;;  %v944_v46 = vld [vmem:[#allocation2 + $0x70] sm:$0xf]  ;;  %v1219_v9 = vshll.u32 %v12625_v4, 16  ;;  %v1223_v11 = vshrl.u32 %v12625_v4, 16  ;;  %v9875_v7 = vrot.slane %v1455_v41, 9 }
  0xbb   : > { %4118 = vmatmul.mubr.bf16.gmra.mxu0 %v9922_v49  ;;  %v1212_v56 = vrot.slane %v1210_v0, 4  ;;  %v1215_v1 = vrot.slane %v1213_v3, 5  ;;  %947 = vst [vmem:[#allocation2 + $0x74] sm:$0xf] %v696_v45  ;;  %v945_v57 = vsel %vm12316_vm12, %v687_v50, %v944_v46  ;;  %v12639_v58 = vpack.c.bf16 %v467_v48, %v467_v48  ;;  %4278 = vmatprep.mubr.bf16.mxu1 %v9970_v63 }
  0xbc   : > { %v1221_v54 = vrot.slane %v1219_v9, 5  ;;  %946 = vst [vmem:[#allocation2 + $0x70] sm:$0xf] %v945_v57  ;;  %v1560_v49 = vrot.slane %v12625_v4, 5  ;;  %v948_v12 = vld [vmem:[#allocation2 + $0x78] sm:$0x1]  ;;  %4279 = vmatmul.mubr.bf16.gmra.mxu1 %v9954_v44  ;;  %v12647_v0 = vpack.c.bf16 %v468_v36, %v468_v36 }
  0xbd   : > { %v1216_v43 = vor.u32 %v1215_v1, %v1212_v56  ;;  %v702_v13 = vshll.u32 %v12577_v16, 16  ;;  %v1052_v14 = vld [vmem:[#allocation2 + $0x68] sm:$0x1]  ;;  %v1225_v15 = vrot.slane %v1223_v11, 4  ;;  %v949_v17 = vsel %vm12281_vm3, %v697_v32, %v948_v12  ;;  %v951_v27 = vld [vmem:[#allocation2 + $0x80] sm:$0xf] }
  0xbe   : > { %v705_v50 = vrot.slane %v12619_v35, 4  ;;  %v707_v19 = vshrl.u32 %v12584_v31, 16  ;;  %v1229_v59 = vshll.u32 %v1052_v14, 16  ;;  %v1562_v20 = vrot.slane %v1560_v49, 4  ;;  %950 = vst [vmem:[#allocation2 + $0x78] sm:$0x1] %v949_v17 }
  0xbf   : > { %v1217_v48 = vrot.slane %v1216_v43, 4  ;;  %v11694_v16 = vld [vmem:[#allocation6 + $0x1e0] sm:$0xff]   ;;  %v1226_v3 = vor.u32 %v1225_v15, %v1221_v54  ;;  %v1563_v41 = vrot.slane %v1052_v14, 5  ;;  %v704_v42 = vor.u32 %v702_v13, %v12619_v35  ;;  %v366_v17 = vld [vmem:[#allocation2 + $0x90] sm:$0x1] }
  0xc0   : > { %v12650_v44 = vrot.slane %v707_v19, 7  ;;  %v1231_v32 = vrot.slane %v1229_v59, 5  ;;  %v1561_v45 = vsel %vm12307_vm11, %v9875_v7, %v1560_v49  ;;  %v710_v46 = vshll.u32 %v12584_v31, 16  ;;  %v469_v56 = vld [vmem:[%s12270_s17 + $0xa0] sm:$0xff]  ;;  %10842 = vmatprep.subr.bf16.mxu1 %v11694_v16 }
  0xc1   : > { %v420_v63 = vsel %vm12286_vm4, 0, %v419_v30  ;;  %v1222_v1 = vsel %vm12343_vm14, %v1217_v48, %v1221_v54  ;;  %v1227_v9 = vrot.slane %v1226_v3, 4  ;;  %v1564_v35 = vsel %vm12307_vm11, %v1562_v20, %v1563_v41  ;;  %v11696_v43 = vld [vmem:[#allocation6 + $0x1a0] sm:$0xff]  }
  0xc2   : > { %v1641_v10 = vld [vmem:[#allocation2 + $0x74] sm:$0xf]  ;;  %v952_v57 = vsel %vm12316_vm12, %v704_v42, %v951_v27  ;;  %421 = vst [vmem:[#allocation2 + $0x88] sm:$0x1] %v420_v63  ;;  %v712_v30 = vor.u32 %v710_v46, %v12650_v44  ;;  %v714_v36 = vrot.slane %v12650_v44, 4  ;;  %v9923_v12 = vcombine.low %v12617_v23, %v12625_v4  ;;  %10843 = vmatpush3.bf16.msra.mxu1 %v11696_v43 }
  0xc3   : > { %v12662_v11 = vld [vmem:[#allocation2 + $0x74] sm:$0xf]  ;;  %953 = vst [vmem:[#allocation2 + $0x80] sm:$0xf] %v952_v57  ;;  %v1232_v54 = vsel %vm12343_vm14, %v1227_v9, %v1231_v32  ;;  %v12672_v49 = vld [vmem:[#allocation2 + $0x70] sm:$0xf]  ;;  %v9955_v13 = vcombine.low %v1561_v45, %v1564_v35  ;;  %v12678_v19 = vpack.c.bf16 %v469_v56, %v469_v56 }
  0xc4   : > { %v1243_v31 = vshll.u32 %v12662_v11, 16  ;;  %v1247_v7 = vshrl.u32 %v12662_v11, 16  ;;  %v12676_v14 = vld [vmem:[#allocation2 + $0x70] sm:$0xf]  ;;  %v9939_v48 = vcombine.low %v1222_v1, %v1232_v54  ;;  %v9971_v27 = vcombine.low %v12672_v49, %v1641_v10  ;;  %v11698_v9 = vld [vmem:[#allocation6 + $0x140] sm:$0xff]  }
  0xc5   : > { %v1456_v15 = vld [vmem:[#allocation2 + $0x70] sm:$0xe]  ;;  %v1053_v16 = vld [vmem:[#allocation2 + $0x78] sm:$0x1]  ;;  %v1234_v3 = vshrl.u32 %v12676_v14, 16  ;;  %v1237_v23 = vshll.u32 %v12676_v14, 16  ;;  %v713_v44 = vsel %vm12330_vm13, %v705_v50, %v712_v30  ;;  %v9924_v32 = vcombine.low %v12676_v14, %v12662_v11  ;;  %10738 = vmatprep.subr.bf16.mxu0 %v11698_v9 }
  0xc6   : > { %v1245_v4 = vrot.slane %v1243_v31, 5  ;;  %v1249_v41 = vrot.slane %v1247_v7, 4  ;;  %4125 = vmatprep.mubr.bf16.mxu0 %v9939_v48  ;;  %4286 = vmatprep.mubr.bf16.mxu1 %v9971_v27  ;;  %v1253_v42 = vshll.u32 %v1053_v16, 16  ;;  %v9876_v45 = vrot.slane %v1456_v15, 9  ;;  %954 = vst [vmem:[#allocation2 + $0x84] sm:$0xf] %v713_v44 }
  0xc7   : > { %4126 = vmatmul.mubr.bf16.gmra.mxu0 %v9923_v12  ;;  %4287 = vmatmul.mubr.bf16.gmra.mxu1 %v9955_v13  ;;  %v1236_v46 = vrot.slane %v1234_v3, 4  ;;  %v1239_v63 = vrot.slane %v1237_v23, 5  ;;  %v1567_v1 = vrot.slane %v12662_v11, 5  ;;  %v1570_v35 = vrot.slane %v1053_v16, 5  ;;  %v11699_v3 = vld [vmem:[#allocation6 + $0x100] sm:$0xff]   ;;  %v11700_v9 = vld [vmem:[#allocation6 + $0x1d8] sm:$0xff]  }
  0xc8   : > { %v1250_v56 = vor.u32 %v1249_v41, %v1245_v4  ;;  %v1255_v10 = vrot.slane %v1253_v42, 5  ;;  %v367_v31 = vsel %vm12281_vm3, 0, %v366_v17  ;;  %v716_v50 = vshrl.u32 %v12629_v60, 16  ;;  %10739 = vmatpush3.bf16.msra.mxu0 %v11699_v3  ;;  %10844 = vmatprep.subr.bf16.mxu1 %v11700_v9  ;;  %v425_v11 = vld [vmem:[#allocation2 + $0xa8] sm:$0x1] }
  0xc9   : > { %v955_v57 = vld [vmem:[#allocation2 + $0x88] sm:$0x1]  ;;  %v1240_v7 = vor.u32 %v1239_v63, %v1236_v46  ;;  %v1568_v54 = vsel %vm12307_vm11, %v9876_v45, %v1567_v1  ;;  %v1569_v12 = vrot.slane %v1567_v1, 4  ;;  %368 = vst [vmem:[#allocation2 + $0x90] sm:$0x1] %v367_v31 }
  0xca   : > { %v1251_v30 = vrot.slane %v1250_v56, 4  ;;  %v12693_v43 = vld [vmem:[#allocation2 + $0x80] sm:$0xf]  ;;  %v956_v17 = vsel %vm12281_vm3, %v714_v36, %v955_v57  ;;  %v422_v45 = vld [vmem:[#allocation2 + $0x98] sm:$0x1]  ;;  %v470_v46 = vld [vmem:[%s12270_s17 + $0xa8] sm:$0xff] }
  0xcb   : > { %v12697_v13 = vld [vmem:[#allocation2 + $0x80] sm:$0xf]  ;;  %v1241_v23 = vrot.slane %v1240_v7, 4  ;;  %v1571_v42 = vsel %vm12307_vm11, %v1569_v12, %v1570_v35  ;;  %957 = vst [vmem:[#allocation2 + $0x88] sm:$0x1] %v956_v17  ;;  %v718_v1 = vrot.slane %v716_v50, 7 }
  0xcc   : > { %v1258_v27 = vshrl.u32 %v12697_v13, 16  ;;  %v1457_v16 = vld [vmem:[#allocation2 + $0x80] sm:$0xe]  ;;  %v1256_v41 = vsel %vm12343_vm14, %v1251_v30, %v1255_v10  ;;  %v1261_v44 = vshll.u32 %v12697_v13, 16  ;;  %v9956_v63 = vcombine.low %v1568_v54, %v1571_v42  ;;  %v11701_v7 = vld [vmem:[#allocation6 + $0x198] sm:$0xff]   ;;  %v478_v15 = vld [vmem:[%s12270_s17 + $0xe8] sm:$0xff] }
  0xcd   : > { %v719_v36 = vshll.u32 %v12629_v60, 16  ;;  %v1246_v57 = vsel %vm12343_vm14, %v1241_v23, %v1245_v4  ;;  %v724_v10 = vshrl.u32 %v12631_v61, 16  ;;  %v727_v35 = vshll.u32 %v12631_v61, 16  ;;  %v1643_v12 = vld [vmem:[#allocation2 + $0x84] sm:$0xf]  ;;  %10845 = vmatpush3.bf16.msra.mxu1 %v11701_v7 }
  0xce   : > { %v1260_v56 = vrot.slane %v1258_v27, 4  ;;  %v1263_v31 = vrot.slane %v1261_v44, 5  ;;  %v9940_v30 = vcombine.low %v1246_v57, %v1256_v41  ;;  %v12715_v17 = vld [vmem:[#allocation2 + $0x84] sm:$0xf]  ;;  %v722_v27 = vrot.slane %v718_v1, 4 }
  0xcf   : > { %v721_v54 = vor.u32 %v719_v36, %v718_v1  ;;  %v9877_v50 = vrot.slane %v1457_v16, 9  ;;  %v9972_v60 = vcombine.low %v12693_v43, %v1643_v12  ;;  %v1267_v42 = vshll.u32 %v12715_v17, 16  ;;  %v369_v23 = vld [vmem:[#allocation2 + $0xa0] sm:$0x1]  ;;  %v11702_v36 = vld [vmem:[#allocation6 + $0x1d0] sm:$0xff]  }
  0xd0   : > { %v1264_v3 = vor.u32 %v1263_v31, %v1260_v56  ;;  %v1271_v4 = vshrl.u32 %v12715_v17, 16  ;;  %4133 = vmatprep.mubr.bf16.mxu0 %v9940_v30  ;;  %v12720_v61 = vrot.slane %v724_v10, 7  ;;  %v958_v41 = vld [vmem:[#allocation2 + $0x90] sm:$0xf]  ;;  %v1574_v44 = vrot.slane %v12715_v17, 5  ;;  %10846 = vmatprep.subr.bf16.mxu1 %v11702_v36  ;;  %v11708_v36 = vld [vmem:[#allocation6 + $0x1c0] sm:$0xff]  }
  0xd1   : > { %v423_v1 = vsel %vm12286_vm4, 0, %v422_v45  ;;  %v12725_v16 = vpack.c.bf16 %v470_v46, %v470_v46  ;;  %4294 = vmatprep.mubr.bf16.mxu1 %v9972_v60  ;;  %4134 = vmatmul.mubr.bf16.gmra.mxu0 %v9924_v32  ;;  %v1269_v9 = vrot.slane %v1267_v42, 5  ;;  %v959_v31 = vsel %vm12316_vm12, %v721_v54, %v958_v41  ;;  %v11704_v60 = vld [vmem:[#allocation6 + $0x190] sm:$0xff]   ;;  %v11706_v42 = vld [vmem:[#allocation6 + $0x1c8] sm:$0xff]  }
  0xd2   : > { %v1265_v56 = vrot.slane %v1264_v3, 4  ;;  %v1273_v57 = vrot.slane %v1271_v4, 4  ;;  %424 = vst [vmem:[#allocation2 + $0x98] sm:$0x1] %v423_v1  ;;  %4295 = vmatmul.mubr.bf16.gmra.mxu1 %v9956_v63  ;;  %v1054_v10 = vld [vmem:[#allocation2 + $0x88] sm:$0x1]  ;;  %v729_v7 = vor.u32 %v727_v35, %v12720_v61  ;;  %v9925_v46 = vcombine.low %v12697_v13, %v12715_v17 }
  0xd3   : > { %v731_v45 = vrot.slane %v12720_v61, 4  ;;  %960 = vst [vmem:[#allocation2 + $0x90] sm:$0xf] %v959_v31  ;;  %v1576_v30 = vrot.slane %v1574_v44, 4  ;;  %v1277_v32 = vshll.u32 %v1054_v10, 16  ;;  %v12738_v12 = vsel %vm12307_vm11, %v9877_v50, %v1574_v44  ;;  %10847 = vmatpush3.bf16.msra.mxu1 %v11704_v60 }
  0xd4   : > { %v1274_v14 = vor.u32 %v1273_v57, %v1269_v9  ;;  %v1577_v54 = vrot.slane %v1054_v10, 5  ;;  %v372_v63 = vld [vmem:[#allocation2 + $0xb0] sm:$0x1]  ;;  %v730_v35 = vsel %vm12330_vm13, %v722_v27, %v729_v7  ;;  %v370_v3 = vsel %vm12281_vm3, 0, %v369_v23  ;;  %v11707_v27 = vld [vmem:[#allocation6 + $0x188] sm:$0xff]   ;;  %10848 = vmatprep.subr.bf16.mxu1 %v11706_v42  ;;  %v11709_v7 = vld [vmem:[#allocation6 + $0x180] sm:$0xff]  }
  0xd5   : > { %v733_v13 = vshrl.u32 %v12639_v58, 16  ;;  %v736_v17 = vshll.u32 %v12639_v58, 16  ;;  %v1270_v4 = vsel %vm12343_vm14, %v1265_v56, %v1269_v9  ;;  %v1279_v50 = vrot.slane %v1277_v32, 5  ;;  %961 = vst [vmem:[#allocation2 + $0x94] sm:$0xf] %v730_v35  ;;  %v471_v10 = vld [vmem:[%s12270_s17 + $0xb0] sm:$0xff] }
  0xd6   : > { %v1275_v61 = vrot.slane %v1274_v14, 4  ;;  %371 = vst [vmem:[#allocation2 + $0xa0] sm:$0x1] %v370_v3  ;;  %v741_v41 = vshrl.u32 %v12647_v0, 16  ;;  %v12751_v23 = vsel %vm12307_vm11, %v1576_v30, %v1577_v54  ;;  %v744_v58 = vshll.u32 %v12647_v0, 16 }
  0xd7   : > { %v735_v44 = vrot.slane %v733_v13, 7  ;;  %v426_v1 = vsel %vm12286_vm4, 0, %v425_v11  ;;  %v373_v57 = vsel %vm12281_vm3, 0, %v372_v63  ;;  %v750_v31 = vshrl.u32 %v12678_v19, 16  ;;  %10849 = vmatpush3.bf16.msra.mxu1 %v11707_v27  ;;  %v472_v27 = vld [vmem:[%s12270_s17 + $0xb8] sm:$0xff] }
  0xd8   : > { %v1280_v56 = vsel %vm12343_vm14, %v1275_v61, %v1279_v50  ;;  %v743_v9 = vrot.slane %v741_v41, 7  ;;  %427 = vst [vmem:[#allocation2 + $0xa8] sm:$0x1] %v426_v1  ;;  %374 = vst [vmem:[#allocation2 + $0xb0] sm:$0x1] %v373_v57  ;;  %v753_v11 = vshll.u32 %v12678_v19, 16  ;;  %10850 = vmatprep.subr.bf16.mxu1 %v11708_v36  ;;  %v12799_v42 = vpack.c.bf16 %v472_v27, %v472_v27 }
  0xd9   : > { %v9941_v30 = vcombine.low %v1270_v4, %v1280_v56  ;;  %v962_v14 = vld [vmem:[#allocation2 + $0x98] sm:$0x1]  ;;  %v738_v0 = vor.u32 %v736_v17, %v735_v44  ;;  %v739_v32 = vrot.slane %v735_v44, 4  ;;  %v12769_v13 = vrot.slane %v750_v31, 7  ;;  %v375_v36 = vld [vmem:[#allocation2 + $0xc0] sm:$0x1] }
  0xda   : > { %v12763_v54 = vld [vmem:[#allocation2 + $0x90] sm:$0xf]  ;;  %v963_v60 = vsel %vm12281_vm3, %v731_v45, %v962_v14  ;;  %v746_v3 = vor.u32 %v744_v58, %v743_v9  ;;  %v748_v63 = vrot.slane %v743_v9, 4  ;;  %v9957_v58 = vcombine.low %v12738_v12, %v12751_v23  ;;  %v428_v57 = vld [vmem:[#allocation2 + $0xb8] sm:$0x1]  ;;  %v474_v17 = vld [vmem:[%s12270_s17 + $0xc8] sm:$0xff] }
  0xdb   : > { %v12767_v35 = vld [vmem:[#allocation2 + $0x90] sm:$0xf]  ;;  %4141 = vmatprep.mubr.bf16.mxu0 %v9941_v30  ;;  %964 = vst [vmem:[#allocation2 + $0x98] sm:$0x1] %v963_v60  ;;  %v756_v41 = vrot.slane %v12769_v13, 4  ;;  %v755_v60 = vor.u32 %v753_v11, %v12769_v13  ;;  %10851 = vmatpush3.bf16.msra.mxu1 %v11709_v7  ;;  %v761_v7 = vshll.u32 %v12725_v16, 16 }
  0xdc   : > { %v1282_v19 = vshrl.u32 %v12767_v35, 16  ;;  %v1285_v4 = vshll.u32 %v12767_v35, 16  ;;  %v1458_v61 = vld [vmem:[#allocation2 + $0x90] sm:$0xe]  ;;  %4142 = vmatmul.mubr.bf16.gmra.mxu0 %v9925_v46  ;;  %v747_v45 = vsel %vm12330_vm13, %v739_v32, %v746_v3  ;;  %v1645_v44 = vld [vmem:[#allocation2 + $0x94] sm:$0xf]  ;;  %v12783_v46 = vpack.c.bf16 %v471_v10, %v471_v10 }
  0xdd   : > { %v9878_v50 = vrot.slane %v1458_v61, 9  ;;  %v12781_v1 = vld [vmem:[#allocation2 + $0x94] sm:$0xf]  ;;  %968 = vst [vmem:[#allocation2 + $0xa4] sm:$0xf] %v747_v45  ;;  %v9973_v31 = vcombine.low %v12763_v54, %v1645_v44  ;;  %v758_v10 = vshrl.u32 %v12725_v16, 16 }
  0xde   : > { %v1284_v56 = vrot.slane %v1282_v19, 4  ;;  %v1287_v9 = vrot.slane %v1285_v4, 5  ;;  %v1291_v30 = vshll.u32 %v12781_v1, 16  ;;  %v1295_v14 = vshrl.u32 %v12781_v1, 16  ;;  %v965_v32 = vld [vmem:[#allocation2 + $0xa0] sm:$0xf] }
  0xdf   : > { %v966_v23 = vsel %vm12316_vm12, %v738_v0, %v965_v32  ;;  %v1581_v3 = vrot.slane %v12781_v1, 5  ;;  %v969_v19 = vld [vmem:[#allocation2 + $0xa8] sm:$0x1]  ;;  %v473_v4 = vld [vmem:[%s12270_s17 + $0xc0] sm:$0xff]  ;;  %4302 = vmatprep.mubr.bf16.mxu1 %v9973_v31  ;;  %v972_v11 = vld [vmem:[#allocation2 + $0xb0] sm:$0xf] }
  0xe0   : > { %v1288_v12 = vor.u32 %v1287_v9, %v1284_v56  ;;  %v1293_v61 = vrot.slane %v1291_v30, 5  ;;  %v1297_v45 = vrot.slane %v1295_v14, 4  ;;  %967 = vst [vmem:[#allocation2 + $0xa0] sm:$0xf] %v966_v23  ;;  %v970_v44 = vsel %vm12281_vm3, %v748_v63, %v969_v19  ;;  %v11710_v56 = vld [vmem:[#allocation6 + $0x238] sm:$0xff]   ;;  %4303 = vmatmul.mubr.bf16.gmra.mxu1 %v9957_v58 }
  0xe1   : > { %v1583_v9 = vrot.slane %v1581_v3, 4  ;;  %971 = vst [vmem:[#allocation2 + $0xa8] sm:$0x1] %v970_v44  ;;  %v12797_v32 = vrot.slane %v758_v10, 7  ;;  %v973_v14 = vsel %vm12316_vm12, %v755_v60, %v972_v11  ;;  %v429_v63 = vsel %vm12286_vm4, 0, %v428_v57  ;;  %11444 = vmatprep.subr.bf16.mxu0 %v11710_v56  ;;  %v475_v56 = vld [vmem:[%s12270_s17 + $0xd0] sm:$0xff] }
  0xe2   : > { %v1289_v0 = vrot.slane %v1288_v12, 4  ;;  %v1055_v31 = vld [vmem:[#allocation2 + $0x98] sm:$0x1]  ;;  %v1298_v30 = vor.u32 %v1297_v45, %v1293_v61  ;;  %v376_v16 = vsel %vm12281_vm3, 0, %v375_v36  ;;  %974 = vst [vmem:[#allocation2 + $0xb0] sm:$0xf] %v973_v14  ;;  %v12809_v27 = vpack.c.bf16 %v473_v4, %v473_v4 }
  0xe3   : > { %v1301_v58 = vshll.u32 %v1055_v31, 16  ;;  %v1584_v12 = vrot.slane %v1055_v31, 5  ;;  %v763_v23 = vor.u32 %v761_v7, %v12797_v32  ;;  %430 = vst [vmem:[#allocation2 + $0xb8] sm:$0x1] %v429_v63  ;;  %377 = vst [vmem:[#allocation2 + $0xc0] sm:$0x1] %v376_v16  ;;  %v9926_v57 = vcombine.low %v12767_v35, %v12781_v1 }
  0xe4   : > { %v1294_v60 = vsel %vm12343_vm14, %v1289_v0, %v1293_v61  ;;  %v1299_v19 = vrot.slane %v1298_v30, 4  ;;  %v1647_v10 = vld [vmem:[#allocation2 + $0xa4] sm:$0xf]  ;;  %v1582_v36 = vsel %vm12307_vm11, %v9878_v50, %v1581_v3  ;;  %v765_v35 = vrot.slane %v12797_v32, 4 }
  0xe5   : > { %v12817_v45 = vld [vmem:[#allocation2 + $0xa4] sm:$0xf]  ;;  %v1303_v44 = vrot.slane %v1301_v58, 5  ;;  %v1585_v7 = vsel %vm12307_vm11, %v1583_v9, %v1584_v12  ;;  %v764_v61 = vsel %vm12330_vm13, %v756_v41, %v763_v23  ;;  %v12830_v1 = vpack.c.bf16 %v474_v17, %v474_v17 }
  0xe6   : > { %v1315_v4 = vshll.u32 %v12817_v45, 16  ;;  %v1319_v11 = vshrl.u32 %v12817_v45, 16  ;;  %v1588_v50 = vrot.slane %v12817_v45, 5  ;;  %v9958_v9 = vcombine.low %v1582_v36, %v1585_v7  ;;  %975 = vst [vmem:[#allocation2 + $0xb4] sm:$0xf] %v764_v61 }
  0xe7   : > { %v1304_v3 = vsel %vm12343_vm14, %v1299_v19, %v1303_v44  ;;  %v12834_v0 = vld [vmem:[#allocation2 + $0xa0] sm:$0xf]  ;;  %v767_v16 = vshrl.u32 %v12783_v46, 16  ;;  %v12840_v17 = vpack.c.bf16 %v475_v56, %v475_v56 }
  0xe8   : > { %v12836_v31 = vld [vmem:[#allocation2 + $0xa0] sm:$0xf]  ;;  %v1317_v30 = vrot.slane %v1315_v4, 5  ;;  %v1321_v14 = vrot.slane %v1319_v11, 4  ;;  %v9942_v13 = vcombine.low %v1294_v60, %v1304_v3  ;;  %v9974_v41 = vcombine.low %v12834_v0, %v1647_v10  ;;  %v1056_v63 = vld [vmem:[#allocation2 + $0xa8] sm:$0x1] }
  0xe9   : > { %v1459_v32 = vld [vmem:[#allocation2 + $0xa0] sm:$0xe]  ;;  %v1306_v58 = vshrl.u32 %v12836_v31, 16  ;;  %v1309_v12 = vshll.u32 %v12836_v31, 16  ;;  %v1325_v19 = vshll.u32 %v1056_v63, 16  ;;  %v1590_v60 = vrot.slane %v1588_v50, 4 }
  0xea   : > { %v1322_v23 = vor.u32 %v1321_v14, %v1317_v30  ;;  %4149 = vmatprep.mubr.bf16.mxu0 %v9942_v13  ;;  %4310 = vmatprep.mubr.bf16.mxu1 %v9974_v41  ;;  %v9879_v44 = vrot.slane %v1459_v32, 9  ;;  %v1591_v7 = vrot.slane %v1056_v63, 5  ;;  %v976_v61 = vld [vmem:[#allocation2 + $0xb8] sm:$0x1]  ;;  %v12846_v48 = vld [vmem:[#allocation2 + $0xb0] sm:$0xf]  ;;  %v9927_v14 = vcombine.low %v12836_v31, %v12817_v45 }
  0xeb   : > { %4150 = vmatmul.mubr.bf16.gmra.mxu0 %v9926_v57  ;;  %4311 = vmatmul.mubr.bf16.gmra.mxu1 %v9958_v9  ;;  %v1308_v10 = vrot.slane %v1306_v58, 4  ;;  %v1311_v4 = vrot.slane %v1309_v12, 5  ;;  %v1327_v56 = vrot.slane %v1325_v19, 5  ;;  %v12854_v57 = vld [vmem:[#allocation2 + $0xb0] sm:$0xf]  ;;  %v977_v58 = vsel %vm12281_vm3, %v765_v35, %v976_v61  ;;  %v476_v61 = vld [vmem:[%s12270_s17 + $0xd8] sm:$0xff] }
  0xec   : > { %v1323_v11 = vrot.slane %v1322_v23, 4  ;;  %v1589_v13 = vsel %vm12307_vm11, %v9879_v44, %v1588_v50  ;;  %v1592_v41 = vsel %vm12307_vm11, %v1590_v60, %v1591_v7  ;;  %978 = vst [vmem:[#allocation2 + $0xb8] sm:$0x1] %v977_v58  ;;  %v1330_v23 = vshrl.u32 %v12854_v57, 16  ;;  %v477_v32 = vld [vmem:[%s12270_s17 + $0xe0] sm:$0xff] }
  0xed   : > { %v1312_v9 = vor.u32 %v1311_v4, %v1308_v10  ;;  %v1649_v31 = vld [vmem:[#allocation2 + $0xb4] sm:$0xf]  ;;  %v9959_v12 = vcombine.low %v1589_v13, %v1592_v41  ;;  %v1333_v19 = vshll.u32 %v12854_v57, 16 }
  0xee   : > { %v1328_v45 = vsel %vm12343_vm14, %v1323_v11, %v1327_v56  ;;  %v12862_v50 = vld [vmem:[#allocation2 + $0xb4] sm:$0xf]  ;;  %v9975_v60 = vcombine.low %v12846_v48, %v1649_v31  ;;  %v1332_v10 = vrot.slane %v1330_v23, 4  ;;  %v769_v11 = vrot.slane %v767_v16, 7  ;;  %v979_v31 = vld [vmem:[#allocation2 + $0xc0] sm:$0xf] }
  0xef   : > { %v1313_v44 = vrot.slane %v1312_v9, 4  ;;  %v1339_v7 = vshll.u32 %v12862_v50, 16  ;;  %v1343_v35 = vshrl.u32 %v12862_v50, 16  ;;  %v1335_v4 = vrot.slane %v1333_v19, 5  ;;  %v1460_v19 = vld [vmem:[#allocation2 + $0xb0] sm:$0xe] }
  0xf0   : > { %v770_v56 = vshll.u32 %v12783_v46, 16  ;;  %4318 = vmatprep.mubr.bf16.mxu1 %v9975_v60  ;;  %v775_v9 = vshrl.u32 %v12799_v42, 16  ;;  %v773_v23 = vrot.slane %v769_v11, 4  ;;  %v431_v16 = vld [vmem:[#allocation2 + $0xc8] sm:$0x1] }
  0xf1   : > { %v1318_v13 = vsel %vm12343_vm14, %v1313_v44, %v1317_v30  ;;  %v1341_v41 = vrot.slane %v1339_v7, 5  ;;  %v1345_v58 = vrot.slane %v1343_v35, 4  ;;  %v1336_v3 = vor.u32 %v1335_v4, %v1332_v10  ;;  %v378_v35 = vld [vmem:[#allocation2 + $0xd0] sm:$0x1] }
  0xf2   : > { %v9943_v63 = vcombine.low %v1318_v13, %v1328_v45  ;;  %v772_v36 = vor.u32 %v770_v56, %v769_v11  ;;  %v12876_v20 = vrot.slane %v775_v9, 7  ;;  %v778_v30 = vshll.u32 %v12799_v42, 16  ;;  %v434_v56 = vld [vmem:[#allocation2 + $0xd8] sm:$0x1] }
  0xf3   : > { %4319 = vmatmul.mubr.bf16.gmra.mxu1 %v9959_v12  ;;  %v1346_v46 = vor.u32 %v1345_v58, %v1341_v41  ;;  %v12879_v44 = vpack.c.bf16 %v476_v61, %v476_v61  ;;  %v1337_v60 = vrot.slane %v1336_v3, 4  ;;  %v1595_v45 = vrot.slane %v12862_v50, 5  ;;  %v1057_v4 = vld [vmem:[#allocation2 + $0xb8] sm:$0x1] }
  0xf4   : > { %4157 = vmatprep.mubr.bf16.mxu0 %v9943_v63  ;;  %v980_v7 = vsel %vm12316_vm12, %v772_v36, %v979_v31  ;;  %v12884_v10 = vpack.c.bf16 %v477_v32, %v477_v32  ;;  %v780_v12 = vor.u32 %v778_v30, %v12876_v20  ;;  %v9880_v11 = vrot.slane %v1460_v19, 9  ;;  %v381_v32 = vld [vmem:[#allocation2 + $0xe0] sm:$0x1] }
  0xf5   : > { %4158 = vmatmul.mubr.bf16.gmra.mxu0 %v9927_v14  ;;  %981 = vst [vmem:[#allocation2 + $0xc0] sm:$0xf] %v980_v7  ;;  %v432_v42 = vsel %vm12286_vm4, 0, %v431_v16  ;;  %v12889_v63 = vpack.c.bf16 %v478_v15, %v478_v15  ;;  %v1342_v36 = vsel %vm12343_vm14, %v1337_v60, %v1341_v41  ;;  %v1347_v3 = vrot.slane %v1346_v46, 4 }
  0xf6   : > { %v1349_v61 = vshll.u32 %v1057_v4, 16  ;;  %v1597_v13 = vrot.slane %v1595_v45, 4  ;;  %433 = vst [vmem:[#allocation2 + $0xc8] sm:$0x1] %v432_v42  ;;  %v781_v14 = vsel %vm12330_vm13, %v773_v23, %v780_v12  ;;  %v1598_v58 = vrot.slane %v1057_v4, 5  ;;  %v479_v42 = vld [vmem:[%s12270_s17 + $0xf0] sm:$0xff] }
  0xf7   : > { %v379_v9 = vsel %vm12281_vm3, 0, %v378_v35  ;;  %v784_v31 = vshrl.u32 %v12809_v27, 16  ;;  %982 = vst [vmem:[#allocation2 + $0xc4] sm:$0xf] %v781_v14  ;;  %v787_v15 = vshll.u32 %v12809_v27, 16  ;;  %v792_v41 = vshrl.u32 %v12830_v1, 16 }
  0xf8   : > { %v1351_v19 = vrot.slane %v1349_v61, 5  ;;  %380 = vst [vmem:[#allocation2 + $0xd0] sm:$0x1] %v379_v9  ;;  %v795_v16 = vshll.u32 %v12830_v1, 16  ;;  %v9928_v46 = vcombine.low %v12854_v57, %v12862_v50  ;;  %v435_v30 = vsel %vm12286_vm4, 0, %v434_v56 }
  0xf9   : > { %v786_v23 = vrot.slane %v784_v31, 7  ;;  %v382_v60 = vsel %vm12281_vm3, 0, %v381_v32  ;;  %v782_v27 = vrot.slane %v12876_v20, 4  ;;  %v794_v35 = vrot.slane %v792_v41, 7  ;;  %436 = vst [vmem:[#allocation2 + $0xd8] sm:$0x1] %v435_v30 }
  0xfa   : > { %v1352_v7 = vsel %vm12343_vm14, %v1347_v3, %v1351_v19  ;;  %383 = vst [vmem:[#allocation2 + $0xe0] sm:$0x1] %v382_v60  ;;  %v801_v1 = vshrl.u32 %v12840_v17, 16  ;;  %v1596_v57 = vsel %vm12307_vm11, %v9880_v11, %v1595_v45  ;;  %v1599_v50 = vsel %vm12307_vm11, %v1597_v13, %v1598_v58  ;;  %v480_v41 = vld [vmem:[%s12270_s17 + $0xf8] sm:$0xff] }
  0xfb   : > { %v9944_v4 = vcombine.low %v1342_v36, %v1352_v7  ;;  %v790_v12 = vrot.slane %v786_v23, 4  ;;  %v789_v3 = vor.u32 %v787_v15, %v786_v23  ;;  %v797_v20 = vor.u32 %v795_v16, %v794_v35  ;;  %v384_v36 = vld [vmem:[#allocation2 + $0xf0] sm:$0x1] }
  0xfc   : > { %v12916_v56 = vld [vmem:[#allocation2 + $0xc0] sm:$0xf]  ;;  %v12920_v32 = vrot.slane %v801_v1, 7  ;;  %v804_v14 = vshll.u32 %v12840_v17, 16  ;;  %v799_v58 = vrot.slane %v794_v35, 4  ;;  %v9960_v23 = vcombine.low %v1596_v57, %v1599_v50 }
  0xfd   : > { %v12918_v61 = vld [vmem:[#allocation2 + $0xc0] sm:$0xf]  ;;  %4165 = vmatprep.mubr.bf16.mxu0 %v9944_v4  ;;  %v983_v45 = vld [vmem:[#allocation2 + $0xc8] sm:$0x1]  ;;  %v798_v19 = vsel %vm12330_vm13, %v790_v12, %v797_v20  ;;  %v809_v9 = vshrl.u32 %v12879_v44, 16 }
  0xfe   : > { %v1354_v11 = vshrl.u32 %v12918_v61, 16  ;;  %v1357_v13 = vshll.u32 %v12918_v61, 16  ;;  %4166 = vmatmul.mubr.bf16.gmra.mxu0 %v9928_v46  ;;  %v984_v31 = vsel %vm12281_vm3, %v782_v27, %v983_v45  ;;  %v1461_v15 = vld [vmem:[#allocation2 + $0xc0] sm:$0xe]  ;;  %v807_v17 = vrot.slane %v12920_v32, 4 }
  0xff   : > { %v1651_v16 = vld [vmem:[#allocation2 + $0xc4] sm:$0xf]  ;;  %985 = vst [vmem:[#allocation2 + $0xc8] sm:$0x1] %v984_v31  ;;  %989 = vst [vmem:[#allocation2 + $0xd4] sm:$0xf] %v798_v19  ;;  %v12935_v46 = vpack.c.bf16 %v479_v42, %v479_v42  ;;  %v806_v20 = vor.u32 %v804_v14, %v12920_v32  ;;  %v12948_v14 = vpack.c.bf16 %v480_v41, %v480_v41 }
 0x100   : > { %v12933_v30 = vld [vmem:[#allocation2 + $0xc4] sm:$0xf]  ;;  %v1356_v60 = vrot.slane %v1354_v11, 4  ;;  %v1359_v7 = vrot.slane %v1357_v13, 5  ;;  %v437_v35 = vld [vmem:[#allocation2 + $0xe8] sm:$0x1]  ;;  %v9976_v27 = vcombine.low %v12916_v56, %v1651_v16 }
 0x101   : > { %v1363_v1 = vshll.u32 %v12933_v30, 16  ;;  %v1367_v4 = vshrl.u32 %v12933_v30, 16  ;;  %v986_v12 = vld [vmem:[#allocation2 + $0xd0] sm:$0xf]  ;;  %v9881_v50 = vrot.slane %v1461_v15, 9  ;;  %v1602_v11 = vrot.slane %v12933_v30, 5 }
 0x102   : > { %v1360_v45 = vor.u32 %v1359_v7, %v1356_v60  ;;  %v987_v57 = vsel %vm12316_vm12, %v789_v3, %v986_v12  ;;  %v990_v13 = vld [vmem:[#allocation2 + $0xd8] sm:$0x1]  ;;  %v993_v31 = vld [vmem:[#allocation2 + $0xe0] sm:$0xf]  ;;  %4326 = vmatprep.mubr.bf16.mxu1 %v9976_v27  ;;  %v812_v3 = vshll.u32 %v12879_v44, 16  ;;  %v1689_v15 = vsel %vm12343_vm14, %v12409_v37, %v12400_v29 }
 0x103   : > { %v1365_v42 = vrot.slane %v1363_v1, 5  ;;  %v1369_v19 = vrot.slane %v1367_v4, 4  ;;  %988 = vst [vmem:[#allocation2 + $0xd0] sm:$0xf] %v987_v57  ;;  %v991_v16 = vsel %vm12281_vm3, %v799_v58, %v990_v13  ;;  %4327 = vmatmul.mubr.bf16.gmra.mxu1 %v9960_v23  ;;  %v12954_v7 = vrot.slane %v809_v9, 7 }
 0x104   : > { %v1361_v32 = vrot.slane %v1360_v45, 4  ;;  %992 = vst [vmem:[#allocation2 + $0xd8] sm:$0x1] %v991_v16  ;;  %v994_v58 = vsel %vm12316_vm12, %v806_v20, %v993_v31  ;;  %v438_v23 = vsel %vm12286_vm4, 0, %v437_v35  ;;  %v9929_v27 = vcombine.low %v12918_v61, %v12933_v30  ;;  %v12971_v30 = vld [vmem:[#allocation2 + $0x20] sm:$0xf] }
 0x105   : > { %v1370_v60 = vor.u32 %v1369_v19, %v1365_v42  ;;  %v1604_v44 = vrot.slane %v1602_v11, 4  ;;  %995 = vst [vmem:[#allocation2 + $0xe0] sm:$0xf] %v994_v58  ;;  %439 = vst [vmem:[#allocation2 + $0xe8] sm:$0x1] %v438_v23  ;;  %v385_v41 = vsel %vm12281_vm3, 0, %v384_v36  ;;  %v1603_v20 = vsel %vm12307_vm11, %v9881_v50, %v1602_v11 }
 0x106   : > { %v818_v1 = vshrl.u32 %v12884_v10, 16  ;;  %v1058_v4 = vld [vmem:[#allocation2 + $0xc8] sm:$0x1]  ;;  %v1366_v9 = vsel %vm12343_vm14, %v1361_v32, %v1365_v42  ;;  %v1653_v12 = vld [vmem:[#allocation2 + $0xd4] sm:$0xf]  ;;  %v814_v35 = vor.u32 %v812_v3, %v12954_v7  ;;  %v821_v61 = vshll.u32 %v12884_v10, 16 }
 0x107   : > { %386 = vst [vmem:[#allocation2 + $0xf0] sm:$0x1] %v385_v41  ;;  %v1371_v45 = vrot.slane %v1370_v60, 4  ;;  %v1373_v57 = vshll.u32 %v1058_v4, 16  ;;  %v1605_v36 = vrot.slane %v1058_v4, 5  ;;  %v816_v31 = vrot.slane %v12954_v7, 4 }
 0x108   : > { %v12973_v13 = vld [vmem:[#allocation2 + $0xd4] sm:$0xf]  ;;  %v815_v50 = vsel %vm12330_vm13, %v807_v17, %v814_v35  ;;  %v12980_v11 = vrot.slane %v818_v1, 7  ;;  %v12982_v16 = vld [vmem:[#allocation2 + $0x24] sm:$0xf]  ;;  %v826_v7 = vshrl.u32 %v12889_v63, 16 }
 0x109   : > { %v1387_v42 = vshll.u32 %v12973_v13, 16  ;;  %v1391_v19 = vshrl.u32 %v12973_v13, 16  ;;  %v1375_v10 = vrot.slane %v1373_v57, 5  ;;  %v1606_v3 = vsel %vm12307_vm11, %v1604_v44, %v1605_v36  ;;  %996 = vst [vmem:[#allocation2 + $0xe4] sm:$0xf] %v815_v50 }
 0x10a   : > { %v12984_v32 = vld [vmem:[#allocation2 + $0xd0] sm:$0xf]  ;;  %v10013_v58 = vcombine.low %v12971_v30, %v12982_v16  ;;  %v9961_v41 = vcombine.low %v1603_v20, %v1606_v3  ;;  %v1609_v4 = vrot.slane %v12973_v13, 5  ;;  %v2299_v29 = vshrl.u32 %v12982_v16, 16 }
 0x10b   : > { %v12988_v60 = vld [vmem:[#allocation2 + $0xd0] sm:$0xf]  ;;  %v1965_v17 = vshrl.u32 %v12984_v32, 16  ;;  %v9977_v23 = vcombine.low %v12984_v32, %v1653_v12  ;;  %v1059_v1 = vld [vmem:[#allocation2 + $0xd8] sm:$0x1]  ;;  %v1376_v35 = vsel %vm12343_vm14, %v1371_v45, %v1375_v10  ;;  %v1389_v36 = vrot.slane %v1387_v42, 5 }
 0x10c   : > { %v1378_v44 = vshrl.u32 %v12988_v60, 16  ;;  %v1381_v57 = vshll.u32 %v12988_v60, 16  ;;  %v1462_v50 = vld [vmem:[#allocation2 + $0xd0] sm:$0xe]  ;;  %v9945_v59 = vcombine.low %v1366_v9, %v1376_v35  ;;  %v1968_v39 = vshll.u32 %v12984_v32, 16 }
 0x10d   : > { %4334 = vmatprep.mubr.bf16.mxu1 %v9977_v23  ;;  %v1393_v18 = vrot.slane %v1391_v19, 4  ;;  %v824_v12 = vrot.slane %v12980_v11, 4  ;;  %v13002_v20 = vrot.slane %v1965_v17, 4  ;;  %v1397_v40 = vshll.u32 %v1059_v1, 16  ;;  %v1654_v45 = vld [vmem:[#allocation2 + $0xe0] sm:$0xf] }
 0x10e   : > { %4335 = vmatmul.mubr.bf16.gmra.mxu1 %v9961_v41  ;;  %v1380_v3 = vrot.slane %v1378_v44, 4  ;;  %v1383_v53 = vrot.slane %v1381_v57, 5  ;;  %4173 = vmatprep.mubr.bf16.mxu0 %v9945_v59  ;;  %v1989_v6 = vshrl.u32 %v1654_v45, 16  ;;  %v9882_v5 = vrot.slane %v1462_v50, 9  ;;  %v997_v42 = vld [vmem:[#allocation2 + $0xe8] sm:$0x1] }
 0x10f   : > { %17130 = vst [vmem:[#allocation19_spill] sm:$0xff] %v13002_v20  ;;  %v1394_v10 = vor.u32 %v1393_v18, %v1389_v36  ;;  %v13004_v34 = vld [vmem:[#allocation2 + $0xe0] sm:$0xf]  ;;  %v823_v9 = vor.u32 %v821_v61, %v12980_v11  ;;  %4174 = vmatmul.mubr.bf16.gmra.mxu0 %v9929_v27  ;;  %v1399_v32 = vrot.slane %v1397_v40, 5  ;;  %v1992_v23 = vshll.u32 %v1654_v45, 16 }
 0x110   : > { %v1384_v19 = vor.u32 %v1383_v53, %v1380_v3  ;;  %v1611_v17 = vrot.slane %v1609_v4, 4  ;;  %v1655_v41 = vld [vmem:[#allocation2 + $0xe4] sm:$0xf]  ;;  %v9930_v44 = vcombine.low %v12988_v60, %v12973_v13  ;;  %v1610_v18 = vsel %vm12307_vm11, %v9882_v5, %v1609_v4  ;;  %v1000_v60 = vld [vmem:[#allocation2 + $0xf0] sm:$0xf] }
 0x111   : > { %v1395_v35 = vrot.slane %v1394_v10, 4  ;;  %v1612_v59 = vrot.slane %v1059_v1, 5  ;;  %v9978_v50 = vcombine.low %v1654_v45, %v1655_v41  ;;  %v998_v33 = vsel %vm12281_vm3, %v816_v31, %v997_v42  ;;  %v13013_v61 = vld [vmem:[#allocation2 + $0xe4] sm:$0xf]  ;;  %v440_v1 = vld [vmem:[#allocation2 + $0xf8] sm:$0x1] }
 0x112   : > { %v1385_v57 = vrot.slane %v1384_v19, 4  ;;  %v1402_v40 = vshrl.u32 %v13004_v34, 16  ;;  %999 = vst [vmem:[#allocation2 + $0xe8] sm:$0x1] %v998_v33  ;;  %v1405_v13 = vshll.u32 %v13004_v34, 16  ;;  %v1411_v5 = vshll.u32 %v13013_v61, 16 }
 0x113   : > { %v1400_v53 = vsel %vm12343_vm14, %v1395_v35, %v1399_v32  ;;  %v1613_v27 = vsel %vm12307_vm11, %v1611_v17, %v1612_v59  ;;  %4342 = vmatprep.mubr.bf16.mxu1 %v9978_v50  ;;  %v1415_v45 = vshrl.u32 %v13013_v61, 16  ;;  %v13025_v32 = vrot.slane %v826_v7, 7  ;;  %v387_v33 = vld [vmem:[#allocation2 + $0x100] sm:$0x1]  ;;  %v1463_v59 = vld [vmem:[#allocation2 + $0xe0] sm:$0xe] }
 0x114   : > { %v1390_v31 = vsel %vm12343_vm14, %v1385_v57, %v1389_v36  ;;  %v9962_v4 = vcombine.low %v1610_v18, %v1613_v27  ;;  %v1404_v3 = vrot.slane %v1402_v40, 4  ;;  %v1407_v42 = vrot.slane %v1405_v13, 5  ;;  %v13045_v13 = vld [vmem:[#allocation2 + $0x18] sm:$0x1] }
 0x115   : > { %v9946_v10 = vcombine.low %v1390_v31, %v1400_v53  ;;  %v1413_v19 = vrot.slane %v1411_v5, 5  ;;  %v13027_v17 = vrot.slane %v1968_v39, 5  ;;  %v1417_v35 = vrot.slane %v1415_v45, 4  ;;  %v2060_v45 = vld [vmem:[#allocation2 + $0x10] sm:$0xe] }
 0x116   : > { %4343 = vmatmul.mubr.bf16.gmra.mxu1 %v9962_v4  ;;  %v829_v41 = vshll.u32 %v12889_v63, 16  ;;  %v1001_v36 = vsel %vm12316_vm12, %v823_v9, %v1000_v60  ;;  %v13032_v18 = vrot.slane %v1989_v6, 4  ;;  %v13034_v57 = vrot.slane %v1992_v23, 5 }
 0x117   : > { %17131 = vst [vmem:[#allocation20_spill] sm:$0xff] %v13027_v17  ;;  %4181 = vmatprep.mubr.bf16.mxu0 %v9946_v10  ;;  %v1408_v50 = vor.u32 %v1407_v42, %v1404_v3  ;;  %1002 = vst [vmem:[#allocation2 + $0xf0] sm:$0xf] %v1001_v36  ;;  %v1616_v7 = vrot.slane %v13013_v61, 5  ;;  %v1418_v39 = vor.u32 %v1417_v35, %v1413_v19  ;;  %v441_v63 = vsel %vm12286_vm4, 0, %v440_v1 }
 0x118   : > { %17132 = vst [vmem:[#allocation21_spill] sm:$0xff] %v13032_v18  ;;  %17133 = vst [vmem:[#allocation22_spill] sm:$0xff] %v13034_v57  ;;  %4182 = vmatmul.mubr.bf16.gmra.mxu0 %v9930_v44  ;;  %v831_v40 = vor.u32 %v829_v41, %v13025_v32  ;;  %v388_v9 = vsel %vm12281_vm3, 0, %v387_v33  ;;  %v9931_v6 = vcombine.low %v13004_v34, %v13013_v61  ;;  %v9883_v23 = vrot.slane %v1463_v59, 9 }
 0x119   : > { %v1409_v53 = vrot.slane %v1408_v50, 4  ;;  %442 = vst [vmem:[#allocation2 + $0xf8] sm:$0x1] %v441_v63  ;;  %389 = vst [vmem:[#allocation2 + $0x100] sm:$0x1] %v388_v9  ;;  %v835_v27 = vshrl.u32 %v12935_v46, 16 }
 0x11a   : > { %v1060_v44 = vld [vmem:[#allocation2 + $0xe8] sm:$0x1]  ;;  %v832_v5 = vsel %vm12330_vm13, %v824_v12, %v831_v40  ;;  %v1618_v60 = vrot.slane %v1616_v7, 4  ;;  %v838_v1 = vshll.u32 %v12935_v46, 16  ;;  %v843_v31 = vshrl.u32 %v12948_v14, 16 }
 0x11b   : > { %v1419_v4 = vrot.slane %v1418_v39, 4  ;;  %v1421_v34 = vshll.u32 %v1060_v44, 16  ;;  %1003 = vst [vmem:[#allocation2 + $0xf4] sm:$0xf] %v832_v5  ;;  %v1619_v61 = vrot.slane %v1060_v44, 5  ;;  %v837_v3 = vrot.slane %v835_v27, 7 }
 0x11c   : > { %v833_v10 = vrot.slane %v13025_v32, 4  ;;  %v13054_v42 = vrot.slane %v843_v31, 7  ;;  %v846_v11 = vshll.u32 %v12948_v14, 16  ;;  %v1696_v33 = vshll.u32 %v13045_v13, 16 }
 0x11d   : > { %v1414_v12 = vsel %vm12343_vm14, %v1409_v53, %v1413_v19  ;;  %v1423_v46 = vrot.slane %v1421_v34, 5  ;;  %v1617_v35 = vsel %vm12307_vm11, %v9883_v23, %v1616_v7  ;;  %v841_v41 = vrot.slane %v837_v3, 4 }
 0x11e   : > { %17134 = vst [vmem:[#allocation23_spill] sm:$0xff] %v13054_v42  ;;  %v1656_v36 = vld [vmem:[#allocation2 + $0xf0] sm:$0xf]  ;;  %v1620_v59 = vsel %vm12307_vm11, %v1618_v60, %v1619_v61  ;;  %v840_v32 = vor.u32 %v838_v1, %v837_v3  ;;  %v848_v39 = vor.u32 %v846_v11, %v13054_v42  ;;  %v9885_v14 = vrot.slane %v2060_v45, 9 }
 0x11f   : > { %v13064_v50 = vld [vmem:[#allocation2 + $0xf0] sm:$0xf]  ;;  %v1424_v40 = vsel %vm12343_vm14, %v1419_v4, %v1423_v46  ;;  %v2013_v63 = vshrl.u32 %v1656_v36, 16  ;;  %v1698_v53 = vrot.slane %v1696_v33, 5  ;;  %v2016_v23 = vshll.u32 %v1656_v36, 16 }
 0x120   : > { %v1426_v19 = vshrl.u32 %v13064_v50, 16  ;;  %v1464_v9 = vld [vmem:[#allocation2 + $0xf0] sm:$0xe]  ;;  %v9947_v7 = vcombine.low %v1414_v12, %v1424_v40  ;;  %v1004_v27 = vld [vmem:[#allocation2 + $0xf8] sm:$0x1]  ;;  %v1429_v44 = vshll.u32 %v13064_v50, 16  ;;  %v849_v5 = vsel %vm12330_vm13, %v841_v41, %v848_v39 }
 0x121   : > { %v1007_v60 = vld [vmem:[#allocation2 + $0x100] sm:$0xf]  ;;  %v1005_v1 = vsel %vm12281_vm3, %v833_v10, %v1004_v27  ;;  %1010 = vst [vmem:[#allocation2 + $0x104] sm:$0xf] %v849_v5  ;;  %v9884_v34 = vrot.slane %v1464_v9, 9  ;;  %v9963_v3 = vcombine.low %v1617_v35, %v1620_v59  ;;  %v1699_v35 = vsel %vm12343_vm14, %v12411_v51, %v1698_v53 }
 0x122   : > { %v1428_v31 = vrot.slane %v1426_v19, 4  ;;  %4189 = vmatprep.mubr.bf16.mxu0 %v9947_v7  ;;  %v1657_v61 = vld [vmem:[#allocation2 + $0xf4] sm:$0xf]  ;;  %1006 = vst [vmem:[#allocation2 + $0xf8] sm:$0x1] %v1005_v1  ;;  %v1431_v11 = vrot.slane %v1429_v44, 5  ;;  %v1008_v33 = vsel %vm12316_vm12, %v840_v32, %v1007_v60 }
 0x123   : > { %v13076_v45 = vld [vmem:[#allocation2 + $0xf4] sm:$0xf]  ;;  %v9979_v41 = vcombine.low %v1656_v36, %v1657_v61  ;;  %4190 = vmatmul.mubr.bf16.gmra.mxu0 %v9931_v6  ;;  %1009 = vst [vmem:[#allocation2 + $0x100] sm:$0xf] %v1008_v33  ;;  %v13085_v59 = vrot.slane %v2013_v63, 4  ;;  %v13087_v40 = vrot.slane %v2016_v23, 5  ;;  %v13102_v63 = vcombine.low %v1689_v15, %v1699_v35 }
 0x124   : > { %v11858_v12 = vld [vmem:[#allocation2 + $0x14] sm:$0xf]  ;;  %v1435_v10 = vshll.u32 %v13076_v45, 16  ;;  %v1439_v39 = vshrl.u32 %v13076_v45, 16  ;;  %v1432_v19 = vor.u32 %v1431_v11, %v1428_v31  ;;  %v1623_v32 = vrot.slane %v13076_v45, 5 }
 0x125   : > { %v2126_v46 = vrot.slane %v11858_v12, 5  ;;  %17135 = vst [vmem:[#allocation24_spill] sm:$0xff] %v13085_v59  ;;  %17136 = vst [vmem:[#allocation25_spill] sm:$0xff] %v13087_v40  ;;  %4350 = vmatprep.mubr.bf16.mxu1 %v9979_v41  ;;  %v2129_v7 = vrot.slane %v13045_v13, 5  ;;  %v9932_v27 = vcombine.low %v13064_v50, %v13076_v45  ;;  %v2269_v53 = vld [vmem:[#allocation2 + $0x28] sm:$0x1] }
 0x126   : > { %v1437_v9 = vrot.slane %v1435_v10, 5  ;;  %v1441_v36 = vrot.slane %v1439_v39, 4  ;;  %4351 = vmatmul.mubr.bf16.gmra.mxu1 %v9963_v3  ;;  %v2286_v23 = vshrl.u32 %v12971_v30, 16  ;;  %v1433_v44 = vrot.slane %v1432_v19, 4  ;;  %v2061_v60 = vld [vmem:[#allocation2 + $0x20] sm:$0xe] }
 0x127   : > { %v2128_v6 = vrot.slane %v2126_v46, 4  ;;  %v13095_v51 = vsel %vm12307_vm11, %v9885_v14, %v2126_v46  ;;  %v2289_v5 = vshll.u32 %v12971_v30, 16  ;;  %v2295_v50 = vshll.u32 %v12982_v16, 16  ;;  %v1661_v19 = vld [vmem:[#allocation2 + $0x28] sm:$0x1] }
 0x128   : > { %v1442_v13 = vor.u32 %v1441_v36, %v1437_v9  ;;  %v1659_v1 = vld [vmem:[#allocation2 + $0x104] sm:$0xf]  ;;  %v1624_v14 = vsel %vm12307_vm11, %v9884_v34, %v1623_v32  ;;  %v1625_v31 = vrot.slane %v1623_v32, 4  ;;  %v2288_v61 = vrot.slane %v2286_v23, 4  ;;  %v13352_v40 = vld [vmem:[#allocation2 + $0x90] sm:$0xf] }
 0x129   : > { %v1061_v37 = vld [vmem:[#allocation2 + $0xf8] sm:$0x1]  ;;  %v2130_v15 = vsel %vm12307_vm11, %v2128_v6, %v2129_v7  ;;  %v2291_v3 = vrot.slane %v2289_v5, 5  ;;  %v2297_v45 = vrot.slane %v2295_v50, 5  ;;  %v2305_v11 = vshll.u32 %v2269_v53, 16 }
 0x12a   : > { %v1443_v33 = vrot.slane %v1442_v13, 4  ;;  %v1445_v12 = vshll.u32 %v1061_v37, 16  ;;  %v13112_v46 = vld [vmem:[#allocation2 + $0x100] sm:$0xf]  ;;  %v1626_v41 = vrot.slane %v1061_v37, 5  ;;  %v2301_v10 = vrot.slane %v2299_v29, 4 }
 0x12b   : > { %17137 = vst [vmem:[#allocation26_spill] sm:$0xff] %v13112_v46  ;;  %v1438_v34 = vsel %vm12343_vm14, %v1433_v44, %v1437_v9  ;;  %v9980_v39 = vcombine.low %v13112_v46, %v1659_v1  ;;  %v2292_v35 = vor.u32 %v2291_v3, %v2288_v61  ;;  %v9886_v32 = vrot.slane %v2061_v60, 9  ;;  %v11859_v1 = vld [vmem:[#allocation2 + $0x24] sm:$0xf] }
 0x12c   : > { %v1447_v36 = vrot.slane %v1445_v12, 5  ;;  %v1627_v6 = vsel %vm12307_vm11, %v1625_v31, %v1626_v41  ;;  %v2302_v7 = vor.u32 %v2301_v10, %v2297_v45  ;;  %v2307_v53 = vrot.slane %v2305_v11, 5 }
 0x12d   : > { %v2037_v23 = vshrl.u32 %v13112_v46, 16  ;;  %4358 = vmatprep.mubr.bf16.mxu1 %v9980_v39  ;;  %v9964_v13 = vcombine.low %v1624_v14, %v1627_v6  ;;  %v9997_v5 = vcombine.low %v13095_v51, %v2130_v15  ;;  %v2293_v50 = vrot.slane %v2292_v35, 4  ;;  %v13129_v51 = vld [vmem:[#allocation2 + $0x30] sm:$0xf] }
 0x12e   : > { %v1448_v9 = vsel %vm12343_vm14, %v1443_v33, %v1447_v36  ;;  %v2303_v44 = vrot.slane %v2302_v7, 4  ;;  %v2133_v61 = vrot.slane %v11859_v1, 5  ;;  %v2136_v60 = vrot.slane %v1661_v19, 5 }
 0x12f   : > { %v9948_v29 = vcombine.low %v1438_v34, %v1448_v9  ;;  %4359 = vmatmul.mubr.bf16.gmra.mxu1 %v9964_v13  ;;  %v2298_v31 = vsel %vm12343_vm14, %v2293_v50, %v2297_v45  ;;  %v1703_v37 = vrot.slane %v1701_v55, 4  ;;  %v1706_v14 = vrot.slane %v1704_v38, 5  ;;  %v13135_v34 = vld [vmem:[#allocation2 + $0x34] sm:$0xf]  ;;  %v2270_v55 = vld [vmem:[#allocation2 + $0x38] sm:$0x1] }
 0x130   : > { %v2308_v15 = vsel %vm12343_vm14, %v2303_v44, %v2307_v53  ;;  %v2134_v3 = vsel %vm12307_vm11, %v9886_v32, %v2133_v61  ;;  %v2135_v11 = vrot.slane %v2133_v61, 4  ;;  %v1710_v33 = vshll.u32 %v11859_v1, 16  ;;  %v2062_v32 = vld [vmem:[#allocation2 + $0x30] sm:$0xe] }
 0x131   : > { %4197 = vmatprep.mubr.bf16.mxu0 %v9948_v29  ;;  %v10029_v12 = vcombine.low %v2298_v31, %v2308_v15  ;;  %v1707_v41 = vor.u32 %v1706_v14, %v1703_v37  ;;  %v1714_v45 = vshrl.u32 %v11859_v1, 16  ;;  %v1720_v10 = vshll.u32 %v1661_v19, 16 }
 0x132   : > { %4198 = vmatmul.mubr.bf16.gmra.mxu0 %v9932_v27  ;;  %v2137_v47 = vsel %vm12307_vm11, %v2135_v11, %v2136_v60  ;;  %v1712_v38 = vrot.slane %v1710_v33, 5  ;;  %v2310_v39 = vshrl.u32 %v13129_v51, 16  ;;  %v2313_v35 = vshll.u32 %v13129_v51, 16  ;;  %v1662_v60 = vld [vmem:[#allocation2 + $0x38] sm:$0x1] }
 0x133   : > { %v13141_v36 = vrot.slane %v2037_v23, 4  ;;  %4399 = vmatprep.mubr.bf16.mxu0 %v9997_v5  ;;  %4560 = vmatprep.mubr.bf16.mxu1 %v10029_v12  ;;  %v1708_v19 = vrot.slane %v1707_v41, 4  ;;  %v1716_v7 = vrot.slane %v1714_v45, 4  ;;  %v2319_v27 = vshll.u32 %v13135_v34, 16  ;;  %v11860_v12 = vld [vmem:[#allocation2 + $0x34] sm:$0xf] }
 0x134   : > { %v2312_v53 = vrot.slane %v2310_v39, 4  ;;  %v2315_v13 = vrot.slane %v2313_v35, 5  ;;  %v2323_v50 = vshrl.u32 %v13135_v34, 16  ;;  %v9998_v9 = vcombine.low %v2134_v3, %v2137_v47  ;;  %v13159_v39 = vld [vmem:[#allocation2 + $0x40] sm:$0xf] }
 0x135   : > { %17138 = vst [vmem:[#allocation27_spill] sm:$0xff] %v13141_v36  ;;  %v1717_v44 = vor.u32 %v1716_v7, %v1712_v38  ;;  %v1722_v1 = vrot.slane %v1720_v10, 5  ;;  %v2329_v61 = vshll.u32 %v2270_v55, 16  ;;  %v1713_v23 = vsel %vm12343_vm14, %v1708_v19, %v1712_v38  ;;  %v11713_v10 = vld [vmem:[#allocation6 + $0x230] sm:$0xff]   ;;  %v13166_v19 = vld [vmem:[#allocation2 + $0x44] sm:$0xf] }
 0x136   : > { %v2316_v29 = vor.u32 %v2315_v13, %v2312_v53  ;;  %v2321_v31 = vrot.slane %v2319_v27, 5  ;;  %v2325_v5 = vrot.slane %v2323_v50, 4  ;;  %v10014_v15 = vcombine.low %v13129_v51, %v13135_v34  ;;  %v11861_v7 = vld [vmem:[#allocation6 + $0x238] sm:$0xff]   ;;  %v13324_v36 = vld [vmem:[#allocation2 + $0x84] sm:$0xf] }
 0x137   : > { %4561 = vmatmul.mubr.bf16.vlgmr.msra.gmra.mxu1 %v10013_v58  ;;  %v1718_v37 = vrot.slane %v1717_v44, 4  ;;  %v2331_v14 = vrot.slane %v2329_v61, 5  ;;  %v9887_v3 = vrot.slane %v2062_v32, 9  ;;  %v2140_v41 = vrot.slane %v11860_v12, 5  ;;  %v11716_v61 = vld [vmem:[#allocation6 + $0x228] sm:$0xff]  }
 0x138   : > { %v2317_v11 = vrot.slane %v2316_v29, 4  ;;  %v2326_v33 = vor.u32 %v2325_v5, %v2321_v31  ;;  %v2143_v45 = vrot.slane %v1662_v60, 5  ;;  %v17139_v47 = vshrl.u32 %v12481_v26, 16  ;;  %v2271_v5 = vld [vmem:[#allocation2 + $0x48] sm:$0x1] }
 0x139   : > { %v1723_v55 = vsel %vm12343_vm14, %v1718_v37, %v1722_v1  ;;  %v17140_v30 = vshll.u32 %v12481_v26, 16  ;;  %v1734_v58 = vshll.u32 %v11860_v12, 16  ;;  %v2141_v32 = vsel %vm12307_vm11, %v9887_v3, %v2140_v41  ;;  %v2063_v37 = vld [vmem:[#allocation2 + $0x40] sm:$0xe] }
 0x13a   : > { %v1727_v38 = vrot.slane %v17139_v47, 4  ;;  %4400 = vmatmul.mubr.bf16.vlgmr.msra.gmra.mxu0 %v13102_v63  ;;  %v9982_v51 = vcombine.low %v1713_v23, %v1723_v55  ;;  %v2322_v34 = vsel %vm12343_vm14, %v2317_v11, %v2321_v31  ;;  %v2327_v35 = vrot.slane %v2326_v33, 4 }
 0x13b   : > { %v1730_v16 = vrot.slane %v17140_v30, 5  ;;  %11445 = vmatpush3.bf16.msra.mxu0 %v11861_v7  ;;  %4407 = vmatprep.mubr.bf16.mxu0 %v9998_v9  ;;  %v2142_v26 = vrot.slane %v2140_v41, 4  ;;  %v1736_v13 = vrot.slane %v1734_v58, 5  ;;  %v1738_v27 = vshrl.u32 %v11860_v12, 16  ;;  %v11862_v7 = vld [vmem:[#allocation2 + $0x44] sm:$0xf] }
 0x13c   : > { %v2332_v63 = vsel %vm12343_vm14, %v2327_v35, %v2331_v14  ;;  %v1744_v50 = vshll.u32 %v1662_v60, 16  ;;  %11446 = vmatprep.subr.bf16.mxu0 %v11713_v10  ;;  %v2334_v44 = vshrl.u32 %v13159_v39, 16  ;;  %v2337_v1 = vshll.u32 %v13159_v39, 16  ;;  %v1663_v14 = vld [vmem:[#allocation2 + $0x48] sm:$0x1]  ;;  %v11719_v60 = vld [vmem:[#allocation6 + $0x220] sm:$0xff]  }
 0x13d   : > { %v1731_v53 = vor.u32 %v1730_v16, %v1727_v38  ;;  %v10030_v23 = vcombine.low %v2322_v34, %v2332_v63  ;;  %v2144_v29 = vsel %vm12307_vm11, %v2142_v26, %v2143_v45  ;;  %v1740_v9 = vrot.slane %v1738_v27, 4 }
 0x13e   : > { %v9999_v3 = vcombine.low %v2141_v32, %v2144_v29  ;;  %v1746_v11 = vrot.slane %v1744_v50, 5  ;;  %v2336_v33 = vrot.slane %v2334_v44, 4  ;;  %v2339_v12 = vrot.slane %v2337_v1, 5  ;;  %v13188_v29 = vld [vmem:[#allocation2 + $0x54] sm:$0xf] }
 0x13f   : > { %v1732_v31 = vrot.slane %v1731_v53, 4  ;;  %4568 = vmatprep.mubr.bf16.mxu1 %v10030_v23  ;;  %v1741_v55 = vor.u32 %v1740_v9, %v1736_v13  ;;  %v2343_v47 = vshll.u32 %v13166_v19, 16  ;;  %v2347_v38 = vshrl.u32 %v13166_v19, 16  ;;  %11447 = vmatpush3.bf16.msra.mxu0 %v11713_v10  ;;  %v13180_v53 = vld [vmem:[#allocation2 + $0x50] sm:$0xf] }
 0x140   : > { %4569 = vmatmul.mubr.bf16.gmra.mxu1 %v10014_v15  ;;  %v2340_v45 = vor.u32 %v2339_v12, %v2336_v33  ;;  %v2353_v30 = vshll.u32 %v2271_v5, 16  ;;  %v10015_v16 = vcombine.low %v13159_v39, %v13166_v19  ;;  %v9888_v58 = vrot.slane %v2063_v37, 9  ;;  %11448 = vmatprep.subr.bf16.mxu0 %v11716_v61 }
 0x141   : > { %v1737_v41 = vsel %vm12343_vm14, %v1732_v31, %v1736_v13  ;;  %v1742_v34 = vrot.slane %v1741_v55, 4  ;;  %v2345_v35 = vrot.slane %v2343_v47, 5  ;;  %v2349_v32 = vrot.slane %v2347_v38, 4 }
 0x142   : > { %v2147_v26 = vrot.slane %v11862_v7, 5  ;;  %4408 = vmatmul.mubr.bf16.gmra.mxu0 %v9982_v51  ;;  %v2341_v13 = vrot.slane %v2340_v45, 4  ;;  %v2355_v27 = vrot.slane %v2353_v30, 5  ;;  %v2150_v63 = vrot.slane %v1663_v14, 5  ;;  %v11722_v51 = vld [vmem:[#allocation6 + $0x218] sm:$0xff]   ;;  %v13198_v38 = vpop.f32.mrf.mxu1 }
 0x143   : > { %v17141_v15 = vshrl.u32 %v12511_v62, 16  ;;  %4415 = vmatprep.mubr.bf16.mxu0 %v9999_v3  ;;  %v1747_v50 = vsel %vm12343_vm14, %v1742_v34, %v1746_v11  ;;  %v2350_v44 = vor.u32 %v2349_v32, %v2345_v35  ;;  %11449 = vmatpush3.bf16.msra.mxu0 %v11716_v61  ;;  %v17142_v37 = vshll.u32 %v12511_v62, 16 }
 0x144   : > { %v2148_v1 = vsel %vm12307_vm11, %v9888_v58, %v2147_v26  ;;  %v2149_v23 = vrot.slane %v2147_v26, 4  ;;  %v13190_v31 = vpop.f32.mrf.mxu0  ;;  %v9983_v9 = vcombine.low %v1737_v41, %v1747_v50  ;;  %v2346_v5 = vsel %vm12343_vm14, %v2341_v13, %v2345_v35  ;;  %11450 = vmatprep.subr.bf16.mxu0 %v11719_v60  ;;  %v2272_v58 = vld [vmem:[#allocation2 + $0x58] sm:$0x1]  ;;  %v2064_v13 = vld [vmem:[#allocation2 + $0x50] sm:$0xe] }
 0x145   : > { %v1751_v10 = vrot.slane %v17141_v15, 4  ;;  %v1754_v3 = vrot.slane %v17142_v37, 5  ;;  %v1758_v33 = vshll.u32 %v11862_v7, 16  ;;  %v2351_v11 = vrot.slane %v2350_v44, 4  ;;  %v13209_v50 = vld [vmem:[#allocation2 + $0x58] sm:$0x1] }
 0x146   : > { %v2151_v12 = vsel %vm12307_vm11, %v2149_v23, %v2150_v63  ;;  %v1762_v55 = vshrl.u32 %v11862_v7, 16  ;;  %v1768_v47 = vshll.u32 %v1663_v14, 16  ;;  %v13200_v61 = vpop.f32.mrf.mxu0  ;;  %v2358_v34 = vshrl.u32 %v13180_v53, 16  ;;  %v13206_v14 = vpop.f32.mrf.mxu1 }
 0x147   : > { %v10000_v45 = vcombine.low %v2148_v1, %v2151_v12  ;;  %v1755_v41 = vor.u32 %v1754_v3, %v1751_v10  ;;  %v1760_v30 = vrot.slane %v1758_v33, 5  ;;  %v2356_v62 = vsel %vm12343_vm14, %v2351_v11, %v2355_v27  ;;  %11451 = vmatpush3.bf16.msra.mxu0 %v11719_v60  ;;  %v11725_v60 = vld [vmem:[#allocation6 + $0x210] sm:$0xff]  }
 0x148   : > { %v1764_v35 = vrot.slane %v1762_v55, 4  ;;  %v1770_v32 = vrot.slane %v1768_v47, 5  ;;  %v2361_v26 = vshll.u32 %v13180_v53, 16  ;;  %v10031_v7 = vcombine.low %v2346_v5, %v2356_v62  ;;  %11452 = vmatprep.subr.bf16.mxu0 %v11722_v51  ;;  %v13211_v44 = vpop.f32.mrf.mxu0  ;;  %v13214_v3 = vpop.f32.mrf.mxu1  ;;  %v11863_v62 = vld [vmem:[#allocation2 + $0x54] sm:$0xf] }
 0x149   : > { %v1756_v63 = vrot.slane %v1755_v41, 4  ;;  %v2360_v15 = vrot.slane %v2358_v34, 4  ;;  %v2367_v10 = vshll.u32 %v13188_v29, 16  ;;  %v2371_v23 = vshrl.u32 %v13188_v29, 16  ;;  %v13223_v34 = vld [vmem:[#allocation2 + $0x60] sm:$0xf] }
 0x14a   : > { %v1765_v1 = vor.u32 %v1764_v35, %v1760_v30  ;;  %v2363_v27 = vrot.slane %v2361_v26, 5  ;;  %v2377_v37 = vshll.u32 %v2272_v58, 16  ;;  %4416 = vmatmul.mubr.bf16.gmra.mxu0 %v9983_v9  ;;  %4576 = vmatprep.mubr.bf16.mxu1 %v10031_v7  ;;  %v10016_v11 = vcombine.low %v13180_v53, %v13188_v29  ;;  %v13225_v9 = vpop.f32.mrf.mxu1  ;;  %v13232_v19 = vpop.f32.mrf.mxu0 }
 0x14b   : > { %v1761_v5 = vsel %vm12343_vm14, %v1756_v63, %v1760_v30  ;;  %v2369_v33 = vrot.slane %v2367_v10, 5  ;;  %v9889_v12 = vrot.slane %v2064_v13, 9  ;;  %4577 = vmatmul.mubr.bf16.gmra.mxu1 %v10015_v16  ;;  %4423 = vmatprep.mubr.bf16.mxu0 %v10000_v45  ;;  %v2373_v41 = vrot.slane %v2371_v23, 4  ;;  %v11728_v16 = vld [vmem:[#allocation6 + $0x208] sm:$0xff]  }
 0x14c   : > { %v1766_v55 = vrot.slane %v1765_v1, 4  ;;  %v2364_v47 = vor.u32 %v2363_v27, %v2360_v15  ;;  %v2379_v58 = vrot.slane %v2377_v37, 5  ;;  %v2154_v30 = vrot.slane %v11863_v62, 5  ;;  %11453 = vmatpush3.bf16.msra.mxu0 %v11722_v51 }
 0x14d   : > { %v2157_v35 = vrot.slane %v13209_v50, 5  ;;  %v17143_v26 = vshrl.u32 %v12543_v21, 16  ;;  %v17144_v7 = vshll.u32 %v12543_v21, 16  ;;  %v2374_v15 = vor.u32 %v2373_v41, %v2369_v33  ;;  %11454 = vmatprep.subr.bf16.mxu0 %v11725_v60  ;;  %v13240_v21 = vpop.f32.mrf.mxu1 }
 0x14e   : > { %v1771_v45 = vsel %vm12343_vm14, %v1766_v55, %v1770_v32  ;;  %v2365_v63 = vrot.slane %v2364_v47, 4  ;;  %v1782_v10 = vshll.u32 %v11863_v62, 16  ;;  %v2155_v27 = vsel %vm12307_vm11, %v9889_v12, %v2154_v30  ;;  %v2273_v55 = vld [vmem:[#allocation2 + $0x68] sm:$0x1]  ;;  %v2065_v47 = vld [vmem:[#allocation2 + $0x60] sm:$0xe] }
 0x14f   : > { %v1775_v13 = vrot.slane %v17143_v26, 4  ;;  %v1778_v39 = vrot.slane %v17144_v7, 5  ;;  %v9984_v1 = vcombine.low %v1761_v5, %v1771_v45  ;;  %v2156_v23 = vrot.slane %v2154_v30, 4  ;;  %v13238_v26 = vld [vmem:[#allocation2 + $0x64] sm:$0xf] }
 0x150   : > { %v2370_v51 = vsel %vm12343_vm14, %v2365_v63, %v2369_v33  ;;  %v2375_v7 = vrot.slane %v2374_v15, 4  ;;  %v1784_v4 = vrot.slane %v1782_v10, 5  ;;  %v1786_v32 = vshrl.u32 %v11863_v62, 16  ;;  %11455 = vmatpush3.bf16.msra.mxu0 %v11725_v60  ;;  %v13253_v63 = vld [vmem:[#allocation2 + $0x68] sm:$0x1]  ;;  %v11731_v15 = vld [vmem:[#allocation6 + $0x200] sm:$0xff]   ;;  %v13259_v60 = vpop.f32.mrf.mxu1 }
 0x151   : > { %v1779_v37 = vor.u32 %v1778_v39, %v1775_v13  ;;  %v2158_v5 = vsel %vm12307_vm11, %v2156_v23, %v2157_v35  ;;  %v1792_v12 = vshll.u32 %v13209_v50, 16  ;;  %v2382_v30 = vshrl.u32 %v13223_v34, 16  ;;  %v13248_v13 = vpop.f32.mrf.mxu0  ;;  %11456 = vmatprep.subr.bf16.mxu0 %v11728_v16 }
 0x152   : > { %v2380_v39 = vsel %vm12343_vm14, %v2375_v7, %v2379_v58  ;;  %v10001_v33 = vcombine.low %v2155_v27, %v2158_v5  ;;  %v1788_v45 = vrot.slane %v1786_v32, 4  ;;  %v2385_v62 = vshll.u32 %v13223_v34, 16  ;;  %4424 = vmatmul.mubr.bf16.gmra.mxu0 %v9984_v1 }
 0x153   : > { %v1780_v41 = vrot.slane %v1779_v37, 4  ;;  %v10032_v35 = vcombine.low %v2370_v51, %v2380_v39  ;;  %v1794_v10 = vrot.slane %v1792_v12, 5  ;;  %v2384_v23 = vrot.slane %v2382_v30, 4  ;;  %v13257_v37 = vpop.f32.mrf.mxu0 }
 0x154   : > { %4431 = vmatprep.mubr.bf16.mxu0 %v10001_v33  ;;  %v1789_v58 = vor.u32 %v1788_v45, %v1784_v4  ;;  %v2387_v27 = vrot.slane %v2385_v62, 5  ;;  %v2391_v7 = vshll.u32 %v13238_v26, 16  ;;  %v2395_v32 = vshrl.u32 %v13238_v26, 16  ;;  %11457 = vmatpush3.bf16.msra.mxu0 %v11728_v16  ;;  %v13270_v62 = vld [vmem:[#allocation2 + $0x70] sm:$0xf]  ;;  %v13277_v16 = vpop.f32.mrf.mxu1 }
 0x155   : > { %v1785_v50 = vsel %vm12343_vm14, %v1780_v41, %v1784_v4  ;;  %4584 = vmatprep.mubr.bf16.mxu1 %v10032_v35  ;;  %v2401_v5 = vshll.u32 %v2273_v55, 16  ;;  %v10017_v1 = vcombine.low %v13223_v34, %v13238_v26  ;;  %v9890_v51 = vrot.slane %v2065_v47, 9  ;;  %v11864_v41 = vld [vmem:[#allocation2 + $0x64] sm:$0xf]  ;;  %v13265_v30 = vpop.f32.mrf.mxu0  ;;  %11458 = vmatprep.subr.bf16.mxu0 %v11731_v15  ;;  %v13275_v35 = vld [vmem:[#allocation2 + $0x74] sm:$0xf] }
 0x156   : > { %v2161_v12 = vrot.slane %v11864_v41, 5  ;;  %4585 = vmatmul.mubr.bf16.gmra.mxu1 %v10016_v11  ;;  %v1790_v4 = vrot.slane %v1789_v58, 4  ;;  %v2388_v39 = vor.u32 %v2387_v27, %v2384_v23  ;;  %v2393_v33 = vrot.slane %v2391_v7, 5 }
 0x157   : > { %v2397_v45 = vrot.slane %v2395_v32, 4  ;;  %v2403_v55 = vrot.slane %v2401_v5, 5  ;;  %v2164_v47 = vrot.slane %v13253_v63, 5  ;;  %v13279_v53 = vpop.f32.mrf.mxu0  ;;  %v17145_v58 = vshrl.u32 %v12615_v22, 16 }
 0x158   : > { %v2162_v34 = vsel %vm12307_vm11, %v9890_v51, %v2161_v12  ;;  %v2163_v26 = vrot.slane %v2161_v12, 4  ;;  %v1795_v29 = vsel %vm12343_vm14, %v1790_v4, %v1794_v10  ;;  %v2389_v11 = vrot.slane %v2388_v39, 4  ;;  %11459 = vmatpush3.bf16.msra.mxu0 %v11731_v15  ;;  %v2274_v4 = vld [vmem:[#allocation2 + $0x78] sm:$0x1]  ;;  %v2066_v39 = vld [vmem:[#allocation2 + $0x70] sm:$0xe] }
 0x159   : > { %v2398_v23 = vor.u32 %v2397_v45, %v2393_v33  ;;  %v1799_v27 = vrot.slane %v17145_v58, 4  ;;  %v9985_v7 = vcombine.low %v1785_v50, %v1795_v29  ;;  %v17146_v5 = vshll.u32 %v12615_v22, 16  ;;  %v13295_v22 = vpop.f32.mrf.mxu0 }
 0x15a   : > { %v2165_v32 = vsel %vm12307_vm11, %v2163_v26, %v2164_v47  ;;  %v1806_v12 = vshll.u32 %v11864_v41, 16  ;;  %v2394_v6 = vsel %vm12343_vm14, %v2389_v11, %v2393_v33  ;;  %v1810_v10 = vshrl.u32 %v11864_v41, 16  ;;  %v13293_v47 = vpop.f32.mrf.mxu1 }
 0x15b   : > { %v1802_v51 = vrot.slane %v17146_v5, 5  ;;  %v2399_v2 = vrot.slane %v2398_v23, 4  ;;  %v10002_v8 = vcombine.low %v2162_v34, %v2165_v32  ;;  %4432 = vmatmul.mubr.bf16.gmra.mxu0 %v9985_v7  ;;  %v1816_v50 = vshll.u32 %v13253_v63, 16  ;;  %v13301_v63 = vpop.f32.mrf.mxu0 }
 0x15c   : > { %v1808_v58 = vrot.slane %v1806_v12, 5  ;;  %v2406_v26 = vshrl.u32 %v13270_v62, 16  ;;  %v1812_v33 = vrot.slane %v1810_v10, 4  ;;  %v2409_v41 = vshll.u32 %v13270_v62, 16  ;;  %v1666_v12 = vld [vmem:[#allocation2 + $0x78] sm:$0x1]  ;;  %v13308_v10 = vpop.f32.mrf.mxu1 }
 0x15d   : > { %v1803_v45 = vor.u32 %v1802_v51, %v1799_v27  ;;  %v2404_v15 = vsel %vm12343_vm14, %v2399_v2, %v2403_v55  ;;  %4439 = vmatprep.mubr.bf16.mxu0 %v10002_v8  ;;  %v2415_v34 = vshll.u32 %v13275_v35, 16  ;;  %v1818_v23 = vrot.slane %v1816_v50, 5 }
 0x15e   : > { %v10033_v29 = vcombine.low %v2394_v6, %v2404_v15  ;;  %v2408_v27 = vrot.slane %v2406_v26, 4  ;;  %v1813_v7 = vor.u32 %v1812_v33, %v1808_v58  ;;  %v2411_v32 = vrot.slane %v2409_v41, 5  ;;  %v11865_v15 = vld [vmem:[#allocation2 + $0x74] sm:$0xf]  ;;  %v13310_v41 = vld [vmem:[#allocation2 + $0x80] sm:$0xf] }
 0x15f   : > { %v1804_v11 = vrot.slane %v1803_v45, 4  ;;  %v2417_v5 = vrot.slane %v2415_v34, 5  ;;  %v2419_v51 = vshrl.u32 %v13275_v35, 16  ;;  %v2425_v8 = vshll.u32 %v2274_v4, 16  ;;  %v13312_v34 = vpop.f32.mrf.mxu0 }
 0x160   : > { %4592 = vmatprep.mubr.bf16.mxu1 %v10033_v29  ;;  %v10018_v55 = vcombine.low %v13270_v62, %v13275_v35  ;;  %v9891_v6 = vrot.slane %v2066_v39, 9  ;;  %v1814_v45 = vrot.slane %v1813_v7, 4  ;;  %v2412_v50 = vor.u32 %v2411_v32, %v2408_v27  ;;  %v13318_v39 = vpop.f32.mrf.mxu1 }
 0x161   : > { %v1809_v2 = vsel %vm12343_vm14, %v1804_v11, %v1808_v58  ;;  %4593 = vmatmul.mubr.bf16.gmra.mxu1 %v10017_v1  ;;  %v2421_v26 = vrot.slane %v2419_v51, 4  ;;  %v2168_v33 = vrot.slane %v11865_v15, 5  ;;  %v2427_v29 = vrot.slane %v2425_v8, 5 }
 0x162   : > { %v2171_v24 = vrot.slane %v1666_v12, 5  ;;  %v17147_v4 = vshrl.u32 %v12672_v49, 16  ;;  %v17148_v62 = vshll.u32 %v12672_v49, 16  ;;  %v1819_v1 = vsel %vm12343_vm14, %v1814_v45, %v1818_v23  ;;  %v13326_v46 = vpop.f32.mrf.mxu1  ;;  %v13330_v45 = vpop.f32.mrf.mxu0 }
 0x163   : > { %v2413_v11 = vrot.slane %v2412_v50, 4  ;;  %v2422_v27 = vor.u32 %v2421_v26, %v2417_v5  ;;  %v2169_v7 = vsel %vm12307_vm11, %v9891_v6, %v2168_v33  ;;  %v9986_v32 = vcombine.low %v1809_v2, %v1819_v1 }
 0x164   : > { %v1823_v58 = vrot.slane %v17147_v4, 4  ;;  %v1826_v35 = vrot.slane %v17148_v62, 5  ;;  %v2170_v51 = vrot.slane %v2168_v33, 4  ;;  %v1830_v42 = vshll.u32 %v11865_v15, 16  ;;  %v2275_v4 = vld [vmem:[#allocation2 + $0x88] sm:$0x1]  ;;  %v13335_v33 = vpop.f32.mrf.mxu1 }
 0x165   : > { %v2418_v49 = vsel %vm12343_vm14, %v2413_v11, %v2417_v5  ;;  %v2423_v62 = vrot.slane %v2422_v27, 4  ;;  %v1834_v25 = vshrl.u32 %v11865_v15, 16  ;;  %v1840_v23 = vshll.u32 %v1666_v12, 16  ;;  %4440 = vmatmul.mubr.bf16.gmra.mxu0 %v9986_v32  ;;  %v2067_v15 = vld [vmem:[#allocation2 + $0x80] sm:$0xe] }
 0x166   : > { %v1827_v8 = vor.u32 %v1826_v35, %v1823_v58  ;;  %v2172_v2 = vsel %vm12307_vm11, %v2170_v51, %v2171_v24  ;;  %v1832_v50 = vrot.slane %v1830_v42, 5  ;;  %v2430_v26 = vshrl.u32 %v13310_v41, 16  ;;  %v1667_v32 = vld [vmem:[#allocation2 + $0x88] sm:$0x1]  ;;  %v13342_v42 = vpop.f32.mrf.mxu1 }
 0x167   : > { %v2428_v58 = vsel %vm12343_vm14, %v2423_v62, %v2427_v29  ;;  %v10003_v35 = vcombine.low %v2169_v7, %v2172_v2  ;;  %v1836_v5 = vrot.slane %v1834_v25, 4  ;;  %v1842_v1 = vrot.slane %v1840_v23, 5  ;;  %v13346_v25 = vpop.f32.mrf.mxu0  ;;  %v11866_v2 = vld [vmem:[#allocation2 + $0x84] sm:$0xf] }
 0x168   : > { %v1828_v6 = vrot.slane %v1827_v8, 4  ;;  %v10034_v12 = vcombine.low %v2418_v49, %v2428_v58  ;;  %v2432_v27 = vrot.slane %v2430_v26, 4  ;;  %v2433_v24 = vshll.u32 %v13310_v41, 16  ;;  %v13350_v26 = vpop.f32.mrf.mxu1 }
 0x169   : > { %4447 = vmatprep.mubr.bf16.mxu0 %v10003_v35  ;;  %v1837_v51 = vor.u32 %v1836_v5, %v1832_v50  ;;  %v2439_v8 = vshll.u32 %v13324_v36, 16  ;;  %v2443_v29 = vshrl.u32 %v13324_v36, 16  ;;  %v2449_v7 = vshll.u32 %v2275_v4, 16  ;;  %v13354_v4 = vpop.f32.mrf.mxu0 }
 0x16a   : > { %v1833_v11 = vsel %vm12343_vm14, %v1828_v6, %v1832_v50  ;;  %4600 = vmatprep.mubr.bf16.mxu1 %v10034_v12  ;;  %v2435_v49 = vrot.slane %v2433_v24, 5  ;;  %v10019_v62 = vcombine.low %v13310_v41, %v13324_v36  ;;  %v9892_v23 = vrot.slane %v2067_v15, 9 }
 0x16b   : > { %v2175_v6 = vrot.slane %v11866_v2, 5  ;;  %4601 = vmatmul.mubr.bf16.gmra.mxu1 %v10018_v55  ;;  %v1838_v58 = vrot.slane %v1837_v51, 4  ;;  %v2441_v50 = vrot.slane %v2439_v8, 5  ;;  %v2445_v35 = vrot.slane %v2443_v29, 4  ;;  %v13366_v57 = vpop.f32.mrf.mxu0 }
 0x16c   : > { %v2451_v5 = vrot.slane %v2449_v7, 5  ;;  %v2436_v59 = vor.u32 %v2435_v49, %v2432_v27  ;;  %v2178_v36 = vrot.slane %v1667_v32, 5  ;;  %v17149_v55 = vshrl.u32 %v12693_v43, 16  ;;  %v13364_v7 = vld [vmem:[#allocation2 + $0x94] sm:$0xf]  ;;  %17151 = vst [vmem:[#allocation28_spill] sm:$0xff] %v13366_v57  ;;  %v13368_v27 = vpop.f32.mrf.mxu1 }
 0x16d   : > { %v2176_v12 = vsel %vm12307_vm11, %v9892_v23, %v2175_v6  ;;  %v2177_v24 = vrot.slane %v2175_v6, 4  ;;  %v1843_v41 = vsel %vm12343_vm14, %v1838_v58, %v1842_v1  ;;  %v2446_v15 = vor.u32 %v2445_v35, %v2441_v50  ;;  %v13372_v20 = vpop.f32.mrf.mxu0 }
 0x16e   : > { %v1847_v51 = vrot.slane %v17149_v55, 4  ;;  %v17150_v8 = vshll.u32 %v12693_v43, 16  ;;  %v9987_v49 = vcombine.low %v1833_v11, %v1843_v41  ;;  %v2437_v23 = vrot.slane %v2436_v59, 4  ;;  %v2276_v55 = vld [vmem:[#allocation2 + $0x98] sm:$0x1] }
 0x16f   : > { %v2179_v6 = vsel %vm12307_vm11, %v2177_v24, %v2178_v36  ;;  %v1854_v18 = vshll.u32 %v11866_v2, 16  ;;  %v2447_v1 = vrot.slane %v2446_v15, 4  ;;  %v1858_v17 = vshrl.u32 %v11866_v2, 16  ;;  %v2068_v59 = vld [vmem:[#allocation2 + $0x90] sm:$0xe]  ;;  %v13380_v15 = vpop.f32.mrf.mxu1 }
 0x170   : > { %v1850_v29 = vrot.slane %v17150_v8, 5  ;;  %v10004_v58 = vcombine.low %v2176_v12, %v2179_v6  ;;  %4448 = vmatmul.mubr.bf16.gmra.mxu0 %v9987_v49  ;;  %v2442_v43 = vsel %vm12343_vm14, %v2437_v23, %v2441_v50  ;;  %v1864_v57 = vshll.u32 %v1667_v32, 16  ;;  %v1668_v41 = vld [vmem:[#allocation2 + $0x98] sm:$0x1]  ;;  %17152 = vst [vmem:[#allocation29_spill] sm:$0xff] %v13380_v15 }
 0x171   : > { %v1856_v8 = vrot.slane %v1854_v18, 5  ;;  %v2454_v11 = vshrl.u32 %v13352_v40, 16  ;;  %v2452_v24 = vsel %vm12343_vm14, %v2447_v1, %v2451_v5  ;;  %v1860_v12 = vrot.slane %v1858_v17, 4 }
 0x172   : > { %v1851_v35 = vor.u32 %v1850_v29, %v1847_v51  ;;  %4455 = vmatprep.mubr.bf16.mxu0 %v10004_v58  ;;  %v2457_v2 = vshll.u32 %v13352_v40, 16  ;;  %v13382_v51 = vpop.f32.mrf.mxu0  ;;  %v10035_v29 = vcombine.low %v2442_v43, %v2452_v24  ;;  %v1866_v50 = vrot.slane %v1864_v57, 5 }
 0x173   : > { %17153 = vst [vmem:[#allocation30_spill] sm:$0xff] %v13382_v51  ;;  %v2456_v18 = vrot.slane %v2454_v11, 4  ;;  %v2463_v32 = vshll.u32 %v13364_v7, 16  ;;  %v1861_v23 = vor.u32 %v1860_v12, %v1856_v8  ;;  %v2467_v6 = vshrl.u32 %v13364_v7, 16  ;;  %v11867_v51 = vld [vmem:[#allocation2 + $0x94] sm:$0xf] }
 0x174   : > { %v1852_v36 = vrot.slane %v1851_v35, 4  ;;  %v2459_v5 = vrot.slane %v2457_v2, 5  ;;  %v13388_v17 = vpop.f32.mrf.mxu0  ;;  %4608 = vmatprep.mubr.bf16.mxu1 %v10035_v29  ;;  %v2473_v58 = vshll.u32 %v2276_v55, 16  ;;  %v10020_v35 = vcombine.low %v13352_v40, %v13364_v7 }
 0x175   : > { %17154 = vst [vmem:[#allocation31_spill] sm:$0xff] %v13388_v17  ;;  %v2465_v1 = vrot.slane %v2463_v32, 5  ;;  %v9893_v43 = vrot.slane %v2068_v59, 9  ;;  %4609 = vmatmul.mubr.bf16.gmra.mxu1 %v10019_v62  ;;  %v1862_v57 = vrot.slane %v1861_v23, 4  ;;  %v2469_v24 = vrot.slane %v2467_v6, 4 }
 0x176   : > { %v1857_v49 = vsel %vm12343_vm14, %v1852_v36, %v1856_v8  ;;  %v2460_v11 = vor.u32 %v2459_v5, %v2456_v18  ;;  %v2182_v15 = vrot.slane %v11867_v51, 5  ;;  %v13392_v36 = vpop.f32.mrf.mxu1  ;;  %v2475_v8 = vrot.slane %v2473_v58, 5  ;;  %v13398_v32 = vpop.f32.mrf.mxu0  ;;  %v13404_v18 = vld [vmem:[#allocation2 + $0xa0] sm:$0xf] }
 0x177   : > { %v2185_v12 = vrot.slane %v1668_v41, 5  ;;  %v17155_v2 = vshrl.u32 %v12763_v54, 16  ;;  %v17156_v29 = vshll.u32 %v12763_v54, 16  ;;  %17157 = vst [vmem:[#allocation32_spill] sm:$0xff] %v13398_v32  ;;  %v1867_v40 = vsel %vm12343_vm14, %v1862_v57, %v1866_v50  ;;  %v13408_v54 = vld [vmem:[#allocation2 + $0xa4] sm:$0xf] }
 0x178   : > { %v2461_v62 = vrot.slane %v2460_v11, 4  ;;  %v2470_v7 = vor.u32 %v2469_v24, %v2465_v1  ;;  %v2183_v59 = vsel %vm12307_vm11, %v9893_v43, %v2182_v15  ;;  %v13406_v23 = vpop.f32.mrf.mxu1  ;;  %v9988_v5 = vcombine.low %v1857_v49, %v1867_v40 }
 0x179   : > { %v1871_v17 = vrot.slane %v17155_v2, 4  ;;  %v1874_v55 = vrot.slane %v17156_v29, 5  ;;  %17158 = vst [vmem:[#allocation33_spill] sm:$0xff] %v13406_v23  ;;  %v2184_v6 = vrot.slane %v2182_v15, 4  ;;  %v1878_v2 = vshll.u32 %v11867_v51, 16 }
 0x17a   : > { %v2277_v29 = vld [vmem:[#allocation2 + $0xa8] sm:$0x1]  ;;  %v2466_v32 = vsel %vm12343_vm14, %v2461_v62, %v2465_v1  ;;  %v2471_v50 = vrot.slane %v2470_v7, 4  ;;  %v1882_v57 = vshrl.u32 %v11867_v51, 16  ;;  %v1888_v11 = vshll.u32 %v1668_v41, 16  ;;  %v13412_v24 = vpop.f32.mrf.mxu1  ;;  %4456 = vmatmul.mubr.bf16.gmra.mxu0 %v9988_v5 }
 0x17b   : > { %v1875_v58 = vor.u32 %v1874_v55, %v1871_v17  ;;  %17159 = vst [vmem:[#allocation34_spill] sm:$0xff] %v13412_v24  ;;  %v2186_v43 = vsel %vm12307_vm11, %v2184_v6, %v2185_v12  ;;  %v1880_v49 = vrot.slane %v1878_v2, 5  ;;  %v2478_v15 = vshrl.u32 %v13404_v18, 16  ;;  %v13417_v17 = vpop.f32.mrf.mxu0  ;;  %v2069_v12 = vld [vmem:[#allocation2 + $0xa0] sm:$0xe] }
 0x17c   : > { %17160 = vst [vmem:[#allocation35_spill] sm:$0xff] %v13417_v17  ;;  %v2476_v55 = vsel %vm12343_vm14, %v2471_v50, %v2475_v8  ;;  %v10005_v40 = vcombine.low %v2183_v59, %v2186_v43  ;;  %v1884_v1 = vrot.slane %v1882_v57, 4  ;;  %v1890_v62 = vrot.slane %v1888_v11, 5  ;;  %v13426_v17 = vpop.f32.mrf.mxu1 }
 0x17d   : > { %v1876_v23 = vrot.slane %v1875_v58, 4  ;;  %v10036_v51 = vcombine.low %v2466_v32, %v2476_v55  ;;  %v2480_v7 = vrot.slane %v2478_v15, 4  ;;  %v2481_v5 = vshll.u32 %v13404_v18, 16  ;;  %v13434_v50 = vpop.f32.mrf.mxu0 }
 0x17e   : > { %4463 = vmatprep.mubr.bf16.mxu0 %v10005_v40  ;;  %v1885_v6 = vor.u32 %v1884_v1, %v1880_v49  ;;  %v2487_v58 = vshll.u32 %v13408_v54, 16  ;;  %v2491_v2 = vshrl.u32 %v13408_v54, 16  ;;  %v2497_v24 = vshll.u32 %v2277_v29, 16  ;;  %v13448_v1 = vpop.f32.mrf.mxu1 }
 0x17f   : > { %v1881_v41 = vsel %vm12343_vm14, %v1876_v23, %v1880_v49  ;;  %4616 = vmatprep.mubr.bf16.mxu1 %v10036_v51  ;;  %v2483_v8 = vrot.slane %v2481_v5, 5  ;;  %v10518_v32 = vadd.f32 %v13200_v61, %v13190_v31  ;;  %v10630_v59 = vadd.f32 %v13206_v14, %v13198_v38  ;;  %v1669_v49 = vld [vmem:[#allocation2 + $0xa8] sm:$0x1]  ;;  %v13442_v61 = vld [vmem:[#allocation2 + $0xb0] sm:$0xf]  ;;  %v13444_v14 = vpop.f32.mrf.mxu0 }
 0x180   : > { %v10021_v23 = vcombine.low %v13404_v18, %v13408_v54  ;;  %4617 = vmatmul.mubr.bf16.gmra.mxu1 %v10020_v35  ;;  %v1886_v57 = vrot.slane %v1885_v6, 4  ;;  %v2489_v11 = vrot.slane %v2487_v58, 5  ;;  %v2493_v43 = vrot.slane %v2491_v2, 4  ;;  %v13458_v2 = vpop.f32.mrf.mxu1 }
 0x181   : > { %v2499_v29 = vrot.slane %v2497_v24, 5  ;;  %v2484_v15 = vor.u32 %v2483_v8, %v2480_v7  ;;  %v13436_v55 = vadd.f32 %v10630_v59, %v10518_v32  ;;  %v10521_v31 = vadd.f32 %v13232_v19, %v13211_v44  ;;  %v11868_v24 = vld [vmem:[#allocation2 + $0xa4] sm:$0xf]  ;;  %v13460_v8 = vpop.f32.mrf.mxu0 }
 0x182   : > { %v10633_v38 = vadd.f32 %v13225_v9, %v13214_v3  ;;  %v1891_v35 = vsel %vm12343_vm14, %v1886_v57, %v1890_v62  ;;  %v2494_v18 = vor.u32 %v2493_v43, %v2489_v11  ;;  %v9894_v54 = vrot.slane %v2069_v12, 9  ;;  %v13456_v62 = vld [vmem:[#allocation2 + $0xb4] sm:$0xf]  ;;  %v2278_v12 = vld [vmem:[#allocation2 + $0xb8] sm:$0x1] }
 0x183   : > { %17161 = vst [vmem:[#allocation36_spill] sm:$0xff] %v13436_v55  ;;  %v2189_v40 = vrot.slane %v11868_v24, 5  ;;  %v9989_v51 = vcombine.low %v1881_v41, %v1891_v35  ;;  %v2485_v7 = vrot.slane %v2484_v15, 4  ;;  %v2192_v44 = vrot.slane %v1669_v49, 5 }
 0x184   : > { %v13450_v5 = vadd.f32 %v10633_v38, %v10521_v31  ;;  %v2495_v19 = vrot.slane %v2494_v18, 4  ;;  %v17163_v6 = vshrl.u32 %v12834_v0, 16  ;;  %v17164_v32 = vshll.u32 %v12834_v0, 16  ;;  %v13471_v18 = vpop.f32.mrf.mxu1 }
 0x185   : > { %v2190_v3 = vsel %vm12307_vm11, %v9894_v54, %v2189_v40  ;;  %v2191_v9 = vrot.slane %v2189_v40, 4  ;;  %4464 = vmatmul.mubr.bf16.gmra.mxu0 %v9989_v51  ;;  %v2490_v41 = vsel %vm12343_vm14, %v2485_v7, %v2489_v11  ;;  %v1902_v57 = vshll.u32 %v11868_v24, 16 }
 0x186   : > { %17162 = vst [vmem:[#allocation37_spill] sm:$0xff] %v13450_v5  ;;  %v1895_v58 = vrot.slane %v17163_v6, 4  ;;  %v1898_v59 = vrot.slane %v17164_v32, 5  ;;  %v1906_v43 = vshrl.u32 %v11868_v24, 16  ;;  %v2500_v15 = vsel %vm12343_vm14, %v2495_v19, %v2499_v29  ;;  %v13474_v32 = vpop.f32.mrf.mxu0  ;;  %v13476_v29 = vpop.f32.mrf.mxu1 }
 0x187   : > { %v2193_v31 = vsel %vm12307_vm11, %v2191_v9, %v2192_v44  ;;  %v1912_v38 = vshll.u32 %v1669_v49, 16  ;;  %v2502_v35 = vshrl.u32 %v13442_v61, 16  ;;  %v10037_v54 = vcombine.low %v2490_v41, %v2500_v15 }
 0x188   : > { %v10006_v40 = vcombine.low %v2190_v3, %v2193_v31  ;;  %v1899_v51 = vor.u32 %v1898_v59, %v1895_v58  ;;  %v1904_v11 = vrot.slane %v1902_v57, 5  ;;  %v1908_v7 = vrot.slane %v1906_v43, 4  ;;  %v1670_v3 = vld [vmem:[#allocation2 + $0xb8] sm:$0x1]  ;;  %v2070_v58 = vld [vmem:[#allocation2 + $0xb0] sm:$0xe] }
 0x189   : > { %v1914_v0 = vrot.slane %v1912_v38, 5  ;;  %v2504_v6 = vrot.slane %v2502_v35, 4  ;;  %v2505_v24 = vshll.u32 %v13442_v61, 16  ;;  %4624 = vmatprep.mubr.bf16.mxu1 %v10037_v54  ;;  %v2511_v44 = vshll.u32 %v13456_v62, 16 }
 0x18a   : > { %4471 = vmatprep.mubr.bf16.mxu0 %v10006_v40  ;;  %v1900_v49 = vrot.slane %v1899_v51, 4  ;;  %v2515_v19 = vshrl.u32 %v13456_v62, 16  ;;  %v2521_v9 = vshll.u32 %v2278_v12, 16  ;;  %4625 = vmatmul.mubr.bf16.gmra.mxu1 %v10021_v23  ;;  %v1909_v41 = vor.u32 %v1908_v7, %v1904_v11  ;;  %v13490_v51 = vpop.f32.mrf.mxu0  ;;  %v13492_v7 = vpop.f32.mrf.mxu1 }
 0x18b   : > { %v2507_v59 = vrot.slane %v2505_v24, 5  ;;  %v10524_v57 = vadd.f32 %v13257_v37, %v13248_v13  ;;  %v10636_v43 = vadd.f32 %v13259_v60, %v13240_v21  ;;  %v2513_v31 = vrot.slane %v2511_v44, 5 }
 0x18c   : > { %v1905_v15 = vsel %vm12343_vm14, %v1900_v49, %v1904_v11  ;;  %v2517_v38 = vrot.slane %v2515_v19, 4  ;;  %v2523_v35 = vrot.slane %v2521_v9, 5  ;;  %v1910_v54 = vrot.slane %v1909_v41, 4  ;;  %v13498_v11 = vld [vmem:[#allocation2 + $0xc0] sm:$0xf]  ;;  %v13502_v44 = vpop.f32.mrf.mxu0  ;;  %v13504_v19 = vpop.f32.mrf.mxu1 }
 0x18d   : > { %v2508_v40 = vor.u32 %v2507_v59, %v2504_v6  ;;  %v13486_v12 = vadd.f32 %v10636_v43, %v10524_v57  ;;  %v10022_v23 = vcombine.low %v13442_v61, %v13456_v62  ;;  %v10527_v21 = vadd.f32 %v13279_v53, %v13265_v30  ;;  %v11869_v49 = vld [vmem:[#allocation2 + $0xb4] sm:$0xf]  ;;  %v13516_v43 = vld [vmem:[#allocation2 + $0xc4] sm:$0xf] }
 0x18e   : > { %v2518_v13 = vor.u32 %v2517_v38, %v2513_v31  ;;  %v10639_v37 = vadd.f32 %v13293_v47, %v13277_v16  ;;  %v9895_v60 = vrot.slane %v2070_v58, 9  ;;  %v1915_v6 = vsel %vm12343_vm14, %v1910_v54, %v1914_v0  ;;  %v13518_v38 = vpop.f32.mrf.mxu0 }
 0x18f   : > { %17165 = vst [vmem:[#allocation38_spill] sm:$0xff] %v13486_v12  ;;  %v2509_v24 = vrot.slane %v2508_v40, 4  ;;  %v2196_v61 = vrot.slane %v11869_v49, 5  ;;  %v2199_v62 = vrot.slane %v1670_v3, 5  ;;  %v9990_v9 = vcombine.low %v1905_v15, %v1915_v6  ;;  %v13520_v15 = vpop.f32.mrf.mxu1 }
 0x190   : > { %v2519_v41 = vrot.slane %v2518_v13, 4  ;;  %v13506_v30 = vadd.f32 %v10639_v37, %v10527_v21  ;;  %v17167_v16 = vshrl.u32 %v12846_v48, 16  ;;  %v17168_v59 = vshll.u32 %v12846_v48, 16  ;;  %v2279_v21 = vld [vmem:[#allocation2 + $0xc8] sm:$0x1] }
 0x191   : > { %v2514_v47 = vsel %vm12343_vm14, %v2509_v24, %v2513_v31  ;;  %v2197_v0 = vsel %vm12307_vm11, %v9895_v60, %v2196_v61  ;;  %v2198_v58 = vrot.slane %v2196_v61, 4  ;;  %4472 = vmatmul.mubr.bf16.gmra.mxu0 %v9990_v9  ;;  %v1926_v40 = vshll.u32 %v11869_v49, 16  ;;  %v13527_v24 = vpop.f32.mrf.mxu0 }
 0x192   : > { %17166 = vst [vmem:[#allocation39_spill] sm:$0xff] %v13506_v30  ;;  %v1919_v53 = vrot.slane %v17167_v16, 4  ;;  %v1922_v57 = vrot.slane %v17168_v59, 5  ;;  %v2524_v54 = vsel %vm12343_vm14, %v2519_v41, %v2523_v35  ;;  %v1930_v13 = vshrl.u32 %v11869_v49, 16  ;;  %v13529_v30 = vpop.f32.mrf.mxu1 }
 0x193   : > { %v1936_v31 = vshll.u32 %v1670_v3, 16  ;;  %v10038_v37 = vcombine.low %v2514_v47, %v2524_v54  ;;  %v2200_v60 = vsel %vm12307_vm11, %v2198_v58, %v2199_v62  ;;  %v2526_v6 = vshrl.u32 %v13498_v11, 16  ;;  %v2071_v47 = vld [vmem:[#allocation2 + $0xc0] sm:$0xe] }
 0x194   : > { %v1923_v48 = vor.u32 %v1922_v57, %v1919_v53  ;;  %v10007_v61 = vcombine.low %v2197_v0, %v2200_v60  ;;  %v1928_v16 = vrot.slane %v1926_v40, 5  ;;  %v1932_v59 = vrot.slane %v1930_v13, 4  ;;  %v1671_v57 = vld [vmem:[#allocation2 + $0xc8] sm:$0x1] }
 0x195   : > { %v1938_v9 = vrot.slane %v1936_v31, 5  ;;  %4632 = vmatprep.mubr.bf16.mxu1 %v10038_v37  ;;  %v2528_v49 = vrot.slane %v2526_v6, 4  ;;  %v2529_v3 = vshll.u32 %v13498_v11, 16  ;;  %v2535_v41 = vshll.u32 %v13516_v43, 16  ;;  %v13540_v37 = vpop.f32.mrf.mxu0  ;;  %v13544_v6 = vpop.f32.mrf.mxu1 }
 0x196   : > { %v1924_v35 = vrot.slane %v1923_v48, 4  ;;  %4633 = vmatmul.mubr.bf16.gmra.mxu1 %v10022_v23  ;;  %4479 = vmatprep.mubr.bf16.mxu0 %v10007_v61  ;;  %v1933_v62 = vor.u32 %v1932_v59, %v1928_v16  ;;  %v2539_v53 = vshrl.u32 %v13516_v43, 16  ;;  %v2545_v58 = vshll.u32 %v2279_v21, 16 }
 0x197   : > { %v10530_v0 = vadd.f32 %v13301_v63, %v13295_v22  ;;  %v2531_v40 = vrot.slane %v2529_v3, 5  ;;  %v2537_v13 = vrot.slane %v2535_v41, 5  ;;  %v10642_v31 = vadd.f32 %v13318_v39, %v13308_v10  ;;  %v13552_v10 = vld [vmem:[#allocation2 + $0xd0] sm:$0xf]  ;;  %v13554_v39 = vpop.f32.mrf.mxu0 }
 0x198   : > { %v1929_v54 = vsel %vm12343_vm14, %v1924_v35, %v1928_v16  ;;  %v1934_v23 = vrot.slane %v1933_v62, 4  ;;  %v2541_v60 = vrot.slane %v2539_v53, 4  ;;  %v2547_v48 = vrot.slane %v2545_v58, 5 }
 0x199   : > { %v10023_v21 = vcombine.low %v13498_v11, %v13516_v43  ;;  %v2532_v22 = vor.u32 %v2531_v40, %v2528_v49  ;;  %v13546_v63 = vadd.f32 %v10642_v31, %v10530_v0  ;;  %v10533_v61 = vadd.f32 %v13330_v45, %v13312_v34  ;;  %v11870_v43 = vld [vmem:[#allocation2 + $0xc4] sm:$0xf]  ;;  %v13558_v49 = vpop.f32.mrf.mxu1  ;;  %v13562_v45 = vpop.f32.mrf.mxu0  ;;  %v2280_v40 = vld [vmem:[#allocation2 + $0xd8] sm:$0x1] }
 0x19a   : > { %v10645_v16 = vadd.f32 %v13335_v33, %v13326_v46  ;;  %v1939_v59 = vsel %vm12343_vm14, %v1934_v23, %v1938_v9  ;;  %v2542_v35 = vor.u32 %v2541_v60, %v2537_v13  ;;  %v9896_v11 = vrot.slane %v2071_v47, 9  ;;  %v13568_v47 = vld [vmem:[#allocation2 + $0xd4] sm:$0xf] }
 0x19b   : > { %17169 = vst [vmem:[#allocation40_spill] sm:$0xff] %v13546_v63  ;;  %v2203_v3 = vrot.slane %v11870_v43, 5  ;;  %v9991_v41 = vcombine.low %v1929_v54, %v1939_v59  ;;  %v2533_v62 = vrot.slane %v2532_v22, 4  ;;  %v2206_v34 = vrot.slane %v1671_v57, 5  ;;  %v2072_v63 = vld [vmem:[#allocation2 + $0xd0] sm:$0xe] }
 0x19c   : > { %v13560_v53 = vadd.f32 %v10645_v16, %v10533_v61  ;;  %v2543_v46 = vrot.slane %v2542_v35, 4  ;;  %v17171_v9 = vshrl.u32 %v12916_v56, 16  ;;  %v17172_v31 = vshll.u32 %v12916_v56, 16  ;;  %v13574_v61 = vpop.f32.mrf.mxu0 }
 0x19d   : > { %v2204_v33 = vsel %vm12307_vm11, %v9896_v11, %v2203_v3  ;;  %v2205_v58 = vrot.slane %v2203_v3, 4  ;;  %4480 = vmatmul.mubr.bf16.gmra.mxu0 %v9991_v41  ;;  %v2538_v54 = vsel %vm12343_vm14, %v2533_v62, %v2537_v13  ;;  %v1950_v60 = vshll.u32 %v11870_v43, 16  ;;  %v13581_v3 = vpop.f32.mrf.mxu1 }
 0x19e   : > { %17170 = vst [vmem:[#allocation41_spill] sm:$0xff] %v13560_v53  ;;  %v1943_v0 = vrot.slane %v17171_v9, 4  ;;  %v1946_v23 = vrot.slane %v17172_v31, 5  ;;  %v1954_v22 = vshrl.u32 %v11870_v43, 16  ;;  %v2548_v16 = vsel %vm12343_vm14, %v2543_v46, %v2547_v48  ;;  %v13586_v12 = vpop.f32.mrf.mxu0 }
 0x19f   : > { %v2207_v59 = vsel %vm12307_vm11, %v2205_v58, %v2206_v34  ;;  %v1960_v35 = vshll.u32 %v1671_v57, 16  ;;  %v2550_v11 = vshrl.u32 %v13552_v10, 16  ;;  %v10039_v41 = vcombine.low %v2538_v54, %v2548_v16  ;;  %v1672_v58 = vld [vmem:[#allocation2 + $0xd8] sm:$0x1] }
 0x1a0   : > { %v10008_v13 = vcombine.low %v2204_v33, %v2207_v59  ;;  %v1947_v62 = vor.u32 %v1946_v23, %v1943_v0  ;;  %v1952_v56 = vrot.slane %v1950_v60, 5  ;;  %v1956_v9 = vrot.slane %v1954_v22, 4  ;;  %v13592_v60 = vpop.f32.mrf.mxu1 }
 0x1a1   : > { %v1962_v31 = vrot.slane %v1960_v35, 5  ;;  %v2552_v43 = vrot.slane %v2550_v11, 4  ;;  %v2553_v53 = vshll.u32 %v13552_v10, 16  ;;  %4640 = vmatprep.mubr.bf16.mxu1 %v10039_v41  ;;  %v2559_v34 = vshll.u32 %v13568_v47, 16 }
 0x1a2   : > { %4487 = vmatprep.mubr.bf16.mxu0 %v10008_v13  ;;  %v1948_v48 = vrot.slane %v1947_v62, 4  ;;  %v2563_v57 = vshrl.u32 %v13568_v47, 16  ;;  %v2569_v46 = vshll.u32 %v2280_v40, 16  ;;  %4641 = vmatmul.mubr.bf16.gmra.mxu1 %v10023_v21  ;;  %v1957_v33 = vor.u32 %v1956_v9, %v1952_v56 }
 0x1a3   : > { %v2555_v0 = vrot.slane %v2553_v53, 5  ;;  %v10536_v54 = vadd.f32 %v13354_v4, %v13346_v25  ;;  %v10648_v23 = vadd.f32 %v13350_v26, %v13342_v42  ;;  %v2561_v16 = vrot.slane %v2559_v34, 5  ;;  %v13600_v53 = vpop.f32.mrf.mxu0  ;;  %v17174_v4 = vld [vmem:[#allocation28_spill] sm:$0xff]  ;;  %v17175_v26 = vld [vmem:[#allocation29_spill] sm:$0xff] }
 0x1a4   : > { %v1953_v22 = vsel %vm12343_vm14, %v1948_v48, %v1952_v56  ;;  %v2565_v59 = vrot.slane %v2563_v57, 4  ;;  %v2571_v40 = vrot.slane %v2569_v46, 5  ;;  %v1958_v35 = vrot.slane %v1957_v33, 4  ;;  %v13606_v56 = vld [vmem:[#allocation2 + $0xe0] sm:$0xf] }
 0x1a5   : > { %v2556_v11 = vor.u32 %v2555_v0, %v2552_v43  ;;  %v13596_v41 = vadd.f32 %v10648_v23, %v10536_v54  ;;  %v10024_v21 = vcombine.low %v13552_v10, %v13568_v47  ;;  %v10539_v42 = vadd.f32 %v13372_v20, %v17174_v4  ;;  %v11871_v48 = vld [vmem:[#allocation2 + $0xd4] sm:$0xf]  ;;  %v13610_v10 = vpop.f32.mrf.mxu1  ;;  %v17178_v0 = vld [vmem:[#allocation20_spill] sm:$0xff] }
 0x1a6   : > { %v2566_v25 = vor.u32 %v2565_v59, %v2561_v16  ;;  %v10651_v13 = vadd.f32 %v17175_v26, %v13368_v27  ;;  %v9897_v62 = vrot.slane %v2072_v63, 9  ;;  %v1963_v9 = vsel %vm12343_vm14, %v1958_v35, %v1962_v31  ;;  %v17177_v20 = vld [vmem:[#allocation19_spill] sm:$0xff]  ;;  %v13616_v27 = vld [vmem:[#allocation2 + $0xe4] sm:$0xf]  ;;  %v13622_v35 = vld [vmem:[#allocation2 + $0xe8] sm:$0x1] }
 0x1a7   : > { %17173 = vst [vmem:[#allocation42_spill] sm:$0xff] %v13596_v41  ;;  %v2557_v43 = vrot.slane %v2556_v11, 4  ;;  %v2210_v34 = vrot.slane %v11871_v48, 5  ;;  %v2213_v57 = vrot.slane %v1672_v58, 5  ;;  %v9992_v47 = vcombine.low %v1953_v22, %v1963_v9  ;;  %17179 = vst [vmem:[#allocation29_spill] sm:$0xff] %v13616_v27  ;;  %v13624_v11 = vpop.f32.mrf.mxu1  ;;  %v13626_v22 = vpop.f32.mrf.mxu0 }
 0x1a8   : > { %v2567_v46 = vrot.slane %v2566_v25, 4  ;;  %v13612_v33 = vadd.f32 %v10651_v13, %v10539_v42  ;;  %v1971_v54 = vor.u32 %v17178_v0, %v17177_v20  ;;  %v1974_v59 = vshll.u32 %v11871_v48, 16  ;;  %17180 = vst [vmem:[#allocation19_spill] sm:$0xff] %v13622_v35 }
 0x1a9   : > { %v2562_v63 = vsel %vm12343_vm14, %v2557_v43, %v2561_v16  ;;  %v2211_v31 = vsel %vm12307_vm11, %v9897_v62, %v2210_v34  ;;  %v2212_v23 = vrot.slane %v2210_v34, 4  ;;  %4488 = vmatmul.mubr.bf16.gmra.mxu0 %v9992_v47  ;;  %v1978_v42 = vshrl.u32 %v11871_v48, 16  ;;  %v13633_v43 = vpop.f32.mrf.mxu1 }
 0x1aa   : > { %17176 = vst [vmem:[#allocation28_spill] sm:$0xff] %v13612_v33  ;;  %v2572_v25 = vsel %vm12343_vm14, %v2567_v46, %v2571_v40  ;;  %v1972_v4 = vrot.slane %v1971_v54, 4  ;;  %v1984_v26 = vshll.u32 %v1672_v58, 16  ;;  %v1976_v62 = vrot.slane %v1974_v59, 5  ;;  %v2073_v33 = vld [vmem:[#allocation2 + $0xe0] sm:$0xe]  ;;  %v13640_v54 = vpop.f32.mrf.mxu0 }
 0x1ab   : > { %v10040_v13 = vcombine.low %v2562_v63, %v2572_v25  ;;  %v2214_v16 = vsel %vm12307_vm11, %v2212_v23, %v2213_v57  ;;  %v2574_v9 = vshrl.u32 %v13606_v56, 16  ;;  %v1980_v20 = vrot.slane %v1978_v42, 4  ;;  %v1673_v46 = vld [vmem:[#allocation2 + $0xe8] sm:$0x1]  ;;  %v13642_v63 = vpop.f32.mrf.mxu1  ;;  %v17183_v42 = vld [vmem:[#allocation31_spill] sm:$0xff] }
 0x1ac   : > { %v10009_v34 = vcombine.low %v2211_v31, %v2214_v16  ;;  %v1986_v0 = vrot.slane %v1984_v26, 5  ;;  %v2577_v47 = vshll.u32 %v13606_v56, 16  ;;  %v1977_v40 = vsel %vm12343_vm14, %v1972_v4, %v1976_v62  ;;  %17181 = vst [vmem:[#allocation20_spill] sm:$0xff] %v13642_v63  ;;  %v17182_v25 = vld [vmem:[#allocation30_spill] sm:$0xff]  ;;  %v17184_v16 = vld [vmem:[#allocation33_spill] sm:$0xff] }
 0x1ad   : > { %4648 = vmatprep.mubr.bf16.mxu1 %v10040_v13  ;;  %v2576_v58 = vrot.slane %v2574_v9, 4  ;;  %v2583_v48 = vshll.u32 %v13616_v27, 16  ;;  %v2587_v57 = vshrl.u32 %v13616_v27, 16  ;;  %v1981_v31 = vor.u32 %v1980_v20, %v1976_v62 }
 0x1ae   : > { %4649 = vmatmul.mubr.bf16.gmra.mxu1 %v10024_v21  ;;  %4495 = vmatprep.mubr.bf16.mxu0 %v10009_v34  ;;  %v2579_v23 = vrot.slane %v2577_v47, 5  ;;  %v2593_v59 = vshll.u32 %v13622_v35, 16  ;;  %v10542_v26 = vadd.f32 %v17183_v42, %v17182_v25  ;;  %v10654_v9 = vadd.f32 %v17184_v16, %v13392_v36  ;;  %v17185_v21 = vld [vmem:[#allocation32_spill] sm:$0xff]  ;;  %v17186_v34 = vld [vmem:[#allocation35_spill] sm:$0xff]  ;;  %v17188_v35 = vld [vmem:[#allocation34_spill] sm:$0xff]  ;;  %v13659_v42 = vpop.f32.mrf.mxu1 }
 0x1af   : > { %v2585_v4 = vrot.slane %v2583_v48, 5  ;;  %v2589_v13 = vrot.slane %v2587_v57, 4  ;;  %v10025_v41 = vcombine.low %v13606_v56, %v13616_v27  ;;  %v1982_v5 = vrot.slane %v1981_v31, 4  ;;  %v13657_v57 = vpop.f32.mrf.mxu0 }
 0x1b0   : > { %v2580_v55 = vor.u32 %v2579_v23, %v2576_v58  ;;  %v2595_v63 = vrot.slane %v2593_v59, 5  ;;  %v10545_v62 = vadd.f32 %v17186_v34, %v17185_v21  ;;  %v13653_v47 = vadd.f32 %v10654_v9, %v10542_v26  ;;  %v11872_v58 = vld [vmem:[#allocation2 + $0xe4] sm:$0xf]  ;;  %v17191_v9 = vld [vmem:[#allocation22_spill] sm:$0xff] }
 0x1b1   : > { %v2590_v20 = vor.u32 %v2589_v13, %v2585_v4  ;;  %v10657_v25 = vadd.f32 %v13426_v17, %v17188_v35  ;;  %v9898_v48 = vrot.slane %v2073_v33, 9  ;;  %v1987_v36 = vsel %vm12343_vm14, %v1982_v5, %v1986_v0  ;;  %v17190_v26 = vld [vmem:[#allocation21_spill] sm:$0xff]  ;;  %v13667_v17 = vld [vmem:[#allocation2 + $0xf0] sm:$0xf]  ;;  %v13669_v33 = vpop.f32.mrf.mxu0  ;;  %v13671_v35 = vpop.f32.mrf.mxu1 }
 0x1b2   : > { %17187 = vst [vmem:[#allocation30_spill] sm:$0xff] %v13653_v47  ;;  %v2581_v56 = vrot.slane %v2580_v55, 4  ;;  %v2217_v31 = vrot.slane %v11872_v58, 5  ;;  %v2220_v23 = vrot.slane %v1673_v46, 5  ;;  %v9993_v59 = vcombine.low %v1977_v40, %v1987_v36  ;;  %v13679_v36 = vld [vmem:[#allocation2 + $0xf4] sm:$0xf] }
 0x1b3   : > { %v2591_v16 = vrot.slane %v2590_v20, 4  ;;  %v13663_v13 = vadd.f32 %v10657_v25, %v10545_v62  ;;  %v1995_v21 = vor.u32 %v17191_v9, %v17190_v26  ;;  %v1998_v40 = vshll.u32 %v11872_v58, 16  ;;  %17192 = vst [vmem:[#allocation33_spill] sm:$0xff] %v13679_v36  ;;  %v13681_v26 = vpop.f32.mrf.mxu0  ;;  %v13683_v9 = vpop.f32.mrf.mxu1 }
 0x1b4   : > { %v2586_v5 = vsel %vm12343_vm14, %v2581_v56, %v2585_v4  ;;  %v2218_v55 = vsel %vm12307_vm11, %v9898_v48, %v2217_v31  ;;  %v2219_v0 = vrot.slane %v2217_v31, 4  ;;  %4496 = vmatmul.mubr.bf16.gmra.mxu0 %v9993_v59  ;;  %v2002_v20 = vshrl.u32 %v11872_v58, 16  ;;  %v13687_v56 = vld [vmem:[#allocation2 + $0xf8] sm:$0x1] }
 0x1b5   : > { %17189 = vst [vmem:[#allocation31_spill] sm:$0xff] %v13663_v13  ;;  %v2596_v34 = vsel %vm12343_vm14, %v2591_v16, %v2595_v63  ;;  %v1996_v62 = vrot.slane %v1995_v21, 4  ;;  %v2008_v25 = vshll.u32 %v1673_v46, 16  ;;  %v2000_v48 = vrot.slane %v1998_v40, 5  ;;  %17193 = vst [vmem:[#allocation32_spill] sm:$0xff] %v13687_v56  ;;  %v13691_v58 = vpop.f32.mrf.mxu0  ;;  %v13693_v21 = vpop.f32.mrf.mxu1 }
 0x1b6   : > { %v10041_v13 = vcombine.low %v2586_v5, %v2596_v34  ;;  %v2221_v4 = vsel %vm12307_vm11, %v2219_v0, %v2220_v23  ;;  %v2598_v31 = vshrl.u32 %v13667_v17, 16  ;;  %v2004_v63 = vrot.slane %v2002_v20, 4 }
 0x1b7   : > { %v10010_v59 = vcombine.low %v2218_v55, %v2221_v4  ;;  %v2010_v16 = vrot.slane %v2008_v25, 5  ;;  %v2601_v46 = vshll.u32 %v13667_v17, 16  ;;  %v2001_v5 = vsel %vm12343_vm14, %v1996_v62, %v2000_v48  ;;  %v2074_v4 = vld [vmem:[#allocation2 + $0xf0] sm:$0xe]  ;;  %v13702_v47 = vpop.f32.mrf.mxu1 }
 0x1b8   : > { %4656 = vmatprep.mubr.bf16.mxu1 %v10041_v13  ;;  %v2600_v34 = vrot.slane %v2598_v31, 4  ;;  %v2607_v23 = vshll.u32 %v13679_v36, 16  ;;  %v2611_v0 = vshrl.u32 %v13679_v36, 16  ;;  %v2005_v55 = vor.u32 %v2004_v63, %v2000_v48 }
 0x1b9   : > { %4657 = vmatmul.mubr.bf16.gmra.mxu1 %v10025_v41  ;;  %4503 = vmatprep.mubr.bf16.mxu0 %v10010_v59  ;;  %v2603_v40 = vrot.slane %v2601_v46, 5  ;;  %v2617_v20 = vshll.u32 %v13687_v56, 16  ;;  %v10548_v25 = vadd.f32 %v13444_v14, %v13434_v50  ;;  %v10660_v62 = vadd.f32 %v13458_v2, %v13448_v1  ;;  %v1674_v41 = vld [vmem:[#allocation2 + $0xf8] sm:$0x1]  ;;  %v13710_v56 = vpop.f32.mrf.mxu0 }
 0x1ba   : > { %v2609_v13 = vrot.slane %v2607_v23, 5  ;;  %v2613_v27 = vrot.slane %v2611_v0, 4  ;;  %v10026_v31 = vcombine.low %v13667_v17, %v13679_v36  ;;  %v2006_v59 = vrot.slane %v2005_v55, 4  ;;  %v11873_v17 = vld [vmem:[#allocation2 + $0xf4] sm:$0xf] }
 0x1bb   : > { %v2604_v48 = vor.u32 %v2603_v40, %v2600_v34  ;;  %v2619_v63 = vrot.slane %v2617_v20, 5  ;;  %v10551_v46 = vadd.f32 %v13474_v32, %v13460_v8  ;;  %v13712_v14 = vadd.f32 %v10660_v62, %v10548_v25  ;;  %v13718_v40 = vpop.f32.mrf.mxu0  ;;  %v13720_v20 = vpop.f32.mrf.mxu1  ;;  %v17196_v25 = vld [vmem:[#allocation24_spill] sm:$0xff]  ;;  %v17197_v62 = vld [vmem:[#allocation25_spill] sm:$0xff] }
 0x1bc   : > { %v2614_v50 = vor.u32 %v2613_v27, %v2609_v13  ;;  %v10663_v23 = vadd.f32 %v13476_v29, %v13471_v18  ;;  %v9899_v0 = vrot.slane %v2074_v4, 9  ;;  %v2011_v1 = vsel %vm12343_vm14, %v2006_v59, %v2010_v16  ;;  %v443_v18 = vld [vmem:[#allocation2 + $0x108] sm:$0x1] }
 0x1bd   : > { %17194 = vst [vmem:[#allocation35_spill] sm:$0xff] %v13712_v14  ;;  %v2605_v2 = vrot.slane %v2604_v48, 4  ;;  %v2224_v55 = vrot.slane %v11873_v17, 5  ;;  %v2227_v34 = vrot.slane %v1674_v41, 5  ;;  %v9994_v8 = vcombine.low %v2001_v5, %v2011_v1  ;;  %v13730_v48 = vld [vmem:[#allocation2 + $0x100] sm:$0xf]  ;;  %v13732_v36 = vpop.f32.mrf.mxu0 }
 0x1be   : > { %v2615_v32 = vrot.slane %v2614_v50, 4  ;;  %v13722_v27 = vadd.f32 %v10663_v23, %v10551_v46  ;;  %v2019_v14 = vor.u32 %v17197_v62, %v17196_v25  ;;  %v2022_v59 = vshll.u32 %v11873_v17, 16  ;;  %17198 = vst [vmem:[#allocation21_spill] sm:$0xff] %v13732_v36  ;;  %v13736_v1 = vld [vmem:[#allocation2 + $0x104] sm:$0xf]  ;;  %v13742_v62 = vpop.f32.mrf.mxu1 }
 0x1bf   : > { %v2610_v29 = vsel %vm12343_vm14, %v2605_v2, %v2609_v13  ;;  %v2225_v16 = vsel %vm12307_vm11, %v9899_v0, %v2224_v55  ;;  %v2226_v4 = vrot.slane %v2224_v55, 4  ;;  %4504 = vmatmul.mubr.bf16.gmra.mxu0 %v9994_v8  ;;  %v2026_v50 = vshrl.u32 %v11873_v17, 16  ;;  %v17200_v8 = vld [vmem:[#allocation26_spill] sm:$0xff] }
 0x1c0   : > { %17195 = vst [vmem:[#allocation34_spill] sm:$0xff] %v13722_v27  ;;  %v2620_v5 = vsel %vm12343_vm14, %v2615_v32, %v2619_v63  ;;  %v2020_v46 = vrot.slane %v2019_v14, 4  ;;  %v2032_v23 = vshll.u32 %v1674_v41, 16  ;;  %v2024_v0 = vrot.slane %v2022_v59, 5  ;;  %v13744_v27 = vpop.f32.mrf.mxu0 }
 0x1c1   : > { %v10042_v25 = vcombine.low %v2610_v29, %v2620_v5  ;;  %v2228_v13 = vsel %vm12307_vm11, %v2226_v4, %v2227_v34  ;;  %v444_v55 = vsel %vm12286_vm4, 0, %v443_v18  ;;  %v17201_v36 = vshll.u32 %v17200_v8, 16 }
 0x1c2   : > { %v10011_v14 = vcombine.low %v2225_v16, %v2228_v13  ;;  %v2028_v17 = vrot.slane %v2026_v50, 4  ;;  %445 = vst [vmem:[#allocation2 + $0x108] sm:$0x1] %v444_v55  ;;  %v2622_v41 = vshrl.u32 %v13730_v48, 16  ;;  %v2034_v32 = vrot.slane %v2032_v23, 5  ;;  %v13760_v13 = vpop.f32.mrf.mxu1  ;;  %v13762_v55 = vpop.f32.mrf.mxu0 }
 0x1c3   : > { %v2042_v63 = vrot.slane %v17201_v36, 5  ;;  %4664 = vmatprep.mubr.bf16.mxu1 %v10042_v25  ;;  %v2625_v34 = vshll.u32 %v13730_v48, 16  ;;  %v2631_v29 = vshll.u32 %v13736_v1, 16  ;;  %v2635_v18 = vshrl.u32 %v13736_v1, 16 }
 0x1c4   : > { %4665 = vmatmul.mubr.bf16.gmra.mxu1 %v10026_v31  ;;  %4511 = vmatprep.mubr.bf16.mxu0 %v10011_v14  ;;  %v2029_v4 = vor.u32 %v2028_v17, %v2024_v0  ;;  %v2624_v59 = vrot.slane %v2622_v41, 4  ;;  %v10554_v36 = vadd.f32 %v13502_v44, %v13490_v51  ;;  %v10666_v16 = vadd.f32 %v13504_v19, %v13492_v7  ;;  %v13770_v44 = vld [vmem:[#allocation2 + $0x34] sm:$0xf] }
 0x1c5   : > { %v2025_v5 = vsel %vm12343_vm14, %v2020_v46, %v2024_v0  ;;  %v2627_v50 = vrot.slane %v2625_v34, 5  ;;  %v13758_v23 = vrot.slane %v2631_v29, 5  ;;  %v2637_v25 = vrot.slane %v2635_v18, 4  ;;  %v2075_v0 = vld [vmem:[#allocation2 + $0x100] sm:$0xe]  ;;  %v17204_v41 = vld [vmem:[#allocation27_spill] sm:$0xff] }
 0x1c6   : > { %v2030_v31 = vrot.slane %v2029_v4, 4  ;;  %v13764_v8 = vadd.f32 %v10666_v16, %v10554_v36  ;;  %v10557_v51 = vadd.f32 %v13527_v24, %v13518_v38  ;;  %v10669_v7 = vadd.f32 %v13529_v30, %v13520_v15  ;;  %v11875_v29 = vld [vmem:[#allocation2 + $0x104] sm:$0xf]  ;;  %v390_v4 = vld [vmem:[#allocation2 + $0x110] sm:$0x1] }
 0x1c7   : > { %v2628_v46 = vor.u32 %v2627_v50, %v2624_v59  ;;  %v2043_v34 = vor.u32 %v2042_v63, %v17204_v41  ;;  %v2046_v18 = vshll.u32 %v11875_v29, 16  ;;  %v446_v38 = vld [vmem:[#allocation2 + $0x118] sm:$0x1]  ;;  %v2638_v59 = vor.u32 %v2637_v25, %v13758_v23  ;;  %v13786_v50 = vpop.f32.mrf.mxu1  ;;  %v13788_v63 = vpop.f32.mrf.mxu0 }
 0x1c8   : > { %17202 = vst [vmem:[#allocation22_spill] sm:$0xff] %v13764_v8  ;;  %v2035_v14 = vsel %vm12343_vm14, %v2030_v31, %v2034_v32  ;;  %v13775_v17 = vadd.f32 %v10669_v7, %v10557_v51  ;;  %v13778_v24 = vld [vmem:[#allocation2 + $0x38] sm:$0x1]  ;;  %v13784_v32 = vld [vmem:[#allocation2 + $0x114] sm:$0xf]  ;;  %17205 = vst [vmem:[#allocation25_spill] sm:$0xff] %v13786_v50  ;;  %v10563_v2 = vadd.f32 %v13574_v61, %v13562_v45 }
 0x1c9   : > { %v9995_v15 = vcombine.low %v2025_v5, %v2035_v14  ;;  %v1011_v36 = vld [vmem:[#allocation2 + $0x108] sm:$0x1]  ;;  %v17206_v31 = vld [vmem:[#allocation23_spill] sm:$0xff]  ;;  %v13794_v19 = vrot.slane %v2628_v46, 4  ;;  %v9900_v5 = vrot.slane %v2075_v0, 9  ;;  %v2231_v14 = vrot.slane %v11875_v29, 5 }
 0x1ca   : > { %17203 = vst [vmem:[#allocation24_spill] sm:$0xff] %v13775_v17  ;;  %v17207_v51 = vrot.slane %v17206_v31, 4  ;;  %v13796_v25 = vrot.slane %v2046_v18, 5  ;;  %v2050_v30 = vshrl.u32 %v11875_v29, 16  ;;  %v391_v16 = vsel %vm12281_vm3, 0, %v390_v4  ;;  %v13802_v31 = vpop.f32.mrf.mxu1 }
 0x1cb   : > { %4512 = vmatmul.mubr.bf16.gmra.mxu0 %v9995_v15  ;;  %v447_v17 = vsel %vm12286_vm4, 0, %v446_v38  ;;  %v2669_v8 = vld [vmem:[#allocation2 + $0x20] sm:$0xe]  ;;  %v13804_v50 = vrot.slane %v2043_v34, 4  ;;  %392 = vst [vmem:[#allocation2 + $0x110] sm:$0x1] %v391_v16  ;;  %v10560_v29 = vadd.f32 %v13554_v39, %v13540_v37  ;;  %v10672_v4 = vadd.f32 %v13558_v49, %v13544_v6  ;;  %v13816_v38 = vpop.f32.mrf.mxu0 }
 0x1cc   : > { %v1012_v41 = vsel %vm12281_vm3, %v17207_v51, %v1011_v36  ;;  %448 = vst [vmem:[#allocation2 + $0x118] sm:$0x1] %v447_v17  ;;  %v2655_v46 = vshll.u32 %v13784_v32, 16  ;;  %v2659_v0 = vshrl.u32 %v13784_v32, 16  ;;  %v2052_v18 = vrot.slane %v2050_v30, 4  ;;  %v13818_v17 = vpop.f32.mrf.mxu1 }
 0x1cd   : > { %1013 = vst [vmem:[#allocation2 + $0x108] sm:$0x1] %v1012_v41  ;;  %v10675_v34 = vadd.f32 %v13592_v60, %v13581_v3  ;;  %17209 = vst [vmem:[#allocation14_spill] sm:$0xff] %v13818_v17  ;;  %v9901_v16 = vrot.slane %v2669_v8, 9  ;;  %v11877_v51 = vld [vmem:[#allocation2 + $0x24] sm:$0xf]  ;;  %v13823_v6 = vadd.f32 %v10672_v4, %v10560_v29  ;;  %v2232_v3 = vsel %vm12307_vm11, %v9900_v5, %v2231_v14  ;;  %v13842_v4 = vpop.f32.mrf.mxu0 }
 0x1ce   : > { %v13820_v15 = vrot.slane %v2655_v46, 5  ;;  %v2661_v36 = vrot.slane %v2659_v0, 4  ;;  %v2735_v37 = vrot.slane %v11877_v51, 5  ;;  %v2639_v39 = vrot.slane %v2638_v59, 4  ;;  %v13827_v45 = vld [vmem:[#allocation2 + $0x30] sm:$0xe]  ;;  %v13829_v61 = vpop.f32.mrf.mxu1 }
 0x1cf   : > { %v2053_v30 = vor.u32 %v2052_v18, %v13796_v25  ;;  %17210 = vst [vmem:[#allocation26_spill] sm:$0xff] %v13823_v6  ;;  %v13825_v49 = vadd.f32 %v10675_v34, %v10563_v2  ;;  %17212 = vst [vmem:[#allocation23_spill] sm:$0xff] %v13829_v61  ;;  %v11878_v8 = vld [vmem:[#allocation2 + $0x28] sm:$0x1]  ;;  %v2634_v59 = vsel %vm12343_vm14, %v13794_v19, %v13758_v23  ;;  %v2233_v0 = vrot.slane %v2231_v14, 4 }
 0x1d0   : > { %v2662_v60 = vor.u32 %v2661_v36, %v13820_v15  ;;  %v2737_v41 = vrot.slane %v2735_v37, 4  ;;  %v2738_v46 = vrot.slane %v11878_v8, 5  ;;  %v10566_v29 = vadd.f32 %v13600_v53, %v13586_v12  ;;  %v13858_v8 = vpop.f32.mrf.mxu1  ;;  %v2671_v17 = vld [vmem:[#allocation2 + $0x40] sm:$0xe] }
 0x1d1   : > { %17211 = vst [vmem:[#allocation27_spill] sm:$0xff] %v13825_v49  ;;  %v10678_v18 = vadd.f32 %v13624_v11, %v13610_v10  ;;  %v2049_v34 = vsel %vm12343_vm14, %v13804_v50, %v13796_v25  ;;  %v2054_v36 = vrot.slane %v2053_v30, 4  ;;  %v2736_v23 = vsel %vm12307_vm11, %v9901_v16, %v2735_v37  ;;  %17215 = vst [vmem:[#allocation44_spill] sm:$0xff] %v13858_v8  ;;  %v17252_v52 = vld [vmem:[#allocation24_spill] sm:$0xff] }
 0x1d2   : > { %v9902_v19 = vrot.slane %v13827_v45, 9  ;;  %v13854_v11 = vld [vmem:[#allocation2 + $0x110] sm:$0xf]  ;;  %v17214_v14 = vrot.slane %v13770_v44, 5  ;;  %v2663_v16 = vrot.slane %v2662_v60, 4  ;;  %v2739_v37 = vsel %vm12307_vm11, %v2737_v41, %v2738_v46  ;;  %v13871_v6 = vpop.f32.mrf.mxu1 }
 0x1d3   : > { %v13860_v7 = vld [vmem:[#allocation2 + $0x118] sm:$0x1]  ;;  %v2646_v50 = vshrl.u32 %v13854_v11, 16  ;;  %v2649_v25 = vshll.u32 %v13854_v11, 16  ;;  %17217 = vst [vmem:[#allocation46_spill] sm:$0xff] %v13871_v6  ;;  %v10569_v60 = vadd.f32 %v13640_v54, %v13626_v22 }
 0x1d4   : > { %v13844_v5 = vld [vmem:[#allocation2 + $0x108] sm:$0x1]  ;;  %v2744_v51 = vrot.slane %v17214_v14, 4  ;;  %17216 = vst [vmem:[#allocation45_spill] sm:$0xff] %v13860_v7  ;;  %v2665_v49 = vshll.u32 %v13860_v7, 16  ;;  %v13869_v14 = vpop.f32.mrf.mxu0  ;;  %v17218_v22 = vld [vmem:[#allocation20_spill] sm:$0xff] }
 0x1d5   : > { %17213 = vst [vmem:[#allocation43_spill] sm:$0xff] %v13844_v5  ;;  %v1675_v2 = vld [vmem:[#allocation2 + $0x108] sm:$0x1]  ;;  %v2641_v12 = vshll.u32 %v13844_v5, 16  ;;  %v2648_v8 = vrot.slane %v2646_v50, 4  ;;  %v2651_v61 = vrot.slane %v2649_v25, 5  ;;  %v13883_v25 = vadd.f32 %v10678_v18, %v10566_v29 }
 0x1d6   : > { %v2234_v53 = vrot.slane %v1675_v2, 5  ;;  %v2056_v10 = vshll.u32 %v1675_v2, 16  ;;  %v10681_v54 = vadd.f32 %v17218_v22, %v13633_v43  ;;  %v2672_v6 = vld [vmem:[#allocation2 + $0x50] sm:$0xe]  ;;  %v11881_v18 = vld [vmem:[#allocation2 + $0x54] sm:$0xf]  ;;  %v17219_v43 = vcombine.low %v13730_v48, %v13736_v1 }
 0x1d7   : > { %v2643_v30 = vrot.slane %v2641_v12, 5  ;;  %v10045_v12 = vcombine.low %v2736_v23, %v2739_v37  ;;  %v2652_v50 = vor.u32 %v2651_v61, %v2648_v8  ;;  %v11880_v61 = vld [vmem:[#allocation2 + $0x48] sm:$0x1]  ;;  %v11882_v22 = vld [vmem:[#allocation2 + $0x58] sm:$0x1] }
 0x1d8   : > { %v2235_v45 = vsel %vm12307_vm11, %v2233_v0, %v2234_v53  ;;  %v2058_v2 = vrot.slane %v2056_v10, 5  ;;  %v2667_v0 = vrot.slane %v2665_v49, 5  ;;  %v13879_v53 = vpop.f32.mrf.mxu0  ;;  %v13881_v10 = vpop.f32.mrf.mxu1  ;;  %v2752_v29 = vrot.slane %v11880_v61, 5 }
 0x1d9   : > { %v10012_v5 = vcombine.low %v2232_v3, %v2235_v45  ;;  %v2644_v41 = vsel %vm12343_vm14, %v2639_v39, %v2643_v30  ;;  %v9903_v45 = vrot.slane %v2671_v17, 9  ;;  %v11879_v39 = vld [vmem:[#allocation2 + $0x44] sm:$0xf]  ;;  %v2653_v23 = vrot.slane %v2652_v50, 4 }
 0x1da   : > { %v2059_v46 = vsel %vm12343_vm14, %v2054_v36, %v2058_v2  ;;  %v10043_v7 = vcombine.low %v2634_v59, %v2644_v41  ;;  %v2749_v30 = vrot.slane %v11879_v39, 5  ;;  %v13887_v36 = vpop.f32.mrf.mxu0  ;;  %v13889_v49 = vpop.f32.mrf.mxu1  ;;  %v2668_v59 = vsel %vm12343_vm14, %v2663_v16, %v2667_v0 }
 0x1db   : > { %4519 = vmatprep.mubr.bf16.mxu0 %v10012_v5  ;;  %v9996_v3 = vcombine.low %v2049_v34, %v2059_v46  ;;  %v2756_v5 = vrot.slane %v11881_v18, 5  ;;  %v17220_v17 = vrot.slane %v13770_v44, 5  ;;  %v13904_v16 = vadd.f32 %v10681_v54, %v10569_v60 }
 0x1dc   : > { %4672 = vmatprep.mubr.bf16.mxu1 %v10043_v7  ;;  %v17221_v7 = vrot.slane %v13778_v24, 5  ;;  %v2751_v37 = vrot.slane %v2749_v30, 4  ;;  %v13906_v2 = vpop.f32.mrf.mxu0  ;;  %v13908_v41 = vpop.f32.mrf.mxu1  ;;  %v2658_v48 = vsel %vm12343_vm14, %v2653_v23, %v13820_v15  ;;  %v2750_v44 = vsel %vm12307_vm11, %v9903_v45, %v2749_v30  ;;  %v11884_v23 = vld [vmem:[#allocation2 + $0x68] sm:$0x1] }
 0x1dd   : > { %4520 = vmatmul.mubr.bf16.gmra.mxu0 %v9996_v3  ;;  %4673 = vmatmul.mubr.bf16.gmra.mxu1 %v17219_v43  ;;  %v2743_v34 = vsel %vm12307_vm11, %v9902_v19, %v17220_v17  ;;  %v9904_v19 = vrot.slane %v2672_v6, 9  ;;  %v10572_v24 = vadd.f32 %v13669_v33, %v13657_v57  ;;  %v10044_v46 = vcombine.low %v2658_v48, %v2668_v59  ;;  %v2674_v43 = vld [vmem:[#allocation2 + $0x70] sm:$0xe]  ;;  %v11885_v17 = vld [vmem:[#allocation2 + $0x74] sm:$0xf] }
 0x1de   : > { %11460 = vmatprep.mubr.bf16.mxu0 %v10045_v12  ;;  %v2746_v8 = vsel %vm12307_vm11, %v2744_v51, %v17221_v7  ;;  %v2753_v51 = vsel %vm12307_vm11, %v2751_v37, %v2752_v29  ;;  %v10684_v60 = vadd.f32 %v13671_v35, %v13659_v42  ;;  %v10575_v0 = vadd.f32 %v13691_v58, %v13681_v26  ;;  %v2673_v12 = vld [vmem:[#allocation2 + $0x60] sm:$0xe]  ;;  %v13923_v3 = vpop.f32.mrf.mxu0  ;;  %v11883_v42 = vld [vmem:[#allocation2 + $0x64] sm:$0xf]  ;;  %v13933_v58 = vpop.f32.mrf.mxu1 }
 0x1df   : > { %v10046_v15 = vcombine.low %v2743_v34, %v2746_v8  ;;  %v2758_v50 = vrot.slane %v2756_v5, 4  ;;  %v2759_v6 = vrot.slane %v11882_v22, 5  ;;  %v10687_v57 = vadd.f32 %v13693_v21, %v13683_v9  ;;  %4680 = vmatprep.mubr.bf16.mxu1 %v10044_v46  ;;  %v17222_v7 = vld [vmem:[#allocation21_spill] sm:$0xff] }
 0x1e0   : > { %v10028_v33 = vcombine.low %v13854_v11, %v13784_v32  ;;  %v10047_v54 = vcombine.low %v2750_v44, %v2753_v51  ;;  %v13929_v45 = vadd.f32 %v10684_v60, %v10572_v24  ;;  %v2763_v35 = vrot.slane %v11883_v42, 5  ;;  %v13931_v26 = vpop.f32.mrf.mxu0  ;;  %v2675_v48 = vld [vmem:[#allocation2 + $0x80] sm:$0xe]  ;;  %v11886_v44 = vld [vmem:[#allocation2 + $0x84] sm:$0xf] }
 0x1e1   : > { %v13935_v39 = vadd.f32 %v10687_v57, %v10575_v0  ;;  %v9905_v30 = vrot.slane %v2673_v12, 9  ;;  %v2766_v59 = vrot.slane %v11884_v23, 5  ;;  %v2757_v9 = vsel %vm12307_vm11, %v9904_v19, %v2756_v5  ;;  %v17223_v0 = vld [vmem:[#allocation25_spill] sm:$0xff]  ;;  %v17225_v57 = vld [vmem:[#allocation23_spill] sm:$0xff] }
 0x1e2   : > { %v2765_v21 = vrot.slane %v2763_v35, 4  ;;  %v10578_v11 = vadd.f32 %v13718_v40, %v13710_v56  ;;  %v10690_v61 = vadd.f32 %v13720_v20, %v13702_v47  ;;  %v13943_v29 = vpop.f32.mrf.mxu0  ;;  %v2760_v18 = vsel %vm12307_vm11, %v2758_v50, %v2759_v6  ;;  %v10709_v47 = vpop.f32.mrf.mxu1  ;;  %v17224_v6 = vld [vmem:[#allocation14_spill] sm:$0xff] }
 0x1e3   : > { %v2770_v34 = vrot.slane %v11885_v17, 5  ;;  %v10581_v8 = vadd.f32 %v13744_v27, %v17222_v7  ;;  %v10693_v5 = vadd.f32 %v13760_v13, %v13742_v62  ;;  %v2764_v40 = vsel %vm12307_vm11, %v9905_v30, %v2763_v35  ;;  %v11887_v13 = vld [vmem:[#allocation2 + $0x78] sm:$0x1]  ;;  %v11888_v35 = vld [vmem:[#allocation2 + $0x88] sm:$0x1] }
 0x1e4   : > { %v13951_v56 = vadd.f32 %v10690_v61, %v10578_v11  ;;  %v2767_v20 = vsel %vm12307_vm11, %v2765_v21, %v2766_v59  ;;  %v2777_v19 = vrot.slane %v11886_v44, 5  ;;  %v10598_v27 = vpop.f32.mrf.mxu0  ;;  %v10048_v24 = vcombine.low %v2757_v9, %v2760_v18  ;;  %v11889_v21 = vld [vmem:[#allocation2 + $0x94] sm:$0xf]  ;;  %v17226_v61 = vld [vmem:[#allocation44_spill] sm:$0xff]  ;;  %v17227_v18 = vld [vmem:[#allocation46_spill] sm:$0xff] }
 0x1e5   : > { %11461 = vmatmul.mubr.bf16.vlgmr.msra.gmra.mxu0 %v10046_v15  ;;  %4681 = vmatmul.mubr.bf16.gmra.mxu1 %v10028_v33  ;;  %v13957_v37 = vadd.f32 %v10693_v5, %v10581_v8  ;;  %v9906_v46 = vrot.slane %v2674_v43, 9  ;;  %v2772_v62 = vrot.slane %v2770_v34, 4  ;;  %v2773_v51 = vrot.slane %v11887_v13, 5  ;;  %v2677_v8 = vld [vmem:[#allocation2 + $0xa0] sm:$0xe] }
 0x1e6   : > { %11464 = vmatprep.mubr.bf16.mxu0 %v10047_v54  ;;  %v10584_v60 = vadd.f32 %v13788_v63, %v13762_v55  ;;  %v10696_v12 = vadd.f32 %v13802_v31, %v17223_v0  ;;  %v10049_v15 = vcombine.low %v2764_v40, %v2767_v20  ;;  %v9907_v50 = vrot.slane %v2675_v48, 9  ;;  %v10710_v54 = vpop.f32.mrf.mxu1  ;;  %v10600_v59 = vpop.f32.mrf.mxu0  ;;  %v11891_v13 = vld [vmem:[#allocation2 + $0x98] sm:$0x1] }
 0x1e7   : > { %v10587_v22 = vadd.f32 %v13842_v4, %v13816_v38  ;;  %v10699_v33 = vadd.f32 %v17225_v57, %v17224_v6  ;;  %v2779_v42 = vrot.slane %v2777_v19, 4  ;;  %v2780_v30 = vrot.slane %v11888_v35, 5  ;;  %v2676_v4 = vld [vmem:[#allocation2 + $0x90] sm:$0xe] }
 0x1e8   : > { %v13967_v23 = vadd.f32 %v10696_v12, %v10584_v60  ;;  %v2771_v55 = vsel %vm12307_vm11, %v9906_v46, %v2770_v34  ;;  %v10590_v63 = vadd.f32 %v13879_v53, %v13869_v14  ;;  %v2774_v31 = vsel %vm12307_vm11, %v2772_v62, %v2773_v51  ;;  %v10712_v17 = vpop.f32.mrf.mxu1  ;;  %v10601_v7 = vpop.f32.mrf.mxu0  ;;  %v11890_v14 = vld [vmem:[#allocation2 + $0xa4] sm:$0xf]  ;;  %v2678_v57 = vld [vmem:[#allocation2 + $0xb0] sm:$0xe] }
 0x1e9   : > { %v13969_v9 = vadd.f32 %v10699_v33, %v10587_v22  ;;  %v2778_v38 = vsel %vm12307_vm11, %v9907_v50, %v2777_v19  ;;  %v2784_v11 = vrot.slane %v11889_v21, 5  ;;  %v10702_v43 = vadd.f32 %v17227_v18, %v17226_v61  ;;  %v11892_v50 = vld [vmem:[#allocation2 + $0xa8] sm:$0x1]  ;;  %v11895_v21 = vld [vmem:[#allocation2 + $0xb8] sm:$0x1] }
 0x1ea   : > { %v2781_v34 = vsel %vm12307_vm11, %v2779_v42, %v2780_v30  ;;  %v2791_v53 = vrot.slane %v11890_v14, 5  ;;  %v10593_v5 = vadd.f32 %v13906_v2, %v13887_v36  ;;  %v10705_v40 = vadd.f32 %v13889_v49, %v13881_v10  ;;  %v10713_v48 = vpop.f32.mrf.mxu1  ;;  %v10603_v0 = vpop.f32.mrf.mxu0  ;;  %v11893_v30 = vld [vmem:[#allocation2 + $0xb4] sm:$0xf] }
 0x1eb   : > { %v13987_v20 = vadd.f32 %v10702_v43, %v10590_v63  ;;  %v10050_v44 = vcombine.low %v2771_v55, %v2774_v31  ;;  %v9908_v19 = vrot.slane %v2676_v4, 9  ;;  %v10051_v46 = vcombine.low %v2778_v38, %v2781_v34 }
 0x1ec   : > { %v2786_v62 = vrot.slane %v2784_v11, 4  ;;  %v2787_v51 = vrot.slane %v11891_v13, 5  ;;  %v9909_v60 = vrot.slane %v2677_v8, 9  ;;  %v10715_v12 = vpop.f32.mrf.mxu1  ;;  %v2794_v36 = vrot.slane %v11892_v50, 5 }
 0x1ed   : > { %11465 = vmatmul.mubr.bf16.gmra.mxu0 %v10048_v24  ;;  %v13989_v24 = vadd.f32 %v10705_v40, %v10593_v5  ;;  %v10596_v10 = vadd.f32 %v13931_v26, %v13923_v3  ;;  %v10708_v49 = vadd.f32 %v13933_v58, %v13908_v41  ;;  %v10599_v2 = vadd.f32 %v10598_v27, %v13943_v29  ;;  %v10604_v41 = vpop.f32.mrf.mxu0  ;;  %v11894_v27 = vld [vmem:[#allocation2 + $0xc4] sm:$0xf] }
 0x1ee   : > { %11468 = vmatprep.mubr.bf16.mxu0 %v10049_v15  ;;  %v2793_v15 = vrot.slane %v2791_v53, 4  ;;  %v10711_v22 = vadd.f32 %v10710_v54, %v10709_v47  ;;  %v10716_v6 = vpop.f32.mrf.mxu1  ;;  %v2785_v42 = vsel %vm12307_vm11, %v9908_v19, %v2784_v11  ;;  %v2788_v35 = vsel %vm12307_vm11, %v2786_v62, %v2787_v51  ;;  %v2679_v47 = vld [vmem:[#allocation2 + $0xc0] sm:$0xe] }
 0x1ef   : > { %v13996_v33 = vadd.f32 %v10708_v49, %v10596_v10  ;;  %v2798_v3 = vrot.slane %v11893_v30, 5  ;;  %v2792_v58 = vsel %vm12307_vm11, %v9909_v60, %v2791_v53  ;;  %v2805_v54 = vrot.slane %v11894_v27, 5  ;;  %v17228_v10 = vld [vmem:[#allocation29_spill] sm:$0xff] }
 0x1f0   : > { %v14002_v26 = vadd.f32 %v10711_v22, %v10599_v2  ;;  %v2795_v29 = vsel %vm12307_vm11, %v2793_v15, %v2794_v36  ;;  %v10602_v55 = vadd.f32 %v10601_v7, %v10600_v59  ;;  %v10718_v63 = vpop.f32.mrf.mxu1  ;;  %v9910_v31 = vrot.slane %v2678_v57, 9  ;;  %v2681_v57 = vld [vmem:[#allocation2 + $0xe0] sm:$0xe] }
 0x1f1   : > { %v10714_v38 = vadd.f32 %v10713_v48, %v10712_v17  ;;  %v10052_v4 = vcombine.low %v2785_v42, %v2788_v35  ;;  %v2801_v11 = vrot.slane %v11895_v21, 5  ;;  %v10605_v61 = vadd.f32 %v10604_v41, %v10603_v0  ;;  %v2680_v0 = vld [vmem:[#allocation2 + $0xd0] sm:$0xe] }
 0x1f2   : > { %v10717_v18 = vadd.f32 %v10716_v6, %v10715_v12  ;;  %v10719_v43 = vpop.f32.mrf.mxu1  ;;  %v10053_v34 = vcombine.low %v2792_v58, %v2795_v29  ;;  %v2800_v8 = vrot.slane %v2798_v3, 4  ;;  %v9911_v14 = vrot.slane %v2679_v47, 9  ;;  %v10606_v5 = vpop.f32.mrf.mxu0  ;;  %v11897_v12 = vld [vmem:[#allocation2 + $0xd4] sm:$0xf]  ;;  %v11898_v47 = vld [vmem:[#allocation2 + $0xd8] sm:$0x1] }
 0x1f3   : > { %v14008_v53 = vadd.f32 %v10714_v38, %v10602_v55  ;;  %v2807_v40 = vrot.slane %v2805_v54, 4  ;;  %v10720_v48 = vadd.f32 %v10719_v43, %v10718_v63  ;;  %v2799_v13 = vsel %vm12307_vm11, %v9910_v31, %v2798_v3  ;;  %v17229_v38 = vld [vmem:[#allocation19_spill] sm:$0xff] }
 0x1f4   : > { %v10721_v59 = vpop.f32.mrf.mxu1  ;;  %v10607_v7 = vpop.f32.mrf.mxu0  ;;  %v2802_v51 = vsel %vm12307_vm11, %v2800_v8, %v2801_v11  ;;  %v2806_v60 = vsel %vm12307_vm11, %v9911_v14, %v2805_v54  ;;  %v2812_v15 = vrot.slane %v11897_v12, 5  ;;  %v2819_v49 = vrot.slane %v17228_v10, 5  ;;  %v17230_v14 = vld [vmem:[#allocation33_spill] sm:$0xff]  ;;  %v17232_v10 = vld [vmem:[#allocation32_spill] sm:$0xff] }
 0x1f5   : > { %11469 = vmatmul.mubr.bf16.gmra.mxu0 %v10050_v44  ;;  %v11896_v44 = vld [vmem:[#allocation2 + $0xc8] sm:$0x1]  ;;  %v10608_v17 = vadd.f32 %v10607_v7, %v10606_v5  ;;  %v10054_v35 = vcombine.low %v2799_v13, %v2802_v51  ;;  %v9912_v30 = vrot.slane %v2680_v0, 9  ;;  %v2815_v27 = vrot.slane %v11898_v47, 5 }
 0x1f6   : > { %11472 = vmatprep.mubr.bf16.mxu0 %v10051_v46  ;;  %v2808_v19 = vrot.slane %v11896_v44, 5  ;;  %v14010_v46 = vadd.f32 %v10717_v18, %v10605_v61  ;;  %v10722_v62 = vpop.f32.mrf.mxu1  ;;  %v10609_v50 = vpop.f32.mrf.mxu0  ;;  %v2814_v29 = vrot.slane %v2812_v15, 4  ;;  %v9913_v63 = vrot.slane %v2681_v57, 9 }
 0x1f7   : > { %v14021_v2 = vadd.f32 %v10720_v48, %v10608_v17  ;;  %v10723_v22 = vadd.f32 %v10722_v62, %v10721_v59  ;;  %v2821_v31 = vrot.slane %v2819_v49, 4  ;;  %v2826_v5 = vrot.slane %v17230_v14, 5  ;;  %v2682_v59 = vld [vmem:[#allocation2 + $0xf0] sm:$0xe]  ;;  %v17231_v17 = vld [vmem:[#allocation36_spill] sm:$0xff] }
 0x1f8   : > { %v2809_v36 = vsel %vm12307_vm11, %v2807_v40, %v2808_v19  ;;  %v10852_v6 = vpop.f32.mrf.mxu1  ;;  %v10610_v42 = vpop.f32.mrf.mxu0  ;;  %v2816_v8 = vsel %vm12307_vm11, %v2814_v29, %v2815_v27  ;;  %v2820_v44 = vsel %vm12307_vm11, %v9913_v63, %v2819_v49  ;;  %v2833_v7 = vrot.slane %v13736_v1, 5  ;;  %v2683_v62 = vld [vmem:[#allocation2 + $0x100] sm:$0xe] }
 0x1f9   : > { %v10611_v3 = vadd.f32 %v10610_v42, %v10609_v50  ;;  %v10055_v58 = vcombine.low %v2806_v60, %v2809_v36  ;;  %v9914_v50 = vrot.slane %v2682_v59, 9  ;;  %v2828_v36 = vrot.slane %v2826_v5, 4  ;;  %v17233_v42 = vld [vmem:[#allocation43_spill] sm:$0xff] }
 0x1fa   : > { %v10853_v41 = vpop.f32.mrf.mxu1  ;;  %v10740_v54 = vpop.f32.mrf.mxu0  ;;  %v2829_v49 = vrot.slane %v17232_v10, 5  ;;  %v9915_v57 = vrot.slane %v2683_v62, 9  ;;  %v2835_v1 = vrot.slane %v2833_v7, 4 }
 0x1fb   : > { %v10854_v55 = vadd.f32 %v10853_v41, %v10852_v6  ;;  %v14024_v21 = vadd.f32 %v10723_v22, %v10611_v3  ;;  %v2827_v47 = vsel %vm12307_vm11, %v9914_v50, %v2826_v5  ;;  %v17236_v5 = vld [vmem:[#allocation45_spill] sm:$0xff] }
 0x1fc   : > { %v14026_v11 = vpop.f32.mrf.mxu1  ;;  %v10741_v61 = vpop.f32.mrf.mxu0  ;;  %v2830_v27 = vsel %vm12307_vm11, %v2828_v36, %v2829_v49  ;;  %v2834_v63 = vsel %vm12307_vm11, %v9915_v57, %v2833_v7  ;;  %v17238_v36 = vld [vmem:[#allocation40_spill] sm:$0xff] }
 0x1fd   : > { %11473 = vmatmul.mubr.bf16.gmra.mxu0 %v10052_v4  ;;  %v2822_v4 = vrot.slane %v17229_v38, 5  ;;  %v10742_v18 = vadd.f32 %v10741_v61, %v10740_v54  ;;  %v2840_v54 = vrot.slane %v13784_v32, 5  ;;  %v2684_v38 = vld [vmem:[#allocation2 + $0x110] sm:$0xe] }
 0x1fe   : > { %11476 = vmatprep.mubr.bf16.mxu0 %v10053_v34  ;;  %v14028_v43 = vpop.f32.mrf.mxu1  ;;  %v2813_v34 = vsel %vm12307_vm11, %v9912_v30, %v2812_v15  ;;  %v10743_v40 = vpop.f32.mrf.mxu0  ;;  %v17234_v30 = vld [vmem:[#allocation37_spill] sm:$0xff]  ;;  %v9916_v32 = vrot.slane %v2684_v38, 9 }
 0x1ff   : > { %v2823_v19 = vsel %vm12307_vm11, %v2821_v31, %v2822_v4  ;;  %v4402_v48 = vadd.f32 %v10742_v18, %v17231_v17  ;;  %v10056_v60 = vcombine.low %v2813_v34, %v2816_v8  ;;  %v17235_v4 = vld [vmem:[#allocation38_spill] sm:$0xff]  ;;  %v10058_v8 = vcombine.low %v2827_v47, %v2830_v27  ;;  %v17237_v17 = vld [vmem:[#allocation39_spill] sm:$0xff] }
 0x200   : > { %v10744_v13 = vpop.f32.mrf.mxu0  ;;  %v14041_v51 = vpop.f32.mrf.mxu1  ;;  %v10057_v15 = vcombine.low %v2820_v44, %v2823_v19  ;;  %v2842_v19 = vrot.slane %v2840_v54, 4 }
 0x201   : > { %v10745_v0 = vadd.f32 %v10744_v13, %v10743_v40  ;;  %v14043_v12 = vadd.f32 %v10854_v55, %v4402_v48  ;;  %v2843_v40 = vrot.slane %v17236_v5, 5 }
 0x202   : > { %v10746_v22 = vpop.f32.mrf.mxu0  ;;  %v14046_v6 = vpop.f32.mrf.mxu1 }
 0x203   : > { %v14050_v3 = vadd.f32 %v10745_v0, %v17234_v30  ;;  %v2841_v0 = vsel %vm12307_vm11, %v9916_v32, %v2840_v54  ;;  %v17239_v30 = vld [vmem:[#allocation41_spill] sm:$0xff] }
 0x204   : > { %v10747_v41 = vpop.f32.mrf.mxu0 }
 0x205   : > { %11477 = vmatmul.mubr.bf16.gmra.mxu0 %v10054_v35  ;;  %v2836_v35 = vrot.slane %v17233_v42, 5  ;;  %v10748_v29 = vadd.f32 %v10747_v41, %v10746_v22 }
 0x206   : > { %11480 = vmatprep.mubr.bf16.mxu0 %v10055_v58  ;;  %v14052_v58 = vpop.f32.mrf.mxu1  ;;  %v10749_v55 = vpop.f32.mrf.mxu0 }
 0x207   : > { %v2837_v31 = vsel %vm12307_vm11, %v2835_v1, %v2836_v35  ;;  %v14064_v61 = vadd.f32 %v10748_v29, %v17235_v4 }
 0x208   : > { %v14066_v18 = vpop.f32.mrf.mxu1  ;;  %v10750_v34 = vpop.f32.mrf.mxu0  ;;  %v10059_v44 = vcombine.low %v2834_v63, %v2837_v31 }
 0x209   : > { %v10751_v14 = vadd.f32 %v10750_v34, %v10749_v55  ;;  %v17240_v55 = vld [vmem:[#allocation42_spill] sm:$0xff] }
 0x20a   : > { %v10752_v59 = vpop.f32.mrf.mxu0 }
 0x20b   : > { %v14070_v7 = vadd.f32 %v10751_v14, %v17237_v17  ;;  %v14072_v48 = vpop.f32.mrf.mxu1  ;;  %v17241_v14 = vld [vmem:[#allocation28_spill] sm:$0xff] }
 0x20c   : > { %v10753_v62 = vpop.f32.mrf.mxu0 }
 0x20d   : > { %11481 = vmatmul.mubr.bf16.gmra.mxu0 %v10056_v60  ;;  %v10754_v13 = vadd.f32 %v10753_v62, %v10752_v59  ;;  %v14074_v60 = vpop.f32.mrf.mxu1  ;;  %v17242_v59 = vld [vmem:[#allocation30_spill] sm:$0xff] }
 0x20e   : > { %11484 = vmatprep.mubr.bf16.mxu0 %v10057_v15  ;;  %v2844_v15 = vsel %vm12307_vm11, %v2842_v19, %v2843_v40  ;;  %v10755_v50 = vpop.f32.mrf.mxu0 }
 0x20f   : > { %v14081_v10 = vadd.f32 %v10754_v13, %v17238_v36  ;;  %v14083_v49 = vpop.f32.mrf.mxu1  ;;  %v10060_v57 = vcombine.low %v2841_v0, %v2844_v15 }
 0x210   : > { %v10756_v22 = vpop.f32.mrf.mxu0 }
 0x211   : > { %v10757_v1 = vadd.f32 %v10756_v22, %v10755_v50  ;;  %v14085_v42 = vpop.f32.mrf.mxu1  ;;  %v17243_v50 = vld [vmem:[#allocation31_spill] sm:$0xff] }
 0x212   : > { %v10758_v35 = vpop.f32.mrf.mxu0 }
 0x213   : > { %v14088_v41 = vadd.f32 %v10757_v1, %v17239_v30 }
 0x214   : > { %v10759_v29 = vpop.f32.mrf.mxu0 }
 0x215   : > { %11485 = vmatmul.mubr.bf16.gmra.mxu0 %v10058_v8  ;;  %v10760_v47 = vadd.f32 %v10759_v29, %v10758_v35 }
 0x216   : > { %11488 = vmatprep.mubr.bf16.mxu0 %v10059_v44  ;;  %v14090_v27 = vpop.f32.mrf.mxu1  ;;  %v10761_v54 = vpop.f32.mrf.mxu0 }
 0x217   : > { %v14093_v63 = vadd.f32 %v10760_v47, %v17240_v55  ;;  %v17245_v47 = vld [vmem:[#allocation35_spill] sm:$0xff] }
 0x218   : > { %v14095_v31 = vpop.f32.mrf.mxu1  ;;  %v10762_v38 = vpop.f32.mrf.mxu0 }
 0x219   : > { %v10763_v4 = vadd.f32 %v10762_v38, %v10761_v54 }
 0x21a   : > { %v14097_v34 = vpop.f32.mrf.mxu1 }
 0x21b   : > { %v10764_v8 = vpop.f32.mrf.mxu0  ;;  %v14100_v5 = vadd.f32 %v10763_v4, %v17241_v14  ;;  %v17247_v14 = vld [vmem:[#allocation34_spill] sm:$0xff] }
 0x21c   : > { %v14102_v40 = vpop.f32.mrf.mxu1 }
 0x21d   : > { %11489 = vmatmul.mubr.bf16.gmra.mxu0 %v10060_v57  ;;  %v10765_v44 = vpop.f32.mrf.mxu0 }
 0x21e   : > { %v10766_v32 = vadd.f32 %v10765_v44, %v10764_v8 }
 0x21f   : > { %v10767_v19 = vpop.f32.mrf.mxu0 }
 0x220   : > { %v14105_v17 = vadd.f32 %v10766_v32, %v17242_v59  ;;  %v11735_v59 = vld [vmem:[#allocation8 + $0x38] sm:$0xff]  }
 0x221   : > { %v14107_v62 = vpop.f32.mrf.mxu1  ;;  %v10768_v13 = vpop.f32.mrf.mxu0 }
 0x222   : > { %v10769_v15 = vadd.f32 %v10768_v13, %v10767_v19  ;;  %v11734_v19 = vld [vmem:[#allocation8 + $0x78] sm:$0xff]  }
 0x223   : > { %v14109_v0 = vpop.f32.mrf.mxu1  ;;  %10972 = vmatprep.subr.bf16.mxu1 %v11734_v19  ;;  %v17254_v19 = vld [vmem:[#allocation26_spill] sm:$0xff] }
 0x224   : > { %v14112_v36 = vadd.f32 %v10769_v15, %v17243_v50  ;;  %10973 = vmatpush3.bf16.msra.mxu1 %v11735_v59 }
 0x225   : > { %v14114_v22 = vpop.f32.mrf.mxu1  ;;  %v10770_v57 = vpop.f32.mrf.mxu0 }
 0x226   : > { %17244 = vst [vmem:[#allocation20_spill] sm:$0xff] %v14112_v36 }
 0x227   : > { %v14116_v1 = vpop.f32.mrf.mxu1  ;;  %v10771_v35 = vpop.f32.mrf.mxu0 }
 0x228   : > { %v10772_v30 = vadd.f32 %v10771_v35, %v10770_v57  ;;  %v17249_v35 = vld [vmem:[#allocation22_spill] sm:$0xff] }
 0x229   : > { %v10773_v29 = vpop.f32.mrf.mxu0 }
 0x22a   : > { %v14119_v54 = vadd.f32 %v10772_v30, %v17245_v47 }
 0x22b   : > { %v14121_v55 = vpop.f32.mrf.mxu1  ;;  %v10774_v38 = vpop.f32.mrf.mxu0 }
 0x22c   : > { %17246 = vst [vmem:[#allocation21_spill] sm:$0xff] %v14119_v54  ;;  %v10775_v4 = vadd.f32 %v10774_v38, %v10773_v29 }
 0x22d   : > { %v14123_v8 = vpop.f32.mrf.mxu1 }
 0x22e   : > { %v14126_v44 = vadd.f32 %v10775_v4, %v17247_v14 }
 0x22f   : > { %v14128_v13 = vpop.f32.mrf.mxu1 }
 0x230   : > { %17248 = vst [vmem:[#allocation25_spill] sm:$0xff] %v14126_v44  ;;  %v10776_v32 = vpop.f32.mrf.mxu0 }
 0x231   : > { %v14133_v47 = vpop.f32.mrf.mxu1 }
 0x232   : > { %v10777_v15 = vpop.f32.mrf.mxu0  ;;  %17251 = vst [vmem:[#allocation23_spill] sm:$0xff] %v14133_v47 }
 0x233   : > { %v10778_v50 = vadd.f32 %v10777_v15, %v10776_v32 }
 0x234   : > { %v10779_v57 = vpop.f32.mrf.mxu0 }
 0x235   : > { %v14131_v30 = vadd.f32 %v10778_v50, %v17249_v35  ;;  %v14138_v14 = vpop.f32.mrf.mxu1  ;;  %v11736_v50 = vld [vmem:[#allocation8 + $0x70] sm:$0xff]  }
 0x236   : > { %v10780_v29 = vpop.f32.mrf.mxu0  ;;  %10974 = vmatprep.subr.bf16.mxu1 %v11736_v50 }
 0x237   : > { %17250 = vst [vmem:[#allocation14_spill] sm:$0xff] %v14131_v30  ;;  %v10781_v38 = vadd.f32 %v10780_v29, %v10779_v57  ;;  %v14140_v54 = vpop.f32.mrf.mxu1  ;;  %v11737_v30 = vld [vmem:[#allocation8 + $0x30] sm:$0xff]  }
 0x238   : > { %10975 = vmatpush3.bf16.msra.mxu1 %v11737_v30  ;;  %v11738_v30 = vld [vmem:[#allocation8 + $0x68] sm:$0xff]  }
 0x239   : > { %v14136_v4 = vadd.f32 %v10781_v38, %v17252_v52  ;;  %v14145_v47 = vpop.f32.mrf.mxu1  ;;  %v17256_v52 = vld [vmem:[#allocation27_spill] sm:$0xff]  ;;  %10976 = vmatprep.subr.bf16.mxu1 %v11738_v30 }
 0x23a   : > { %v10782_v28 = vpop.f32.mrf.mxu0 }
 0x23b   : > { %17253 = vst [vmem:[#allocation44_spill] sm:$0xff] %v14136_v4  ;;  %v14150_v38 = vpop.f32.mrf.mxu1 }
 0x23c   : > { %v10783_v44 = vpop.f32.mrf.mxu0  ;;  %17258 = vst [vmem:[#allocation19_spill] sm:$0xff] %v14150_v38 }
 0x23d   : > { %v10784_v36 = vadd.f32 %v10783_v44, %v10782_v28 }
 0x23e   : > { %v10785_v32 = vpop.f32.mrf.mxu0 }
 0x23f   : > { %v14143_v59 = vadd.f32 %v10784_v36, %v17254_v19 }
 0x240   : > { %v10786_v15 = vpop.f32.mrf.mxu0  ;;  %v14155_v19 = vpop.f32.mrf.mxu1 }
 0x241   : > { %17255 = vst [vmem:[#allocation46_spill] sm:$0xff] %v14143_v59  ;;  %v10787_v35 = vadd.f32 %v10786_v15, %v10785_v32 }
 0x242   : > { %v14160_v50 = vpop.f32.mrf.mxu1 }
 0x243   : > { %v14148_v57 = vadd.f32 %v10787_v35, %v17256_v52  ;;  %v11739_v52 = vld [vmem:[#allocation8 + $0x28] sm:$0xff]  }
 0x244   : > { %10977 = vmatpush3.bf16.msra.mxu1 %v11739_v52 }
 0x245   : > { %17257 = vst [vmem:[#allocation29_spill] sm:$0xff] %v14148_v57  ;;  %v10788_v29 = vpop.f32.mrf.mxu0  ;;  %v14162_v57 = vpop.f32.mrf.mxu1 }
 0x246   : > { %17261 = vst [vmem:[#allocation32_spill] sm:$0xff] %v14162_v57 }
 0x247   : > { %v10789_v28 = vpop.f32.mrf.mxu0 }
 0x248   : > { %v10790_v44 = vadd.f32 %v10789_v28, %v10788_v29 }
 0x249   : > { %v10791_v4 = vpop.f32.mrf.mxu0 }
 0x24a   : > { %v14153_v36 = vadd.f32 %v10790_v44, %v13883_v25  ;;  %v14167_v44 = vpop.f32.mrf.mxu1 }
 0x24b   : > { %v10792_v32 = vpop.f32.mrf.mxu0 }
 0x24c   : > { %17259 = vst [vmem:[#allocation33_spill] sm:$0xff] %v14153_v36  ;;  %v10793_v15 = vadd.f32 %v10792_v32, %v10791_v4 }
 0x24e   : > { %v14158_v59 = vadd.f32 %v10793_v15, %v13904_v16  ;;  %v14172_v15 = vpop.f32.mrf.mxu1 }
 0x250   : > { %17260 = vst [vmem:[#allocation36_spill] sm:$0xff] %v14158_v59  ;;  %v14174_v57 = vpop.f32.mrf.mxu1 }
 0x251   : > { %v10794_v35 = vpop.f32.mrf.mxu0  ;;  %17264 = vst [vmem:[#allocation38_spill] sm:$0xff] %v14174_v57 }
 0x253   : > { %v10795_v38 = vpop.f32.mrf.mxu0 }
 0x254   : > { %v10796_v29 = vadd.f32 %v10795_v38, %v10794_v35 }
 0x255   : > { %v10797_v25 = vpop.f32.mrf.mxu0 }
 0x256   : > { %v14165_v28 = vadd.f32 %v10796_v29, %v13929_v45  ;;  %v11740_v45 = vld [vmem:[#allocation8 + $0x60] sm:$0xff]  }
 0x257   : > { %v10798_v4 = vpop.f32.mrf.mxu0  ;;  %v11741_v29 = vld [vmem:[#allocation8 + $0x20] sm:$0xff]   ;;  %10978 = vmatprep.subr.bf16.mxu1 %v11740_v45 }
 0x258   : > { %17262 = vst [vmem:[#allocation43_spill] sm:$0xff] %v14165_v28  ;;  %v10799_v16 = vadd.f32 %v10798_v4, %v10797_v25  ;;  %v14179_v28 = vpop.f32.mrf.mxu1  ;;  %10979 = vmatpush3.bf16.msra.mxu1 %v11741_v29 }
 0x25a   : > { %v14170_v32 = vadd.f32 %v10799_v16, %v13935_v39  ;;  %v14184_v4 = vpop.f32.mrf.mxu1 }
 0x25c   : > { %17263 = vst [vmem:[#allocation37_spill] sm:$0xff] %v14170_v32 }
 0x25d   : > { %v10800_v59 = vpop.f32.mrf.mxu0 }
 0x25f   : > { %v10801_v36 = vpop.f32.mrf.mxu0 }
 0x260   : > { %v10802_v30 = vadd.f32 %v10801_v36, %v10800_v59  ;;  %v14186_v59 = vpop.f32.mrf.mxu1 }
 0x261   : > { %v10803_v38 = vpop.f32.mrf.mxu0  ;;  %17267 = vst [vmem:[#allocation40_spill] sm:$0xff] %v14186_v59 }
 0x262   : > { %v14177_v35 = vadd.f32 %v10802_v30, %v13951_v56  ;;  %v14191_v57 = vpop.f32.mrf.mxu1 }
 0x263   : > { %v10804_v52 = vpop.f32.mrf.mxu0 }
 0x264   : > { %17265 = vst [vmem:[#allocation45_spill] sm:$0xff] %v14177_v35  ;;  %v10805_v25 = vadd.f32 %v10804_v52, %v10803_v38 }
 0x266   : > { %v14182_v39 = vadd.f32 %v10805_v25, %v13957_v37  ;;  %v14196_v37 = vpop.f32.mrf.mxu1 }
 0x268   : > { %17266 = vst [vmem:[#allocation39_spill] sm:$0xff] %v14182_v39  ;;  %v14198_v39 = vpop.f32.mrf.mxu1 }
 0x269   : > { %v10806_v16 = vpop.f32.mrf.mxu0 }
 0x26b   : > { %v10807_v32 = vpop.f32.mrf.mxu0 }
 0x26c   : > { %v10808_v36 = vadd.f32 %v10807_v32, %v10806_v16 }
 0x26d   : > { %v10809_v56 = vpop.f32.mrf.mxu0 }
 0x26e   : > { %v14189_v30 = vadd.f32 %v10808_v36, %v13967_v23  ;;  %v14203_v36 = vpop.f32.mrf.mxu1 }
 0x26f   : > { %v10810_v35 = vpop.f32.mrf.mxu0 }
 0x270   : > { %17268 = vst [vmem:[#allocation41_spill] sm:$0xff] %v14189_v30  ;;  %v10811_v38 = vadd.f32 %v10810_v35, %v10809_v56  ;;  %v14208_v56 = vpop.f32.mrf.mxu1 }
 0x271   : > { %17272 = vst [vmem:[#allocation31_spill] sm:$0xff] %v14208_v56 }
 0x272   : > { %v14194_v45 = vadd.f32 %v10811_v38, %v13969_v9 }
 0x274   : > { %17269 = vst [vmem:[#allocation42_spill] sm:$0xff] %v14194_v45  ;;  %v10812_v52 = vpop.f32.mrf.mxu0 }
 0x276   : > { %v10813_v29 = vpop.f32.mrf.mxu0 }
 0x277   : > { %v10814_v25 = vadd.f32 %v10813_v29, %v10812_v52  ;;  %v14210_v52 = vpop.f32.mrf.mxu1 }
 0x278   : > { %v10815_v59 = vpop.f32.mrf.mxu0 }
 0x279   : > { %v14201_v32 = vadd.f32 %v10814_v25, %v13987_v20 }
 0x27a   : > { %v10816_v23 = vpop.f32.mrf.mxu0 }
 0x27b   : > { %17270 = vst [vmem:[#allocation28_spill] sm:$0xff] %v14201_v32  ;;  %v10817_v16 = vadd.f32 %v10816_v23, %v10815_v59  ;;  %v14215_v32 = vpop.f32.mrf.mxu1 }
 0x27d   : > { %v14206_v35 = vadd.f32 %v10817_v16, %v13989_v24  ;;  %v14220_v23 = vpop.f32.mrf.mxu1 }
 0x27f   : > { %17271 = vst [vmem:[#allocation30_spill] sm:$0xff] %v14206_v35  ;;  %v10818_v9 = vpop.f32.mrf.mxu0 }
 0x281   : > { %v10819_v38 = vpop.f32.mrf.mxu0 }
 0x282   : > { %v10820_v45 = vadd.f32 %v10819_v38, %v10818_v9  ;;  %v14225_v38 = vpop.f32.mrf.mxu1 }
 0x283   : > { %v10821_v30 = vpop.f32.mrf.mxu0 }
 0x284   : > { %v14213_v29 = vadd.f32 %v10820_v45, %v13996_v33 }
 0x285   : > { %v10822_v20 = vpop.f32.mrf.mxu0 }
 0x286   : > { %17273 = vst [vmem:[#allocation35_spill] sm:$0xff] %v14213_v29  ;;  %v10823_v25 = vadd.f32 %v10822_v20, %v10821_v30  ;;  %v14230_v20 = vpop.f32.mrf.mxu1 }
 0x288   : > { %v14218_v59 = vadd.f32 %v10823_v25, %v14002_v26  ;;  %v14232_v26 = vpop.f32.mrf.mxu1 }
 0x28a   : > { %17274 = vst [vmem:[#allocation34_spill] sm:$0xff] %v14218_v59  ;;  %v14234_v29 = vpop.f32.mrf.mxu1 }
 0x28b   : > { %v10824_v24 = vpop.f32.mrf.mxu0  ;;  %17277 = vst [vmem:[#allocation26_spill] sm:$0xff] %v14234_v29 }
 0x28d   : > { %v10825_v16 = vpop.f32.mrf.mxu0 }
 0x28e   : > { %v10826_v35 = vadd.f32 %v10825_v16, %v10824_v24 }
 0x28f   : > { %v10827_v56 = vpop.f32.mrf.mxu0 }
 0x290   : > { %v14223_v9 = vadd.f32 %v10826_v35, %v14008_v53 }
 0x291   : > { %v10828_v33 = vpop.f32.mrf.mxu0 }
 0x292   : > { %17275 = vst [vmem:[#allocation22_spill] sm:$0xff] %v14223_v9  ;;  %v10829_v45 = vadd.f32 %v10828_v33, %v10827_v56  ;;  %v14239_v9 = vpop.f32.mrf.mxu1 }
 0x294   : > { %v14228_v30 = vadd.f32 %v10829_v45, %v14010_v46  ;;  %v10857_v46 = vadd.f32 %v14028_v43, %v14026_v11  ;;  %v10860_v45 = vadd.f32 %v14046_v6, %v14041_v51 }
 0x296   : > { %17276 = vst [vmem:[#allocation24_spill] sm:$0xff] %v14228_v30  ;;  %v4566_v43 = vadd.f32 %v10857_v46, %v14050_v3  ;;  %v10878_v46 = vadd.f32 %v14109_v0, %v14107_v62 }
 0x29d   : > { %v10830_v25 = vpop.f32.mrf.mxu0 }
 0x29f   : > { %v10831_v59 = vpop.f32.mrf.mxu0 }
 0x2a0   : > { %v10832_v24 = vadd.f32 %v10831_v59, %v10830_v25  ;;  %v10863_v59 = vadd.f32 %v14066_v18, %v14052_v58  ;;  %v10866_v25 = vadd.f32 %v14074_v60, %v14072_v48  ;;  %v10869_v48 = vadd.f32 %v14085_v42, %v14083_v49 }
 0x2a1   : > { %v10833_v16 = vpop.f32.mrf.mxu0  ;;  %v10875_v49 = vadd.f32 %v14102_v40, %v14097_v34 }
 0x2a2   : > { %v14237_v53 = vadd.f32 %v10832_v24, %v14021_v2  ;;  %v14250_v2 = vpop.f32.mrf.mxu1  ;;  %v4574_v58 = vadd.f32 %v10863_v59, %v14070_v7 }
 0x2a3   : > { %v10834_v35 = vpop.f32.mrf.mxu0 }
 0x2a4   : > { %v10835_v56 = vadd.f32 %v10834_v35, %v10833_v16  ;;  %v4571_v16 = vadd.f32 %v10860_v45, %v14064_v61  ;;  %v10872_v61 = vadd.f32 %v14095_v31, %v14090_v27 }
 0x2a5   : > { %v11462_v33 = vpop.f32.mrf.mxu0 }
 0x2a6   : > { %v14246_v30 = vadd.f32 %v10835_v56, %v14024_v21  ;;  %v14259_v21 = vpop.f32.mrf.mxu1  ;;  %v14261_v6 = vadd.f32 %v11462_v33, %v4571_v16  ;;  %v4587_v45 = vadd.f32 %v10872_v61, %v14093_v63 }
 0x2a7   : > { %v4723_v29 = vpop.f32.mrf.mxu0 }
 0x2a8   : > { %v14256_v11 = vadd.f32 %v4723_v29, %v14043_v12  ;;  %v4579_v12 = vadd.f32 %v10866_v25, %v14081_v10  ;;  %v14281_v56 = vpop.f32.mrf.mxu1  ;;  %v4891_v10 = vmul.f32 %v14261_v6, %v14261_v6 }
 0x2a9   : > { %v11463_v24 = vpop.f32.mrf.mxu0 }
 0x2aa   : > { %v4889_v3 = vmul.f32 %v14256_v11, %v14256_v11  ;;  %v14273_v29 = vadd.f32 %v11463_v24, %v4574_v58  ;;  %v4582_v24 = vadd.f32 %v10869_v48, %v14088_v41  ;;  %v14298_v58 = vpop.f32.mrf.mxu1  ;;  %v10884_v41 = vadd.f32 %v14123_v8, %v14121_v55 }
 0x2ab   : > { %v4726_v51 = vpop.f32.mrf.mxu0  ;;  %v10890_v8 = vadd.f32 %v14140_v54, %v14138_v14 }
 0x2ac   : > { %v14264_v18 = vadd.f32 %v4726_v51, %v4566_v43  ;;  %v4892_v34 = vmul.f32 %v14273_v29, %v14273_v29  ;;  %v4590_v43 = vadd.f32 %v10875_v49, %v14100_v5  ;;  %v4595_v5 = vadd.f32 %v10878_v46, %v14105_v17  ;;  %v17278_v49 = vld [vmem:[#allocation23_spill] sm:$0xff] }
 0x2ad   : > { %v11466_v60 = vpop.f32.mrf.mxu0 }
 0x2ae   : > { %v4852_v35 = vadd.f32 %v14264_v18, %v14256_v11  ;;  %v4890_v7 = vmul.f32 %v14264_v18, %v14264_v18  ;;  %v14295_v16 = vadd.f32 %v11466_v60, %v4587_v45 }
 0x2af   : > { %v4739_v42 = vpop.f32.mrf.mxu0 }
 0x2b0   : > { %v4853_v27 = vadd.f32 %v4852_v35, %v14261_v6  ;;  %v4921_v31 = vadd.f32 %v4890_v7, %v4889_v3  ;;  %v14286_v33 = vadd.f32 %v4739_v42, %v4579_v12  ;;  %v10881_v12 = vadd.f32 %v14116_v1, %v14114_v22 }
 0x2b1   : > { %v11467_v59 = vpop.f32.mrf.mxu0  ;;  %v10887_v42 = vadd.f32 %v17278_v49, %v14128_v13  ;;  %v4895_v22 = vmul.f32 %v14295_v16, %v14295_v16 }
 0x2b2   : > { %v4922_v40 = vadd.f32 %v4921_v31, %v4891_v10  ;;  %v4854_v25 = vadd.f32 %v4853_v27, %v14273_v29  ;;  %v4893_v63 = vmul.f32 %v14286_v33, %v14286_v33  ;;  %v14310_v3 = vadd.f32 %v11467_v59, %v4590_v43  ;;  %v14317_v27 = vpop.f32.mrf.mxu1  ;;  %v17279_v31 = vld [vmem:[#allocation21_spill] sm:$0xff] }
 0x2b3   : > { %v4742_v51 = vpop.f32.mrf.mxu0  ;;  %v4603_v46 = vadd.f32 %v10884_v41, %v17279_v31  ;;  %v17281_v43 = vld [vmem:[#allocation25_spill] sm:$0xff] }
 0x2b4   : > { %v4855_v62 = vadd.f32 %v4854_v25, %v14286_v33  ;;  %v4923_v0 = vadd.f32 %v4922_v40, %v4892_v34  ;;  %v14303_v61 = vadd.f32 %v4742_v51, %v4582_v24  ;;  %v4896_v13 = vmul.f32 %v14310_v3, %v14310_v3  ;;  %v17280_v40 = vld [vmem:[#allocation20_spill] sm:$0xff] }
 0x2b5   : > { %v11470_v48 = vpop.f32.mrf.mxu0  ;;  %v4598_v25 = vadd.f32 %v10881_v12, %v17280_v40  ;;  %v4606_v51 = vadd.f32 %v10887_v42, %v17281_v43  ;;  %v10896_v12 = vadd.f32 %v14160_v50, %v14155_v19 }
 0x2b6   : > { %v4924_v60 = vadd.f32 %v4923_v0, %v4893_v63  ;;  %v4856_v35 = vadd.f32 %v4855_v62, %v14303_v61  ;;  %v4894_v7 = vmul.f32 %v14303_v61, %v14303_v61  ;;  %v14331_v24 = vadd.f32 %v11470_v48, %v4603_v46  ;;  %v14334_v63 = vpop.f32.mrf.mxu1 }
 0x2b7   : > { %v4755_v10 = vpop.f32.mrf.mxu0 }
 0x2b8   : > { %v4857_v1 = vadd.f32 %v4856_v35, %v14295_v16  ;;  %v4925_v17 = vadd.f32 %v4924_v60, %v4894_v7  ;;  %v14322_v55 = vadd.f32 %v4755_v10, %v4595_v5  ;;  %v17282_v5 = vld [vmem:[#allocation19_spill] sm:$0xff]  ;;  %v17283_v35 = vld [vmem:[#allocation14_spill] sm:$0xff]  ;;  %v14353_v46 = vpop.f32.mrf.mxu1 }
 0x2b9   : > { %v11471_v45 = vpop.f32.mrf.mxu0  ;;  %v10893_v60 = vadd.f32 %v17282_v5, %v14145_v47  ;;  %v4611_v7 = vadd.f32 %v10890_v8, %v17283_v35  ;;  %v4899_v47 = vmul.f32 %v14331_v24, %v14331_v24 }
 0x2ba   : > { %v4926_v59 = vadd.f32 %v4925_v17, %v4895_v22  ;;  %v4858_v34 = vadd.f32 %v4857_v1, %v14310_v3  ;;  %v4897_v14 = vmul.f32 %v14322_v55, %v14322_v55  ;;  %v14346_v42 = vadd.f32 %v11471_v45, %v4606_v51  ;;  %v17284_v1 = vld [vmem:[#allocation32_spill] sm:$0xff]  ;;  %v17285_v45 = vld [vmem:[#allocation38_spill] sm:$0xff]  ;;  %v14370_v35 = vpop.f32.mrf.mxu1 }
 0x2bb   : > { %v4758_v62 = vpop.f32.mrf.mxu0  ;;  %v10899_v17 = vadd.f32 %v14167_v44, %v17284_v1  ;;  %v17287_v51 = vld [vmem:[#allocation44_spill] sm:$0xff]  ;;  %v17290_v1 = vld [vmem:[#allocation33_spill] sm:$0xff] }
 0x2bc   : > { %v4859_v54 = vadd.f32 %v4858_v34, %v14322_v55  ;;  %v4927_v0 = vadd.f32 %v4926_v59, %v4896_v13  ;;  %v14339_v41 = vadd.f32 %v4758_v62, %v4598_v25  ;;  %v10902_v13 = vadd.f32 %v17285_v45, %v14172_v15  ;;  %v17286_v59 = vld [vmem:[#allocation46_spill] sm:$0xff] }
 0x2bd   : > { %v11474_v48 = vpop.f32.mrf.mxu0  ;;  %v4619_v34 = vadd.f32 %v10896_v12, %v17286_v59  ;;  %v4900_v44 = vmul.f32 %v14346_v42, %v14346_v42  ;;  %v4614_v62 = vadd.f32 %v10893_v60, %v17287_v51  ;;  %v10911_v45 = vadd.f32 %v14198_v39, %v14196_v37 }
 0x2be   : > { %v4928_v49 = vadd.f32 %v4927_v0, %v4897_v14  ;;  %v4860_v10 = vadd.f32 %v4859_v54, %v14339_v41  ;;  %v4898_v22 = vmul.f32 %v14339_v41, %v14339_v41  ;;  %v17288_v14 = vld [vmem:[#allocation29_spill] sm:$0xff] }
 0x2bf   : > { %v4771_v31 = vpop.f32.mrf.mxu0  ;;  %v14367_v54 = vadd.f32 %v11474_v48, %v4619_v34  ;;  %v4622_v0 = vadd.f32 %v10899_v17, %v17288_v14  ;;  %v4627_v17 = vadd.f32 %v10902_v13, %v17290_v1  ;;  %v14389_v34 = vpop.f32.mrf.mxu1  ;;  %v17293_v14 = vld [vmem:[#allocation36_spill] sm:$0xff] }
 0x2c0   : > { %v4861_v19 = vadd.f32 %v4860_v10, %v14331_v24  ;;  %v4929_v50 = vadd.f32 %v4928_v49, %v4898_v22  ;;  %v14358_v8 = vadd.f32 %v4771_v31, %v4611_v7  ;;  %v10905_v10 = vadd.f32 %v14184_v4, %v14179_v28  ;;  %v17289_v22 = vld [vmem:[#allocation40_spill] sm:$0xff] }
 0x2c1   : > { %v11475_v40 = vpop.f32.mrf.mxu0  ;;  %v10908_v60 = vadd.f32 %v14191_v57, %v17289_v22  ;;  %v4903_v57 = vmul.f32 %v14367_v54, %v14367_v54  ;;  %v14406_v22 = vpop.f32.mrf.mxu1 }
 0x2c2   : > { %v4930_v25 = vadd.f32 %v4929_v50, %v4899_v47  ;;  %v4862_v43 = vadd.f32 %v4861_v19, %v14346_v42  ;;  %v4901_v12 = vmul.f32 %v14358_v8, %v14358_v8  ;;  %v14382_v47 = vadd.f32 %v11475_v40, %v4622_v0  ;;  %v17291_v40 = vld [vmem:[#allocation31_spill] sm:$0xff] }
 0x2c3   : > { %v4774_v5 = vpop.f32.mrf.mxu0  ;;  %v4630_v0 = vadd.f32 %v10905_v10, %v17293_v14  ;;  %v10920_v10 = vadd.f32 %v14225_v38, %v14220_v23  ;;  %v17298_v14 = vld [vmem:[#allocation39_spill] sm:$0xff] }
 0x2c4   : > { %v4863_v15 = vadd.f32 %v4862_v43, %v14358_v8  ;;  %v4931_v7 = vadd.f32 %v4930_v25, %v4900_v44  ;;  %v14375_v49 = vadd.f32 %v4774_v5, %v4614_v62  ;;  %v10914_v44 = vadd.f32 %v17291_v40, %v14203_v36  ;;  %v17292_v25 = vld [vmem:[#allocation43_spill] sm:$0xff] }
 0x2c5   : > { %v11478_v48 = vpop.f32.mrf.mxu0  ;;  %v4635_v43 = vadd.f32 %v10908_v60, %v17292_v25  ;;  %v4904_v39 = vmul.f32 %v14382_v47, %v14382_v47  ;;  %v10942_v25 = vpop.f32.mrf.mxu1 }
 0x2c6   : > { %v4932_v31 = vadd.f32 %v4931_v7, %v4901_v12  ;;  %v4864_v19 = vadd.f32 %v4863_v15, %v14375_v49  ;;  %v4902_v50 = vmul.f32 %v14375_v49, %v14375_v49  ;;  %v17294_v15 = vld [vmem:[#allocation37_spill] sm:$0xff] }
 0x2c7   : > { %v4787_v59 = vpop.f32.mrf.mxu0  ;;  %v14403_v5 = vadd.f32 %v11478_v48, %v4635_v43  ;;  %v4638_v12 = vadd.f32 %v10911_v45, %v17294_v15  ;;  %v11746_v15 = vld [vmem:[#allocation8 + $0xf8] sm:$0xff]  }
 0x2c8   : > { %v4865_v28 = vadd.f32 %v4864_v19, %v14367_v54  ;;  %v4933_v4 = vadd.f32 %v4932_v31, %v4902_v50  ;;  %v14394_v13 = vadd.f32 %v4787_v59, %v4627_v17  ;;  %v10917_v31 = vadd.f32 %v14215_v32, %v14210_v52  ;;  %v17295_v19 = vld [vmem:[#allocation45_spill] sm:$0xff]  ;;  %11084 = vmatprep.subr.bf16.mxu0 %v11746_v15  ;;  %v17302_v15 = vld [vmem:[#allocation30_spill] sm:$0xff] }
 0x2c9   : > { %v11479_v51 = vpop.f32.mrf.mxu0  ;;  %v4643_v50 = vadd.f32 %v10914_v44, %v17295_v19  ;;  %v4907_v32 = vmul.f32 %v14403_v5, %v14403_v5  ;;  %v17296_v44 = vld [vmem:[#allocation26_spill] sm:$0xff]  ;;  %v10943_v19 = vpop.f32.mrf.mxu1 }
 0x2ca   : > { %v4934_v37 = vadd.f32 %v4933_v4, %v4903_v57  ;;  %v4866_v62 = vadd.f32 %v4865_v28, %v14382_v47  ;;  %v4905_v60 = vmul.f32 %v14394_v13, %v14394_v13  ;;  %v14418_v59 = vadd.f32 %v11479_v51, %v4638_v12  ;;  %v17297_v51 = vld [vmem:[#allocation41_spill] sm:$0xff] }
 0x2cb   : > { %v4790_v7 = vpop.f32.mrf.mxu0  ;;  %v10923_v4 = vadd.f32 %v14232_v26, %v14230_v20  ;;  %v10926_v43 = vadd.f32 %v14239_v9, %v17296_v44  ;;  %v11750_v44 = vld [vmem:[#allocation8 + $0xf0] sm:$0xff]  }
 0x2cc   : > { %v4867_v36 = vadd.f32 %v4866_v62, %v14394_v13  ;;  %v4935_v1 = vadd.f32 %v4934_v37, %v4904_v39  ;;  %v14411_v17 = vadd.f32 %v4790_v7, %v4630_v0  ;;  %v4651_v39 = vadd.f32 %v10920_v10, %v17297_v51  ;;  %v17299_v7 = vld [vmem:[#allocation42_spill] sm:$0xff] }
 0x2cd   : > { %v11482_v48 = vpop.f32.mrf.mxu0  ;;  %v4908_v62 = vmul.f32 %v14418_v59, %v14418_v59  ;;  %v4646_v0 = vadd.f32 %v10917_v31, %v17298_v14  ;;  %v10929_v31 = vadd.f32 %v14259_v21, %v14250_v2  ;;  %v10935_v51 = vadd.f32 %v14334_v63, %v14317_v27  ;;  %v11751_v21 = vld [vmem:[#allocation8 + $0xb0] sm:$0xff]  }
 0x2ce   : > { %v4936_v45 = vadd.f32 %v4935_v1, %v4905_v60  ;;  %v4868_v57 = vadd.f32 %v4867_v36, %v14411_v17  ;;  %v4906_v28 = vmul.f32 %v14411_v17, %v14411_v17  ;;  %v14437_v12 = vadd.f32 %v11482_v48, %v4651_v39  ;;  %v11748_v1 = vld [vmem:[#allocation8 + $0xb8] sm:$0xff]   ;;  %v10945_v39 = vpop.f32.mrf.mxu1 }
 0x2cf   : > { %v4803_v40 = vpop.f32.mrf.mxu0  ;;  %v4654_v36 = vadd.f32 %v10923_v4, %v17299_v7  ;;  %v10932_v48 = vadd.f32 %v14298_v58, %v14281_v56  ;;  %11085 = vmatpush3.bf16.msra.mxu0 %v11748_v1  ;;  %v4662_v7 = vadd.f32 %v10929_v31, %v17302_v15  ;;  %v17303_v1 = vld [vmem:[#allocation34_spill] sm:$0xff]  ;;  %v10941_v31 = vadd.f32 %v14406_v22, %v14389_v34  ;;  %v11755_v34 = vld [vmem:[#allocation8 + $0xa0] sm:$0xff]  }
 0x2d0   : > { %v4869_v52 = vadd.f32 %v4868_v57, %v14403_v5  ;;  %v4937_v23 = vadd.f32 %v4936_v45, %v4906_v28  ;;  %v14428_v38 = vadd.f32 %v4803_v40, %v4643_v50  ;;  %v17300_v28 = vld [vmem:[#allocation28_spill] sm:$0xff]  ;;  %v4911_v56 = vmul.f32 %v14437_v12, %v14437_v12  ;;  %11086 = vmatprep.subr.bf16.mxu0 %v11750_v44 }
 0x2d1   : > { %v11483_v37 = vpop.f32.mrf.mxu0  ;;  %v4659_v4 = vadd.f32 %v10926_v43, %v17300_v28  ;;  %v11742_v44 = vld [vmem:[#allocation8 + $0x58] sm:$0xff]  }
 0x2d2   : > { %v4938_v20 = vadd.f32 %v4937_v23, %v4907_v32  ;;  %v4870_v26 = vadd.f32 %v4869_v52, %v14418_v59  ;;  %v4909_v10 = vmul.f32 %v14428_v38, %v14428_v38  ;;  %v14450_v32 = vadd.f32 %v11483_v37, %v4654_v36  ;;  %v11752_v36 = vld [vmem:[#allocation8 + $0xe8] sm:$0xff]   ;;  %10980 = vmatprep.subr.bf16.mxu1 %v11742_v44 }
 0x2d3   : > { %v4806_v60 = vpop.f32.mrf.mxu0  ;;  %11087 = vmatpush3.bf16.msra.mxu0 %v11751_v21 }
 0x2d4   : > { %v4871_v9 = vadd.f32 %v4870_v26, %v14428_v38  ;;  %v4939_v50 = vadd.f32 %v4938_v20, %v4908_v62  ;;  %v14443_v45 = vadd.f32 %v4806_v60, %v4646_v0  ;;  %v10938_v62 = vadd.f32 %v14370_v35, %v14353_v46  ;;  %v17301_v20 = vld [vmem:[#allocation35_spill] sm:$0xff]  ;;  %v10946_v46 = vpop.f32.mrf.mxu1  ;;  %11088 = vmatprep.subr.bf16.mxu0 %v11752_v36 }
 0x2d5   : > { %v11486_v57 = vpop.f32.mrf.mxu0  ;;  %v4667_v26 = vadd.f32 %v10932_v48, %v17301_v20  ;;  %v4912_v27 = vmul.f32 %v14450_v32, %v14450_v32  ;;  %v10947_v20 = vadd.f32 %v10946_v46, %v10945_v39 }
 0x2d6   : > { %v4940_v40 = vadd.f32 %v4939_v50, %v4909_v10  ;;  %v4872_v52 = vadd.f32 %v4871_v9, %v14443_v45  ;;  %v4910_v23 = vmul.f32 %v14443_v45, %v14443_v45  ;;  %v4670_v9 = vadd.f32 %v10935_v51, %v17303_v1  ;;  %v11753_v50 = vld [vmem:[#allocation8 + $0xa8] sm:$0xff]   ;;  %v11745_v1 = vld [vmem:[#allocation8 + $0x10] sm:$0xff]  }
 0x2d7   : > { %v4819_v2 = vpop.f32.mrf.mxu0  ;;  %v14469_v60 = vadd.f32 %v11486_v57, %v4667_v26  ;;  %11089 = vmatpush3.bf16.msra.mxu0 %v11753_v50 }
 0x2d8   : > { %v4873_v58 = vadd.f32 %v4872_v52, %v14437_v12  ;;  %v4941_v43 = vadd.f32 %v4940_v40, %v4910_v23  ;;  %v14460_v37 = vadd.f32 %v4819_v2, %v4659_v4  ;;  %v10944_v40 = vadd.f32 %v10943_v19, %v10942_v25  ;;  %v17304_v52 = vld [vmem:[#allocation22_spill] sm:$0xff] }
 0x2d9   : > { %v11487_v14 = vpop.f32.mrf.mxu0  ;;  %v4675_v23 = vadd.f32 %v10938_v62, %v17304_v52  ;;  %v4915_v22 = vmul.f32 %v14469_v60, %v14469_v60 }
 0x2da   : > { %v4942_v63 = vadd.f32 %v4941_v43, %v4911_v56  ;;  %v4874_v0 = vadd.f32 %v4873_v58, %v14450_v32  ;;  %v4913_v48 = vmul.f32 %v14460_v37, %v14460_v37  ;;  %v14480_v2 = vadd.f32 %v11487_v14, %v4670_v9  ;;  %v11743_v58 = vld [vmem:[#allocation8 + $0x18] sm:$0xff]   ;;  %v11754_v43 = vld [vmem:[#allocation8 + $0xe0] sm:$0xff]  }
 0x2db   : > { %v4822_v10 = vpop.f32.mrf.mxu0  ;;  %10981 = vmatpush3.bf16.msra.mxu1 %v11743_v58  ;;  %v4683_v14 = vadd.f32 %v10944_v40, %v14237_v53  ;;  %11090 = vmatprep.subr.bf16.mxu0 %v11754_v43  ;;  %v11756_v9 = vld [vmem:[#allocation8 + $0xd8] sm:$0xff]   ;;  %v4686_v53 = vadd.f32 %v10947_v20, %v14246_v30 }
 0x2dc   : > { %v4875_v35 = vadd.f32 %v4874_v0, %v14460_v37  ;;  %v4943_v28 = vadd.f32 %v4942_v63, %v4912_v27  ;;  %v14475_v4 = vadd.f32 %v4822_v10, %v4662_v7  ;;  %v11744_v63 = vld [vmem:[#allocation8 + $0x50] sm:$0xff]   ;;  %v4916_v39 = vmul.f32 %v14480_v2, %v14480_v2  ;;  %v17305_v7 = vld [vmem:[#allocation24_spill] sm:$0xff]  ;;  %11091 = vmatpush3.bf16.msra.mxu0 %v11755_v34  ;;  %v14495_v10 = vld [vmem:[#allocation2] sm:$0xf] }
 0x2dd   : > { %v11490_v57 = vpop.f32.mrf.mxu0  ;;  %v4678_v36 = vadd.f32 %v10941_v31, %v17305_v7  ;;  %10982 = vmatprep.subr.bf16.mxu1 %v11744_v63  ;;  %v5653_v40 = vshll.u32 %v14495_v10, 16  ;;  %11092 = vmatprep.subr.bf16.mxu0 %v11756_v9  ;;  %v11749_v34 = vld [vmem:[#allocation8 + $0x8] sm:$0xff]  }
 0x2de   : > { %v4944_v51 = vadd.f32 %v4943_v28, %v4913_v48  ;;  %v4876_v21 = vadd.f32 %v4875_v35, %v14475_v4  ;;  %v4914_v56 = vmul.f32 %v14475_v4, %v14475_v4  ;;  %v14497_v50 = vadd.f32 %v11490_v57, %v4683_v14  ;;  %v11758_v35 = vld [vmem:[#allocation8 + $0x98] sm:$0xff]   ;;  %v14500_v48 = vld [vmem:[#allocation2 + $0x4] sm:$0xf]  ;;  %v11747_v57 = vld [vmem:[#allocation8 + $0x48] sm:$0xff]  }
 0x2df   : > { %v4835_v26 = vpop.f32.mrf.mxu0  ;;  %v5650_v28 = vshrl.u32 %v14495_v10, 16  ;;  %10983 = vmatpush3.bf16.msra.mxu1 %v11745_v1  ;;  %v11759_v1 = vld [vmem:[#allocation8] sm:$0xff]   ;;  %v11762_v9 = vld [vmem:[#allocation8 + $0xc8] sm:$0xff]  }
 0x2e0   : > { %v4877_v25 = vadd.f32 %v4876_v21, %v14469_v60  ;;  %v4945_v19 = vadd.f32 %v4944_v51, %v4914_v56  ;;  %v14488_v62 = vadd.f32 %v4835_v26, %v4675_v23  ;;  %v5655_v51 = vrot.slane %v5653_v40, 5  ;;  %11093 = vmatpush3.bf16.msra.mxu0 %v11758_v35  ;;  %10984 = vmatprep.subr.bf16.mxu1 %v11747_v57 }
 0x2e1   : > { %v11491_v27 = vpop.f32.mrf.mxu0  ;;  %v5652_v30 = vrot.slane %v5650_v28, 4  ;;  %v5659_v21 = vshll.u32 %v14500_v48, 16  ;;  %v5663_v56 = vshrl.u32 %v14500_v48, 16  ;;  %v6099_v28 = vrot.slane %v14500_v48, 5 }
 0x2e2   : > { %v4946_v0 = vadd.f32 %v4945_v19, %v4915_v22  ;;  %v4878_v15 = vadd.f32 %v4877_v25, %v14480_v2  ;;  %v4917_v52 = vmul.f32 %v14488_v62, %v14488_v62  ;;  %v14511_v43 = vadd.f32 %v11491_v27, %v4686_v53  ;;  %v11760_v22 = vld [vmem:[#allocation8 + $0xd0] sm:$0xff]   ;;  %v5633_v25 = vld [vmem:[#allocation2 + $0x8] sm:$0x1] }
 0x2e3   : > { %v4838_v46 = vpop.f32.mrf.mxu0  ;;  %v11761_v19 = vld [vmem:[#allocation8 + $0x90] sm:$0xff]   ;;  %v5656_v14 = vor.u32 %v5655_v51, %v5652_v30  ;;  %v5661_v63 = vrot.slane %v5659_v21, 5  ;;  %10985 = vmatpush3.bf16.msra.mxu1 %v11749_v34  ;;  %11094 = vmatprep.subr.bf16.mxu0 %v11760_v22  ;;  %v6102_v57 = vrot.slane %v5633_v25, 5 }
 0x2e4   : > { %v4879_v31 = vadd.f32 %v4878_v15, %v14488_v62  ;;  %v4947_v23 = vadd.f32 %v4946_v0, %v4916_v39  ;;  %v14507_v44 = vadd.f32 %v4838_v46, %v4678_v36  ;;  %v5665_v39 = vrot.slane %v5663_v56, 4  ;;  %v11757_v36 = vld [vmem:[#allocation8 + $0x40] sm:$0xff]   ;;  %11095 = vmatpush3.bf16.msra.mxu0 %v11761_v19 }
 0x2e5   : > { %v5669_v0 = vshll.u32 %v5633_v25, 16  ;;  %v4919_v15 = vmul.f32 %v14497_v50, %v14497_v50  ;;  %v5657_v53 = vrot.slane %v5656_v14, 4  ;;  %v4920_v40 = vmul.f32 %v14511_v43, %v14511_v43  ;;  %10986 = vmatprep.subr.bf16.mxu1 %v11757_v36  ;;  %11096 = vmatprep.subr.bf16.mxu0 %v11762_v9  ;;  %v11770_v9 = vld [vmem:[#allocation8 + $0x138] sm:$0xff]  }
 0x2e6   : > { %v4948_v58 = vadd.f32 %v4947_v23, %v4917_v52  ;;  %v4880_v20 = vadd.f32 %v4879_v31, %v14507_v44  ;;  %v4918_v26 = vmul.f32 %v14507_v44, %v14507_v44  ;;  %v5666_v46 = vor.u32 %v5665_v39, %v5661_v63  ;;  %v11763_v23 = vld [vmem:[#allocation8 + $0x88] sm:$0xff]  }
 0x2e7   : > { %v5671_v35 = vrot.slane %v5669_v0, 5  ;;  %v5662_v51 = vsel %vm12343_vm14, %v5657_v53, %v5661_v63  ;;  %v6101_v56 = vrot.slane %v6099_v28, 4  ;;  %10987 = vmatpush3.bf16.msra.mxu1 %v11759_v1  ;;  %v10213_v25 = vcombine.low %v14495_v10, %v14500_v48  ;;  %v11766_v0 = vld [vmem:[#allocation8 + $0x80] sm:$0xff]   ;;  %v11769_v1 = vld [vmem:[#allocation8 + $0x178] sm:$0xff]  }
 0x2e8   : > { %v4881_v27 = vadd.f32 %v4880_v20, %v14497_v50  ;;  %v4949_v7 = vadd.f32 %v4948_v58, %v4918_v26  ;;  %v5667_v21 = vrot.slane %v5666_v46, 4  ;;  %v11765_v58 = vld [vmem:[#allocation8 + $0xc0] sm:$0xff]   ;;  %11097 = vmatpush3.bf16.msra.mxu0 %v11763_v23  ;;  %11196 = vmatprep.subr.bf16.mxu1 %v11769_v1 }
 0x2e9   : > { %v14529_v14 = vsel %vm12307_vm11, %v6101_v56, %v6102_v57  ;;  %11098 = vmatprep.subr.bf16.mxu0 %v11765_v58 }
 0x2ea   : > { %v4882_v31 = vadd.f32 %v4881_v27, %v14511_v43  ;;  %v4950_v52 = vadd.f32 %v4949_v7, %v4919_v15  ;;  %v5672_v34 = vsel %vm12343_vm14, %v5667_v21, %v5671_v35  ;;  %17308 = vst [vmem:[#allocation27_spill] sm:$0xff] %v14529_v14  ;;  %v6033_v15 = vld [vmem:[#allocation2] sm:$0xe] }
 0x2eb   : > { %v10229_v63 = vcombine.low %v5662_v51, %v5672_v34  ;;  %v10165_v27 = vrot.slane %v6033_v15, 9  ;;  %v4851_v15 = vld [vmem:[%s17058_s3] sm:$0x1] }
 0x2ec   : > { %v4883_v20 = vrot.slane %v4882_v31, 4  ;;  %v4951_v26 = vadd.f32 %v4950_v52, %v4920_v40  ;;  %11099 = vmatpush3.bf16.msra.mxu0 %v11766_v0 }
 0x2ed   : > { %8657 = vmatprep.mubr.bf16.mxu1 %v10229_v63  ;;  %v14535_v53 = vsel %vm12307_vm11, %v10165_v27, %v6099_v28 }
 0x2ee   : > { %v4884_v19 = vadd.f32 %v4883_v20, %v4882_v31  ;;  %v4952_v39 = vrot.slane %v4951_v26, 4  ;;  %8658 = vmatmul.mubr.bf16.vlgmr.msra.gmra.mxu1 %v10213_v25  ;;  %17309 = vst [vmem:[#allocation23_spill] sm:$0xff] %v14535_v53  ;;  %v11775_v20 = vld [vmem:[#allocation8 + $0x170] sm:$0xff]  }
 0x2ef   : > { %11197 = vmatpush3.bf16.msra.mxu1 %v11770_v9  ;;  %v11776_v25 = vld [vmem:[#allocation8 + $0x130] sm:$0xff]  }
 0x2f0   : > { %v4885_v7 = vrot.slane %v4884_v19, 2  ;;  %v4953_v36 = vadd.f32 %v4952_v39, %v4951_v26  ;;  %v4968_v26 = vlaneseq  ;;  %11198 = vmatprep.subr.bf16.mxu1 %v11775_v20 }
 0x2f2   : > { %v4886_v46 = vadd.f32 %v4885_v7, %v4884_v19  ;;  %v4954_v10 = vrot.slane %v4953_v36, 2  ;;  %v4969_v34 = vshrl.u32 %v4968_v26, 7  ;;  %v4850_v19 = vld [vmem:[%s17057_s2] sm:$0x1] }
 0x2f3   : > { %11199 = vmatpush3.bf16.msra.mxu1 %v11776_v25  ;;  %v11782_v25 = vld [vmem:[#allocation8 + $0x128] sm:$0xff]  }
 0x2f4   : > { %v4887_v35 = vrot.slane %v4886_v46, 1  ;;  %v4955_v40 = vadd.f32 %v4954_v10, %v4953_v36  ;;  %v14542_v39 = vsub.s32 0, %v4969_v34 }
 0x2f6   : > { %v4888_v31 = vadd.f32 %v4887_v35, %v4886_v46  ;;  %v4956_v52 = vrot.slane %v4955_v40, 1  ;;  %17310 = vst [vmem:[#allocation21_spill] sm:$0xff] %v14542_v39 }
 0x2f8   : > { %v4957_v23 = vadd.f32 %v4956_v52, %v4955_v40  ;;  %v4958_v57 = vmul.f32 0.00390625, %v4888_v31 }
 0x2fa   : > { %v4959_v51 = vmul.f32 0.00390625, %v4957_v23  ;;  %v4960_v21 = vmul.f32 %v4958_v57, %v4958_v57 }
 0x2fc   : > { %v4961_v56 = vsub.f32 %v4959_v51, %v4960_v21 }
 0x2fe   : > { %v4962_v58 = vmax.f32 %v4961_v56, 0.0 }
 0x300   : > { %v4963_v28 = vadd.f32 1e-05, %v4962_v58 }
 0x302   : > { %11854 = vrsqrt.f32 %v4963_v28 }
 0x30f   : > { %v11855_v63 = vpop.eup %11854 }
 0x310   : > { %v4965_v0 = vmul.f32 %v11855_v63, %v4850_v19 }
 0x312   : > { %v4966_v27 = vmul.f32 %v4965_v0, %v4958_v57  ;;  %v4971_v7 = vrot.slane %v4965_v0, %v14542_v39  ;;  %v5591_v0 = vld [vmem:[#allocation2 + $0xf8] sm:$0x1] }
 0x314   : > { %v4967_v36 = vsub.f32 %v4851_v15, %v4966_v27  ;;  %v5000_v1 = vmul.f32 %v4971_v7, %v14488_v62  ;;  %v5001_v9 = vmul.f32 %v4971_v7, %v14507_v44  ;;  %v4972_v46 = vmul.f32 %v4971_v7, %v14256_v11  ;;  %v11781_v44 = vld [vmem:[#allocation8 + $0x168] sm:$0xff]  }
 0x315   : > { %v4973_v10 = vmul.f32 %v4971_v7, %v14264_v18  ;;  %v4974_v35 = vmul.f32 %v4971_v7, %v14261_v6  ;;  %v4975_v40 = vmul.f32 %v4971_v7, %v14273_v29  ;;  %v4976_v31 = vmul.f32 %v4971_v7, %v14286_v33  ;;  %11200 = vmatprep.subr.bf16.mxu1 %v11781_v44 }
 0x316   : > { %v14556_v52 = vrot.slane %v4967_v36, %v14542_v39  ;;  %v4977_v23 = vmul.f32 %v4971_v7, %v14303_v61  ;;  %v4978_v57 = vmul.f32 %v4971_v7, %v14295_v16  ;;  %v4979_v62 = vmul.f32 %v4971_v7, %v14310_v3  ;;  %11201 = vmatpush3.bf16.msra.mxu1 %v11782_v25  ;;  %v11899_v39 = vld [vmem:[#allocation2 + $0x10] sm:$0xf] }
 0x317   : > { %v4980_v11 = vmul.f32 %v4971_v7, %v14322_v55  ;;  %v4981_v18 = vmul.f32 %v4971_v7, %v14339_v41  ;;  %v4982_v6 = vmul.f32 %v4971_v7, %v14331_v24  ;;  %v4983_v29 = vmul.f32 %v4971_v7, %v14346_v42 }
 0x318   : > { %v5038_v33 = vadd.f32 %v14556_v52, %v5000_v1  ;;  %v5039_v51 = vadd.f32 %v14556_v52, %v5001_v9  ;;  %v4984_v21 = vmul.f32 %v4971_v7, %v14358_v8  ;;  %v4985_v61 = vmul.f32 %v4971_v7, %v14375_v49 }
 0x319   : > { %v4986_v16 = vmul.f32 %v4971_v7, %v14367_v54  ;;  %v4987_v3 = vmul.f32 %v4971_v7, %v14382_v47  ;;  %v4988_v55 = vmul.f32 %v4971_v7, %v14394_v13  ;;  %v4989_v41 = vmul.f32 %v4971_v7, %v14411_v17 }
 0x31a   : > { %v5070_v24 = vmax.f32 %v5038_v33, 0.0  ;;  %v5071_v56 = vmax.f32 %v5039_v51, 0.0  ;;  %v4990_v42 = vmul.f32 %v4971_v7, %v14403_v5  ;;  %v4991_v58 = vmul.f32 %v4971_v7, %v14418_v59 }
 0x31b   : > { %v4992_v28 = vmul.f32 %v4971_v7, %v14428_v38  ;;  %v4993_v8 = vmul.f32 %v4971_v7, %v14443_v45  ;;  %v4994_v49 = vmul.f32 %v4971_v7, %v14437_v12  ;;  %v4995_v54 = vmul.f32 %v4971_v7, %v14450_v32 }
 0x31c   : > { %v14579_v20 = vpack.c.bf16 %v5070_v24, %v5070_v24  ;;  %v10496_v47 = vpack.c.bf16 %v5071_v56, %v5071_v56  ;;  %v4996_v13 = vmul.f32 %v4971_v7, %v14460_v37  ;;  %v4997_v17 = vmul.f32 %v4971_v7, %v14475_v4 }
 0x31d   : > { %v4998_v26 = vmul.f32 %v4971_v7, %v14469_v60  ;;  %v4999_v5 = vmul.f32 %v4971_v7, %v14480_v2  ;;  %v5002_v59 = vmul.f32 %v4971_v7, %v14497_v50  ;;  %v5003_v38 = vmul.f32 %v4971_v7, %v14511_v43 }
 0x31e   : > { %v5409_v45 = vshrl.u32 %v14579_v20, 16  ;;  %v5417_v12 = vshrl.u32 %v10496_v47, 16  ;;  %v5420_v34 = vshll.u32 %v10496_v47, 16  ;;  %v5412_v32 = vshll.u32 %v14579_v20, 16  ;;  %v5528_v20 = vld [vmem:[#allocation2 + $0x68] sm:$0x1] }
 0x31f   : > { %v14590_v19 = vadd.f32 %v14556_v52, %v4972_v46  ;;  %v14593_v37 = vadd.f32 %v14556_v52, %v4973_v10  ;;  %v14596_v60 = vadd.f32 %v14556_v52, %v4974_v35  ;;  %v14599_v4 = vadd.f32 %v14556_v52, %v4975_v40 }
 0x320   : > { %v14601_v2 = vrot.slane %v5409_v45, 7  ;;  %v5419_v50 = vrot.slane %v5417_v12, 7  ;;  %v14604_v43 = vadd.f32 %v14556_v52, %v4976_v31  ;;  %v14607_v63 = vadd.f32 %v14556_v52, %v4977_v23 }
 0x321   : > { %v14610_v15 = vadd.f32 %v14556_v52, %v4978_v57  ;;  %v14613_v27 = vadd.f32 %v14556_v52, %v4979_v62  ;;  %v14616_v7 = vadd.f32 %v14556_v52, %v4980_v11  ;;  %v14619_v36 = vadd.f32 %v14556_v52, %v4981_v18  ;;  %v5577_v57 = vld [vmem:[#allocation2 + $0xd8] sm:$0x1] }
 0x322   : > { %v5415_v1 = vrot.slane %v14601_v2, 4  ;;  %v5422_v9 = vor.u32 %v5420_v34, %v5419_v50  ;;  %v5424_v46 = vrot.slane %v5419_v50, 4  ;;  %v14623_v10 = vadd.f32 %v14556_v52, %v4982_v6 }
 0x323   : > { %v14626_v35 = vadd.f32 %v14556_v52, %v4983_v29  ;;  %v14629_v40 = vadd.f32 %v14556_v52, %v4984_v21  ;;  %v14632_v31 = vadd.f32 %v14556_v52, %v4985_v61  ;;  %v14635_v23 = vadd.f32 %v14556_v52, %v4986_v16 }
 0x324   : > { %v5423_v62 = vsel %vm12330_vm13, %v5415_v1, %v5422_v9  ;;  %v5592_v11 = vsel %vm12281_vm3, %v5424_v46, %v5591_v0  ;;  %v14642_v18 = vadd.f32 %v14556_v52, %v4987_v3  ;;  %v14645_v6 = vadd.f32 %v14556_v52, %v4988_v55 }
 0x325   : > { %5590 = vst [vmem:[#allocation2 + $0xf4] sm:$0xf] %v5423_v62  ;;  %5593 = vst [vmem:[#allocation2 + $0xf8] sm:$0x1] %v5592_v11  ;;  %v14648_v29 = vadd.f32 %v14556_v52, %v4989_v41  ;;  %v14651_v33 = vadd.f32 %v14556_v52, %v4990_v42  ;;  %v14654_v51 = vadd.f32 %v14556_v52, %v4991_v58  ;;  %v5045_v47 = vmax.f32 %v14599_v4, 0.0  ;;  %v11788_v62 = vld [vmem:[#allocation8 + $0x120] sm:$0xff]  }
 0x326   : > { %v14657_v21 = vadd.f32 %v14556_v52, %v4992_v28  ;;  %v14660_v61 = vadd.f32 %v14556_v52, %v4993_v8  ;;  %v14663_v16 = vadd.f32 %v14556_v52, %v4994_v49  ;;  %v14666_v3 = vadd.f32 %v14556_v52, %v4995_v54  ;;  %v11787_v54 = vld [vmem:[#allocation8 + $0x160] sm:$0xff]  }
 0x327   : > { %v14669_v55 = vadd.f32 %v14556_v52, %v4996_v13  ;;  %v14672_v41 = vadd.f32 %v14556_v52, %v4997_v17  ;;  %v14675_v24 = vadd.f32 %v14556_v52, %v4998_v26  ;;  %v14678_v56 = vadd.f32 %v14556_v52, %v4999_v5  ;;  %11202 = vmatprep.subr.bf16.mxu1 %v11787_v54 }
 0x328   : > { %v14681_v42 = vadd.f32 %v14556_v52, %v5002_v59  ;;  %v14684_v58 = vadd.f32 %v14556_v52, %v5003_v38  ;;  %v5042_v28 = vmax.f32 %v14590_v19, 0.0  ;;  %v5043_v8 = vmax.f32 %v14593_v37, 0.0  ;;  %11203 = vmatpush3.bf16.msra.mxu1 %v11788_v62 }
 0x329   : > { %v5044_v49 = vmax.f32 %v14596_v60, 0.0  ;;  %v5046_v13 = vmax.f32 %v14604_v43, 0.0  ;;  %v5047_v17 = vmax.f32 %v14607_v63, 0.0  ;;  %v5048_v26 = vmax.f32 %v14610_v15, 0.0 }
 0x32a   : > { %v5049_v5 = vmax.f32 %v14613_v27, 0.0  ;;  %v5050_v52 = vmax.f32 %v14616_v7, 0.0  ;;  %v5051_v59 = vmax.f32 %v14619_v36, 0.0  ;;  %v5052_v38 = vmax.f32 %v14623_v10, 0.0 }
 0x32b   : > { %v5053_v45 = vmax.f32 %v14626_v35, 0.0  ;;  %v5054_v12 = vmax.f32 %v14629_v40, 0.0  ;;  %v5055_v34 = vmax.f32 %v14632_v31, 0.0  ;;  %v5056_v25 = vmax.f32 %v14635_v23, 0.0 }
 0x32c   : > { %v5057_v19 = vmax.f32 %v14642_v18, 0.0  ;;  %v5058_v37 = vmax.f32 %v14645_v6, 0.0  ;;  %v5059_v60 = vmax.f32 %v14648_v29, 0.0  ;;  %v5060_v4 = vmax.f32 %v14651_v33, 0.0 }
 0x32d   : > { %v5061_v50 = vmax.f32 %v14654_v51, 0.0  ;;  %v5062_v43 = vmax.f32 %v14657_v21, 0.0  ;;  %v5063_v63 = vmax.f32 %v14660_v61, 0.0  ;;  %v5064_v0 = vmax.f32 %v14663_v16, 0.0 }
 0x32e   : > { %v5065_v15 = vmax.f32 %v14666_v3, 0.0  ;;  %v5066_v27 = vmax.f32 %v14669_v55, 0.0  ;;  %v5067_v7 = vmax.f32 %v14672_v41, 0.0  ;;  %v5068_v36 = vmax.f32 %v14675_v24, 0.0 }
 0x32f   : > { %v5069_v1 = vmax.f32 %v14678_v56, 0.0  ;;  %v5072_v9 = vmax.f32 %v14681_v42, 0.0  ;;  %v5073_v46 = vmax.f32 %v14684_v58, 0.0  ;;  %v10467_v10 = vpack.c.bf16 %v5042_v28, %v5042_v28 }
 0x330   : > { %v10468_v35 = vpack.c.bf16 %v5043_v8, %v5043_v8  ;;  %v10469_v40 = vpack.c.bf16 %v5044_v49, %v5044_v49  ;;  %v10470_v31 = vpack.c.bf16 %v5045_v47, %v5045_v47  ;;  %v14716_v23 = vpack.c.bf16 %v5046_v13, %v5046_v13 }
 0x331   : > { %v14718_v11 = vpack.c.bf16 %v5047_v17, %v5047_v17  ;;  %v14720_v18 = vpack.c.bf16 %v5048_v26, %v5048_v26  ;;  %v14722_v6 = vpack.c.bf16 %v5049_v5, %v5049_v5  ;;  %v14724_v29 = vpack.c.bf16 %v5050_v52, %v5050_v52 }
 0x332   : > { %v14726_v33 = vpack.c.bf16 %v5051_v59, %v5051_v59  ;;  %v14728_v51 = vpack.c.bf16 %v5052_v38, %v5052_v38  ;;  %v14730_v21 = vpack.c.bf16 %v5053_v45, %v5053_v45  ;;  %v14732_v61 = vpack.c.bf16 %v5054_v12, %v5054_v12 }
 0x333   : > { %v14734_v16 = vpack.c.bf16 %v5055_v34, %v5055_v34  ;;  %v14736_v3 = vpack.c.bf16 %v5056_v25, %v5056_v25  ;;  %v14738_v55 = vpack.c.bf16 %v5057_v19, %v5057_v19  ;;  %v14740_v41 = vpack.c.bf16 %v5058_v37, %v5058_v37 }
 0x334   : > { %v14742_v24 = vpack.c.bf16 %v5059_v60, %v5059_v60  ;;  %v14744_v56 = vpack.c.bf16 %v5060_v4, %v5060_v4  ;;  %v14746_v42 = vpack.c.bf16 %v5061_v50, %v5061_v50  ;;  %v14748_v58 = vpack.c.bf16 %v5062_v43, %v5062_v43 }
 0x335   : > { %v14750_v28 = vpack.c.bf16 %v5063_v63, %v5063_v63  ;;  %v14752_v8 = vpack.c.bf16 %v5064_v0, %v5064_v0  ;;  %v14754_v49 = vpack.c.bf16 %v5065_v15, %v5065_v15  ;;  %v14756_v54 = vpack.c.bf16 %v5066_v27, %v5066_v27  ;;  %v11793_v15 = vld [vmem:[#allocation8 + $0x158] sm:$0xff]  }
 0x336   : > { %v14758_v47 = vpack.c.bf16 %v5067_v7, %v5067_v7  ;;  %v14760_v13 = vpack.c.bf16 %v5068_v36, %v5068_v36  ;;  %v14762_v17 = vpack.c.bf16 %v5069_v1, %v5069_v1  ;;  %v14764_v26 = vpack.c.bf16 %v5072_v9, %v5072_v9  ;;  %v11794_v27 = vld [vmem:[#allocation8 + $0x1f8] sm:$0xff]   ;;  %11204 = vmatprep.subr.bf16.mxu1 %v11793_v15  ;;  %v11809_v9 = vld [vmem:[#allocation8 + $0x148] sm:$0xff]  }
 0x337   : > { %v14766_v5 = vpack.c.bf16 %v5073_v46, %v5073_v46  ;;  %v5171_v52 = vshrl.u32 %v10467_v10, 16  ;;  %v5174_v59 = vshll.u32 %v10467_v10, 16  ;;  %v5179_v38 = vshrl.u32 %v10468_v35, 16  ;;  %11308 = vmatprep.subr.bf16.mxu0 %v11794_v27 }
 0x338   : > { %v5182_v45 = vshll.u32 %v10468_v35, 16  ;;  %v5188_v12 = vshrl.u32 %v10469_v40, 16  ;;  %v5191_v34 = vshll.u32 %v10469_v40, 16  ;;  %v5196_v25 = vshrl.u32 %v10470_v31, 16 }
 0x339   : > { %v5173_v19 = vrot.slane %v5171_v52, 7  ;;  %v14768_v37 = vrot.slane %v5179_v38, 7  ;;  %v5199_v60 = vshll.u32 %v10470_v31, 16  ;;  %v5205_v4 = vshrl.u32 %v14716_v23, 16 }
 0x33a   : > { %v5190_v50 = vrot.slane %v5188_v12, 7  ;;  %v14771_v43 = vrot.slane %v5196_v25, 7  ;;  %v5208_v63 = vshll.u32 %v14716_v23, 16  ;;  %v5213_v0 = vshrl.u32 %v14718_v11, 16 }
 0x33b   : > { %v14775_v7 = vor.u32 %v5174_v59, %v5173_v19  ;;  %v5177_v36 = vrot.slane %v5173_v19, 4  ;;  %v5184_v1 = vor.u32 %v5182_v45, %v14768_v37  ;;  %v5207_v23 = vrot.slane %v5205_v4, 7 }
 0x33c   : > { %v14779_v46 = vor.u32 %v5191_v34, %v5190_v50  ;;  %v5194_v10 = vrot.slane %v5190_v50, 4  ;;  %v5201_v35 = vor.u32 %v5199_v60, %v14771_v43  ;;  %v14785_v62 = vrot.slane %v5213_v0, 7 }
 0x33d   : > { %v5185_v31 = vsel %vm12330_vm13, %v5177_v36, %v5184_v1  ;;  %v5216_v52 = vshll.u32 %v14718_v11, 16  ;;  %v5222_v38 = vshrl.u32 %v14720_v18, 16  ;;  %v5225_v45 = vshll.u32 %v14720_v18, 16 }
 0x33e   : > { %v5202_v59 = vsel %vm12330_vm13, %v5194_v10, %v5201_v35  ;;  %v5230_v12 = vshrl.u32 %v14722_v6, 16  ;;  %5492 = vst [vmem:[#allocation2 + $0x14] sm:$0xf] %v5185_v31  ;;  %v14793_v34 = vor.u32 %v5208_v63, %v5207_v23  ;;  %v5211_v25 = vrot.slane %v5207_v23, 4  ;;  %v14932_v35 = vld [vmem:[#allocation2 + $0x60] sm:$0xf] }
 0x33f   : > { %v5218_v19 = vor.u32 %v5216_v52, %v14785_v62  ;;  %5499 = vst [vmem:[#allocation2 + $0x24] sm:$0xf] %v5202_v59  ;;  %v5224_v4 = vrot.slane %v5222_v38, 7  ;;  %v5233_v50 = vshll.u32 %v14722_v6, 16  ;;  %v5239_v0 = vshrl.u32 %v14724_v29, 16  ;;  %v11795_v6 = vld [vmem:[#allocation8 + $0x118] sm:$0xff]  }
 0x340   : > { %v14797_v11 = vrot.slane %v5230_v12, 7  ;;  %v5242_v15 = vshll.u32 %v14724_v29, 16  ;;  %v5247_v63 = vshrl.u32 %v14726_v33, 16  ;;  %v5250_v27 = vshll.u32 %v14726_v33, 16  ;;  %11205 = vmatpush3.bf16.msra.mxu1 %v11795_v6 }
 0x341   : > { %v5219_v18 = vsel %vm12330_vm13, %v5211_v25, %v5218_v19  ;;  %v14806_v36 = vor.u32 %v5225_v45, %v5224_v4  ;;  %v5228_v1 = vrot.slane %v5224_v4, 4  ;;  %v5241_v31 = vrot.slane %v5239_v0, 7 }
 0x342   : > { %v5235_v10 = vor.u32 %v5233_v50, %v14797_v11  ;;  %5506 = vst [vmem:[#allocation2 + $0x34] sm:$0xf] %v5219_v18  ;;  %v14810_v23 = vrot.slane %v5247_v63, 7  ;;  %v5256_v52 = vshrl.u32 %v14728_v51, 16  ;;  %v5259_v29 = vshll.u32 %v14728_v51, 16 }
 0x343   : > { %v5264_v33 = vshrl.u32 %v14730_v21, 16  ;;  %v5267_v38 = vshll.u32 %v14730_v21, 16  ;;  %v5273_v45 = vshrl.u32 %v14732_v61, 16  ;;  %v14819_v12 = vor.u32 %v5242_v15, %v5241_v31 }
 0x344   : > { %v5236_v59 = vsel %vm12330_vm13, %v5228_v1, %v5235_v10  ;;  %v5245_v25 = vrot.slane %v5241_v31, 4  ;;  %v5252_v19 = vor.u32 %v5250_v27, %v14810_v23  ;;  %v5258_v50 = vrot.slane %v5256_v52, 7 }
 0x345   : > { %5513 = vst [vmem:[#allocation2 + $0x44] sm:$0xf] %v5236_v59  ;;  %v14823_v51 = vrot.slane %v5264_v33, 7  ;;  %v5275_v0 = vrot.slane %v5273_v45, 7  ;;  %v5276_v18 = vshll.u32 %v14732_v61, 16  ;;  %v5281_v63 = vshrl.u32 %v14734_v16, 16 }
 0x346   : > { %v5253_v21 = vsel %vm12330_vm13, %v5245_v25, %v5252_v19  ;;  %v5284_v15 = vshll.u32 %v14734_v16, 16  ;;  %v5290_v1 = vshrl.u32 %v14736_v3, 16  ;;  %v14831_v10 = vor.u32 %v5259_v29, %v5258_v50 }
 0x347   : > { %v5262_v27 = vrot.slane %v5258_v50, 4  ;;  %v5269_v6 = vor.u32 %v5267_v38, %v14823_v51  ;;  %5520 = vst [vmem:[#allocation2 + $0x54] sm:$0xf] %v5253_v21  ;;  %v14835_v52 = vor.u32 %v5276_v18, %v5275_v0  ;;  %v5279_v61 = vrot.slane %v5275_v0, 4 }
 0x348   : > { %v14837_v59 = vrot.slane %v5281_v63, 7  ;;  %v5292_v33 = vrot.slane %v5290_v1, 7  ;;  %v5293_v16 = vshll.u32 %v14736_v3, 16  ;;  %v5298_v29 = vshrl.u32 %v14738_v55, 16  ;;  %v11801_v1 = vld [vmem:[#allocation8 + $0x150] sm:$0xff]  }
 0x349   : > { %v5270_v45 = vsel %vm12330_vm13, %v5262_v27, %v5269_v6  ;;  %v5301_v25 = vshll.u32 %v14738_v55, 16  ;;  %v5307_v18 = vshrl.u32 %v14740_v41, 16  ;;  %v5310_v63 = vshll.u32 %v14740_v41, 16  ;;  %11206 = vmatprep.subr.bf16.mxu1 %v11801_v1 }
 0x34a   : > { %v5286_v38 = vor.u32 %v5284_v15, %v14837_v59  ;;  %v5296_v50 = vrot.slane %v5292_v33, 4  ;;  %5527 = vst [vmem:[#allocation2 + $0x64] sm:$0xf] %v5270_v45  ;;  %v14847_v0 = vor.u32 %v5293_v16, %v5292_v33  ;;  %v14849_v21 = vrot.slane %v5298_v29, 7 }
 0x34b   : > { %v5315_v3 = vshrl.u32 %v14742_v24, 16  ;;  %v5309_v27 = vrot.slane %v5307_v18, 7  ;;  %v5318_v15 = vshll.u32 %v14742_v24, 16  ;;  %v5324_v6 = vshrl.u32 %v14744_v56, 16 }
 0x34c   : > { %v5287_v55 = vsel %vm12330_vm13, %v5279_v61, %v5286_v38  ;;  %v5303_v48 = vor.u32 %v5301_v25, %v14849_v21  ;;  %v5327_v16 = vshll.u32 %v14744_v56, 16  ;;  %v5332_v61 = vshrl.u32 %v14746_v42, 16 }
 0x34d   : > { %v14859_v45 = vrot.slane %v5315_v3, 7  ;;  %5534 = vst [vmem:[#allocation2 + $0x74] sm:$0xf] %v5287_v55  ;;  %v14862_v41 = vor.u32 %v5310_v63, %v5309_v27  ;;  %v5313_v29 = vrot.slane %v5309_v27, 4  ;;  %v5326_v19 = vrot.slane %v5324_v6, 7 }
 0x34e   : > { %v5304_v24 = vsel %vm12330_vm13, %v5296_v50, %v5303_v48  ;;  %v5335_v18 = vshll.u32 %v14746_v42, 16  ;;  %v14872_v55 = vrot.slane %v5332_v61, 7  ;;  %v5341_v63 = vshrl.u32 %v14748_v58, 16 }
 0x34f   : > { %v5320_v38 = vor.u32 %v5318_v15, %v14859_v45  ;;  %v14870_v3 = vor.u32 %v5327_v16, %v5326_v19  ;;  %v5330_v56 = vrot.slane %v5326_v19, 4  ;;  %5541 = vst [vmem:[#allocation2 + $0x84] sm:$0xf] %v5304_v24  ;;  %v5344_v27 = vshll.u32 %v14748_v58, 16  ;;  %v11803_v24 = vld [vmem:[#allocation8 + $0x110] sm:$0xff]  }
 0x350   : > { %v5349_v48 = vshrl.u32 %v14750_v28, 16  ;;  %v5352_v50 = vshll.u32 %v14750_v28, 16  ;;  %v5337_v15 = vor.u32 %v5335_v18, %v14872_v55  ;;  %v5343_v6 = vrot.slane %v5341_v63, 7  ;;  %11207 = vmatpush3.bf16.msra.mxu1 %v11803_v24 }
 0x351   : > { %v5321_v1 = vsel %vm12330_vm13, %v5313_v29, %v5320_v38  ;;  %v5358_v19 = vshrl.u32 %v14752_v8, 16  ;;  %v5361_v61 = vshll.u32 %v14752_v8, 16  ;;  %v5366_v29 = vshrl.u32 %v14754_v49, 16  ;;  %11208 = vmatprep.subr.bf16.mxu1 %v11809_v9  ;;  %v5570_v9 = vld [vmem:[#allocation2 + $0xc8] sm:$0x1] }
 0x352   : > { %5548 = vst [vmem:[#allocation2 + $0x94] sm:$0xf] %v5321_v1  ;;  %v14883_v16 = vrot.slane %v5349_v48, 7  ;;  %v5369_v58 = vshll.u32 %v14754_v49, 16  ;;  %v5338_v28 = vsel %vm12330_vm13, %v5330_v56, %v5337_v15  ;;  %v14890_v38 = vor.u32 %v5344_v27, %v5343_v6 }
 0x353   : > { %v5347_v18 = vrot.slane %v5343_v6, 4  ;;  %v5360_v42 = vrot.slane %v5358_v19, 7  ;;  %v14894_v48 = vrot.slane %v5366_v29, 7  ;;  %v5375_v8 = vshrl.u32 %v14756_v54, 16  ;;  %5555 = vst [vmem:[#allocation2 + $0xa4] sm:$0xf] %v5338_v28 }
 0x354   : > { %v5354_v63 = vor.u32 %v5352_v50, %v14883_v16  ;;  %v5378_v33 = vshll.u32 %v14756_v54, 16  ;;  %v5383_v56 = vshrl.u32 %v14758_v47, 16  ;;  %v5386_v29 = vshll.u32 %v14758_v47, 16  ;;  %v5496_v54 = vld [vmem:[#allocation2 + $0x20] sm:$0xf] }
 0x355   : > { %v14897_v25 = vor.u32 %v5361_v61, %v5360_v42  ;;  %v5364_v49 = vrot.slane %v5360_v42, 4  ;;  %v5371_v50 = vor.u32 %v5369_v58, %v14894_v48  ;;  %v5377_v6 = vrot.slane %v5375_v8, 7  ;;  %v5493_v8 = vld [vmem:[#allocation2 + $0x18] sm:$0x1]  ;;  %v5517_v47 = vld [vmem:[#allocation2 + $0x50] sm:$0xf] }
 0x356   : > { %v5355_v27 = vsel %vm12330_vm13, %v5347_v18, %v5354_v63  ;;  %v14905_v19 = vrot.slane %v5383_v56, 7  ;;  %v5392_v61 = vshrl.u32 %v14760_v13, 16  ;;  %v5395_v42 = vshll.u32 %v14760_v13, 16  ;;  %v5500_v63 = vld [vmem:[#allocation2 + $0x28] sm:$0x1] }
 0x357   : > { %5562 = vst [vmem:[#allocation2 + $0xb4] sm:$0xf] %v5355_v27  ;;  %v5372_v24 = vsel %vm12330_vm13, %v5364_v49, %v5371_v50  ;;  %v14912_v28 = vor.u32 %v5378_v33, %v5377_v6  ;;  %v5381_v18 = vrot.slane %v5377_v6, 4  ;;  %v5400_v58 = vshrl.u32 %v14762_v17, 16  ;;  %v5503_v13 = vld [vmem:[#allocation2 + $0x30] sm:$0xf] }
 0x358   : > { %v5388_v56 = vor.u32 %v5386_v29, %v14905_v19  ;;  %v5394_v15 = vrot.slane %v5392_v61, 7  ;;  %v5403_v1 = vshll.u32 %v14762_v17, 16  ;;  %5569 = vst [vmem:[#allocation2 + $0xc4] sm:$0xf] %v5372_v24  ;;  %v5507_v27 = vld [vmem:[#allocation2 + $0x38] sm:$0x1]  ;;  %v14923_v33 = vor.u32 %v5412_v32, %v14601_v2 }
 0x359   : > { %v14918_v31 = vrot.slane %v5400_v58, 7  ;;  %v5426_v49 = vshrl.u32 %v14764_v26, 16  ;;  %v5429_v50 = vshll.u32 %v14764_v26, 16  ;;  %v5510_v6 = vld [vmem:[#allocation2 + $0x40] sm:$0xf]  ;;  %v5434_v4 = vshrl.u32 %v14766_v5, 16 }
 0x35a   : > { %v5514_v29 = vld [vmem:[#allocation2 + $0x48] sm:$0x1]  ;;  %v5521_v61 = vld [vmem:[#allocation2 + $0x58] sm:$0x1]  ;;  %v5389_v17 = vsel %vm12330_vm13, %v5381_v18, %v5388_v56  ;;  %v14929_v24 = vor.u32 %v5395_v42, %v5394_v15  ;;  %v5398_v58 = vrot.slane %v5394_v15, 4  ;;  %v5437_v40 = vshll.u32 %v14766_v5, 16 }
 0x35b   : > { %v14934_v32 = vld [vmem:[#allocation2 + $0x70] sm:$0xf]  ;;  %v5405_v2 = vor.u32 %v5403_v1, %v14918_v31  ;;  %v5428_v60 = vrot.slane %v5426_v49, 7  ;;  %5576 = vst [vmem:[#allocation2 + $0xd4] sm:$0xf] %v5389_v17  ;;  %v14941_v56 = vrot.slane %v5434_v4, 7  ;;  %v5490_v30 = vsel %vm12316_vm12, %v14775_v7, %v11899_v39 }
 0x35c   : > { %v14939_v18 = vld [vmem:[#allocation2 + $0x80] sm:$0xf]  ;;  %v5542_v42 = vld [vmem:[#allocation2 + $0x88] sm:$0x1]  ;;  %v5535_v15 = vld [vmem:[#allocation2 + $0x78] sm:$0x1]  ;;  %v5497_v5 = vsel %vm12316_vm12, %v14779_v46, %v5496_v54 }
 0x35d   : > { %v17314_v1 = vrot.slane %v14768_v37, 4  ;;  %v14953_v17 = vld [vmem:[#allocation2 + $0xa0] sm:$0xf]  ;;  %v5545_v26 = vld [vmem:[#allocation2 + $0x90] sm:$0xf]  ;;  %v5406_v4 = vsel %vm12330_vm13, %v5398_v58, %v5405_v2  ;;  %v14957_v14 = vor.u32 %v5429_v50, %v5428_v60  ;;  %v5432_v53 = vrot.slane %v5428_v60, 4 }
 0x35e   : > { %5491 = vst [vmem:[#allocation2 + $0x10] sm:$0xf] %v5490_v30  ;;  %v17315_v39 = vrot.slane %v14771_v43, 4  ;;  %5498 = vst [vmem:[#allocation2 + $0x20] sm:$0xf] %v5497_v5  ;;  %v5439_v54 = vor.u32 %v5437_v40, %v14941_v56  ;;  %v5504_v60 = vsel %vm12316_vm12, %v14793_v34, %v5503_v13  ;;  %v17316_v30 = vrot.slane %v14785_v62, 4 }
 0x35f   : > { %v5494_v49 = vsel %vm12281_vm3, %v17314_v1, %v5493_v8  ;;  %v5556_v7 = vld [vmem:[#allocation2 + $0xa8] sm:$0x1]  ;;  %v5549_v46 = vld [vmem:[#allocation2 + $0x98] sm:$0x1]  ;;  %v5441_v8 = vrot.slane %v14941_v56, 4  ;;  %v5511_v40 = vsel %vm12316_vm12, %v14806_v36, %v5510_v6  ;;  %v17317_v58 = vrot.slane %v14797_v11, 4 }
 0x360   : > { %5495 = vst [vmem:[#allocation2 + $0x18] sm:$0x1] %v5494_v49  ;;  %v5501_v37 = vsel %vm12281_vm3, %v17315_v39, %v5500_v63  ;;  %v5508_v43 = vsel %vm12281_vm3, %v17316_v30, %v5507_v27  ;;  %5583 = vst [vmem:[#allocation2 + $0xe4] sm:$0xf] %v5406_v4  ;;  %v5566_v63 = vld [vmem:[#allocation2 + $0xc0] sm:$0xf]  ;;  %v5518_v62 = vsel %vm12316_vm12, %v14819_v12, %v5517_v47 }
 0x361   : > { %5502 = vst [vmem:[#allocation2 + $0x28] sm:$0x1] %v5501_v37  ;;  %v5559_v50 = vld [vmem:[#allocation2 + $0xb0] sm:$0xf]  ;;  %5509 = vst [vmem:[#allocation2 + $0x38] sm:$0x1] %v5508_v43  ;;  %v5515_v2 = vsel %vm12281_vm3, %v17317_v58, %v5514_v29  ;;  %v5440_v36 = vsel %vm12330_vm13, %v5432_v53, %v5439_v54  ;;  %v5525_v11 = vsel %vm12316_vm12, %v14831_v10, %v14932_v35 }
 0x362   : > { %v17318_v34 = vrot.slane %v14810_v23, 4  ;;  %5505 = vst [vmem:[#allocation2 + $0x30] sm:$0xf] %v5504_v60  ;;  %v5563_v27 = vld [vmem:[#allocation2 + $0xb8] sm:$0x1]  ;;  %v17319_v12 = vrot.slane %v14823_v51, 4  ;;  %v5532_v47 = vsel %vm12316_vm12, %v14835_v52, %v14934_v32  ;;  %v5539_v51 = vsel %vm12316_vm12, %v14847_v0, %v14939_v18 }
 0x363   : > { %v5580_v1 = vld [vmem:[#allocation2 + $0xe0] sm:$0xf]  ;;  %v5573_v49 = vld [vmem:[#allocation2 + $0xd0] sm:$0xf]  ;;  %5516 = vst [vmem:[#allocation2 + $0x48] sm:$0x1] %v5515_v2 }
 0x364   : > { %v5522_v13 = vsel %vm12281_vm3, %v17318_v34, %v5521_v61  ;;  %v5529_v23 = vsel %vm12281_vm3, %v17319_v12, %v5528_v20  ;;  %5512 = vst [vmem:[#allocation2 + $0x40] sm:$0xf] %v5511_v40  ;;  %5519 = vst [vmem:[#allocation2 + $0x50] sm:$0xf] %v5518_v62  ;;  %v5584_v53 = vld [vmem:[#allocation2 + $0xe8] sm:$0x1]  ;;  %v5546_v61 = vsel %vm12316_vm12, %v14862_v41, %v5545_v26 }
 0x365   : > { %5523 = vst [vmem:[#allocation2 + $0x58] sm:$0x1] %v5522_v13  ;;  %v5587_v6 = vld [vmem:[#allocation2 + $0xf0] sm:$0xf]  ;;  %5530 = vst [vmem:[#allocation2 + $0x68] sm:$0x1] %v5529_v23  ;;  %v5560_v26 = vsel %vm12316_vm12, %v14890_v38, %v5559_v50  ;;  %v5574_v38 = vsel %vm12316_vm12, %v14912_v28, %v5573_v49 }
 0x366   : > { %v17320_v29 = vrot.slane %v14837_v59, 4  ;;  %v17321_v10 = vrot.slane %v14849_v21, 4  ;;  %5597 = vst [vmem:[#allocation2 + $0x104] sm:$0xf] %v5440_v36  ;;  %5526 = vst [vmem:[#allocation2 + $0x60] sm:$0xf] %v5525_v11  ;;  %v5553_v21 = vsel %vm12316_vm12, %v14870_v3, %v14953_v17  ;;  %v5567_v3 = vsel %vm12316_vm12, %v14897_v25, %v5566_v63 }
 0x367   : > { %5533 = vst [vmem:[#allocation2 + $0x70] sm:$0xf] %v5532_v47  ;;  %v5594_v59 = vld [vmem:[#allocation2 + $0x100] sm:$0xf]  ;;  %v5598_v20 = vld [vmem:[#allocation2 + $0x108] sm:$0x1]  ;;  %v5588_v39 = vsel %vm12316_vm12, %v14923_v33, %v5587_v6 }
 0x368   : > { %v5536_v35 = vsel %vm12281_vm3, %v17320_v29, %v5535_v15  ;;  %v5543_v52 = vsel %vm12281_vm3, %v17321_v10, %v5542_v42  ;;  %v17322_v32 = vrot.slane %v14859_v45, 4  ;;  %v17323_v18 = vrot.slane %v14872_v55, 4  ;;  %5540 = vst [vmem:[#allocation2 + $0x80] sm:$0xf] %v5539_v51  ;;  %5547 = vst [vmem:[#allocation2 + $0x90] sm:$0xf] %v5546_v61 }
 0x369   : > { %5537 = vst [vmem:[#allocation2 + $0x78] sm:$0x1] %v5536_v35  ;;  %5544 = vst [vmem:[#allocation2 + $0x88] sm:$0x1] %v5543_v52  ;;  %v17324_v45 = vrot.slane %v14883_v16, 4  ;;  %v17325_v55 = vrot.slane %v14894_v48, 4  ;;  %v5581_v48 = vsel %vm12316_vm12, %v14929_v24, %v5580_v1 }
 0x36a   : > { %v5550_v0 = vsel %vm12281_vm3, %v17322_v32, %v5549_v46  ;;  %v5557_v41 = vsel %vm12281_vm3, %v17323_v18, %v5556_v7  ;;  %5554 = vst [vmem:[#allocation2 + $0xa0] sm:$0xf] %v5553_v21  ;;  %5561 = vst [vmem:[#allocation2 + $0xb0] sm:$0xf] %v5560_v26  ;;  %v6210_v5 = vld [vmem:[#allocation2 + $0x14] sm:$0xf]  ;;  %v5595_v7 = vsel %vm12316_vm12, %v14957_v14, %v5594_v59 }
 0x36b   : > { %5551 = vst [vmem:[#allocation2 + $0x98] sm:$0x1] %v5550_v0  ;;  %5558 = vst [vmem:[#allocation2 + $0xa8] sm:$0x1] %v5557_v41  ;;  %v5564_v42 = vsel %vm12281_vm3, %v17324_v45, %v5563_v27  ;;  %v5571_v15 = vsel %vm12281_vm3, %v17325_v55, %v5570_v9  ;;  %v11811_v16 = vld [vmem:[#allocation8 + $0x108] sm:$0xff]   ;;  %v17326_v17 = vrot.slane %v14905_v19, 4 }
 0x36c   : > { %5565 = vst [vmem:[#allocation2 + $0xb8] sm:$0x1] %v5564_v42  ;;  %5572 = vst [vmem:[#allocation2 + $0xc8] sm:$0x1] %v5571_v15  ;;  %v17327_v4 = vrot.slane %v14918_v31, 4  ;;  %v5599_v31 = vsel %vm12281_vm3, %v5441_v8, %v5598_v20  ;;  %11209 = vmatpush3.bf16.msra.mxu1 %v11811_v16  ;;  %v6267_v33 = vshll.u32 %v6210_v5, 16 }
 0x36d   : > { %v5578_v25 = vsel %vm12281_vm3, %v17326_v17, %v5577_v57  ;;  %5568 = vst [vmem:[#allocation2 + $0xc0] sm:$0xf] %v5567_v3  ;;  %5575 = vst [vmem:[#allocation2 + $0xd0] sm:$0xf] %v5574_v38  ;;  %v6209_v37 = vld [vmem:[#allocation2 + $0x10] sm:$0xf] }
 0x36e   : > { %v5585_v28 = vsel %vm12281_vm3, %v17327_v4, %v5584_v53  ;;  %v6211_v19 = vld [vmem:[#allocation2 + $0x20] sm:$0xf]  ;;  %5579 = vst [vmem:[#allocation2 + $0xd8] sm:$0x1] %v5578_v25  ;;  %5582 = vst [vmem:[#allocation2 + $0xe0] sm:$0xf] %v5581_v48  ;;  %v10261_v60 = vcombine.low %v6209_v37, %v6210_v5 }
 0x36f   : > { %5586 = vst [vmem:[#allocation2 + $0xe8] sm:$0x1] %v5585_v28  ;;  %5589 = vst [vmem:[#allocation2 + $0xf0] sm:$0xf] %v5588_v39  ;;  %v6258_v24 = vshrl.u32 %v6209_v37, 16  ;;  %v6261_v46 = vshll.u32 %v6209_v37, 16 }
 0x370   : > { %5600 = vst [vmem:[#allocation2 + $0x108] sm:$0x1] %v5599_v31  ;;  %5596 = vst [vmem:[#allocation2 + $0x100] sm:$0xf] %v5595_v7  ;;  %v6271_v54 = vshrl.u32 %v6210_v5, 16  ;;  %v11796_v43 = vld [vmem:[#allocation8 + $0x1b8] sm:$0xff]   ;;  %8818 = vmatprep.mubr.bf16.mxu0 %v10261_v60 }
 0x371   : > { %v6212_v30 = vld [vmem:[#allocation2 + $0x24] sm:$0xf]  ;;  %v6282_v63 = vshrl.u32 %v6211_v19, 16  ;;  %v15065_v22 = vld [vmem:[#allocation2 + $0x10] sm:$0xf]  ;;  %v6260_v56 = vrot.slane %v6258_v24, 4 }
 0x372   : > { %v11802_v14 = vld [vmem:[#allocation8 + $0x1f0] sm:$0xff]   ;;  %v6263_v50 = vrot.slane %v6261_v46, 5  ;;  %v6285_v44 = vshll.u32 %v6211_v19, 16  ;;  %v6291_v2 = vshll.u32 %v6212_v30, 16  ;;  %v10262_v62 = vcombine.low %v6211_v19, %v6212_v30  ;;  %v11810_v13 = vld [vmem:[#allocation8 + $0x1e8] sm:$0xff]   ;;  %v11815_v55 = vld [vmem:[#allocation8 + $0x1e0] sm:$0xff]  }
 0x373   : > { %v15067_v8 = vld [vmem:[#allocation2 + $0x14] sm:$0xf]  ;;  %v15072_v27 = vrot.slane %v6267_v33, 5  ;;  %v15074_v1 = vrot.slane %v6271_v54, 4  ;;  %v5634_v49 = vld [vmem:[#allocation2 + $0x18] sm:$0x1] }
 0x374   : > { %v17328_v9 = vld [vmem:[#allocation23_spill] sm:$0xff]  ;;  %v5674_v36 = vshrl.u32 %v15065_v22, 16  ;;  %v5677_v11 = vshll.u32 %v15065_v22, 16  ;;  %v15078_v12 = vrot.slane %v6282_v63, 4  ;;  %v6295_v23 = vshrl.u32 %v6212_v30, 16  ;;  %v11812_v18 = vld [vmem:[#allocation8 + $0x1a8] sm:$0xff]  }
 0x375   : > { %v17329_v40 = vld [vmem:[#allocation27_spill] sm:$0xff]  ;;  %v5683_v47 = vshll.u32 %v15067_v8, 16  ;;  %v5687_v53 = vshrl.u32 %v15067_v8, 16  ;;  %v6264_v6 = vor.u32 %v6263_v50, %v6260_v56  ;;  %v15082_v29 = vrot.slane %v6285_v44, 5  ;;  %v15097_v17 = vld [vmem:[#allocation2 + $0x20] sm:$0xf] }
 0x376   : > { %v17330_v58 = vcombine.low %v17328_v9, %v17329_v40  ;;  %v11804_v34 = vld [vmem:[#allocation8 + $0x1b0] sm:$0xff]   ;;  %v5676_v35 = vrot.slane %v5674_v36, 4  ;;  %v5679_v51 = vrot.slane %v5677_v11, 5  ;;  %v5693_v59 = vshll.u32 %v5634_v49, 16  ;;  %v15106_v46 = vld [vmem:[#allocation2 + $0x24] sm:$0xf] }
 0x377   : > { %v6034_v57 = vld [vmem:[#allocation2 + $0x10] sm:$0xe]  ;;  %v5685_v52 = vrot.slane %v5683_v47, 5  ;;  %v5689_v61 = vrot.slane %v5687_v53, 4  ;;  %v6274_v20 = vor.u32 %v15074_v1, %v15072_v27  ;;  %v15086_v32 = vrot.slane %v6291_v2, 5  ;;  %v11820_v33 = vld [vmem:[#allocation8 + $0x140] sm:$0xff]  }
 0x378   : > { %8819 = vmatmul.mubr.bf16.vlgmr.msra.gmra.mxu0 %v17330_v58  ;;  %v6213_v10 = vld [vmem:[#allocation2 + $0x30] sm:$0xf]  ;;  %v5680_v0 = vor.u32 %v5679_v51, %v5676_v35  ;;  %v10166_v21 = vrot.slane %v6034_v57, 9  ;;  %v15088_v41 = vrot.slane %v6295_v23, 4  ;;  %v6106_v45 = vrot.slane %v15067_v8, 5  ;;  %11210 = vmatprep.subr.bf16.mxu1 %v11820_v33  ;;  %v11821_v35 = vld [vmem:[#allocation8 + $0x198] sm:$0xff]  }
 0x379   : > { %11309 = vmatpush3.bf16.msra.mxu0 %v11796_v43  ;;  %8826 = vmatprep.mubr.bf16.mxu0 %v10262_v62  ;;  %v5690_v26 = vor.u32 %v5689_v61, %v5685_v52  ;;  %v15091_v42 = vld [vmem:[#allocation2 + $0x34] sm:$0xf]  ;;  %v6306_v3 = vshrl.u32 %v6213_v10, 16  ;;  %v15093_v15 = vrot.slane %v6264_v6, 4  ;;  %v6288_v38 = vor.u32 %v15082_v29, %v15078_v12  ;;  %v5635_v43 = vld [vmem:[#allocation2 + $0x28] sm:$0x1] }
 0x37a   : > { %11310 = vmatprep.subr.bf16.mxu0 %v11802_v14  ;;  %v5681_v5 = vrot.slane %v5680_v0, 4  ;;  %v6309_v16 = vshll.u32 %v6213_v10, 16  ;;  %v5695_v48 = vrot.slane %v5693_v59, 5  ;;  %v6109_v4 = vrot.slane %v5634_v49, 5  ;;  %v6035_v44 = vld [vmem:[#allocation2 + $0x20] sm:$0xe] }
 0x37b   : > { %v5691_v25 = vrot.slane %v5690_v26, 4  ;;  %v6108_v28 = vrot.slane %v6106_v45, 4  ;;  %v6107_v7 = vsel %vm12307_vm11, %v10166_v21, %v6106_v45  ;;  %v10214_v31 = vcombine.low %v15065_v22, %v15067_v8  ;;  %v11816_v8 = vld [vmem:[#allocation8 + $0x1a0] sm:$0xff]   ;;  %v11817_v62 = vld [vmem:[#allocation8 + $0x1d8] sm:$0xff]   ;;  %v15139_v45 = vld [vmem:[#allocation2 + $0x30] sm:$0xf] }
 0x37c   : > { %v5686_v37 = vsel %vm12343_vm14, %v5681_v5, %v5685_v52  ;;  %v6315_v24 = vshll.u32 %v15091_v42, 16  ;;  %v15112_v30 = vrot.slane %v6306_v3, 4  ;;  %v5698_v63 = vshrl.u32 %v15097_v17, 16  ;;  %v6215_v47 = vld [vmem:[#allocation2 + $0x40] sm:$0xf] }
 0x37d   : > { %11311 = vmatpush3.bf16.msra.mxu0 %v11804_v34  ;;  %v5696_v54 = vsel %vm12343_vm14, %v5691_v25, %v5695_v48  ;;  %v6110_v60 = vsel %vm12307_vm11, %v6108_v28, %v6109_v4  ;;  %v15115_v56 = vrot.slane %v6309_v16, 5  ;;  %v5701_v50 = vshll.u32 %v15097_v17, 16  ;;  %v15135_v59 = vld [vmem:[#allocation2 + $0x44] sm:$0xf]  ;;  %v5636_v4 = vld [vmem:[#allocation2 + $0x38] sm:$0x1] }
 0x37e   : > { %11312 = vmatprep.subr.bf16.mxu0 %v11810_v13  ;;  %v10230_v14 = vcombine.low %v5686_v37, %v5696_v54  ;;  %v10246_v22 = vcombine.low %v6107_v7, %v6110_v60  ;;  %v10263_v9 = vcombine.low %v6213_v10, %v15091_v42  ;;  %v5700_v40 = vrot.slane %v5698_v63, 4  ;;  %v11822_v28 = vld [vmem:[#allocation8 + $0x100] sm:$0xff]   ;;  %v6233_v34 = vld [vmem:[#allocation2 + $0xd0] sm:$0xf] }
 0x37f   : > { %v5707_v58 = vshll.u32 %v15106_v46, 16  ;;  %v5711_v2 = vshrl.u32 %v15106_v46, 16  ;;  %v15125_v13 = vrot.slane %v6274_v20, 4  ;;  %v5703_v1 = vrot.slane %v5701_v50, 5  ;;  %v15137_v20 = vld [vmem:[#allocation2 + $0x34] sm:$0xf]  ;;  %11211 = vmatpush3.bf16.msra.mxu1 %v11822_v28 }
 0x380   : > { %8665 = vmatprep.mubr.bf16.mxu1 %v10230_v14  ;;  %8827 = vmatmul.mubr.bf16.gmra.mxu0 %v10246_v22  ;;  %v5717_v49 = vshll.u32 %v5635_v43, 16  ;;  %v10167_v12 = vrot.slane %v6035_v44, 9  ;;  %v6113_v23 = vrot.slane %v15106_v46, 5  ;;  %v15128_v53 = vrot.slane %v6288_v38, 4 }
 0x381   : > { %11313 = vmatpush3.bf16.msra.mxu0 %v11812_v18  ;;  %8666 = vmatmul.mubr.bf16.gmra.mxu1 %v10214_v31  ;;  %v5709_v36 = vrot.slane %v5707_v58, 5  ;;  %v5713_v11 = vrot.slane %v5711_v2, 4  ;;  %v15130_v57 = vrot.slane %v6315_v24, 5  ;;  %v6319_v6 = vshrl.u32 %v15091_v42, 16  ;;  %v6036_v24 = vld [vmem:[#allocation2 + $0x30] sm:$0xe] }
 0x382   : > { %11314 = vmatprep.subr.bf16.mxu0 %v11815_v55  ;;  %8834 = vmatprep.mubr.bf16.mxu0 %v10263_v9  ;;  %v5704_v29 = vor.u32 %v5703_v1, %v5700_v40  ;;  %v6312_v51 = vor.u32 %v15115_v56, %v15112_v30  ;;  %v6116_v52 = vrot.slane %v5635_v43, 5  ;;  %v6115_v61 = vrot.slane %v6113_v23, 4  ;;  %v11824_v43 = vld [vmem:[#allocation8 + $0x190] sm:$0xff]  }
 0x383   : > { %v5714_v10 = vor.u32 %v5713_v11, %v5709_v36  ;;  %v5719_v21 = vrot.slane %v5717_v49, 5  ;;  %v6330_v18 = vshrl.u32 %v6215_v47, 16  ;;  %v6333_v26 = vshll.u32 %v6215_v47, 16  ;;  %v6217_v40 = vld [vmem:[#allocation2 + $0x50] sm:$0xf] }
 0x384   : > { %v5705_v0 = vrot.slane %v5704_v29, 4  ;;  %v6114_v3 = vsel %vm12307_vm11, %v10167_v12, %v6113_v23  ;;  %v6117_v55 = vsel %vm12307_vm11, %v6115_v61, %v6116_v52  ;;  %v10215_v38 = vcombine.low %v15097_v17, %v15106_v46  ;;  %v11823_v46 = vld [vmem:[#allocation8 + $0x1d0] sm:$0xff]  }
 0x385   : > { %11315 = vmatpush3.bf16.msra.mxu0 %v11816_v8  ;;  %v5715_v42 = vrot.slane %v5714_v10, 4  ;;  %v10247_v16 = vcombine.low %v6114_v3, %v6117_v55  ;;  %v6339_v25 = vshll.u32 %v15135_v59, 16  ;;  %v10264_v48 = vcombine.low %v6215_v47, %v15135_v59  ;;  %v15171_v23 = vld [vmem:[#allocation2 + $0x54] sm:$0xf]  ;;  %v15173_v47 = vld [vmem:[#allocation2 + $0x44] sm:$0xf] }
 0x386   : > { %11316 = vmatprep.subr.bf16.mxu0 %v11817_v62  ;;  %v5710_v5 = vsel %vm12343_vm14, %v5705_v0, %v5709_v36  ;;  %v5722_v7 = vshrl.u32 %v15139_v45, 16  ;;  %v5725_v31 = vshll.u32 %v15139_v45, 16  ;;  %v5731_v17 = vshll.u32 %v15137_v20, 16  ;;  %v15175_v10 = vld [vmem:[#allocation2 + $0x40] sm:$0xf]  ;;  %v11825_v55 = vld [vmem:[#allocation8 + $0x1c8] sm:$0xff]  }
 0x387   : > { %v5720_v37 = vsel %vm12343_vm14, %v5715_v42, %v5719_v21  ;;  %v15156_v54 = vrot.slane %v6330_v18, 4  ;;  %v15158_v60 = vrot.slane %v6333_v26, 5  ;;  %v5735_v30 = vshrl.u32 %v15137_v20, 16  ;;  %v5637_v3 = vld [vmem:[#allocation2 + $0x48] sm:$0x1] }
 0x388   : > { %v10231_v33 = vcombine.low %v5710_v5, %v5720_v37  ;;  %8835 = vmatmul.mubr.bf16.gmra.mxu0 %v10247_v16  ;;  %v5724_v63 = vrot.slane %v5722_v7, 4  ;;  %v5727_v14 = vrot.slane %v5725_v31, 5  ;;  %v5733_v22 = vrot.slane %v5731_v17, 5  ;;  %v11829_v7 = vld [vmem:[#allocation8 + $0x1c0] sm:$0xff]  }
 0x389   : > { %11317 = vmatpush3.bf16.msra.mxu0 %v11821_v35  ;;  %8842 = vmatprep.mubr.bf16.mxu0 %v10264_v48  ;;  %v5741_v56 = vshll.u32 %v5636_v4, 16  ;;  %v15161_v50 = vrot.slane %v6319_v6, 4  ;;  %v5737_v44 = vrot.slane %v5735_v30, 4  ;;  %v10168_v8 = vrot.slane %v6036_v24, 9 }
 0x38a   : > { %11318 = vmatprep.subr.bf16.mxu0 %v11823_v46  ;;  %8673 = vmatprep.mubr.bf16.mxu1 %v10231_v33  ;;  %v6120_v9 = vrot.slane %v15137_v20, 5  ;;  %v15164_v58 = vrot.slane %v6312_v51, 4  ;;  %v15166_v2 = vrot.slane %v6339_v25, 5  ;;  %v6343_v62 = vshrl.u32 %v15135_v59, 16 }
 0x38b   : > { %8674 = vmatmul.mubr.bf16.gmra.mxu1 %v10215_v38  ;;  %v5728_v1 = vor.u32 %v5727_v14, %v5724_v63  ;;  %v6336_v49 = vor.u32 %v15158_v60, %v15156_v54  ;;  %v5738_v36 = vor.u32 %v5737_v44, %v5733_v22  ;;  %v6123_v11 = vrot.slane %v5636_v4, 5 }
 0x38c   : > { %v6122_v12 = vrot.slane %v6120_v9, 4  ;;  %v5743_v29 = vrot.slane %v5741_v56, 5  ;;  %v6354_v35 = vshrl.u32 %v6217_v40, 16  ;;  %v6357_v51 = vshll.u32 %v6217_v40, 16 }
 0x38d   : > { %11319 = vmatpush3.bf16.msra.mxu0 %v11824_v43  ;;  %v5729_v6 = vrot.slane %v5728_v1, 4  ;;  %v5739_v52 = vrot.slane %v5738_v36, 4  ;;  %v6121_v61 = vsel %vm12307_vm11, %v10168_v8, %v6120_v9  ;;  %v10216_v0 = vcombine.low %v15139_v45, %v15137_v20  ;;  %v6037_v20 = vld [vmem:[#allocation2 + $0x40] sm:$0xe]  ;;  %v11827_v45 = vld [vmem:[#allocation8 + $0x188] sm:$0xff]  }
 0x38e   : > { %v6124_v59 = vsel %vm12307_vm11, %v6122_v12, %v6123_v11  ;;  %v6363_v26 = vshll.u32 %v15171_v23, 16  ;;  %v10265_v42 = vcombine.low %v6217_v40, %v15171_v23  ;;  %v5746_v5 = vshrl.u32 %v15175_v10, 16  ;;  %11320 = vmatprep.subr.bf16.mxu0 %v11825_v55  ;;  %v6219_v43 = vld [vmem:[#allocation2 + $0x60] sm:$0xf]  ;;  %v15209_v1 = vld [vmem:[#allocation2 + $0x54] sm:$0xf] }
 0x38f   : > { %v5734_v21 = vsel %vm12343_vm14, %v5729_v6, %v5733_v22  ;;  %v10248_v18 = vcombine.low %v6121_v61, %v6124_v59  ;;  %v5744_v38 = vsel %vm12343_vm14, %v5739_v52, %v5743_v29  ;;  %v5749_v16 = vshll.u32 %v15175_v10, 16  ;;  %v15211_v6 = vld [vmem:[#allocation2 + $0x50] sm:$0xf] }
 0x390   : > { %v5755_v25 = vshll.u32 %v15173_v47, 16  ;;  %v10232_v48 = vcombine.low %v5734_v21, %v5744_v38  ;;  %v15192_v4 = vrot.slane %v6354_v35, 4  ;;  %v15194_v28 = vrot.slane %v6357_v51, 5  ;;  %v5638_v21 = vld [vmem:[#allocation2 + $0x58] sm:$0x1] }
 0x391   : > { %8843 = vmatmul.mubr.bf16.gmra.mxu0 %v10248_v18  ;;  %v5759_v37 = vshrl.u32 %v15173_v47, 16  ;;  %v5748_v31 = vrot.slane %v5746_v5, 4  ;;  %v5751_v17 = vrot.slane %v5749_v16, 5  ;;  %v5765_v46 = vshll.u32 %v5637_v3, 16  ;;  %v11830_v18 = vld [vmem:[#allocation8 + $0x180] sm:$0xff]  }
 0x392   : > { %8850 = vmatprep.mubr.bf16.mxu0 %v10265_v42  ;;  %v5757_v24 = vrot.slane %v5755_v25, 5  ;;  %11321 = vmatpush3.bf16.msra.mxu0 %v11827_v45  ;;  %v15197_v33 = vrot.slane %v6343_v62, 4  ;;  %v10169_v60 = vrot.slane %v6037_v20, 9  ;;  %v6127_v30 = vrot.slane %v15173_v47, 5  ;;  %v15207_v62 = vld [vmem:[#allocation2 + $0x64] sm:$0xf] }
 0x393   : > { %8681 = vmatprep.mubr.bf16.mxu1 %v10232_v48  ;;  %v5761_v54 = vrot.slane %v5759_v37, 4  ;;  %11322 = vmatprep.subr.bf16.mxu0 %v11829_v7  ;;  %v15200_v63 = vrot.slane %v6336_v49, 4  ;;  %v15202_v14 = vrot.slane %v6363_v26, 5  ;;  %v6367_v22 = vshrl.u32 %v15171_v23, 16 }
 0x394   : > { %8682 = vmatmul.mubr.bf16.gmra.mxu1 %v10216_v0  ;;  %v5752_v56 = vor.u32 %v5751_v17, %v5748_v31  ;;  %v6360_v44 = vor.u32 %v15194_v28, %v15192_v4  ;;  %v6130_v9 = vrot.slane %v5637_v3, 5  ;;  %v6129_v40 = vrot.slane %v6127_v30, 4  ;;  %v6221_v17 = vld [vmem:[#allocation2 + $0x70] sm:$0xf] }
 0x395   : > { %v5762_v8 = vor.u32 %v5761_v54, %v5757_v24  ;;  %v5767_v11 = vrot.slane %v5765_v46, 5  ;;  %v6378_v49 = vshrl.u32 %v6219_v43, 16  ;;  %v6381_v12 = vshll.u32 %v6219_v43, 16 }
 0x396   : > { %v5753_v36 = vrot.slane %v5752_v56, 4  ;;  %v6128_v23 = vsel %vm12307_vm11, %v10169_v60, %v6127_v30  ;;  %v6131_v35 = vsel %vm12307_vm11, %v6129_v40, %v6130_v9  ;;  %v10217_v51 = vcombine.low %v15175_v10, %v15173_v47  ;;  %v6038_v47 = vld [vmem:[#allocation2 + $0x50] sm:$0xe]  ;;  %v11831_v10 = vld [vmem:[#allocation8 + $0x238] sm:$0xff]   ;;  %11323 = vmatpush3.bf16.msra.mxu0 %v11830_v18  ;;  %v15239_v9 = vld [vmem:[#allocation2 + $0x64] sm:$0xf] }
 0x397   : > { %v5763_v29 = vrot.slane %v5762_v8, 4  ;;  %v10249_v61 = vcombine.low %v6128_v23, %v6131_v35  ;;  %v6387_v59 = vshll.u32 %v15207_v62, 16  ;;  %v10266_v0 = vcombine.low %v6219_v43, %v15207_v62  ;;  %11492 = vmatprep.subr.bf16.mxu1 %v11831_v10  ;;  %v15237_v8 = vld [vmem:[#allocation2 + $0x74] sm:$0xf] }
 0x398   : > { %v5758_v52 = vsel %vm12343_vm14, %v5753_v36, %v5757_v24  ;;  %v5770_v42 = vshrl.u32 %v15211_v6, 16  ;;  %v5773_v3 = vshll.u32 %v15211_v6, 16  ;;  %v5779_v55 = vshll.u32 %v15209_v1, 16 }
 0x399   : > { %v5768_v26 = vsel %vm12343_vm14, %v5763_v29, %v5767_v11  ;;  %8851 = vmatmul.mubr.bf16.gmra.mxu0 %v10249_v61  ;;  %v6380_v5 = vrot.slane %v6378_v49, 4  ;;  %v6383_v16 = vrot.slane %v6381_v12, 5  ;;  %v5783_v25 = vshrl.u32 %v15209_v1, 16 }
 0x39a   : > { %v10233_v38 = vcombine.low %v5758_v52, %v5768_v26  ;;  %8858 = vmatprep.mubr.bf16.mxu0 %v10266_v0  ;;  %v5772_v20 = vrot.slane %v5770_v42, 4  ;;  %v5775_v45 = vrot.slane %v5773_v3, 5  ;;  %v5781_v48 = vrot.slane %v5779_v55, 5  ;;  %v6039_v42 = vld [vmem:[#allocation2 + $0x60] sm:$0xe] }
 0x39b   : > { %v5789_v4 = vshll.u32 %v5638_v21, 16  ;;  %v15229_v28 = vrot.slane %v6367_v22, 4  ;;  %v5785_v37 = vrot.slane %v5783_v25, 4  ;;  %v10170_v7 = vrot.slane %v6038_v47, 9 }
 0x39c   : > { %8689 = vmatprep.mubr.bf16.mxu1 %v10233_v38  ;;  %v6134_v31 = vrot.slane %v15209_v1, 5  ;;  %v15232_v24 = vrot.slane %v6360_v44, 4  ;;  %v15234_v46 = vrot.slane %v6387_v59, 5  ;;  %v6391_v54 = vshrl.u32 %v15207_v62, 16  ;;  %v15241_v44 = vld [vmem:[#allocation2 + $0x60] sm:$0xf] }
 0x39d   : > { %8690 = vmatmul.mubr.bf16.gmra.mxu1 %v10217_v51  ;;  %v5776_v60 = vor.u32 %v5775_v45, %v5772_v20  ;;  %v6384_v30 = vor.u32 %v6383_v16, %v6380_v5  ;;  %v5786_v43 = vor.u32 %v5785_v37, %v5781_v48  ;;  %v6137_v56 = vrot.slane %v5638_v21, 5  ;;  %v5639_v59 = vld [vmem:[#allocation2 + $0x68] sm:$0x1] }
 0x39e   : > { %v6136_v22 = vrot.slane %v6134_v31, 4  ;;  %v5791_v36 = vrot.slane %v5789_v4, 5  ;;  %v6402_v11 = vshrl.u32 %v6221_v17, 16  ;;  %v6405_v49 = vshll.u32 %v6221_v17, 16 }
 0x39f   : > { %v5777_v40 = vrot.slane %v5776_v60, 4  ;;  %v5787_v12 = vrot.slane %v5786_v43, 4  ;;  %v6135_v29 = vsel %vm12307_vm11, %v10170_v7, %v6134_v31  ;;  %v10218_v23 = vcombine.low %v15211_v6, %v15209_v1 }
 0x3a0   : > { %v6138_v62 = vsel %vm12307_vm11, %v6136_v22, %v6137_v56  ;;  %v6411_v52 = vshll.u32 %v15237_v8, 16  ;;  %v10267_v61 = vcombine.low %v6221_v17, %v15237_v8  ;;  %v5794_v21 = vshrl.u32 %v15241_v44, 16  ;;  %v15269_v22 = vld [vmem:[#allocation2 + $0x74] sm:$0xf] }
 0x3a1   : > { %v5782_v35 = vsel %vm12343_vm14, %v5777_v40, %v5781_v48  ;;  %v10250_v51 = vcombine.low %v6135_v29, %v6138_v62  ;;  %v5792_v0 = vsel %vm12343_vm14, %v5787_v12, %v5791_v36  ;;  %v5797_v18 = vshll.u32 %v15241_v44, 16  ;;  %v6223_v48 = vld [vmem:[#allocation2 + $0x80] sm:$0xf] }
 0x3a2   : > { %v5803_v26 = vshll.u32 %v15239_v9, 16  ;;  %v10234_v1 = vcombine.low %v5782_v35, %v5792_v0  ;;  %v6404_v6 = vrot.slane %v6402_v11, 4  ;;  %v6407_v3 = vrot.slane %v6405_v49, 5 }
 0x3a3   : > { %8859 = vmatmul.mubr.bf16.gmra.mxu0 %v10250_v51  ;;  %v5807_v55 = vshrl.u32 %v15239_v9, 16  ;;  %v5796_v47 = vrot.slane %v5794_v21, 4  ;;  %v5799_v10 = vrot.slane %v5797_v18, 5  ;;  %v5813_v5 = vshll.u32 %v5639_v59, 16 }
 0x3a4   : > { %8866 = vmatprep.mubr.bf16.mxu0 %v10267_v61  ;;  %v5805_v38 = vrot.slane %v5803_v26, 5  ;;  %v15259_v16 = vrot.slane %v6391_v54, 4  ;;  %8697 = vmatprep.mubr.bf16.mxu1 %v10234_v1  ;;  %v10171_v20 = vrot.slane %v6039_v42, 9  ;;  %v6141_v45 = vrot.slane %v15239_v9, 5  ;;  %v15267_v54 = vld [vmem:[#allocation2 + $0x84] sm:$0xf] }
 0x3a5   : > { %v5809_v25 = vrot.slane %v5807_v55, 4  ;;  %v15262_v4 = vrot.slane %v6384_v30, 4  ;;  %8698 = vmatmul.mubr.bf16.gmra.mxu1 %v10218_v23  ;;  %v15264_v37 = vrot.slane %v6411_v52, 5  ;;  %v6415_v7 = vshrl.u32 %v15237_v8, 16  ;;  %v15271_v30 = vld [vmem:[#allocation2 + $0x70] sm:$0xf] }
 0x3a6   : > { %v5800_v31 = vor.u32 %v5799_v10, %v5796_v47  ;;  %v6408_v17 = vor.u32 %v6407_v3, %v6404_v6  ;;  %v6144_v43 = vrot.slane %v5639_v59, 5  ;;  %v6143_v56 = vrot.slane %v6141_v45, 4  ;;  %v5640_v61 = vld [vmem:[#allocation2 + $0x78] sm:$0x1]  ;;  %v6040_v26 = vld [vmem:[#allocation2 + $0x70] sm:$0xe] }
 0x3a7   : > { %v5810_v60 = vor.u32 %v5809_v25, %v5805_v38  ;;  %v5815_v36 = vrot.slane %v5813_v5, 5  ;;  %v6426_v11 = vshrl.u32 %v6223_v48, 16  ;;  %v6429_v49 = vshll.u32 %v6223_v48, 16 }
 0x3a8   : > { %v5801_v40 = vrot.slane %v5800_v31, 4  ;;  %v6142_v29 = vsel %vm12307_vm11, %v10171_v20, %v6141_v45  ;;  %v6145_v8 = vsel %vm12307_vm11, %v6143_v56, %v6144_v43  ;;  %v10219_v62 = vcombine.low %v15241_v44, %v15239_v9  ;;  %v6225_v20 = vld [vmem:[#allocation2 + $0x90] sm:$0xf] }
 0x3a9   : > { %v5811_v12 = vrot.slane %v5810_v60, 4  ;;  %v10251_v35 = vcombine.low %v6142_v29, %v6145_v8  ;;  %v6435_v51 = vshll.u32 %v15267_v54, 16  ;;  %v10268_v52 = vcombine.low %v6223_v48, %v15267_v54 }
 0x3aa   : > { %v5806_v23 = vsel %vm12343_vm14, %v5801_v40, %v5805_v38  ;;  %v5818_v0 = vshrl.u32 %v15271_v30, 16  ;;  %v5821_v21 = vshll.u32 %v15271_v30, 16  ;;  %v5827_v18 = vshll.u32 %v15269_v22, 16 }
 0x3ab   : > { %v5816_v59 = vsel %vm12343_vm14, %v5811_v12, %v5815_v36  ;;  %8867 = vmatmul.mubr.bf16.gmra.mxu0 %v10251_v35  ;;  %v6428_v44 = vrot.slane %v6426_v11, 4  ;;  %v6431_v42 = vrot.slane %v6429_v49, 5  ;;  %v5831_v1 = vshrl.u32 %v15269_v22, 16  ;;  %v15299_v11 = vld [vmem:[#allocation2 + $0x84] sm:$0xf] }
 0x3ac   : > { %v10235_v9 = vcombine.low %v5806_v23, %v5816_v59  ;;  %8874 = vmatprep.mubr.bf16.mxu0 %v10268_v52  ;;  %v5820_v6 = vrot.slane %v5818_v0, 4  ;;  %v5823_v3 = vrot.slane %v5821_v21, 5  ;;  %v5829_v55 = vrot.slane %v5827_v18, 5  ;;  %v5641_v0 = vld [vmem:[#allocation2 + $0x88] sm:$0x1] }
 0x3ad   : > { %v5837_v47 = vshll.u32 %v5640_v61, 16  ;;  %v15289_v10 = vrot.slane %v6415_v7, 4  ;;  %v5833_v38 = vrot.slane %v5831_v1, 4  ;;  %v10172_v5 = vrot.slane %v6040_v26, 9  ;;  %v15297_v7 = vld [vmem:[#allocation2 + $0x94] sm:$0xf] }
 0x3ae   : > { %8705 = vmatprep.mubr.bf16.mxu1 %v10235_v9  ;;  %v6148_v25 = vrot.slane %v15269_v22, 5  ;;  %v15292_v45 = vrot.slane %v6408_v17, 4  ;;  %v15294_v48 = vrot.slane %v6435_v51, 5  ;;  %v6439_v31 = vshrl.u32 %v15267_v54, 16  ;;  %v15301_v17 = vld [vmem:[#allocation2 + $0x80] sm:$0xf] }
 0x3af   : > { %8706 = vmatmul.mubr.bf16.gmra.mxu1 %v10219_v62  ;;  %v5824_v60 = vor.u32 %v5823_v3, %v5820_v6  ;;  %v6432_v43 = vor.u32 %v6431_v42, %v6428_v44  ;;  %v5834_v56 = vor.u32 %v5833_v38, %v5829_v55  ;;  %v6151_v40 = vrot.slane %v5640_v61, 5  ;;  %v6041_v44 = vld [vmem:[#allocation2 + $0x80] sm:$0xe] }
 0x3b0   : > { %v6150_v36 = vrot.slane %v6148_v25, 4  ;;  %v5839_v12 = vrot.slane %v5837_v47, 5  ;;  %v6450_v29 = vshrl.u32 %v6225_v20, 16  ;;  %v6453_v8 = vshll.u32 %v6225_v20, 16 }
 0x3b1   : > { %v5825_v49 = vrot.slane %v5824_v60, 4  ;;  %v5835_v62 = vrot.slane %v5834_v56, 4  ;;  %v6149_v23 = vsel %vm12307_vm11, %v10172_v5, %v6148_v25  ;;  %v10220_v35 = vcombine.low %v15271_v30, %v15269_v22  ;;  %v6227_v60 = vld [vmem:[#allocation2 + $0xa0] sm:$0xf] }
 0x3b2   : > { %v6152_v54 = vsel %vm12307_vm11, %v6150_v36, %v6151_v40  ;;  %v6459_v61 = vshll.u32 %v15297_v7, 16  ;;  %v10269_v59 = vcombine.low %v6225_v20, %v15297_v7  ;;  %v5842_v18 = vshrl.u32 %v15301_v17, 16 }
 0x3b3   : > { %v5830_v51 = vsel %vm12343_vm14, %v5825_v49, %v5829_v55  ;;  %v10252_v52 = vcombine.low %v6149_v23, %v6152_v54  ;;  %v5840_v21 = vsel %vm12343_vm14, %v5835_v62, %v5839_v12  ;;  %v5845_v26 = vshll.u32 %v15301_v17, 16  ;;  %v15329_v23 = vld [vmem:[#allocation2 + $0x94] sm:$0xf] }
 0x3b4   : > { %v5851_v9 = vshll.u32 %v15299_v11, 16  ;;  %v10236_v22 = vcombine.low %v5830_v51, %v5840_v21  ;;  %v6452_v30 = vrot.slane %v6450_v29, 4  ;;  %v6455_v42 = vrot.slane %v6453_v8, 5 }
 0x3b5   : > { %8875 = vmatmul.mubr.bf16.gmra.mxu0 %v10252_v52  ;;  %v5855_v1 = vshrl.u32 %v15299_v11, 16  ;;  %v5844_v6 = vrot.slane %v5842_v18, 4  ;;  %v5847_v3 = vrot.slane %v5845_v26, 5  ;;  %v5861_v47 = vshll.u32 %v5641_v0, 16 }
 0x3b6   : > { %8882 = vmatprep.mubr.bf16.mxu0 %v10269_v59  ;;  %v5853_v55 = vrot.slane %v5851_v9, 5  ;;  %v15319_v38 = vrot.slane %v6439_v31, 4  ;;  %8713 = vmatprep.mubr.bf16.mxu1 %v10236_v22  ;;  %v10173_v25 = vrot.slane %v6041_v44, 9  ;;  %v6155_v20 = vrot.slane %v15299_v11, 5  ;;  %v15327_v31 = vld [vmem:[#allocation2 + $0xa4] sm:$0xf] }
 0x3b7   : > { %v5857_v5 = vrot.slane %v5855_v1, 4  ;;  %v15322_v56 = vrot.slane %v6432_v43, 4  ;;  %8714 = vmatmul.mubr.bf16.gmra.mxu1 %v10220_v35  ;;  %v15324_v40 = vrot.slane %v6459_v61, 5  ;;  %v6463_v36 = vshrl.u32 %v15297_v7, 16  ;;  %v15331_v43 = vld [vmem:[#allocation2 + $0x90] sm:$0xf] }
 0x3b8   : > { %v5848_v49 = vor.u32 %v5847_v3, %v5844_v6  ;;  %v6456_v12 = vor.u32 %v6455_v42, %v6452_v30  ;;  %v6158_v8 = vrot.slane %v5641_v0, 5  ;;  %v6157_v62 = vrot.slane %v6155_v20, 4  ;;  %v5642_v44 = vld [vmem:[#allocation2 + $0x98] sm:$0x1]  ;;  %v6042_v6 = vld [vmem:[#allocation2 + $0x90] sm:$0xe] }
 0x3b9   : > { %v5858_v29 = vor.u32 %v5857_v5, %v5853_v55  ;;  %v5863_v51 = vrot.slane %v5861_v47, 5  ;;  %v6474_v52 = vshrl.u32 %v6227_v60, 16  ;;  %v6477_v59 = vshll.u32 %v6227_v60, 16 }
 0x3ba   : > { %v5849_v54 = vrot.slane %v5848_v49, 4  ;;  %v6156_v61 = vsel %vm12307_vm11, %v10173_v25, %v6155_v20  ;;  %v6159_v7 = vsel %vm12307_vm11, %v6157_v62, %v6158_v8  ;;  %v10221_v0 = vcombine.low %v15301_v17, %v15299_v11  ;;  %v6229_v62 = vld [vmem:[#allocation2 + $0xb0] sm:$0xf] }
 0x3bb   : > { %v5859_v35 = vrot.slane %v5858_v29, 4  ;;  %v10253_v18 = vcombine.low %v6156_v61, %v6159_v7  ;;  %v6483_v26 = vshll.u32 %v15327_v31, 16  ;;  %v10270_v9 = vcombine.low %v6227_v60, %v15327_v31 }
 0x3bc   : > { %v5854_v21 = vsel %vm12343_vm14, %v5849_v54, %v5853_v55  ;;  %v5866_v30 = vshrl.u32 %v15331_v43, 16  ;;  %v5869_v42 = vshll.u32 %v15331_v43, 16  ;;  %v5875_v1 = vshll.u32 %v15329_v23, 16 }
 0x3bd   : > { %v5864_v22 = vsel %vm12343_vm14, %v5859_v35, %v5863_v51  ;;  %8883 = vmatmul.mubr.bf16.gmra.mxu0 %v10253_v18  ;;  %v6476_v17 = vrot.slane %v6474_v52, 4  ;;  %v6479_v3 = vrot.slane %v6477_v59, 5  ;;  %v5879_v55 = vshrl.u32 %v15329_v23, 16  ;;  %v15359_v18 = vld [vmem:[#allocation2 + $0xa4] sm:$0xf] }
 0x3be   : > { %v10237_v11 = vcombine.low %v5854_v21, %v5864_v22  ;;  %8890 = vmatprep.mubr.bf16.mxu0 %v10270_v9  ;;  %v5868_v47 = vrot.slane %v5866_v30, 4  ;;  %v5871_v5 = vrot.slane %v5869_v42, 5  ;;  %v5877_v25 = vrot.slane %v5875_v1, 5 }
 0x3bf   : > { %v5885_v20 = vshll.u32 %v5642_v44, 16  ;;  %v15349_v60 = vrot.slane %v6463_v36, 4  ;;  %v5881_v49 = vrot.slane %v5879_v55, 4  ;;  %v10174_v29 = vrot.slane %v6042_v6, 9  ;;  %v15357_v36 = vld [vmem:[#allocation2 + $0xb4] sm:$0xf] }
 0x3c0   : > { %8721 = vmatprep.mubr.bf16.mxu1 %v10237_v11  ;;  %v6162_v8 = vrot.slane %v15329_v23, 5  ;;  %v15352_v54 = vrot.slane %v6456_v12, 4  ;;  %v15354_v51 = vrot.slane %v6483_v26, 5  ;;  %v6487_v52 = vshrl.u32 %v15327_v31, 16  ;;  %v15361_v12 = vld [vmem:[#allocation2 + $0xa0] sm:$0xf] }
 0x3c1   : > { %8722 = vmatmul.mubr.bf16.gmra.mxu1 %v10221_v0  ;;  %v5872_v59 = vor.u32 %v5871_v5, %v5868_v47  ;;  %v6480_v35 = vor.u32 %v6479_v3, %v6476_v17  ;;  %v5882_v61 = vor.u32 %v5881_v49, %v5877_v25  ;;  %v6165_v7 = vrot.slane %v5642_v44, 5  ;;  %v5643_v3 = vld [vmem:[#allocation2 + $0xa8] sm:$0x1]  ;;  %v6043_v49 = vld [vmem:[#allocation2 + $0xa0] sm:$0xe] }
 0x3c2   : > { %v6164_v21 = vrot.slane %v6162_v8, 4  ;;  %v5887_v22 = vrot.slane %v5885_v20, 5  ;;  %v6498_v30 = vshrl.u32 %v6229_v62, 16  ;;  %v6501_v42 = vshll.u32 %v6229_v62, 16 }
 0x3c3   : > { %v5873_v9 = vrot.slane %v5872_v59, 4  ;;  %v5883_v0 = vrot.slane %v5882_v61, 4  ;;  %v6163_v26 = vsel %vm12307_vm11, %v10174_v29, %v6162_v8  ;;  %v10222_v44 = vcombine.low %v15331_v43, %v15329_v23 }
 0x3c4   : > { %v6166_v31 = vsel %vm12307_vm11, %v6164_v21, %v6165_v7  ;;  %v6507_v11 = vshll.u32 %v15357_v36, 16  ;;  %v10271_v17 = vcombine.low %v6229_v62, %v15357_v36  ;;  %v5890_v47 = vshrl.u32 %v15361_v12, 16 }
 0x3c5   : > { %v5878_v1 = vsel %vm12343_vm14, %v5873_v9, %v5877_v25  ;;  %v10254_v6 = vcombine.low %v6163_v26, %v6166_v31  ;;  %v5888_v55 = vsel %vm12343_vm14, %v5883_v0, %v5887_v22  ;;  %v5893_v5 = vshll.u32 %v15361_v12, 16  ;;  %v6231_v0 = vld [vmem:[#allocation2 + $0xc0] sm:$0xf] }
 0x3c6   : > { %v5899_v20 = vshll.u32 %v15359_v18, 16  ;;  %v10238_v23 = vcombine.low %v5878_v1, %v5888_v55  ;;  %v6500_v43 = vrot.slane %v6498_v30, 4  ;;  %v6503_v25 = vrot.slane %v6501_v42, 5 }
 0x3c7   : > { %8891 = vmatmul.mubr.bf16.gmra.mxu0 %v10254_v6  ;;  %v5903_v29 = vshrl.u32 %v15359_v18, 16  ;;  %v5892_v8 = vrot.slane %v5890_v47, 4  ;;  %v5895_v62 = vrot.slane %v5893_v5, 5  ;;  %v5909_v61 = vshll.u32 %v5643_v3, 16  ;;  %v15389_v47 = vld [vmem:[#allocation2 + $0xb4] sm:$0xf] }
 0x3c8   : > { %8898 = vmatprep.mubr.bf16.mxu0 %v10271_v17  ;;  %v5901_v59 = vrot.slane %v5899_v20, 5  ;;  %v15379_v7 = vrot.slane %v6487_v52, 4  ;;  %8729 = vmatprep.mubr.bf16.mxu1 %v10238_v23  ;;  %v10175_v9 = vrot.slane %v6043_v49, 9  ;;  %v6169_v22 = vrot.slane %v15359_v18, 5  ;;  %v15387_v52 = vld [vmem:[#allocation2 + $0xc4] sm:$0xf] }
 0x3c9   : > { %v5905_v21 = vrot.slane %v5903_v29, 4  ;;  %v15382_v26 = vrot.slane %v6480_v35, 4  ;;  %8730 = vmatmul.mubr.bf16.gmra.mxu1 %v10222_v44  ;;  %v15384_v30 = vrot.slane %v6507_v11, 5  ;;  %v6511_v42 = vshrl.u32 %v15357_v36, 16  ;;  %v15391_v35 = vld [vmem:[#allocation2 + $0xb0] sm:$0xf] }
 0x3ca   : > { %17333 = vst [vmem:[#allocation20_spill] sm:$0xff] %v15379_v7  ;;  %v5896_v31 = vor.u32 %v5895_v62, %v5892_v8  ;;  %v6504_v1 = vor.u32 %v6503_v25, %v6500_v43  ;;  %v6172_v17 = vrot.slane %v5643_v3, 5  ;;  %v6171_v55 = vrot.slane %v6169_v22, 4  ;;  %v5644_v62 = vld [vmem:[#allocation2 + $0xb8] sm:$0x1] }
 0x3cb   : > { %17334 = vst [vmem:[#allocation25_spill] sm:$0xff] %v15382_v26  ;;  %17335 = vst [vmem:[#allocation19_spill] sm:$0xff] %v15384_v30  ;;  %v5906_v6 = vor.u32 %v5905_v21, %v5901_v59  ;;  %v5911_v20 = vrot.slane %v5909_v61, 5  ;;  %v6522_v49 = vshrl.u32 %v6231_v0, 16  ;;  %v6525_v23 = vshll.u32 %v6231_v0, 16 }
 0x3cc   : > { %v5897_v5 = vrot.slane %v5896_v31, 4  ;;  %v6170_v11 = vsel %vm12307_vm11, %v10175_v9, %v6169_v22  ;;  %v6173_v36 = vsel %vm12307_vm11, %v6171_v55, %v6172_v17  ;;  %v10223_v3 = vcombine.low %v15361_v12, %v15359_v18  ;;  %v6044_v31 = vld [vmem:[#allocation2 + $0xb0] sm:$0xe] }
 0x3cd   : > { %v5907_v44 = vrot.slane %v5906_v6, 4  ;;  %v10255_v25 = vcombine.low %v6170_v11, %v6173_v36  ;;  %v6531_v29 = vshll.u32 %v15387_v52, 16  ;;  %v10272_v8 = vcombine.low %v6231_v0, %v15387_v52 }
 0x3ce   : > { %v5902_v43 = vsel %vm12343_vm14, %v5897_v5, %v5901_v59  ;;  %v5914_v21 = vshrl.u32 %v15391_v35, 16  ;;  %v5917_v9 = vshll.u32 %v15391_v35, 16  ;;  %v5923_v22 = vshll.u32 %v15389_v47, 16 }
 0x3cf   : > { %v5912_v61 = vsel %vm12343_vm14, %v5907_v44, %v5911_v20  ;;  %8899 = vmatmul.mubr.bf16.gmra.mxu0 %v10255_v25  ;;  %v6524_v12 = vrot.slane %v6522_v49, 4  ;;  %v6527_v59 = vrot.slane %v6525_v23, 5  ;;  %v5927_v6 = vshrl.u32 %v15389_v47, 16 }
 0x3d0   : > { %v10239_v18 = vcombine.low %v5902_v43, %v5912_v61  ;;  %8906 = vmatprep.mubr.bf16.mxu0 %v10272_v8  ;;  %v5916_v17 = vrot.slane %v5914_v21, 4  ;;  %v5919_v0 = vrot.slane %v5917_v9, 5  ;;  %v5925_v55 = vrot.slane %v5923_v22, 5  ;;  %v15417_v9 = vld [vmem:[#allocation2 + $0xc4] sm:$0xf] }
 0x3d1   : > { %v5933_v5 = vshll.u32 %v5644_v62, 16  ;;  %v15409_v11 = vrot.slane %v6511_v42, 4  ;;  %v5929_v20 = vrot.slane %v5927_v6, 4  ;;  %v10176_v44 = vrot.slane %v6044_v31, 9  ;;  %v6234_v42 = vld [vmem:[#allocation2 + $0xd4] sm:$0xf] }
 0x3d2   : > { %8737 = vmatprep.mubr.bf16.mxu1 %v10239_v18  ;;  %v6176_v36 = vrot.slane %v15389_v47, 5  ;;  %v15412_v30 = vrot.slane %v6504_v1, 4  ;;  %v15414_v49 = vrot.slane %v6531_v29, 5  ;;  %v6535_v23 = vshrl.u32 %v15387_v52, 16 }
 0x3d3   : > { %17336 = vst [vmem:[#allocation14_spill] sm:$0xff] %v15409_v11  ;;  %8738 = vmatmul.mubr.bf16.gmra.mxu1 %v10223_v3  ;;  %v5920_v43 = vor.u32 %v5919_v0, %v5916_v17  ;;  %v6528_v25 = vor.u32 %v6527_v59, %v6524_v12  ;;  %v5930_v8 = vor.u32 %v5929_v20, %v5925_v55  ;;  %v6179_v61 = vrot.slane %v5644_v62, 5  ;;  %v15419_v11 = vld [vmem:[#allocation2 + $0xc0] sm:$0xf]  ;;  %v5645_v0 = vld [vmem:[#allocation2 + $0xc8] sm:$0x1] }
 0x3d4   : > { %17337 = vst [vmem:[#allocation32_spill] sm:$0xff] %v15412_v30  ;;  %17338 = vst [vmem:[#allocation38_spill] sm:$0xff] %v15414_v49  ;;  %v6178_v21 = vrot.slane %v6176_v36, 4  ;;  %v5935_v31 = vrot.slane %v5933_v5, 5  ;;  %v6546_v18 = vshrl.u32 %v6233_v34, 16  ;;  %v6549_v6 = vshll.u32 %v6233_v34, 16 }
 0x3d5   : > { %v5921_v22 = vrot.slane %v5920_v43, 4  ;;  %v5931_v1 = vrot.slane %v5930_v8, 4  ;;  %v6177_v3 = vsel %vm12307_vm11, %v10176_v44, %v6176_v36  ;;  %v10224_v29 = vcombine.low %v15391_v35, %v15389_v47  ;;  %v6045_v43 = vld [vmem:[#allocation2 + $0xc0] sm:$0xe] }
 0x3d6   : > { %v6180_v52 = vsel %vm12307_vm11, %v6178_v21, %v6179_v61  ;;  %v6555_v59 = vshll.u32 %v6234_v42, 16  ;;  %v10273_v17 = vcombine.low %v6233_v34, %v6234_v42  ;;  %v5938_v20 = vshrl.u32 %v15419_v11, 16  ;;  %v6235_v49 = vld [vmem:[#allocation2 + $0xe0] sm:$0xf] }
 0x3d7   : > { %v5926_v62 = vsel %vm12343_vm14, %v5921_v22, %v5925_v55  ;;  %v10256_v12 = vcombine.low %v6177_v3, %v6180_v52  ;;  %v5936_v5 = vsel %vm12343_vm14, %v5931_v1, %v5935_v31  ;;  %v5941_v44 = vshll.u32 %v15419_v11, 16 }
 0x3d8   : > { %v5947_v36 = vshll.u32 %v15417_v9, 16  ;;  %v10240_v8 = vcombine.low %v5926_v62, %v5936_v5  ;;  %v15434_v47 = vrot.slane %v6546_v18, 4  ;;  %v15436_v35 = vrot.slane %v6549_v6, 5 }
 0x3d9   : > { %8907 = vmatmul.mubr.bf16.gmra.mxu0 %v10256_v12  ;;  %v5951_v55 = vshrl.u32 %v15417_v9, 16  ;;  %v6559_v34 = vshrl.u32 %v6234_v42, 16  ;;  %v5940_v61 = vrot.slane %v5938_v20, 4  ;;  %v5943_v21 = vrot.slane %v5941_v44, 5  ;;  %v15448_v44 = vld [vmem:[#allocation2 + $0xe4] sm:$0xf] }
 0x3da   : > { %8914 = vmatprep.mubr.bf16.mxu0 %v10273_v17  ;;  %v5949_v22 = vrot.slane %v5947_v36, 5  ;;  %8745 = vmatprep.mubr.bf16.mxu1 %v10240_v8  ;;  %v5957_v1 = vshll.u32 %v5645_v0, 16  ;;  %v10177_v3 = vrot.slane %v6045_v43, 9  ;;  %v6183_v52 = vrot.slane %v15417_v9, 5  ;;  %v15450_v36 = vld [vmem:[#allocation2 + $0xd4] sm:$0xf] }
 0x3db   : > { %v5953_v31 = vrot.slane %v5951_v55, 4  ;;  %v15440_v62 = vrot.slane %v6528_v25, 4  ;;  %v15442_v18 = vrot.slane %v6535_v23, 4  ;;  %8746 = vmatmul.mubr.bf16.gmra.mxu1 %v10224_v29  ;;  %v15444_v6 = vrot.slane %v6555_v59, 5  ;;  %v15454_v55 = vld [vmem:[#allocation2 + $0xd0] sm:$0xf] }
 0x3dc   : > { %v5944_v12 = vor.u32 %v5943_v21, %v5940_v61  ;;  %v6186_v5 = vrot.slane %v5645_v0, 5  ;;  %v6185_v20 = vrot.slane %v6183_v52, 4  ;;  %v15452_v43 = vrot.slane %v6559_v34, 4  ;;  %v5646_v42 = vld [vmem:[#allocation2 + $0xd8] sm:$0x1] }
 0x3dd   : > { %17339 = vst [vmem:[#allocation46_spill] sm:$0xff] %v15440_v62  ;;  %17340 = vst [vmem:[#allocation44_spill] sm:$0xff] %v15442_v18  ;;  %v5954_v17 = vor.u32 %v5953_v31, %v5949_v22  ;;  %v6570_v8 = vshrl.u32 %v6235_v49, 16  ;;  %v6573_v23 = vshll.u32 %v6235_v49, 16  ;;  %v5959_v59 = vrot.slane %v5957_v1, 5 }
 0x3de   : > { %17341 = vst [vmem:[#allocation29_spill] sm:$0xff] %v15444_v6  ;;  %17342 = vst [vmem:[#allocation40_spill] sm:$0xff] %v15452_v43  ;;  %v5945_v25 = vrot.slane %v5944_v12, 4  ;;  %v6184_v61 = vsel %vm12307_vm11, %v10177_v3, %v6183_v52  ;;  %v6187_v0 = vsel %vm12307_vm11, %v6185_v20, %v6186_v5  ;;  %v10225_v34 = vcombine.low %v15419_v11, %v15417_v9  ;;  %v6046_v5 = vld [vmem:[#allocation2 + $0xd0] sm:$0xe] }
 0x3df   : > { %v5955_v29 = vrot.slane %v5954_v17, 4  ;;  %v10257_v31 = vcombine.low %v6184_v61, %v6187_v0  ;;  %v10274_v12 = vcombine.low %v6235_v49, %v15448_v44  ;;  %v5962_v1 = vshrl.u32 %v15454_v55, 16  ;;  %v6237_v11 = vld [vmem:[#allocation2 + $0xf0] sm:$0xf] }
 0x3e0   : > { %v5950_v21 = vsel %vm12343_vm14, %v5945_v25, %v5949_v22  ;;  %v5965_v3 = vshll.u32 %v15454_v55, 16  ;;  %v5971_v52 = vshll.u32 %v15450_v36, 16  ;;  %v6572_v22 = vrot.slane %v6570_v8, 4 }
 0x3e1   : > { %v5960_v17 = vsel %vm12343_vm14, %v5955_v29, %v5959_v59  ;;  %8915 = vmatmul.mubr.bf16.gmra.mxu0 %v10257_v31  ;;  %v6575_v25 = vrot.slane %v6573_v23, 5  ;;  %v5975_v61 = vshrl.u32 %v15450_v36, 16  ;;  %v5964_v49 = vrot.slane %v5962_v1, 4 }
 0x3e2   : > { %v10241_v20 = vcombine.low %v5950_v21, %v5960_v17  ;;  %8922 = vmatprep.mubr.bf16.mxu0 %v10274_v12  ;;  %v5967_v9 = vrot.slane %v5965_v3, 5  ;;  %v5973_v0 = vrot.slane %v5971_v52, 5  ;;  %v5981_v43 = vshll.u32 %v5646_v42, 16  ;;  %v6238_v3 = vld [vmem:[#allocation2 + $0xf4] sm:$0xf] }
 0x3e3   : > { %v6579_v29 = vshll.u32 %v15448_v44, 16  ;;  %v5977_v59 = vrot.slane %v5975_v61, 4  ;;  %v10178_v6 = vrot.slane %v6046_v5, 9  ;;  %v6190_v18 = vrot.slane %v15450_v36, 5  ;;  %v15474_v52 = vld [vmem:[#allocation2 + $0xe0] sm:$0xf] }
 0x3e4   : > { %8753 = vmatprep.mubr.bf16.mxu1 %v10241_v20  ;;  %v6583_v21 = vshrl.u32 %v15448_v44, 16  ;;  %v5968_v8 = vor.u32 %v5967_v9, %v5964_v49  ;;  %v6594_v23 = vshrl.u32 %v6237_v11, 16  ;;  %v6597_v31 = vshll.u32 %v6237_v11, 16  ;;  %v15476_v5 = vld [vmem:[#allocation2 + $0xe4] sm:$0xf] }
 0x3e5   : > { %8754 = vmatmul.mubr.bf16.gmra.mxu1 %v10225_v34  ;;  %v6576_v17 = vor.u32 %v6575_v25, %v6572_v22  ;;  %v5978_v62 = vor.u32 %v5977_v59, %v5973_v0  ;;  %v6193_v12 = vrot.slane %v5646_v42, 5  ;;  %v6192_v1 = vrot.slane %v6190_v18, 4  ;;  %v5647_v9 = vld [vmem:[#allocation2 + $0xe8] sm:$0x1] }
 0x3e6   : > { %v5969_v20 = vrot.slane %v5968_v8, 4  ;;  %v5983_v30 = vrot.slane %v5981_v43, 5  ;;  %v6596_v7 = vrot.slane %v6594_v23, 4  ;;  %v6599_v61 = vrot.slane %v6597_v31, 5  ;;  %v6047_v8 = vld [vmem:[#allocation2 + $0xe0] sm:$0xe] }
 0x3e7   : > { %v5979_v26 = vrot.slane %v5978_v62, 4  ;;  %v6191_v44 = vsel %vm12307_vm11, %v10178_v6, %v6190_v18  ;;  %v6194_v34 = vsel %vm12307_vm11, %v6192_v1, %v6193_v12  ;;  %v10226_v42 = vcombine.low %v15454_v55, %v15450_v36 }
 0x3e8   : > { %v5974_v22 = vsel %vm12343_vm14, %v5969_v20, %v5973_v0  ;;  %v10258_v25 = vcombine.low %v6191_v44, %v6194_v34  ;;  %v6603_v49 = vshll.u32 %v6238_v3, 16  ;;  %v10275_v43 = vcombine.low %v6237_v11, %v6238_v3 }
 0x3e9   : > { %v5984_v59 = vsel %vm12343_vm14, %v5979_v26, %v5983_v30  ;;  %v5986_v62 = vshrl.u32 %v15474_v52, 16  ;;  %v5989_v18 = vshll.u32 %v15474_v52, 16  ;;  %v5995_v6 = vshll.u32 %v15476_v5, 16 }
 0x3ea   : > { %v10242_v23 = vcombine.low %v5974_v22, %v5984_v59  ;;  %8923 = vmatmul.mubr.bf16.gmra.mxu0 %v10258_v25  ;;  %v6600_v36 = vor.u32 %v6599_v61, %v6596_v7  ;;  %v6607_v55 = vshrl.u32 %v6238_v3, 16  ;;  %v5999_v0 = vshrl.u32 %v15476_v5, 16  ;;  %v15498_v22 = vld [vmem:[#allocation2 + $0x100] sm:$0xf] }
 0x3eb   : > { %8930 = vmatprep.mubr.bf16.mxu0 %v10275_v43  ;;  %v5988_v31 = vrot.slane %v5986_v62, 4  ;;  %v5991_v11 = vrot.slane %v5989_v18, 5  ;;  %v5997_v12 = vrot.slane %v5995_v6, 5  ;;  %v6005_v1 = vshll.u32 %v5647_v9, 16  ;;  %v15506_v43 = vld [vmem:[#allocation2 + $0x104] sm:$0xf] }
 0x3ec   : > { %v17343_v26 = vor.u32 %v15436_v35, %v15434_v47  ;;  %8761 = vmatprep.mubr.bf16.mxu1 %v10242_v23  ;;  %v6001_v20 = vrot.slane %v5999_v0, 4  ;;  %v10179_v44 = vrot.slane %v6047_v8, 9  ;;  %v6197_v34 = vrot.slane %v15476_v5, 5  ;;  %v15510_v18 = vld [vmem:[#allocation2 + $0xf0] sm:$0xf] }
 0x3ed   : > { %v15500_v7 = vrot.slane %v6576_v17, 4  ;;  %v15502_v3 = vrot.slane %v6579_v29, 5  ;;  %v15504_v61 = vrot.slane %v6583_v21, 4  ;;  %8762 = vmatmul.mubr.bf16.gmra.mxu1 %v10226_v42  ;;  %v5992_v25 = vor.u32 %v5991_v11, %v5988_v31  ;;  %v15516_v23 = vld [vmem:[#allocation2 + $0xf4] sm:$0xf] }
 0x3ee   : > { %v15495_v30 = vrot.slane %v17343_v26, 4  ;;  %v15508_v47 = vrot.slane %v6603_v49, 5  ;;  %v6002_v35 = vor.u32 %v6001_v20, %v5997_v12  ;;  %v6200_v59 = vrot.slane %v5647_v9, 5  ;;  %v5648_v0 = vld [vmem:[#allocation2 + $0xf8] sm:$0x1] }
 0x3ef   : > { %17344 = vst [vmem:[#allocation33_spill] sm:$0xff] %v15500_v7  ;;  %17345 = vst [vmem:[#allocation31_spill] sm:$0xff] %v15504_v61  ;;  %v6199_v62 = vrot.slane %v6197_v34, 4  ;;  %v15512_v6 = vrot.slane %v6600_v36, 4  ;;  %v15514_v8 = vrot.slane %v6607_v55, 4  ;;  %v5993_v17 = vrot.slane %v5992_v25, 4 }
 0x3f0   : > { %17346 = vst [vmem:[#allocation43_spill] sm:$0xff] %v15508_v47  ;;  %v6007_v29 = vrot.slane %v6005_v1, 5  ;;  %v6003_v21 = vrot.slane %v6002_v35, 4  ;;  %v6198_v42 = vsel %vm12307_vm11, %v10179_v44, %v6197_v34  ;;  %v10227_v9 = vcombine.low %v15474_v52, %v15476_v5  ;;  %v6048_v52 = vld [vmem:[#allocation2 + $0xf0] sm:$0xe] }
 0x3f1   : > { %17347 = vst [vmem:[#allocation36_spill] sm:$0xff] %v15512_v6  ;;  %17348 = vst [vmem:[#allocation37_spill] sm:$0xff] %v15514_v8  ;;  %v6201_v49 = vsel %vm12307_vm11, %v6199_v62, %v6200_v59  ;;  %v5998_v36 = vsel %vm12343_vm14, %v5993_v17, %v5997_v12  ;;  %v10276_v11 = vcombine.low %v15498_v22, %v15506_v43  ;;  %v6010_v26 = vshrl.u32 %v15510_v18, 16  ;;  %v15536_v35 = vld [vmem:[#allocation2 + $0x20] sm:$0xf] }
 0x3f2   : > { %v10259_v55 = vcombine.low %v6198_v42, %v6201_v49  ;;  %v6008_v1 = vsel %vm12343_vm14, %v6003_v21, %v6007_v29  ;;  %v6013_v20 = vshll.u32 %v15510_v18, 16  ;;  %v6019_v44 = vshll.u32 %v15516_v23, 16  ;;  %v15539_v21 = vld [vmem:[#allocation2 + $0x24] sm:$0xf]  ;;  %v6849_v31 = vld [vmem:[#allocation2 + $0x28] sm:$0x1] }
 0x3f3   : > { %v10243_v5 = vcombine.low %v5998_v36, %v6008_v1  ;;  %v6023_v34 = vshrl.u32 %v15516_v23, 16  ;;  %v6029_v25 = vshll.u32 %v5648_v0, 16  ;;  %v6012_v62 = vrot.slane %v6010_v26, 4  ;;  %v6641_v47 = vld [vmem:[#allocation2 + $0x10] sm:$0xe] }
 0x3f4   : > { %8931 = vmatmul.mubr.bf16.gmra.mxu0 %v10259_v55  ;;  %v6015_v17 = vrot.slane %v6013_v20, 5  ;;  %v6021_v29 = vrot.slane %v6019_v44, 5  ;;  %v6207_v49 = vrot.slane %v5648_v0, 5  ;;  %v10180_v36 = vrot.slane %v6048_v52, 9  ;;  %v15552_v7 = vld [vmem:[#allocation2 + $0x30] sm:$0xf] }
 0x3f5   : > { %8938 = vmatprep.mubr.bf16.mxu0 %v10276_v11  ;;  %8769 = vmatprep.mubr.bf16.mxu1 %v10243_v5  ;;  %v6025_v42 = vrot.slane %v6023_v34, 4  ;;  %v6204_v55 = vrot.slane %v15516_v23, 5  ;;  %v6031_v12 = vrot.slane %v6029_v25, 5  ;;  %v6866_v8 = vshrl.u32 %v15536_v35, 16 }
 0x3f6   : > { %8770 = vmatmul.mubr.bf16.gmra.mxu1 %v10227_v9  ;;  %v6016_v1 = vor.u32 %v6015_v17, %v6012_v62  ;;  %v6869_v59 = vshll.u32 %v15536_v35, 16  ;;  %v6875_v44 = vshll.u32 %v15539_v21, 16  ;;  %v6879_v34 = vshrl.u32 %v15539_v21, 16  ;;  %v6241_v9 = vld [vmem:[#allocation2 + $0x18] sm:$0x1] }
 0x3f7   : > { %v6026_v11 = vor.u32 %v6025_v42, %v6021_v29  ;;  %v6205_v26 = vsel %vm12307_vm11, %v10180_v36, %v6204_v55  ;;  %v6206_v20 = vrot.slane %v6204_v55, 4  ;;  %v6868_v0 = vrot.slane %v6866_v8, 4 }
 0x3f8   : > { %v6017_v5 = vrot.slane %v6016_v1, 4  ;;  %v6871_v52 = vrot.slane %v6869_v59, 5  ;;  %v6877_v17 = vrot.slane %v6875_v44, 5  ;;  %v6885_v6 = vshll.u32 %v6849_v31, 16 }
 0x3f9   : > { %v6027_v62 = vrot.slane %v6026_v11, 4  ;;  %v6208_v25 = vsel %vm12307_vm11, %v6206_v20, %v6207_v49  ;;  %v6881_v61 = vrot.slane %v6879_v34, 4  ;;  %v10228_v59 = vcombine.low %v15510_v18, %v15516_v23  ;;  %v15558_v49 = vld [vmem:[#allocation2 + $0x34] sm:$0xf]  ;;  %v6850_v23 = vld [vmem:[#allocation2 + $0x38] sm:$0x1] }
 0x3fa   : > { %v6022_v42 = vsel %vm12343_vm14, %v6017_v5, %v6021_v29  ;;  %v10260_v36 = vcombine.low %v6205_v26, %v6208_v25  ;;  %v6872_v55 = vor.u32 %v6871_v52, %v6868_v0  ;;  %v6887_v1 = vrot.slane %v6885_v6, 5  ;;  %v11900_v0 = vld [vmem:[#allocation2 + $0x14] sm:$0xf] }
 0x3fb   : > { %v6032_v8 = vsel %vm12343_vm14, %v6027_v62, %v6031_v12  ;;  %v6277_v11 = vshll.u32 %v6241_v9, 16  ;;  %v6882_v44 = vor.u32 %v6881_v61, %v6877_v17  ;;  %v10181_v29 = vrot.slane %v6641_v47, 9 }
 0x3fc   : > { %v10244_v31 = vcombine.low %v6022_v42, %v6032_v8  ;;  %8939 = vmatmul.mubr.bf16.gmra.mxu0 %v10260_v36  ;;  %v6873_v20 = vrot.slane %v6872_v55, 4  ;;  %v10309_v26 = vcombine.low %v15536_v35, %v15539_v21  ;;  %v6707_v52 = vrot.slane %v11900_v0, 5  ;;  %v6242_v55 = vld [vmem:[#allocation2 + $0x28] sm:$0x1]  ;;  %v6642_v8 = vld [vmem:[#allocation2 + $0x20] sm:$0xe] }
 0x3fd   : > { %v6279_v5 = vrot.slane %v6277_v11, 5  ;;  %v6890_v12 = vshrl.u32 %v15552_v7, 16  ;;  %v6883_v6 = vrot.slane %v6882_v44, 4  ;;  %v6893_v34 = vshll.u32 %v15552_v7, 16 }
 0x3fe   : > { %8777 = vmatprep.mubr.bf16.mxu1 %v10244_v31  ;;  %v6878_v18 = vsel %vm12343_vm14, %v6873_v20, %v6877_v17  ;;  %v6899_v62 = vshll.u32 %v15558_v49, 16  ;;  %v6709_v47 = vrot.slane %v6707_v52, 4  ;;  %v6710_v35 = vrot.slane %v6241_v9, 5 }
 0x3ff   : > { %8778 = vmatmul.mubr.bf16.gmra.mxu1 %v10228_v59  ;;  %v6280_v61 = vsel %vm12343_vm14, %v15125_v13, %v6279_v5  ;;  %v6892_v21 = vrot.slane %v6890_v12, 4  ;;  %v6888_v25 = vsel %vm12343_vm14, %v6883_v6, %v6887_v1  ;;  %v6708_v17 = vsel %vm12307_vm11, %v10181_v29, %v6707_v52 }
 0x400   : > { %v6895_v42 = vrot.slane %v6893_v34, 5  ;;  %v6901_v36 = vrot.slane %v6899_v62, 5  ;;  %v10325_v11 = vcombine.low %v6878_v18, %v6888_v25  ;;  %v6711_v59 = vsel %vm12307_vm11, %v6709_v47, %v6710_v35  ;;  %v11834_v18 = vld [vmem:[#allocation8 + $0x230] sm:$0xff]   ;;  %v11901_v47 = vld [vmem:[#allocation2 + $0x24] sm:$0xf] }
 0x401   : > { %v6903_v31 = vshrl.u32 %v15558_v49, 16  ;;  %v6909_v13 = vshll.u32 %v6850_v23, 16  ;;  %v10293_v20 = vcombine.low %v6708_v17, %v6711_v59  ;;  %v17349_v9 = vsel %vm12343_vm14, %v15093_v15, %v15072_v27  ;;  %v15585_v27 = vld [vmem:[#allocation2 + $0x40] sm:$0xf]  ;;  %v15591_v25 = vld [vmem:[#allocation2 + $0x44] sm:$0xf] }
 0x402   : > { %v10277_v1 = vcombine.low %v17349_v9, %v6280_v61  ;;  %v6896_v44 = vor.u32 %v6895_v42, %v6892_v21  ;;  %v17098_v29 = vrot.slane %v15558_v49, 5  ;;  %9140 = vmatprep.mubr.bf16.mxu0 %v10325_v11  ;;  %v7325_v0 = vrot.slane %v6850_v23, 5 }
 0x403   : > { %v6905_v5 = vrot.slane %v6903_v31, 4  ;;  %v6301_v52 = vshll.u32 %v6242_v55, 16  ;;  %v10182_v12 = vrot.slane %v6642_v8, 9  ;;  %8979 = vmatprep.mubr.bf16.mxu1 %v10293_v20  ;;  %v6911_v34 = vrot.slane %v6909_v13, 5  ;;  %v6243_v13 = vld [vmem:[#allocation2 + $0x38] sm:$0x1] }
 0x404   : > { %9141 = vmatmul.mubr.bf16.vlgmr.msra.gmra.mxu0 %v10309_v26  ;;  %v6897_v6 = vrot.slane %v6896_v44, 4  ;;  %v7324_v62 = vrot.slane %v17098_v29, 4  ;;  %v6714_v35 = vrot.slane %v11901_v47, 5  ;;  %v6717_v21 = vrot.slane %v6242_v55, 5  ;;  %v6851_v26 = vld [vmem:[#allocation2 + $0x48] sm:$0x1] }
 0x405   : > { %v6906_v15 = vor.u32 %v6905_v5, %v6901_v36  ;;  %v6303_v61 = vrot.slane %v6301_v52, 5  ;;  %v6294_v23 = vsel %vm12343_vm14, %v15128_v53, %v15086_v32  ;;  %v6298_v59 = vor.u32 %v15088_v41, %v15086_v32  ;;  %v11902_v20 = vld [vmem:[#allocation8 + $0x238] sm:$0xff]  }
 0x406   : > { %v6902_v17 = vsel %vm12343_vm14, %v6897_v6, %v6901_v36  ;;  %v15597_v42 = vsel %vm12307_vm11, %v7324_v62, %v7325_v0  ;;  %v6715_v8 = vsel %vm12307_vm11, %v10182_v12, %v6714_v35  ;;  %v6716_v11 = vrot.slane %v6714_v35, 4  ;;  %v11837_v12 = vld [vmem:[#allocation8 + $0x228] sm:$0xff]  }
 0x407   : > { %8980 = vmatmul.mubr.bf16.vlgmr.msra.gmra.mxu1 %v10277_v1  ;;  %v6907_v55 = vrot.slane %v6906_v15, 4  ;;  %v6914_v53 = vshrl.u32 %v15585_v27, 16  ;;  %v6917_v31 = vshll.u32 %v15585_v27, 16  ;;  %v6923_v9 = vshll.u32 %v15591_v25, 16  ;;  %v6643_v1 = vld [vmem:[#allocation2 + $0x30] sm:$0xe] }
 0x408   : > { %v6718_v36 = vsel %vm12307_vm11, %v6716_v11, %v6717_v21  ;;  %11493 = vmatpush3.bf16.msra.mxu1 %v11902_v20  ;;  %v6927_v44 = vshrl.u32 %v15591_v25, 16  ;;  %v6933_v5 = vshll.u32 %v6851_v26, 16  ;;  %v6299_v41 = vrot.slane %v6298_v59, 4  ;;  %v11903_v59 = vld [vmem:[#allocation2 + $0x34] sm:$0xf] }
 0x409   : > { %v6912_v0 = vsel %vm12343_vm14, %v6907_v55, %v6911_v34  ;;  %v10294_v32 = vcombine.low %v6715_v8, %v6718_v36  ;;  %v6916_v52 = vrot.slane %v6914_v53, 4  ;;  %11494 = vmatprep.subr.bf16.mxu1 %v11834_v18  ;;  %v6919_v62 = vrot.slane %v6917_v31, 5  ;;  %v15615_v36 = vld [vmem:[#allocation2 + $0x50] sm:$0xf] }
 0x40a   : > { %v10326_v6 = vcombine.low %v6902_v17, %v6912_v0  ;;  %v6925_v47 = vrot.slane %v6923_v9, 5  ;;  %v6929_v35 = vrot.slane %v6927_v44, 4  ;;  %v10310_v15 = vcombine.low %v15552_v7, %v15558_v49  ;;  %v15617_v17 = vld [vmem:[#allocation2 + $0x54] sm:$0xf]  ;;  %v11840_v9 = vld [vmem:[#allocation8 + $0x220] sm:$0xff]  }
 0x40b   : > { %8987 = vmatprep.mubr.bf16.mxu1 %v10294_v32  ;;  %v6304_v21 = vsel %vm12343_vm14, %v6299_v41, %v6303_v61  ;;  %v6325_v26 = vshll.u32 %v6243_v13, 16  ;;  %v10183_v11 = vrot.slane %v6643_v1, 9  ;;  %v6920_v34 = vor.u32 %v6919_v62, %v6916_v52 }
 0x40c   : > { %9148 = vmatprep.mubr.bf16.mxu0 %v10326_v6  ;;  %v6930_v8 = vor.u32 %v6929_v35, %v6925_v47  ;;  %v6935_v55 = vrot.slane %v6933_v5, 5  ;;  %v6721_v53 = vrot.slane %v11903_v59, 5  ;;  %11495 = vmatpush3.bf16.msra.mxu1 %v11834_v18  ;;  %v10278_v31 = vcombine.low %v6294_v23, %v6304_v21  ;;  %v6852_v23 = vld [vmem:[#allocation2 + $0x58] sm:$0x1]  ;;  %v6244_v35 = vld [vmem:[#allocation2 + $0x48] sm:$0x1] }
 0x40d   : > { %9149 = vmatmul.mubr.bf16.gmra.mxu0 %v10310_v15  ;;  %v6327_v20 = vrot.slane %v6325_v26, 5  ;;  %v6724_v7 = vrot.slane %v6243_v13, 5  ;;  %v6318_v61 = vsel %vm12343_vm14, %v15164_v58, %v15130_v57  ;;  %11496 = vmatprep.subr.bf16.mxu1 %v11837_v12  ;;  %v6921_v44 = vrot.slane %v6920_v34, 4 }
 0x40e   : > { %v6931_v5 = vrot.slane %v6930_v8, 4  ;;  %v6722_v1 = vsel %vm12307_vm11, %v10183_v11, %v6721_v53  ;;  %v6723_v0 = vrot.slane %v6721_v53, 4  ;;  %v6322_v18 = vor.u32 %v15161_v50, %v15130_v57  ;;  %v6644_v57 = vld [vmem:[#allocation2 + $0x40] sm:$0xe]  ;;  %v11843_v11 = vld [vmem:[#allocation8 + $0x218] sm:$0xff]  }
 0x40f   : > { %8988 = vmatmul.mubr.bf16.gmra.mxu1 %v10278_v31  ;;  %v6938_v13 = vshrl.u32 %v15615_v36, 16  ;;  %v6941_v32 = vshll.u32 %v15615_v36, 16  ;;  %v6947_v41 = vshll.u32 %v15617_v17, 16  ;;  %v6926_v58 = vsel %vm12343_vm14, %v6921_v44, %v6925_v47 }
 0x410   : > { %v6936_v52 = vsel %vm12343_vm14, %v6931_v5, %v6935_v55  ;;  %v6725_v6 = vsel %vm12307_vm11, %v6723_v0, %v6724_v7  ;;  %v6951_v62 = vshrl.u32 %v15617_v17, 16  ;;  %11497 = vmatpush3.bf16.msra.mxu1 %v11837_v12  ;;  %v6323_v21 = vrot.slane %v6322_v18, 4  ;;  %v15645_v18 = vld [vmem:[#allocation2 + $0x60] sm:$0xf] }
 0x411   : > { %v10327_v50 = vcombine.low %v6926_v58, %v6936_v52  ;;  %v10295_v15 = vcombine.low %v6722_v1, %v6725_v6  ;;  %v6940_v26 = vrot.slane %v6938_v13, 4  ;;  %11498 = vmatprep.subr.bf16.mxu1 %v11840_v9  ;;  %v6943_v34 = vrot.slane %v6941_v32, 5 }
 0x412   : > { %v6949_v8 = vrot.slane %v6947_v41, 5  ;;  %v6953_v47 = vrot.slane %v6951_v62, 4  ;;  %v6957_v59 = vshll.u32 %v6852_v23, 16  ;;  %v10311_v55 = vcombine.low %v15585_v27, %v15591_v25  ;;  %v15647_v23 = vld [vmem:[#allocation2 + $0x64] sm:$0xf]  ;;  %v11846_v41 = vld [vmem:[#allocation8 + $0x210] sm:$0xff]  }
 0x413   : > { %9156 = vmatprep.mubr.bf16.mxu0 %v10327_v50  ;;  %8995 = vmatprep.mubr.bf16.mxu1 %v10295_v15  ;;  %v6328_v53 = vsel %vm12343_vm14, %v6323_v21, %v6327_v20  ;;  %v6349_v31 = vshll.u32 %v6244_v35, 16  ;;  %v10184_v12 = vrot.slane %v6644_v57, 9  ;;  %v17350_v7 = vshrl.u32 %v15498_v22, 16  ;;  %v11904_v25 = vld [vmem:[#allocation2 + $0x44] sm:$0xf] }
 0x414   : > { %v10279_v5 = vcombine.low %v6318_v61, %v6328_v53  ;;  %v6944_v1 = vor.u32 %v6943_v34, %v6940_v26  ;;  %v6954_v0 = vor.u32 %v6953_v47, %v6949_v8  ;;  %11499 = vmatpush3.bf16.msra.mxu1 %v11840_v9  ;;  %v6959_v13 = vrot.slane %v6957_v59, 5  ;;  %v11849_v53 = vld [vmem:[#allocation8 + $0x208] sm:$0xff]  }
 0x415   : > { %v15643_v44 = vrot.slane %v17350_v7, 4  ;;  %9157 = vmatmul.mubr.bf16.gmra.mxu0 %v10311_v55  ;;  %v6351_v27 = vrot.slane %v6349_v31, 5  ;;  %v6728_v32 = vrot.slane %v11904_v25, 5  ;;  %v6731_v20 = vrot.slane %v6244_v35, 5  ;;  %11500 = vmatprep.subr.bf16.mxu1 %v11843_v11  ;;  %v6645_v55 = vld [vmem:[#allocation2 + $0x50] sm:$0xe] }
 0x416   : > { %v6945_v58 = vrot.slane %v6944_v1, 4  ;;  %v6955_v52 = vrot.slane %v6954_v0, 4  ;;  %v6342_v61 = vsel %vm12343_vm14, %v15200_v63, %v15166_v2  ;;  %v6346_v6 = vor.u32 %v15197_v33, %v15166_v2  ;;  %v6853_v63 = vld [vmem:[#allocation2 + $0x68] sm:$0x1]  ;;  %v6245_v2 = vld [vmem:[#allocation2 + $0x58] sm:$0x1] }
 0x417   : > { %8996 = vmatmul.mubr.bf16.gmra.mxu1 %v10279_v5  ;;  %v6729_v9 = vsel %vm12307_vm11, %v10184_v12, %v6728_v32  ;;  %v6730_v62 = vrot.slane %v6728_v32, 4  ;;  %v6962_v57 = vshrl.u32 %v15645_v18, 16  ;;  %v6965_v35 = vshll.u32 %v15645_v18, 16 }
 0x418   : > { %v6950_v50 = vsel %vm12343_vm14, %v6945_v58, %v6949_v8  ;;  %v6960_v15 = vsel %vm12343_vm14, %v6955_v52, %v6959_v13  ;;  %v6347_v21 = vrot.slane %v6346_v6, 4  ;;  %v6971_v26 = vshll.u32 %v15647_v23, 16  ;;  %11501 = vmatpush3.bf16.msra.mxu1 %v11843_v11  ;;  %v15671_v13 = vld [vmem:[#allocation2 + $0x70] sm:$0xf]  ;;  %v11905_v58 = vld [vmem:[#allocation2 + $0x54] sm:$0xf] }
 0x419   : > { %v10328_v33 = vcombine.low %v6950_v50, %v6960_v15  ;;  %v6732_v34 = vsel %vm12307_vm11, %v6730_v62, %v6731_v20  ;;  %v6964_v47 = vrot.slane %v6962_v57, 4  ;;  %v6967_v59 = vrot.slane %v6965_v35, 5  ;;  %11502 = vmatprep.subr.bf16.mxu1 %v11846_v41  ;;  %v15673_v6 = vld [vmem:[#allocation2 + $0x74] sm:$0xf] }
 0x41a   : > { %v10296_v31 = vcombine.low %v6729_v9, %v6732_v34  ;;  %v6352_v8 = vsel %vm12343_vm14, %v6347_v21, %v6351_v27  ;;  %v6973_v12 = vrot.slane %v6971_v26, 5  ;;  %v6975_v7 = vshrl.u32 %v15647_v23, 16  ;;  %v6854_v21 = vld [vmem:[#allocation2 + $0x78] sm:$0x1] }
 0x41b   : > { %9164 = vmatprep.mubr.bf16.mxu0 %v10328_v33  ;;  %v10312_v11 = vcombine.low %v15615_v36, %v15617_v17  ;;  %v6968_v5 = vor.u32 %v6967_v59, %v6964_v47  ;;  %v6981_v1 = vshll.u32 %v6853_v63, 16  ;;  %v6373_v0 = vshll.u32 %v6245_v2, 16  ;;  %v11852_v36 = vld [vmem:[#allocation8 + $0x200] sm:$0xff]  }
 0x41c   : > { %9003 = vmatprep.mubr.bf16.mxu1 %v10296_v31  ;;  %v10280_v25 = vcombine.low %v6342_v61, %v6352_v8  ;;  %v6977_v32 = vrot.slane %v6975_v7, 4  ;;  %v10185_v20 = vrot.slane %v6645_v55, 9  ;;  %v6735_v52 = vrot.slane %v11905_v58, 5  ;;  %11503 = vmatpush3.bf16.msra.mxu1 %v11846_v41  ;;  %v6246_v8 = vld [vmem:[#allocation2 + $0x68] sm:$0x1] }
 0x41d   : > { %9165 = vmatmul.mubr.bf16.gmra.mxu0 %v10312_v11  ;;  %v6969_v27 = vrot.slane %v6968_v5, 4  ;;  %v6983_v9 = vrot.slane %v6981_v1, 5  ;;  %v6375_v62 = vrot.slane %v6373_v0, 5  ;;  %v6738_v57 = vrot.slane %v6245_v2, 5  ;;  %11504 = vmatprep.subr.bf16.mxu1 %v11849_v53  ;;  %v6646_v11 = vld [vmem:[#allocation2 + $0x60] sm:$0xe] }
 0x41e   : > { %v6978_v17 = vor.u32 %v6977_v32, %v6973_v12  ;;  %v6736_v35 = vsel %vm12307_vm11, %v10185_v20, %v6735_v52  ;;  %v6737_v50 = vrot.slane %v6735_v52, 4  ;;  %v6366_v61 = vsel %vm12343_vm14, %v15232_v24, %v15202_v14 }
 0x41f   : > { %9004 = vmatmul.mubr.bf16.gmra.mxu1 %v10280_v25  ;;  %v6974_v41 = vsel %vm12343_vm14, %v6969_v27, %v6973_v12  ;;  %v6370_v15 = vor.u32 %v15229_v28, %v15202_v14  ;;  %v6986_v63 = vshrl.u32 %v15671_v13, 16  ;;  %v6989_v26 = vshll.u32 %v15671_v13, 16  ;;  %v15701_v27 = vld [vmem:[#allocation2 + $0x80] sm:$0xf] }
 0x420   : > { %v6979_v2 = vrot.slane %v6978_v17, 4  ;;  %v6739_v33 = vsel %vm12307_vm11, %v6737_v50, %v6738_v57  ;;  %v6995_v34 = vshll.u32 %v15673_v6, 16  ;;  %v6999_v24 = vshrl.u32 %v15673_v6, 16  ;;  %11505 = vmatpush3.bf16.msra.mxu1 %v11849_v53  ;;  %v11906_v17 = vld [vmem:[#allocation2 + $0x64] sm:$0xf] }
 0x421   : > { %v10297_v47 = vcombine.low %v6736_v35, %v6739_v33  ;;  %v6371_v59 = vrot.slane %v6370_v15, 4  ;;  %v6988_v55 = vrot.slane %v6986_v63, 4  ;;  %v6991_v31 = vrot.slane %v6989_v26, 5  ;;  %11506 = vmatprep.subr.bf16.mxu1 %v11852_v36  ;;  %v15703_v50 = vld [vmem:[#allocation2 + $0x84] sm:$0xf] }
 0x422   : > { %v6984_v14 = vsel %vm12343_vm14, %v6979_v2, %v6983_v9  ;;  %v6997_v28 = vrot.slane %v6995_v34, 5  ;;  %v7001_v12 = vrot.slane %v6999_v24, 4  ;;  %v7005_v7 = vshll.u32 %v6854_v21, 16  ;;  %v6855_v63 = vld [vmem:[#allocation2 + $0x88] sm:$0x1] }
 0x423   : > { %v17351_v5 = vshll.u32 %v15498_v22, 16  ;;  %v10329_v0 = vcombine.low %v6974_v41, %v6984_v14  ;;  %9011 = vmatprep.mubr.bf16.mxu1 %v10297_v47  ;;  %v6376_v53 = vsel %vm12343_vm14, %v6371_v59, %v6375_v62  ;;  %v6992_v25 = vor.u32 %v6991_v31, %v6988_v55  ;;  %v6247_v34 = vld [vmem:[#allocation2 + $0x78] sm:$0x1]  ;;  %v6647_v31 = vld [vmem:[#allocation2 + $0x70] sm:$0xe] }
 0x424   : > { %v10313_v32 = vcombine.low %v15645_v18, %v15647_v23  ;;  %v10281_v20 = vcombine.low %v6366_v61, %v6376_v53  ;;  %v7002_v58 = vor.u32 %v7001_v12, %v6997_v28  ;;  %v6397_v52 = vshll.u32 %v6246_v8, 16  ;;  %11507 = vmatpush3.bf16.msra.mxu1 %v11852_v36 }
 0x425   : > { %v15695_v1 = vrot.slane %v17351_v5, 5  ;;  %9172 = vmatprep.mubr.bf16.mxu0 %v10329_v0  ;;  %v6993_v9 = vrot.slane %v6992_v25, 4  ;;  %v7007_v22 = vrot.slane %v7005_v7, 5  ;;  %v10186_v57 = vrot.slane %v6646_v11, 9  ;;  %v11907_v25 = vld [vmem:[#allocation2 + $0x74] sm:$0xf] }
 0x426   : > { %v6742_v35 = vrot.slane %v11906_v17, 5  ;;  %9173 = vmatmul.mubr.bf16.gmra.mxu0 %v10313_v32  ;;  %v7003_v62 = vrot.slane %v7002_v58, 4  ;;  %v6399_v41 = vrot.slane %v6397_v52, 5  ;;  %v6745_v15 = vrot.slane %v6246_v8, 5 }
 0x427   : > { %v6390_v18 = vsel %vm12343_vm14, %v15262_v4, %v15234_v46  ;;  %9012 = vmatmul.mubr.bf16.gmra.mxu1 %v10281_v20  ;;  %v6998_v23 = vsel %vm12343_vm14, %v6993_v9, %v6997_v28  ;;  %v6394_v21 = vor.u32 %v15259_v16, %v15234_v46  ;;  %v7010_v2 = vshrl.u32 %v15701_v27, 16  ;;  %v15727_v20 = vld [vmem:[#allocation2 + $0x90] sm:$0xf] }
 0x428   : > { %v6743_v36 = vsel %vm12307_vm11, %v10186_v57, %v6742_v35  ;;  %v6744_v61 = vrot.slane %v6742_v35, 4  ;;  %v7008_v26 = vsel %vm12343_vm14, %v7003_v62, %v7007_v22  ;;  %v7013_v33 = vshll.u32 %v15701_v27, 16  ;;  %v15729_v57 = vld [vmem:[#allocation2 + $0x94] sm:$0xf] }
 0x429   : > { %v7019_v4 = vshll.u32 %v15703_v50, 16  ;;  %v10330_v24 = vcombine.low %v6998_v23, %v7008_v26  ;;  %v6395_v59 = vrot.slane %v6394_v21, 4  ;;  %v7023_v55 = vshrl.u32 %v15703_v50, 16  ;;  %v6248_v26 = vld [vmem:[#allocation2 + $0x88] sm:$0x1] }
 0x42a   : > { %v6746_v47 = vsel %vm12307_vm11, %v6744_v61, %v6745_v15  ;;  %v7012_v16 = vrot.slane %v7010_v2, 4  ;;  %v7015_v8 = vrot.slane %v7013_v33, 5  ;;  %v7029_v7 = vshll.u32 %v6855_v63, 16  ;;  %v6856_v61 = vld [vmem:[#allocation2 + $0x98] sm:$0x1] }
 0x42b   : > { %v10298_v46 = vcombine.low %v6743_v36, %v6746_v47  ;;  %v7021_v14 = vrot.slane %v7019_v4, 5  ;;  %9180 = vmatprep.mubr.bf16.mxu0 %v10330_v24  ;;  %v6400_v28 = vsel %vm12343_vm14, %v6395_v59, %v6399_v41  ;;  %v7025_v12 = vrot.slane %v7023_v55, 4  ;;  %v15749_v59 = vpop.f32.mrf.mxu1 }
 0x42c   : > { %v6421_v11 = vshll.u32 %v6247_v34, 16  ;;  %v10314_v5 = vcombine.low %v15671_v13, %v15673_v6  ;;  %v7016_v0 = vor.u32 %v7015_v8, %v7012_v16  ;;  %v10187_v53 = vrot.slane %v6647_v31, 9 }
 0x42d   : > { %9019 = vmatprep.mubr.bf16.mxu1 %v10298_v46  ;;  %v6749_v32 = vrot.slane %v11907_v25, 5  ;;  %v10282_v58 = vcombine.low %v6390_v18, %v6400_v28  ;;  %v7026_v52 = vor.u32 %v7025_v12, %v7021_v14  ;;  %v7031_v9 = vrot.slane %v7029_v7, 5 }
 0x42e   : > { %v6423_v22 = vrot.slane %v6421_v11, 5  ;;  %9181 = vmatmul.mubr.bf16.gmra.mxu0 %v10314_v5  ;;  %v7017_v17 = vrot.slane %v7016_v0, 4  ;;  %v6752_v41 = vrot.slane %v6247_v34, 5  ;;  %v6414_v6 = vsel %vm12343_vm14, %v15292_v45, %v15264_v37  ;;  %v15758_v11 = vld [vmem:[#allocation2 + $0xa0] sm:$0xf] }
 0x42f   : > { %v6750_v35 = vsel %vm12307_vm11, %v10187_v53, %v6749_v32  ;;  %v6751_v62 = vrot.slane %v6749_v32, 4  ;;  %9020 = vmatmul.mubr.bf16.gmra.mxu1 %v10282_v58  ;;  %v7027_v13 = vrot.slane %v7026_v52, 4  ;;  %v6418_v15 = vor.u32 %v15289_v10, %v15264_v37  ;;  %v6648_v10 = vld [vmem:[#allocation2 + $0x80] sm:$0xe]  ;;  %v11908_v32 = vld [vmem:[#allocation2 + $0x84] sm:$0xf] }
 0x430   : > { %v7034_v18 = vshrl.u32 %v15727_v20, 16  ;;  %v7022_v23 = vsel %vm12343_vm14, %v7017_v17, %v7021_v14  ;;  %v7037_v21 = vshll.u32 %v15727_v20, 16  ;;  %v7043_v63 = vshll.u32 %v15729_v57, 16  ;;  %v15762_v52 = vld [vmem:[#allocation2 + $0xa4] sm:$0xf] }
 0x431   : > { %v6753_v36 = vsel %vm12307_vm11, %v6751_v62, %v6752_v41  ;;  %v7032_v45 = vsel %vm12343_vm14, %v7027_v13, %v7031_v9  ;;  %v6419_v33 = vrot.slane %v6418_v15, 4  ;;  %v7047_v47 = vshrl.u32 %v15729_v57, 16  ;;  %v6857_v13 = vld [vmem:[#allocation2 + $0xa8] sm:$0x1] }
 0x432   : > { %v10299_v2 = vcombine.low %v6750_v35, %v6753_v36  ;;  %v7036_v37 = vrot.slane %v7034_v18, 4  ;;  %v10331_v4 = vcombine.low %v7022_v23, %v7032_v45  ;;  %v7039_v34 = vrot.slane %v7037_v21, 5 }
 0x433   : > { %v7045_v24 = vrot.slane %v7043_v63, 5  ;;  %v6631_v31 = vshrl.u32 %v15506_v43, 16  ;;  %v6424_v46 = vsel %vm12343_vm14, %v6419_v33, %v6423_v22  ;;  %v7053_v16 = vshll.u32 %v6856_v61, 16  ;;  %v6249_v61 = vld [vmem:[#allocation2 + $0x98] sm:$0x1] }
 0x434   : > { %9027 = vmatprep.mubr.bf16.mxu1 %v10299_v2  ;;  %v6445_v8 = vshll.u32 %v6248_v26, 16  ;;  %9188 = vmatprep.mubr.bf16.mxu0 %v10331_v4  ;;  %v10315_v14 = vcombine.low %v15701_v27, %v15703_v50  ;;  %v7040_v28 = vor.u32 %v7039_v34, %v7036_v37  ;;  %v7049_v12 = vrot.slane %v7047_v47, 4  ;;  %v15768_v50 = vpop.f32.mrf.mxu1 }
 0x435   : > { %v10188_v7 = vrot.slane %v6648_v10, 9  ;;  %v10283_v0 = vcombine.low %v6414_v6, %v6424_v46  ;;  %v7055_v53 = vrot.slane %v7053_v16, 5  ;;  %v6756_v58 = vrot.slane %v11908_v32, 5 }
 0x436   : > { %v6447_v25 = vrot.slane %v6445_v8, 5  ;;  %9189 = vmatmul.mubr.bf16.gmra.mxu0 %v10315_v14  ;;  %v7041_v9 = vrot.slane %v7040_v28, 4  ;;  %v7050_v22 = vor.u32 %v7049_v12, %v7045_v24  ;;  %v6759_v17 = vrot.slane %v6248_v26, 5  ;;  %v15786_v10 = vpop.f32.mrf.mxu1 }
 0x437   : > { %v6438_v27 = vsel %vm12343_vm14, %v15322_v56, %v15294_v48  ;;  %9028 = vmatmul.mubr.bf16.gmra.mxu1 %v10283_v0  ;;  %v6757_v35 = vsel %vm12307_vm11, %v10188_v7, %v6756_v58  ;;  %v6758_v62 = vrot.slane %v6756_v58, 4  ;;  %v6442_v41 = vor.u32 %v15319_v38, %v15294_v48  ;;  %v6649_v38 = vld [vmem:[#allocation2 + $0x90] sm:$0xe] }
 0x438   : > { %v15751_v55 = vpop.f32.mrf.mxu0  ;;  %v7058_v6 = vshrl.u32 %v15758_v11, 16  ;;  %v7046_v18 = vsel %vm12343_vm14, %v7041_v9, %v7045_v24  ;;  %v7051_v23 = vrot.slane %v7050_v22, 4  ;;  %v7061_v56 = vshll.u32 %v15758_v11, 16 }
 0x439   : > { %v7067_v36 = vshll.u32 %v15762_v52, 16  ;;  %v6760_v21 = vsel %vm12307_vm11, %v6758_v62, %v6759_v17  ;;  %v6443_v63 = vrot.slane %v6442_v41, 4  ;;  %v7071_v48 = vshrl.u32 %v15762_v52, 16 }
 0x43a   : > { %v15760_v5 = vpop.f32.mrf.mxu0  ;;  %v7060_v26 = vrot.slane %v7058_v6, 4  ;;  %v7056_v45 = vsel %vm12343_vm14, %v7051_v23, %v7055_v53  ;;  %v10300_v2 = vcombine.low %v6757_v35, %v6760_v21  ;;  %v7063_v33 = vrot.slane %v7061_v56, 5  ;;  %v11909_v53 = vld [vmem:[#allocation2 + $0x94] sm:$0xf]  ;;  %v6858_v23 = vld [vmem:[#allocation2 + $0xb8] sm:$0x1] }
 0x43b   : > { %v7069_v37 = vrot.slane %v7067_v36, 5  ;;  %v10332_v4 = vcombine.low %v7046_v18, %v7056_v45  ;;  %v6448_v34 = vsel %vm12343_vm14, %v6443_v63, %v6447_v25  ;;  %v7073_v24 = vrot.slane %v7071_v48, 4  ;;  %v15796_v25 = vld [vmem:[#allocation2 + $0xb0] sm:$0xf]  ;;  %v15798_v35 = vld [vmem:[#allocation2 + $0xb4] sm:$0xf] }
 0x43c   : > { %v15775_v15 = vpop.f32.mrf.mxu0  ;;  %v7077_v47 = vshll.u32 %v6857_v13, 16  ;;  %9035 = vmatprep.mubr.bf16.mxu1 %v10300_v2  ;;  %v10316_v16 = vcombine.low %v15727_v20, %v15729_v57  ;;  %v7064_v8 = vor.u32 %v7063_v33, %v7060_v26  ;;  %v6469_v14 = vshll.u32 %v6249_v61, 16  ;;  %v10992_v20 = vpop.f32.mrf.mxu1  ;;  %v6250_v2 = vld [vmem:[#allocation2 + $0xa8] sm:$0x1] }
 0x43d   : > { %v10189_v28 = vrot.slane %v6649_v38, 9  ;;  %v6624_v12 = vor.u32 %v15695_v1, %v15643_v44  ;;  %9196 = vmatprep.mubr.bf16.mxu0 %v10332_v4  ;;  %v10284_v7 = vcombine.low %v6438_v27, %v6448_v34  ;;  %v7074_v0 = vor.u32 %v7073_v24, %v7069_v37 }
 0x43e   : > { %v15790_v46 = vpop.f32.mrf.mxu0  ;;  %v6763_v32 = vrot.slane %v11909_v53, 5  ;;  %9197 = vmatmul.mubr.bf16.gmra.mxu0 %v10316_v16  ;;  %v7065_v58 = vrot.slane %v7064_v8, 4  ;;  %v7079_v9 = vrot.slane %v7077_v47, 5  ;;  %v6471_v22 = vrot.slane %v6469_v14, 5  ;;  %v6650_v47 = vld [vmem:[#allocation2 + $0xa0] sm:$0xe] }
 0x43f   : > { %v6766_v17 = vrot.slane %v6249_v61, 5  ;;  %9036 = vmatmul.mubr.bf16.gmra.mxu1 %v10284_v7  ;;  %v7075_v57 = vrot.slane %v7074_v0, 4  ;;  %v6462_v27 = vsel %vm12343_vm14, %v15352_v54, %v15324_v40  ;;  %v6466_v18 = vor.u32 %v15349_v60, %v15324_v40 }
 0x440   : > { %v6764_v62 = vsel %vm12307_vm11, %v10189_v28, %v6763_v32  ;;  %v6765_v41 = vrot.slane %v6763_v32, 4  ;;  %v15806_v13 = vpop.f32.mrf.mxu0  ;;  %v7070_v6 = vsel %vm12343_vm14, %v7065_v58, %v7069_v37  ;;  %v7082_v56 = vshrl.u32 %v15796_v25, 16 }
 0x441   : > { %v7085_v36 = vshll.u32 %v15796_v25, 16  ;;  %v15814_v61 = vpop.f32.mrf.mxu1  ;;  %v7080_v21 = vsel %vm12343_vm14, %v7075_v57, %v7079_v9  ;;  %v7091_v63 = vshll.u32 %v15798_v35, 16  ;;  %v7095_v26 = vshrl.u32 %v15798_v35, 16 }
 0x442   : > { %v6767_v54 = vsel %vm12307_vm11, %v6765_v41, %v6766_v17  ;;  %v15822_v48 = vpop.f32.mrf.mxu0  ;;  %v10333_v40 = vcombine.low %v7070_v6, %v7080_v21  ;;  %v6467_v38 = vrot.slane %v6466_v18, 4  ;;  %v7084_v45 = vrot.slane %v7082_v56, 4 }
 0x443   : > { %v10301_v60 = vcombine.low %v6764_v62, %v6767_v54  ;;  %v15824_v33 = vpop.f32.mrf.mxu1  ;;  %v7087_v37 = vrot.slane %v7085_v36, 5  ;;  %v7093_v4 = vrot.slane %v7091_v63, 5  ;;  %v7097_v34 = vrot.slane %v7095_v26, 4  ;;  %v15857_v54 = vld [vmem:[#allocation2 + $0xc4] sm:$0xf] }
 0x444   : > { %v7101_v24 = vshll.u32 %v6858_v23, 16  ;;  %v15826_v16 = vpop.f32.mrf.mxu0  ;;  %v17352_v8 = vshll.u32 %v15506_v43, 16  ;;  %9204 = vmatprep.mubr.bf16.mxu0 %v10333_v40  ;;  %v10317_v28 = vcombine.low %v15758_v11, %v15762_v52  ;;  %v6472_v7 = vsel %vm12343_vm14, %v6467_v38, %v6471_v22  ;;  %v11910_v52 = vld [vmem:[#allocation2 + $0xa4] sm:$0xf]  ;;  %v15849_v23 = vld [vmem:[#allocation2 + $0xc0] sm:$0xf] }
 0x445   : > { %9043 = vmatprep.mubr.bf16.mxu1 %v10301_v60  ;;  %v15838_v0 = vadd.f32 %v15760_v5, %v15751_v55  ;;  %v15840_v53 = vpop.f32.mrf.mxu1  ;;  %v10285_v32 = vcombine.low %v6462_v27, %v6472_v7  ;;  %v7088_v58 = vor.u32 %v7087_v37, %v7084_v45  ;;  %v7098_v9 = vor.u32 %v7097_v34, %v7093_v4  ;;  %v17353_v26 = vld [vmem:[#allocation25_spill] sm:$0xff]  ;;  %v6859_v60 = vld [vmem:[#allocation2 + $0xc8] sm:$0x1]  ;;  %v6651_v7 = vld [vmem:[#allocation2 + $0xb0] sm:$0xe] }
 0x446   : > { %v15830_v14 = vrot.slane %v17352_v8, 5  ;;  %v10993_v17 = vadd.f32 %v10992_v20, %v15786_v10  ;;  %v15843_v57 = vpop.f32.mrf.mxu0  ;;  %9205 = vmatmul.mubr.bf16.gmra.mxu0 %v10317_v28  ;;  %v7103_v62 = vrot.slane %v7101_v24, 5  ;;  %v6493_v41 = vshll.u32 %v6250_v2, 16 }
 0x447   : > { %v10190_v11 = vrot.slane %v6650_v47, 9  ;;  %v6770_v6 = vrot.slane %v11910_v52, 5  ;;  %v15845_v22 = vpop.f32.mrf.mxu1  ;;  %9044 = vmatmul.mubr.bf16.gmra.mxu1 %v10285_v32  ;;  %v7089_v55 = vrot.slane %v7088_v58, 4  ;;  %v7099_v5 = vrot.slane %v7098_v9, 4 }
 0x448   : > { %v6773_v18 = vrot.slane %v6250_v2, 5  ;;  %v11105_v27 = vadd.f32 %v15790_v46, %v15775_v15  ;;  %v15851_v10 = vpop.f32.mrf.mxu0  ;;  %v6495_v20 = vrot.slane %v6493_v41, 5  ;;  %v10318_v21 = vcombine.low %v15796_v25, %v15798_v35  ;;  %v17354_v35 = vld [vmem:[#allocation20_spill] sm:$0xff] }
 0x449   : > { %v6771_v56 = vsel %vm12307_vm11, %v10190_v11, %v6770_v6  ;;  %v6772_v36 = vrot.slane %v6770_v6, 4  ;;  %v7094_v63 = vsel %vm12343_vm14, %v7089_v55, %v7093_v4  ;;  %v7104_v15 = vsel %vm12343_vm14, %v7099_v5, %v7103_v62  ;;  %v6251_v4 = vld [vmem:[#allocation2 + $0xb8] sm:$0x1] }
 0x44a   : > { %v15863_v46 = vadd.f32 %v11105_v27, %v10993_v17  ;;  %v6486_v40 = vsel %vm12343_vm14, %v17353_v26, %v15354_v51  ;;  %v15869_v38 = vpop.f32.mrf.mxu0  ;;  %v10334_v45 = vcombine.low %v7094_v63, %v7104_v15  ;;  %v6490_v2 = vor.u32 %v17354_v35, %v15354_v51 }
 0x44b   : > { %v6774_v25 = vsel %vm12307_vm11, %v6772_v36, %v6773_v18  ;;  %v7106_v37 = vshrl.u32 %v15849_v23, 16  ;;  %v15876_v34 = vpop.f32.mrf.mxu1  ;;  %v7109_v47 = vshll.u32 %v15849_v23, 16  ;;  %v7115_v8 = vshll.u32 %v15857_v54, 16 }
 0x44c   : > { %v10302_v24 = vcombine.low %v6771_v56, %v6774_v25  ;;  %v7119_v28 = vshrl.u32 %v15857_v54, 16  ;;  %v15881_v32 = vpop.f32.mrf.mxu0  ;;  %9212 = vmatprep.mubr.bf16.mxu0 %v10334_v45  ;;  %v6491_v58 = vrot.slane %v6490_v2, 4  ;;  %v7125_v17 = vshll.u32 %v6859_v60, 16  ;;  %v11911_v56 = vld [vmem:[#allocation2 + $0xb4] sm:$0xf] }
 0x44d   : > { %v7108_v9 = vrot.slane %v7106_v37, 4  ;;  %v11108_v51 = vadd.f32 %v15822_v48, %v15806_v13  ;;  %v15885_v62 = vpop.f32.mrf.mxu1  ;;  %v7111_v41 = vrot.slane %v7109_v47, 5  ;;  %v7117_v11 = vrot.slane %v7115_v8, 5  ;;  %v15907_v37 = vld [vmem:[#allocation2 + $0xd0] sm:$0xf] }
 0x44e   : > { %9051 = vmatprep.mubr.bf16.mxu1 %v10302_v24  ;;  %v7121_v52 = vrot.slane %v7119_v28, 4  ;;  %v6517_v6 = vshll.u32 %v6251_v4, 16  ;;  %v15887_v55 = vpop.f32.mrf.mxu0  ;;  %v15891_v5 = vrot.slane %v6631_v31, 4  ;;  %9213 = vmatmul.mubr.bf16.gmra.mxu0 %v10318_v21  ;;  %v6496_v18 = vsel %vm12343_vm14, %v6491_v58, %v6495_v20  ;;  %v15917_v47 = vld [vmem:[#allocation2 + $0xd4] sm:$0xf] }
 0x44f   : > { %v10191_v27 = vrot.slane %v6651_v7, 9  ;;  %v6777_v13 = vrot.slane %v11911_v56, 5  ;;  %v15895_v48 = vpop.f32.mrf.mxu1  ;;  %v10286_v36 = vcombine.low %v6486_v40, %v6496_v18  ;;  %v7112_v63 = vor.u32 %v7111_v41, %v7108_v9  ;;  %v15919_v8 = vld [vmem:[#allocation2 + $0xd8] sm:$0x1]  ;;  %v17356_v9 = vld [vmem:[#allocation19_spill] sm:$0xff] }
 0x450   : > { %v7122_v15 = vor.u32 %v7121_v52, %v7117_v11  ;;  %v7127_v26 = vrot.slane %v7125_v17, 5  ;;  %v6519_v60 = vrot.slane %v6517_v6, 5  ;;  %v6780_v25 = vrot.slane %v6251_v4, 5  ;;  %v6252_v52 = vld [vmem:[#allocation2 + $0xc8] sm:$0x1] }
 0x451   : > { %v6779_v45 = vrot.slane %v6777_v13, 4  ;;  %v10996_v43 = vadd.f32 %v15824_v33, %v15814_v61  ;;  %v15899_v31 = vpop.f32.mrf.mxu1  ;;  %v15901_v21 = vpop.f32.mrf.mxu0  ;;  %9052 = vmatmul.mubr.bf16.gmra.mxu1 %v10286_v36  ;;  %v7113_v20 = vrot.slane %v7112_v63, 4  ;;  %v11111_v2 = vadd.f32 %v15843_v57, %v15826_v16  ;;  %v6652_v36 = vld [vmem:[#allocation2 + $0xc0] sm:$0xe] }
 0x452   : > { %v7123_v35 = vrot.slane %v7122_v15, 4  ;;  %v10999_v40 = vadd.f32 %v15845_v22, %v15840_v53  ;;  %v6778_v4 = vsel %vm12307_vm11, %v10191_v27, %v6777_v13  ;;  %v10319_v24 = vcombine.low %v15849_v23, %v15857_v54  ;;  %v17357_v23 = vld [vmem:[#allocation14_spill] sm:$0xff] }
 0x453   : > { %v6781_v61 = vsel %vm12307_vm11, %v6779_v45, %v6780_v25  ;;  %v15913_v33 = vadd.f32 %v11108_v51, %v10996_v43  ;;  %v15921_v16 = vpop.f32.mrf.mxu0  ;;  %v7118_v53 = vsel %vm12343_vm14, %v7113_v20, %v7117_v11  ;;  %v6514_v17 = vor.u32 %v17357_v23, %v17356_v9  ;;  %v17358_v11 = vld [vmem:[#allocation32_spill] sm:$0xff] }
 0x454   : > { %v7128_v57 = vsel %vm12343_vm14, %v7123_v35, %v7127_v26  ;;  %v10303_v22 = vcombine.low %v6778_v4, %v6781_v61  ;;  %v15927_v28 = vadd.f32 %v11111_v2, %v10999_v40  ;;  %v15929_v7 = vpop.f32.mrf.mxu1  ;;  %v7130_v51 = vshrl.u32 %v15907_v37, 16 }
 0x455   : > { %v10335_v58 = vcombine.low %v7118_v53, %v7128_v57  ;;  %v7133_v41 = vshll.u32 %v15907_v37, 16  ;;  %v15935_v6 = vpop.f32.mrf.mxu0  ;;  %v6510_v18 = vsel %vm12343_vm14, %v17358_v11, %v17356_v9  ;;  %v7139_v27 = vshll.u32 %v15917_v47, 16 }
 0x456   : > { %17355 = vst [vmem:[#allocation45_spill] sm:$0xff] %v15927_v28  ;;  %9059 = vmatprep.mubr.bf16.mxu1 %v10303_v22  ;;  %v7143_v56 = vshrl.u32 %v15917_v47, 16  ;;  %v7149_v13 = vshll.u32 %v15919_v8, 16  ;;  %v15944_v63 = vpop.f32.mrf.mxu1  ;;  %v6515_v15 = vrot.slane %v6514_v17, 4  ;;  %v7132_v26 = vrot.slane %v7130_v51, 4 }
 0x457   : > { %9220 = vmatprep.mubr.bf16.mxu0 %v10335_v58  ;;  %v7135_v45 = vrot.slane %v7133_v41, 5  ;;  %v11114_v25 = vadd.f32 %v15869_v38, %v15851_v10  ;;  %v15948_v43 = vpop.f32.mrf.mxu0  ;;  %v7141_v20 = vrot.slane %v7139_v27, 5  ;;  %v6541_v40 = vshll.u32 %v6252_v52, 16  ;;  %v11912_v22 = vld [vmem:[#allocation2 + $0xc4] sm:$0xf] }
 0x458   : > { %9221 = vmatmul.mubr.bf16.gmra.mxu0 %v10319_v24  ;;  %v7145_v35 = vrot.slane %v7143_v56, 4  ;;  %v7151_v2 = vrot.slane %v7149_v13, 5  ;;  %v15950_v4 = vpop.f32.mrf.mxu1  ;;  %v6520_v61 = vsel %vm12343_vm14, %v6515_v15, %v6519_v60  ;;  %v10192_v57 = vrot.slane %v6652_v36, 9  ;;  %v15968_v13 = vld [vmem:[#allocation2 + $0xe0] sm:$0xf] }
 0x459   : > { %v7136_v53 = vor.u32 %v7135_v45, %v7132_v26  ;;  %v6784_v58 = vrot.slane %v11912_v22, 5  ;;  %v10287_v9 = vcombine.low %v6510_v18, %v6520_v61  ;;  %v6543_v17 = vrot.slane %v6541_v40, 5  ;;  %v15956_v24 = vpop.f32.mrf.mxu0  ;;  %v15970_v36 = vld [vmem:[#allocation2 + $0xe4] sm:$0xf] }
 0x45a   : > { %v7146_v23 = vor.u32 %v7145_v35, %v7141_v20  ;;  %v6787_v10 = vrot.slane %v6252_v52, 5  ;;  %v15954_v38 = vpop.f32.mrf.mxu1  ;;  %v11002_v60 = vadd.f32 %v15885_v62, %v15876_v34  ;;  %v11117_v18 = vadd.f32 %v15887_v55, %v15881_v32  ;;  %v17360_v32 = vld [vmem:[#allocation38_spill] sm:$0xff] }
 0x45b   : > { %v7137_v51 = vrot.slane %v7136_v53, 4  ;;  %v6785_v41 = vsel %vm12307_vm11, %v10192_v57, %v6784_v58  ;;  %v6786_v11 = vrot.slane %v6784_v58, 4  ;;  %9060 = vmatmul.mubr.bf16.gmra.mxu1 %v10287_v9  ;;  %v11005_v52 = vadd.f32 %v15899_v31, %v15895_v48  ;;  %v15972_v15 = vpop.f32.mrf.mxu0  ;;  %v17361_v55 = vld [vmem:[#allocation46_spill] sm:$0xff] }
 0x45c   : > { %v7147_v27 = vrot.slane %v7146_v23, 4  ;;  %v10320_v56 = vcombine.low %v15907_v37, %v15917_v47  ;;  %v15978_v26 = vadd.f32 %v11114_v25, %v11002_v60  ;;  %v6534_v48 = vsel %vm12343_vm14, %v17361_v55, %v17360_v32  ;;  %v15984_v31 = vld [vmem:[#allocation2 + $0xe8] sm:$0x1]  ;;  %v6253_v25 = vld [vmem:[#allocation2 + $0xd8] sm:$0x1] }
 0x45d   : > { %v7142_v34 = vsel %vm12343_vm14, %v7137_v51, %v7141_v20  ;;  %v6788_v62 = vsel %vm12307_vm11, %v6786_v11, %v6787_v10  ;;  %v15986_v37 = vpop.f32.mrf.mxu1  ;;  %v15990_v40 = vadd.f32 %v11117_v18, %v11005_v52  ;;  %v17363_v20 = vld [vmem:[#allocation44_spill] sm:$0xff]  ;;  %v15994_v53 = vpop.f32.mrf.mxu0  ;;  %v7154_v22 = vshrl.u32 %v15968_v13, 16  ;;  %v6653_v23 = vld [vmem:[#allocation2 + $0xd0] sm:$0xe] }
 0x45e   : > { %17359 = vst [vmem:[#allocation26_spill] sm:$0xff] %v15978_v26  ;;  %v7152_v45 = vsel %vm12343_vm14, %v7147_v27, %v7151_v2  ;;  %v10304_v35 = vcombine.low %v6785_v41, %v6788_v62  ;;  %v6538_v61 = vor.u32 %v17363_v20, %v17360_v32  ;;  %v7157_v58 = vshll.u32 %v15968_v13, 16 }
 0x45f   : > { %17362 = vst [vmem:[#allocation41_spill] sm:$0xff] %v15990_v40  ;;  %v10336_v57 = vcombine.low %v7142_v34, %v7152_v45  ;;  %v7163_v9 = vshll.u32 %v15970_v36, 16  ;;  %v15999_v10 = vpop.f32.mrf.mxu1  ;;  %v7167_v51 = vshrl.u32 %v15970_v36, 16  ;;  %v7173_v41 = vshll.u32 %v15984_v31, 16  ;;  %v16005_v60 = vpop.f32.mrf.mxu0 }
 0x460   : > { %9067 = vmatprep.mubr.bf16.mxu1 %v10304_v35  ;;  %v6539_v2 = vrot.slane %v6538_v61, 4  ;;  %v11120_v11 = vadd.f32 %v15921_v16, %v15901_v21  ;;  %v7156_v27 = vrot.slane %v7154_v22, 4  ;;  %v7159_v18 = vrot.slane %v7157_v58, 5  ;;  %v11913_v61 = vld [vmem:[#allocation2 + $0xd4] sm:$0xf] }
 0x461   : > { %9228 = vmatprep.mubr.bf16.mxu0 %v10336_v57  ;;  %v7165_v52 = vrot.slane %v7163_v9, 5  ;;  %v6565_v34 = vshll.u32 %v6253_v25, 16  ;;  %v16007_v62 = vpop.f32.mrf.mxu1  ;;  %v16012_v32 = vrot.slane %v6624_v12, 4  ;;  %v7169_v45 = vrot.slane %v7167_v51, 4 }
 0x462   : > { %9229 = vmatmul.mubr.bf16.gmra.mxu0 %v10320_v56  ;;  %v6544_v55 = vsel %vm12343_vm14, %v6539_v2, %v6543_v17  ;;  %v10193_v21 = vrot.slane %v6653_v23, 9  ;;  %v7160_v35 = vor.u32 %v7159_v18, %v7156_v27  ;;  %v7175_v20 = vrot.slane %v7173_v41, 5  ;;  %v16026_v23 = vld [vmem:[#allocation2 + $0xf0] sm:$0xf] }
 0x463   : > { %v10288_v16 = vcombine.low %v6534_v48, %v6544_v55  ;;  %v6791_v57 = vrot.slane %v11913_v61, 5  ;;  %v16016_v22 = vpop.f32.mrf.mxu1  ;;  %v16018_v58 = vpop.f32.mrf.mxu0  ;;  %v7170_v9 = vor.u32 %v7169_v45, %v7165_v52  ;;  %v6567_v29 = vrot.slane %v6565_v34, 5  ;;  %v16050_v34 = vld [vmem:[#allocation2 + $0xf8] sm:$0x1] }
 0x464   : > { %v11008_v44 = vadd.f32 %v15944_v63, %v15929_v7  ;;  %v11123_v1 = vadd.f32 %v15948_v43, %v15935_v6  ;;  %v7161_v12 = vrot.slane %v7160_v35, 4  ;;  %v6794_v56 = vrot.slane %v6253_v25, 5  ;;  %v17365_v7 = vld [vmem:[#allocation29_spill] sm:$0xff]  ;;  %v16038_v63 = vld [vmem:[#allocation2 + $0xf4] sm:$0xf] }
 0x465   : > { %9068 = vmatmul.mubr.bf16.gmra.mxu1 %v10288_v16  ;;  %v6793_v17 = vrot.slane %v6791_v57, 4  ;;  %v11011_v48 = vadd.f32 %v15954_v38, %v15950_v4  ;;  %v16028_v2 = vpop.f32.mrf.mxu0  ;;  %v7171_v51 = vrot.slane %v7170_v9, 4  ;;  %v6792_v41 = vsel %vm12307_vm11, %v10193_v21, %v6791_v57  ;;  %v16040_v43 = vpop.f32.mrf.mxu1 }
 0x466   : > { %v16032_v27 = vadd.f32 %v11120_v11, %v11008_v44  ;;  %v6558_v6 = vsel %vm12343_vm14, %v15495_v30, %v17365_v7  ;;  %v7166_v4 = vsel %vm12343_vm14, %v7161_v12, %v7165_v52  ;;  %v17367_v11 = vld [vmem:[#allocation40_spill] sm:$0xff]  ;;  %v7178_v21 = vshrl.u32 %v16026_v23, 16  ;;  %v6254_v44 = vld [vmem:[#allocation2 + $0xe8] sm:$0x1] }
 0x467   : > { %v6795_v38 = vsel %vm12307_vm11, %v6793_v17, %v6794_v56  ;;  %v16046_v25 = vadd.f32 %v11123_v1, %v11011_v48  ;;  %v6562_v18 = vor.u32 %v17367_v11, %v17365_v7  ;;  %v16052_v55 = vpop.f32.mrf.mxu0  ;;  %v7176_v30 = vsel %vm12343_vm14, %v7171_v51, %v7175_v20  ;;  %v16058_v16 = vpop.f32.mrf.mxu1  ;;  %v6654_v48 = vld [vmem:[#allocation2 + $0xe0] sm:$0xe] }
 0x468   : > { %17364 = vst [vmem:[#allocation39_spill] sm:$0xff] %v16032_v27  ;;  %v10305_v45 = vcombine.low %v6792_v41, %v6795_v38  ;;  %v7181_v52 = vshll.u32 %v16026_v23, 16  ;;  %v10337_v35 = vcombine.low %v7166_v4, %v7176_v30  ;;  %v7187_v57 = vshll.u32 %v16038_v63, 16 }
 0x469   : > { %17366 = vst [vmem:[#allocation42_spill] sm:$0xff] %v16046_v25  ;;  %v6563_v61 = vrot.slane %v6562_v18, 4  ;;  %v7191_v9 = vshrl.u32 %v16038_v63, 16  ;;  %v16062_v1 = vpop.f32.mrf.mxu0  ;;  %v10321_v20 = vcombine.low %v15968_v13, %v15970_v36  ;;  %v7180_v12 = vrot.slane %v7178_v21, 4  ;;  %v16067_v51 = vpop.f32.mrf.mxu1 }
 0x46a   : > { %9075 = vmatprep.mubr.bf16.mxu1 %v10305_v45  ;;  %v7183_v17 = vrot.slane %v7181_v52, 5  ;;  %v7197_v56 = vshll.u32 %v16050_v34, 16  ;;  %9236 = vmatprep.mubr.bf16.mxu0 %v10337_v35  ;;  %v7189_v7 = vrot.slane %v7187_v57, 5  ;;  %v11126_v38 = vadd.f32 %v15972_v15, %v15956_v24  ;;  %v11914_v35 = vld [vmem:[#allocation2 + $0xe4] sm:$0xf] }
 0x46b   : > { %v6568_v41 = vsel %vm12343_vm14, %v6563_v61, %v6567_v29  ;;  %v7193_v4 = vrot.slane %v7191_v9, 4  ;;  %9237 = vmatmul.mubr.bf16.gmra.mxu0 %v10321_v20  ;;  %v6589_v30 = vshll.u32 %v6254_v44, 16  ;;  %v16073_v45 = vpop.f32.mrf.mxu1  ;;  %v16075_v21 = vpop.f32.mrf.mxu0  ;;  %v10194_v25 = vrot.slane %v6654_v48, 9 }
 0x46c   : > { %v10289_v11 = vcombine.low %v6558_v6, %v6568_v41  ;;  %v7184_v18 = vor.u32 %v7183_v17, %v7180_v12  ;;  %v7199_v13 = vrot.slane %v7197_v56, 5  ;;  %v6798_v27 = vrot.slane %v11914_v35, 5 }
 0x46d   : > { %v7194_v52 = vor.u32 %v7193_v4, %v7189_v7  ;;  %v6801_v40 = vrot.slane %v6254_v44, 5  ;;  %v6591_v61 = vrot.slane %v6589_v30, 5  ;;  %v11014_v24 = vadd.f32 %v15999_v10, %v15986_v37  ;;  %v16081_v6 = vpop.f32.mrf.mxu0  ;;  %v16087_v44 = vld [vmem:[#allocation2 + $0x100] sm:$0xf]  ;;  %v6255_v4 = vld [vmem:[#allocation2 + $0xf8] sm:$0x1] }
 0x46e   : > { %9076 = vmatmul.mubr.bf16.gmra.mxu1 %v10289_v11  ;;  %v7185_v29 = vrot.slane %v7184_v18, 4  ;;  %v11129_v15 = vadd.f32 %v16005_v60, %v15994_v53  ;;  %v6799_v9 = vsel %vm12307_vm11, %v10194_v25, %v6798_v27  ;;  %v6800_v20 = vrot.slane %v6798_v27, 4  ;;  %v17369_v60 = vld [vmem:[#allocation33_spill] sm:$0xff] }
 0x46f   : > { %v7195_v57 = vrot.slane %v7194_v52, 4  ;;  %v11017_v12 = vadd.f32 %v16016_v22, %v16007_v62  ;;  %v16089_v17 = vpop.f32.mrf.mxu1  ;;  %v16093_v10 = vadd.f32 %v11126_v38, %v11014_v24  ;;  %v10322_v53 = vcombine.low %v16026_v23, %v16038_v63  ;;  %v16101_v25 = vld [vmem:[#allocation2 + $0x104] sm:$0xf]  ;;  %v16103_v62 = vld [vmem:[#allocation2 + $0x108] sm:$0x1]  ;;  %v16105_v22 = vpop.f32.mrf.mxu0  ;;  %v17371_v23 = vld [vmem:[#allocation31_spill] sm:$0xff] }
 0x470   : > { %v7190_v37 = vsel %vm12343_vm14, %v7185_v29, %v7189_v7  ;;  %v6582_v27 = vsel %vm12343_vm14, %v17369_v60, %v15502_v3  ;;  %v6802_v48 = vsel %vm12307_vm11, %v6800_v20, %v6801_v40  ;;  %v6586_v7 = vor.u32 %v17371_v23, %v15502_v3 }
 0x471   : > { %17368 = vst [vmem:[#allocation28_spill] sm:$0xff] %v16093_v10  ;;  %v7200_v56 = vsel %vm12343_vm14, %v7195_v57, %v7199_v13  ;;  %v16111_v41 = vadd.f32 %v11129_v15, %v11017_v12  ;;  %v16115_v38 = vpop.f32.mrf.mxu1  ;;  %v10306_v18 = vcombine.low %v6799_v9, %v6802_v48  ;;  %v7202_v30 = vshrl.u32 %v16087_v44, 16  ;;  %v16119_v35 = vpop.f32.mrf.mxu0  ;;  %v6655_v15 = vld [vmem:[#allocation2 + $0xf0] sm:$0xe] }
 0x472   : > { %v10338_v11 = vcombine.low %v7190_v37, %v7200_v56  ;;  %v7205_v52 = vshll.u32 %v16087_v44, 16  ;;  %v6587_v13 = vrot.slane %v6586_v7, 4  ;;  %v7211_v29 = vshll.u32 %v16101_v25, 16 }
 0x473   : > { %17370 = vst [vmem:[#allocation35_spill] sm:$0xff] %v16111_v41  ;;  %v7215_v40 = vshrl.u32 %v16101_v25, 16  ;;  %v7221_v24 = vshll.u32 %v16103_v62, 16  ;;  %v11027_v3 = vpop.f32.mrf.mxu1  ;;  %9083 = vmatprep.mubr.bf16.mxu1 %v10306_v18  ;;  %v7204_v57 = vrot.slane %v7202_v30, 4  ;;  %v11132_v9 = vadd.f32 %v16028_v2, %v16018_v58 }
 0x474   : > { %9244 = vmatprep.mubr.bf16.mxu0 %v10338_v11  ;;  %v7207_v20 = vrot.slane %v7205_v52, 5  ;;  %v6613_v12 = vshll.u32 %v6255_v4, 16  ;;  %v6592_v37 = vsel %vm12343_vm14, %v6587_v13, %v6591_v61  ;;  %v7213_v60 = vrot.slane %v7211_v29, 5  ;;  %v11915_v52 = vld [vmem:[#allocation2 + $0xf4] sm:$0xf] }
 0x475   : > { %9245 = vmatmul.mubr.bf16.gmra.mxu0 %v10322_v53  ;;  %v7217_v56 = vrot.slane %v7215_v40, 4  ;;  %v7223_v48 = vrot.slane %v7221_v24, 5  ;;  %v11028_v23 = vpop.f32.mrf.mxu1  ;;  %v16128_v7 = vpop.f32.mrf.mxu0  ;;  %v10290_v41 = vcombine.low %v6582_v27, %v6592_v37  ;;  %v10195_v18 = vrot.slane %v6655_v15, 9  ;;  %v6256_v29 = vld [vmem:[#allocation2 + $0x108] sm:$0x1]  ;;  %v17374_v15 = vld [vmem:[#allocation37_spill] sm:$0xff] }
 0x476   : > { %v7208_v10 = vor.u32 %v7207_v20, %v7204_v57  ;;  %v6615_v11 = vrot.slane %v6613_v12, 5  ;;  %v6805_v26 = vrot.slane %v11915_v52, 5  ;;  %v6808_v28 = vrot.slane %v6255_v4, 5 }
 0x477   : > { %v7218_v30 = vor.u32 %v7217_v56, %v7213_v60  ;;  %v11020_v58 = vadd.f32 %v16058_v16, %v16040_v43  ;;  %v11143_v2 = vpop.f32.mrf.mxu0  ;;  %9084 = vmatmul.mubr.bf16.gmra.mxu1 %v10290_v41  ;;  %v11135_v53 = vadd.f32 %v16062_v1, %v16052_v55  ;;  %v11023_v13 = vadd.f32 %v16073_v45, %v16067_v51  ;;  %v16138_v40 = vpop.f32.mrf.mxu1  ;;  %v17372_v51 = vld [vmem:[#allocation43_spill] sm:$0xff]  ;;  %v17373_v45 = vld [vmem:[#allocation36_spill] sm:$0xff] }
 0x478   : > { %v7209_v61 = vrot.slane %v7208_v10, 4  ;;  %v10323_v27 = vcombine.low %v16087_v44, %v16101_v25  ;;  %v6806_v4 = vsel %vm12307_vm11, %v10195_v18, %v6805_v26  ;;  %v6807_v43 = vrot.slane %v6805_v26, 4  ;;  %v6656_v10 = vld [vmem:[#allocation2 + $0x100] sm:$0xe] }
 0x479   : > { %v7219_v24 = vrot.slane %v7218_v30, 4  ;;  %v16142_v16 = vadd.f32 %v11132_v9, %v11020_v58  ;;  %v16144_v41 = vpop.f32.mrf.mxu0  ;;  %v16148_v1 = vadd.f32 %v11135_v53, %v11023_v13  ;;  %v6606_v44 = vsel %vm12343_vm14, %v17373_v45, %v17372_v51  ;;  %v11031_v20 = vpop.f32.mrf.mxu1  ;;  %v11916_v13 = vld [vmem:[#allocation2 + $0x104] sm:$0xf] }
 0x47a   : > { %v7214_v55 = vsel %vm12343_vm14, %v7209_v61, %v7213_v60  ;;  %v6610_v57 = vor.u32 %v17374_v15, %v17372_v51  ;;  %v6809_v9 = vsel %vm12307_vm11, %v6807_v43, %v6808_v28  ;;  %v11138_v12 = vadd.f32 %v16081_v6, %v16075_v21  ;;  %v16162_v60 = vld [vmem:[#allocation2 + $0x110] sm:$0xf]  ;;  %v16179_v15 = vld [vmem:[#allocation2 + $0x118] sm:$0x1] }
 0x47b   : > { %v7224_v26 = vsel %vm12343_vm14, %v7219_v24, %v7223_v48  ;;  %v6637_v37 = vshll.u32 %v6256_v29, 16  ;;  %v16164_v56 = vpop.f32.mrf.mxu0  ;;  %v10307_v30 = vcombine.low %v6806_v4, %v6809_v9  ;;  %v10196_v58 = vrot.slane %v6656_v10, 9  ;;  %v11033_v61 = vpop.f32.mrf.mxu1  ;;  %v16172_v4 = vld [vmem:[#allocation2 + $0x114] sm:$0xf] }
 0x47c   : > { %v10339_v18 = vcombine.low %v7214_v55, %v7224_v26  ;;  %v6611_v52 = vrot.slane %v6610_v57, 4  ;;  %v6812_v51 = vrot.slane %v11916_v13, 5  ;;  %v6815_v48 = vrot.slane %v6256_v29, 5 }
 0x47d   : > { %v6639_v53 = vrot.slane %v6637_v37, 5  ;;  %v11026_v28 = vadd.f32 %v16115_v38, %v16089_v17  ;;  %9091 = vmatprep.mubr.bf16.mxu1 %v10307_v30  ;;  %v11141_v6 = vadd.f32 %v16119_v35, %v16105_v22  ;;  %v11029_v24 = vadd.f32 %v11028_v23, %v11027_v3  ;;  %v11034_v10 = vpop.f32.mrf.mxu1  ;;  %v11148_v55 = vpop.f32.mrf.mxu0  ;;  %v7249_v23 = vld [vmem:[#allocation2 + $0x20] sm:$0xe] }
 0x47e   : > { %9252 = vmatprep.mubr.bf16.mxu0 %v10339_v18  ;;  %v6616_v21 = vsel %vm12343_vm14, %v6611_v52, %v6615_v11  ;;  %v7226_v43 = vshrl.u32 %v16162_v60, 16  ;;  %v6813_v17 = vsel %vm12307_vm11, %v10196_v58, %v6812_v51  ;;  %v6814_v38 = vrot.slane %v6812_v51, 4  ;;  %v11917_v51 = vld [vmem:[#allocation2 + $0x24] sm:$0xf] }
 0x47f   : > { %9253 = vmatmul.mubr.bf16.gmra.mxu0 %v10323_v27  ;;  %v10291_v29 = vcombine.low %v6606_v44, %v6616_v21  ;;  %v16177_v45 = vadd.f32 %v11138_v12, %v11026_v28  ;;  %v16181_v11 = vadd.f32 %v11141_v6, %v11029_v24  ;;  %v6630_v22 = vsel %vm12343_vm14, %v16012_v32, %v15830_v14  ;;  %v11149_v27 = vpop.f32.mrf.mxu0 }
 0x480   : > { %v6634_v35 = vor.u32 %v15891_v5, %v15830_v14  ;;  %v11144_v3 = vadd.f32 %v11143_v2, %v16128_v7  ;;  %v6816_v44 = vsel %vm12307_vm11, %v6814_v38, %v6815_v48  ;;  %v7228_v57 = vrot.slane %v7226_v43, 4 }
 0x481   : > { %9092 = vmatmul.mubr.bf16.gmra.mxu1 %v10291_v29  ;;  %v7229_v26 = vshll.u32 %v16162_v60, 16  ;;  %v7235_v9 = vshll.u32 %v16172_v4, 16  ;;  %v11036_v12 = vpop.f32.mrf.mxu1  ;;  %v10308_v37 = vcombine.low %v6813_v17, %v6816_v44  ;;  %v7239_v32 = vshrl.u32 %v16172_v4, 16  ;;  %v11151_v5 = vpop.f32.mrf.mxu0  ;;  %v7250_v29 = vld [vmem:[#allocation2 + $0x30] sm:$0xe] }
 0x482   : > { %v6635_v18 = vrot.slane %v6634_v35, 4  ;;  %v7245_v14 = vshll.u32 %v16179_v15, 16  ;;  %v10197_v30 = vrot.slane %v7249_v23, 9  ;;  %v7315_v48 = vrot.slane %v11917_v51, 5  ;;  %v11918_v44 = vld [vmem:[#allocation2 + $0x28] sm:$0x1] }
 0x483   : > { %v7231_v7 = vrot.slane %v7229_v26, 5  ;;  %v7237_v2 = vrot.slane %v7235_v9, 5  ;;  %v11037_v52 = vpop.f32.mrf.mxu1  ;;  %9099 = vmatprep.mubr.bf16.mxu1 %v10308_v37  ;;  %v7241_v13 = vrot.slane %v7239_v32, 4  ;;  %v11152_v28 = vpop.f32.mrf.mxu0  ;;  %v11032_v43 = vadd.f32 %v11031_v20, %v16138_v40 }
 0x484   : > { %v6640_v58 = vsel %vm12343_vm14, %v6635_v18, %v6639_v53  ;;  %v7247_v24 = vrot.slane %v7245_v14, 5  ;;  %v7316_v35 = vsel %vm12307_vm11, %v10197_v30, %v7315_v48  ;;  %v7317_v23 = vrot.slane %v7315_v48, 4 }
 0x485   : > { %v10292_v21 = vcombine.low %v6630_v22, %v6640_v58  ;;  %v7232_v6 = vor.u32 %v7231_v7, %v7228_v57  ;;  %v11039_v17 = vpop.f32.mrf.mxu1  ;;  %v7242_v38 = vor.u32 %v7241_v13, %v7237_v2  ;;  %v7318_v26 = vrot.slane %v11918_v44, 5  ;;  %v7251_v57 = vld [vmem:[#allocation2 + $0x40] sm:$0xe] }
 0x486   : > { %v16201_v53 = vadd.f32 %v11144_v3, %v11032_v43  ;;  %v11147_v37 = vadd.f32 %v16164_v56, %v16144_v41  ;;  %v11035_v22 = vadd.f32 %v11034_v10, %v11033_v61  ;;  %v10198_v14 = vrot.slane %v7250_v29, 9 }
 0x487   : > { %v7233_v9 = vrot.slane %v7232_v6, 4  ;;  %v11040_v18 = vpop.f32.mrf.mxu1  ;;  %v11154_v32 = vpop.f32.mrf.mxu0  ;;  %v7243_v40 = vrot.slane %v7242_v38, 4  ;;  %v7319_v20 = vsel %vm12307_vm11, %v7317_v23, %v7318_v26  ;;  %v11150_v7 = vadd.f32 %v11149_v27, %v11148_v55  ;;  %v11919_v27 = vld [vmem:[#allocation2 + $0x44] sm:$0xf]  ;;  %v11920_v38 = vld [vmem:[#allocation2 + $0x48] sm:$0x1] }
 0x488   : > { %v10341_v58 = vcombine.low %v7316_v35, %v7319_v20  ;;  %v10324_v3 = vcombine.low %v16162_v60, %v16172_v4  ;;  %v16211_v13 = vadd.f32 %v11147_v37, %v11035_v22  ;;  %v17375_v61 = vrot.slane %v15558_v49, 5  ;;  %v11921_v23 = vld [vmem:[#allocation2 + $0x54] sm:$0xf] }
 0x489   : > { %9100 = vmatmul.mubr.bf16.gmra.mxu1 %v10292_v21  ;;  %v7238_v30 = vsel %vm12343_vm14, %v7233_v9, %v7237_v2  ;;  %v11155_v41 = vpop.f32.mrf.mxu0  ;;  %v7248_v56 = vsel %vm12343_vm14, %v7243_v40, %v7247_v24  ;;  %v10199_v55 = vrot.slane %v7251_v57, 9  ;;  %v7329_v51 = vrot.slane %v11919_v27, 5  ;;  %v11042_v48 = vpop.f32.mrf.mxu1  ;;  %v7253_v40 = vld [vmem:[#allocation2 + $0x60] sm:$0xe] }
 0x48a   : > { %v7323_v10 = vsel %vm12307_vm11, %v10198_v14, %v17375_v61  ;;  %v10340_v2 = vcombine.low %v7238_v30, %v7248_v56  ;;  %11508 = vmatprep.mubr.bf16.mxu1 %v10341_v58  ;;  %v11038_v60 = vadd.f32 %v11037_v52, %v11036_v12  ;;  %v11153_v6 = vadd.f32 %v11152_v28, %v11151_v5  ;;  %v11922_v12 = vld [vmem:[#allocation2 + $0x64] sm:$0xf] }
 0x48b   : > { %v10342_v21 = vcombine.low %v7323_v10, %v15597_v42  ;;  %v11157_v43 = vpop.f32.mrf.mxu0  ;;  %v7331_v29 = vrot.slane %v7329_v51, 4  ;;  %v7332_v39 = vrot.slane %v11920_v38, 5  ;;  %v11041_v24 = vadd.f32 %v11040_v18, %v11039_v17  ;;  %v11043_v35 = vpop.f32.mrf.mxu1  ;;  %v7252_v17 = vld [vmem:[#allocation2 + $0x50] sm:$0xe] }
 0x48c   : > { %9260 = vmatprep.mubr.bf16.mxu0 %v10340_v2  ;;  %v16220_v49 = vadd.f32 %v11150_v7, %v11038_v60  ;;  %v7336_v44 = vrot.slane %v11921_v23, 5  ;;  %v11156_v26 = vadd.f32 %v11155_v41, %v11154_v32  ;;  %v7343_v5 = vrot.slane %v11922_v12, 5  ;;  %v11925_v60 = vld [vmem:[#allocation2 + $0x74] sm:$0xf]  ;;  %v7254_v23 = vld [vmem:[#allocation2 + $0x70] sm:$0xe] }
 0x48d   : > { %v11158_v9 = vpop.f32.mrf.mxu0  ;;  %9261 = vmatmul.mubr.bf16.gmra.mxu0 %v10324_v3  ;;  %v7333_v37 = vsel %vm12307_vm11, %v7331_v29, %v7332_v39  ;;  %v16224_v42 = vadd.f32 %v11153_v6, %v11041_v24  ;;  %v11045_v52 = vpop.f32.mrf.mxu1  ;;  %v7330_v28 = vsel %vm12307_vm11, %v10199_v55, %v7329_v51  ;;  %v11044_v22 = vadd.f32 %v11043_v35, %v11042_v48  ;;  %v11923_v3 = vld [vmem:[#allocation2 + $0x58] sm:$0x1]  ;;  %v11924_v55 = vld [vmem:[#allocation2 + $0x68] sm:$0x1] }
 0x48e   : > { %v10343_v57 = vcombine.low %v7330_v28, %v7333_v37  ;;  %v7338_v18 = vrot.slane %v7336_v44, 4  ;;  %v11159_v20 = vadd.f32 %v11158_v9, %v11157_v43  ;;  %v7345_v7 = vrot.slane %v7343_v5, 4  ;;  %v11926_v43 = vld [vmem:[#allocation2 + $0x84] sm:$0xf] }
 0x48f   : > { %v11046_v32 = vpop.f32.mrf.mxu1  ;;  %v11160_v14 = vpop.f32.mrf.mxu0  ;;  %v16228_v30 = vadd.f32 %v11156_v26, %v11044_v22  ;;  %v7339_v41 = vrot.slane %v11923_v3, 5  ;;  %v10200_v56 = vrot.slane %v7252_v17, 9  ;;  %v10201_v10 = vrot.slane %v7253_v40, 9  ;;  %v7255_v26 = vld [vmem:[#allocation2 + $0x80] sm:$0xe] }
 0x490   : > { %v11047_v58 = vadd.f32 %v11046_v32, %v11045_v52  ;;  %v7346_v27 = vrot.slane %v11924_v55, 5  ;;  %v7357_v29 = vrot.slane %v11926_v43, 5  ;;  %v10203_v32 = vrot.slane %v7255_v26, 9  ;;  %v11928_v3 = vld [vmem:[#allocation2 + $0x78] sm:$0x1] }
 0x491   : > { %11509 = vmatmul.mubr.bf16.vlgmr.msra.gmra.mxu1 %v10342_v21  ;;  %v11161_v61 = vpop.f32.mrf.mxu0  ;;  %v7340_v2 = vsel %vm12307_vm11, %v7338_v18, %v7339_v41  ;;  %v7350_v21 = vrot.slane %v11925_v60, 5  ;;  %v7337_v35 = vsel %vm12307_vm11, %v10200_v56, %v7336_v44  ;;  %v7344_v52 = vsel %vm12307_vm11, %v10201_v10, %v7343_v5  ;;  %v11929_v5 = vld [vmem:[#allocation2 + $0x88] sm:$0x1]  ;;  %v16245_v10 = vld [vmem:[#allocation2 + $0x90] sm:$0xe] }
 0x492   : > { %11512 = vmatprep.mubr.bf16.mxu1 %v10343_v57  ;;  %v16230_v51 = vadd.f32 %v11159_v20, %v11047_v58  ;;  %v11162_v6 = vadd.f32 %v11161_v61, %v11160_v14  ;;  %v7347_v39 = vsel %vm12307_vm11, %v7345_v7, %v7346_v27  ;;  %v10344_v12 = vcombine.low %v7337_v35, %v7340_v2  ;;  %v16242_v7 = vld [vmem:[#allocation2 + $0x94] sm:$0xf]  ;;  %v11930_v55 = vld [vmem:[#allocation2 + $0x98] sm:$0x1]  ;;  %v16247_v2 = vld [vmem:[#allocation2 + $0xa0] sm:$0xe] }
 0x493   : > { %v11048_v48 = vpop.f32.mrf.mxu1  ;;  %v11163_v38 = vpop.f32.mrf.mxu0  ;;  %v10345_v22 = vcombine.low %v7344_v52, %v7347_v39  ;;  %v7352_v57 = vrot.slane %v7350_v21, 4  ;;  %v7359_v18 = vrot.slane %v7357_v29, 4  ;;  %v10202_v20 = vrot.slane %v7254_v23, 9  ;;  %v16249_v60 = vld [vmem:[#allocation2 + $0xa4] sm:$0xf] }
 0x494   : > { %v7364_v58 = vrot.slane %v16242_v7, 5  ;;  %v7353_v41 = vrot.slane %v11928_v3, 5  ;;  %v7360_v56 = vrot.slane %v11929_v5, 5  ;;  %v7367_v27 = vrot.slane %v11930_v55, 5  ;;  %v7261_v43 = vld [vmem:[#allocation2 + $0xe0] sm:$0xe] }
 0x495   : > { %v11049_v24 = vpop.f32.mrf.mxu1  ;;  %v11164_v37 = vpop.f32.mrf.mxu0  ;;  %v7409_v26 = vrot.slane %v16050_v34, 5  ;;  %v11932_v3 = vld [vmem:[#allocation2 + $0xa8] sm:$0x1] }
 0x496   : > { %v11050_v9 = vadd.f32 %v11049_v24, %v11048_v48  ;;  %v11165_v17 = vadd.f32 %v11164_v37, %v11163_v38  ;;  %v7354_v38 = vsel %vm12307_vm11, %v7352_v57, %v7353_v41  ;;  %v7361_v39 = vsel %vm12307_vm11, %v7359_v18, %v7360_v56 }
 0x497   : > { %v11051_v28 = vpop.f32.mrf.mxu1  ;;  %v7358_v37 = vsel %vm12307_vm11, %v10203_v32, %v7357_v29  ;;  %v10209_v57 = vrot.slane %v7261_v43, 9  ;;  %v7399_v18 = vrot.slane %v15970_v36, 5  ;;  %v7263_v32 = vld [vmem:[#allocation2 + $0x100] sm:$0xe]  ;;  %v7374_v41 = vrot.slane %v11932_v3, 5 }
 0x498   : > { %v16240_v40 = vadd.f32 %v11162_v6, %v11050_v9  ;;  %v7371_v6 = vrot.slane %v16249_v60, 5  ;;  %v7351_v9 = vsel %vm12307_vm11, %v10202_v20, %v7350_v21 }
 0x499   : > { %11513 = vmatmul.mubr.bf16.gmra.mxu1 %v10344_v12  ;;  %v11052_v14 = vpop.f32.mrf.mxu1  ;;  %v11166_v44 = vpop.f32.mrf.mxu0  ;;  %v7366_v12 = vrot.slane %v7364_v58, 4  ;;  %v10346_v34 = vcombine.low %v7351_v9, %v7354_v38  ;;  %v7413_v9 = vrot.slane %v16101_v25, 5 }
 0x49a   : > { %11516 = vmatprep.mubr.bf16.mxu1 %v10345_v22  ;;  %v11053_v61 = vadd.f32 %v11052_v14, %v11051_v28  ;;  %v10204_v28 = vrot.slane %v16245_v10, 9  ;;  %v10205_v22 = vrot.slane %v16247_v2, 9  ;;  %v7262_v14 = vld [vmem:[#allocation2 + $0xf0] sm:$0xe]  ;;  %v7373_v21 = vrot.slane %v7371_v6, 4 }
 0x49b   : > { %v11167_v48 = vpop.f32.mrf.mxu0  ;;  %v11054_v35 = vpop.f32.mrf.mxu1  ;;  %v7402_v10 = vrot.slane %v15984_v31, 5  ;;  %v7368_v36 = vsel %vm12307_vm11, %v7366_v12, %v7367_v27  ;;  %v7406_v2 = vrot.slane %v16038_v63, 5  ;;  %v10211_v31 = vrot.slane %v7263_v32, 9 }
 0x49c   : > { %v16256_v24 = vadd.f32 %v11165_v17, %v11053_v61  ;;  %v11168_v23 = vadd.f32 %v11167_v48, %v11166_v44  ;;  %v10347_v44 = vcombine.low %v7358_v37, %v7361_v39  ;;  %v7401_v61 = vrot.slane %v7399_v18, 4 }
 0x49d   : > { %v11169_v52 = vpop.f32.mrf.mxu0  ;;  %v11055_v17 = vpop.f32.mrf.mxu1  ;;  %v10210_v48 = vrot.slane %v7262_v14, 9  ;;  %v16278_v39 = vsel %vm12307_vm11, %v10209_v57, %v7399_v18  ;;  %v7408_v12 = vrot.slane %v7406_v2, 4  ;;  %v7385_v57 = vrot.slane %v15857_v54, 5 }
 0x49e   : > { %v11056_v20 = vadd.f32 %v11055_v17, %v11054_v35  ;;  %v16282_v35 = vsel %vm12307_vm11, %v7401_v61, %v7402_v10  ;;  %v7415_v18 = vrot.slane %v7413_v9, 4  ;;  %v7416_v14 = vrot.slane %v16103_v62, 5  ;;  %v7259_v61 = vld [vmem:[#allocation2 + $0xc0] sm:$0xe] }
 0x49f   : > { %v11170_v29 = vpop.f32.mrf.mxu0  ;;  %v11057_v5 = vpop.f32.mrf.mxu1  ;;  %v10353_v63 = vcombine.low %v16278_v39, %v16282_v35  ;;  %v7365_v54 = vsel %vm12307_vm11, %v10204_v28, %v7364_v58  ;;  %v16309_v32 = vsel %vm12307_vm11, %v10211_v31, %v7413_v9  ;;  %v7372_v7 = vsel %vm12307_vm11, %v10205_v22, %v7371_v6  ;;  %v11935_v22 = vld [vmem:[#allocation2 + $0xc8] sm:$0x1] }
 0x4a0   : > { %v11171_v56 = vadd.f32 %v11170_v29, %v11169_v52  ;;  %v16273_v55 = vadd.f32 %v11168_v23, %v11056_v20  ;;  %v11933_v23 = vld [vmem:[#allocation2 + $0xb4] sm:$0xf]  ;;  %v7375_v52 = vsel %vm12307_vm11, %v7373_v21, %v7374_v41  ;;  %v16295_v20 = vsel %vm12307_vm11, %v10210_v48, %v7406_v2 }
 0x4a1   : > { %11517 = vmatmul.mubr.bf16.gmra.mxu1 %v10346_v34  ;;  %v11058_v43 = vpop.f32.mrf.mxu1  ;;  %v11172_v38 = vpop.f32.mrf.mxu0  ;;  %v7378_v37 = vrot.slane %v11933_v23, 5  ;;  %v16299_v29 = vsel %vm12307_vm11, %v7408_v12, %v7409_v26  ;;  %v16313_v3 = vsel %vm12307_vm11, %v7415_v18, %v7416_v14  ;;  %v10348_v41 = vcombine.low %v7365_v54, %v7368_v36  ;;  %v7258_v26 = vld [vmem:[#allocation2 + $0xb0] sm:$0xe]  ;;  %v11934_v36 = vld [vmem:[#allocation2 + $0xb8] sm:$0x1] }
 0x4a2   : > { %11520 = vmatprep.mubr.bf16.mxu1 %v10347_v44  ;;  %v11059_v27 = vadd.f32 %v11058_v43, %v11057_v5  ;;  %v10354_v62 = vcombine.low %v16295_v20, %v16299_v29  ;;  %v10355_v28 = vcombine.low %v16309_v32, %v16313_v3  ;;  %v10349_v5 = vcombine.low %v7372_v7, %v7375_v52 }
 0x4a3   : > { %v11173_v17 = vpop.f32.mrf.mxu0  ;;  %v7387_v2 = vrot.slane %v7385_v57, 4  ;;  %v7381_v31 = vrot.slane %v11934_v36, 5  ;;  %v10206_v60 = vrot.slane %v7258_v26, 9  ;;  %v10207_v6 = vrot.slane %v7259_v61, 9 }
 0x4a4   : > { %v16291_v34 = vadd.f32 %v11171_v56, %v11059_v27  ;;  %v11174_v25 = vadd.f32 %v11173_v17, %v11172_v38  ;;  %v7380_v56 = vrot.slane %v7378_v37, 4  ;;  %v7388_v27 = vrot.slane %v11935_v22, 5 }
 0x4a5   : > { %v11060_v44 = vpop.f32.mrf.mxu1  ;;  %v11175_v21 = vpop.f32.mrf.mxu0  ;;  %v7392_v18 = vrot.slane %v15917_v47, 5  ;;  %v7379_v54 = vsel %vm12307_vm11, %v10206_v60, %v7378_v37  ;;  %v7386_v26 = vsel %vm12307_vm11, %v10207_v6, %v7385_v57 }
 0x4a6   : > { %v7382_v52 = vsel %vm12307_vm11, %v7380_v56, %v7381_v31  ;;  %v7389_v14 = vsel %vm12307_vm11, %v7387_v2, %v7388_v27  ;;  %v7395_v2 = vrot.slane %v15919_v8, 5 }
 0x4a7   : > { %v11061_v58 = vpop.f32.mrf.mxu1  ;;  %v11176_v48 = vpop.f32.mrf.mxu0  ;;  %v10350_v7 = vcombine.low %v7379_v54, %v7382_v52  ;;  %v10351_v56 = vcombine.low %v7386_v26, %v7389_v14  ;;  %v7394_v61 = vrot.slane %v7392_v18, 4 }
 0x4a8   : > { %v11062_v10 = vadd.f32 %v11061_v58, %v11060_v44  ;;  %v11177_v38 = vadd.f32 %v11176_v48, %v11175_v21  ;;  %v7260_v58 = vld [vmem:[#allocation2 + $0xd0] sm:$0xe] }
 0x4a9   : > { %11521 = vmatmul.mubr.bf16.gmra.mxu1 %v10348_v41  ;;  %v11063_v43 = vpop.f32.mrf.mxu1  ;;  %v10208_v37 = vrot.slane %v7260_v58, 9  ;;  %v7396_v31 = vsel %vm12307_vm11, %v7394_v61, %v7395_v2 }
 0x4aa   : > { %11524 = vmatprep.mubr.bf16.mxu1 %v10349_v5  ;;  %v16321_v9 = vadd.f32 %v11174_v25, %v11062_v10  ;;  %v11178_v12 = vpop.f32.mrf.mxu0 }
 0x4ab   : > { %v11064_v23 = vpop.f32.mrf.mxu1  ;;  %v7393_v22 = vsel %vm12307_vm11, %v10208_v37, %v7392_v18  ;;  %v7264_v18 = vld [vmem:[#allocation2 + $0x110] sm:$0xe] }
 0x4ac   : > { %v11065_v17 = vadd.f32 %v11064_v23, %v11063_v43  ;;  %v11179_v44 = vpop.f32.mrf.mxu0  ;;  %v10352_v23 = vcombine.low %v7393_v22, %v7396_v31 }
 0x4ad   : > { %v11066_v21 = vpop.f32.mrf.mxu1  ;;  %v11180_v41 = vadd.f32 %v11179_v44, %v11178_v12 }
 0x4ae   : > { %v16330_v25 = vadd.f32 %v11177_v38, %v11065_v17  ;;  %v11181_v5 = vpop.f32.mrf.mxu0 }
 0x4af   : > { %v11067_v47 = vpop.f32.mrf.mxu1 }
 0x4b0   : > { %v11068_v10 = vadd.f32 %v11067_v47, %v11066_v21  ;;  %v11182_v48 = vpop.f32.mrf.mxu0  ;;  %v7420_v21 = vrot.slane %v16172_v4, 5  ;;  %v10212_v47 = vrot.slane %v7264_v18, 9 }
 0x4b1   : > { %11525 = vmatmul.mubr.bf16.gmra.mxu1 %v10350_v7  ;;  %v11069_v43 = vpop.f32.mrf.mxu1  ;;  %v11183_v38 = vadd.f32 %v11182_v48, %v11181_v5 }
 0x4b2   : > { %11528 = vmatprep.mubr.bf16.mxu1 %v10351_v56  ;;  %v16335_v36 = vadd.f32 %v11180_v41, %v11068_v10  ;;  %v7423_v56 = vrot.slane %v16179_v15, 5  ;;  %v7422_v10 = vrot.slane %v7420_v21, 4  ;;  %v7421_v15 = vsel %vm12307_vm11, %v10212_v47, %v7420_v21 }
 0x4b3   : > { %v11070_v57 = vpop.f32.mrf.mxu1 }
 0x4b4   : > { %v11184_v60 = vpop.f32.mrf.mxu0  ;;  %v11071_v6 = vadd.f32 %v11070_v57, %v11069_v43 }
 0x4b6   : > { %v11185_v27 = vpop.f32.mrf.mxu0  ;;  %v16341_v12 = vadd.f32 %v11183_v38, %v11071_v6  ;;  %v11072_v8 = vpop.f32.mrf.mxu1 }
 0x4b7   : > { %v11186_v52 = vadd.f32 %v11185_v27, %v11184_v60 }
 0x4b8   : > { %v11187_v17 = vpop.f32.mrf.mxu0  ;;  %v11073_v14 = vpop.f32.mrf.mxu1 }
 0x4b9   : > { %11529 = vmatmul.mubr.bf16.gmra.mxu1 %v10352_v23  ;;  %v11074_v44 = vadd.f32 %v11073_v14, %v11072_v8 }
 0x4ba   : > { %11532 = vmatprep.mubr.bf16.mxu1 %v10353_v63  ;;  %v11188_v54 = vpop.f32.mrf.mxu0  ;;  %v11075_v41 = vpop.f32.mrf.mxu1  ;;  %v7424_v63 = vsel %vm12307_vm11, %v7422_v10, %v7423_v56 }
 0x4bb   : > { %v11189_v7 = vadd.f32 %v11188_v54, %v11187_v17  ;;  %v16347_v26 = vadd.f32 %v11186_v52, %v11074_v44  ;;  %v10356_v60 = vcombine.low %v7421_v15, %v7424_v63 }
 0x4bc   : > { %v11076_v58 = vpop.f32.mrf.mxu1  ;;  %v11190_v5 = vpop.f32.mrf.mxu0 }
 0x4bd   : > { %v11077_v61 = vadd.f32 %v11076_v58, %v11075_v41 }
 0x4be   : > { %v11191_v48 = vpop.f32.mrf.mxu0 }
 0x4bf   : > { %v16350_v2 = vadd.f32 %v11189_v7, %v11077_v61  ;;  %v11078_v39 = vpop.f32.mrf.mxu1  ;;  %v11192_v35 = vadd.f32 %v11191_v48, %v11190_v5 }
 0x4c0   : > { %v11193_v4 = vpop.f32.mrf.mxu0 }
 0x4c1   : > { %11533 = vmatmul.mubr.bf16.gmra.mxu1 %v10354_v62  ;;  %v11079_v37 = vpop.f32.mrf.mxu1  ;;  %v10990_v62 = vadd.f32 %v15768_v50, %v15749_v59 }
 0x4c2   : > { %11536 = vmatprep.mubr.bf16.mxu1 %v10355_v28  ;;  %v11080_v43 = vadd.f32 %v11079_v37, %v11078_v39  ;;  %v11194_v38 = vpop.f32.mrf.mxu0 }
 0x4c3   : > { %v11081_v31 = vpop.f32.mrf.mxu1  ;;  %v11195_v57 = vadd.f32 %v11194_v38, %v11193_v4  ;;  %v8821_v8 = vadd.f32 %v15838_v0, %v10990_v62 }
 0x4c4   : > { %v16362_v6 = vadd.f32 %v11192_v35, %v11080_v43  ;;  %v11324_v20 = vpop.f32.mrf.mxu0 }
 0x4c5   : > { %v11082_v29 = vpop.f32.mrf.mxu1 }
 0x4c6   : > { %v11083_v32 = vadd.f32 %v11082_v29, %v11081_v31  ;;  %v11325_v3 = vpop.f32.mrf.mxu0 }
 0x4c7   : > { %v11212_v28 = vpop.f32.mrf.mxu1  ;;  %v11326_v22 = vadd.f32 %v11325_v3, %v11324_v20  ;;  %v17378_v3 = vld [vmem:[#allocation41_spill] sm:$0xff] }
 0x4c8   : > { %v16366_v19 = vadd.f32 %v11195_v57, %v11083_v32  ;;  %v16368_v27 = vpop.f32.mrf.mxu0 }
 0x4c9   : > { %11537 = vmatmul.mubr.bf16.gmra.mxu1 %v10356_v60  ;;  %v11213_v23 = vpop.f32.mrf.mxu1 }
 0x4ca   : > { %v11214_v52 = vadd.f32 %v11213_v23, %v11212_v28  ;;  %v16371_v17 = vpop.f32.mrf.mxu0 }
 0x4cb   : > { %v11215_v14 = vpop.f32.mrf.mxu1 }
 0x4cc   : > { %v8982_v44 = vadd.f32 %v11214_v52, %v8821_v8 }
 0x4cd   : > { %v11216_v54 = vpop.f32.mrf.mxu1  ;;  %v16373_v21 = vpop.f32.mrf.mxu0 }
 0x4ce   : > { %v11217_v59 = vadd.f32 %v11216_v54, %v11215_v14  ;;  %v16387_v47 = vadd.f32 %v11326_v22, %v8982_v44  ;;  %v17379_v44 = vld [vmem:[#allocation39_spill] sm:$0xff] }
 0x4cf   : > { %v11218_v50 = vpop.f32.mrf.mxu1  ;;  %v16375_v41 = vpop.f32.mrf.mxu0 }
 0x4d0   : > { %v16378_v7 = vadd.f32 %v11217_v59, %v15863_v46  ;;  %v17376_v46 = vld [vmem:[#allocation45_spill] sm:$0xff] }
 0x4d1   : > { %v11219_v18 = vpop.f32.mrf.mxu1  ;;  %v16380_v58 = vpop.f32.mrf.mxu0 }
 0x4d2   : > { %v11220_v5 = vadd.f32 %v11219_v18, %v11218_v50 }
 0x4d3   : > { %v11221_v0 = vpop.f32.mrf.mxu1  ;;  %v16382_v56 = vpop.f32.mrf.mxu0 }
 0x4d4   : > { %v16385_v61 = vadd.f32 %v11220_v5, %v15913_v33  ;;  %v17377_v33 = vld [vmem:[#allocation26_spill] sm:$0xff] }
 0x4d5   : > { %v11222_v10 = vpop.f32.mrf.mxu1  ;;  %v16389_v48 = vpop.f32.mrf.mxu0 }
 0x4d6   : > { %v11223_v39 = vadd.f32 %v11222_v10, %v11221_v0  ;;  %v17380_v0 = vld [vmem:[#allocation42_spill] sm:$0xff] }
 0x4d7   : > { %v11224_v35 = vpop.f32.mrf.mxu1  ;;  %v16391_v4 = vpop.f32.mrf.mxu0 }
 0x4d8   : > { %v16394_v15 = vadd.f32 %v11223_v39, %v17376_v46 }
 0x4d9   : > { %v11225_v63 = vpop.f32.mrf.mxu1  ;;  %v16396_v37 = vpop.f32.mrf.mxu0 }
 0x4da   : > { %v11226_v43 = vadd.f32 %v11225_v63, %v11224_v35 }
 0x4db   : > { %v11227_v38 = vpop.f32.mrf.mxu1  ;;  %v16398_v31 = vpop.f32.mrf.mxu0 }
 0x4dc   : > { %v16401_v57 = vadd.f32 %v11226_v43, %v17377_v33 }
 0x4dd   : > { %v11228_v60 = vpop.f32.mrf.mxu1  ;;  %v16403_v20 = vpop.f32.mrf.mxu0 }
 0x4de   : > { %v11229_v29 = vadd.f32 %v11228_v60, %v11227_v38  ;;  %v17381_v38 = vld [vmem:[#allocation28_spill] sm:$0xff] }
 0x4df   : > { %v11230_v62 = vpop.f32.mrf.mxu1  ;;  %v16405_v32 = vpop.f32.mrf.mxu0 }
 0x4e0   : > { %v16408_v28 = vadd.f32 %v11229_v29, %v17378_v3 }
 0x4e1   : > { %v11231_v22 = vpop.f32.mrf.mxu1  ;;  %v16410_v23 = vpop.f32.mrf.mxu0 }
 0x4e2   : > { %v11232_v8 = vadd.f32 %v11231_v22, %v11230_v62 }
 0x4e3   : > { %v11233_v52 = vpop.f32.mrf.mxu1  ;;  %v16412_v14 = vpop.f32.mrf.mxu0 }
 0x4e4   : > { %v16415_v54 = vadd.f32 %v11232_v8, %v17379_v44  ;;  %v17383_v8 = vld [vmem:[#allocation35_spill] sm:$0xff] }
 0x4e5   : > { %v11234_v59 = vpop.f32.mrf.mxu1 }
 0x4e6   : > { %v11235_v50 = vadd.f32 %v11234_v59, %v11233_v52  ;;  %v16417_v18 = vpop.f32.mrf.mxu0 }
 0x4e7   : > { %v11236_v5 = vpop.f32.mrf.mxu1 }
 0x4e8   : > { %v16420_v10 = vadd.f32 %v11235_v50, %v17380_v0  ;;  %v16422_v39 = vpop.f32.mrf.mxu0 }
 0x4e9   : > { %v11237_v35 = vpop.f32.mrf.mxu1 }
 0x4ea   : > { %v11238_v46 = vadd.f32 %v11237_v35, %v11236_v5  ;;  %v16424_v63 = vpop.f32.mrf.mxu0 }
 0x4eb   : > { %v11239_v43 = vpop.f32.mrf.mxu1 }
 0x4ec   : > { %v16427_v33 = vadd.f32 %v11238_v46, %v17381_v38  ;;  %v16429_v60 = vpop.f32.mrf.mxu0 }
 0x4ed   : > { %v11240_v29 = vpop.f32.mrf.mxu1 }
 0x4ee   : > { %v11241_v62 = vadd.f32 %v11240_v29, %v11239_v43  ;;  %v16431_v3 = vpop.f32.mrf.mxu0 }
 0x4ef   : > { %17382 = vst [vmem:[#allocation30_spill] sm:$0xff] %v16431_v3  ;;  %v11242_v22 = vpop.f32.mrf.mxu1 }
 0x4f0   : > { %v16434_v52 = vadd.f32 %v11241_v62, %v17383_v8  ;;  %v16436_v44 = vpop.f32.mrf.mxu0 }
 0x4f1   : > { %v11243_v59 = vpop.f32.mrf.mxu1 }
 0x4f2   : > { %17384 = vst [vmem:[#allocation34_spill] sm:$0xff] %v16434_v52  ;;  %v11244_v50 = vadd.f32 %v11243_v59, %v11242_v22  ;;  %v16438_v5 = vpop.f32.mrf.mxu0 }
 0x4f3   : > { %17385 = vst [vmem:[#allocation22_spill] sm:$0xff] %v16438_v5  ;;  %v11245_v0 = vpop.f32.mrf.mxu1 }
 0x4f4   : > { %v16441_v35 = vadd.f32 %v11244_v50, %v16142_v16  ;;  %v16443_v46 = vpop.f32.mrf.mxu0 }
 0x4f5   : > { %v11246_v38 = vpop.f32.mrf.mxu1 }
 0x4f6   : > { %17386 = vst [vmem:[#allocation24_spill] sm:$0xff] %v16441_v35  ;;  %v11247_v43 = vadd.f32 %v11246_v38, %v11245_v0  ;;  %v16445_v29 = vpop.f32.mrf.mxu0 }
 0x4f7   : > { %17387 = vst [vmem:[#allocation17_spill] sm:$0xff] %v16445_v29  ;;  %v11248_v3 = vpop.f32.mrf.mxu1 }
 0x4f8   : > { %v16448_v62 = vadd.f32 %v11247_v43, %v16148_v1  ;;  %v16450_v8 = vpop.f32.mrf.mxu0 }
 0x4f9   : > { %v11249_v52 = vpop.f32.mrf.mxu1 }
 0x4fa   : > { %17388 = vst [vmem:[#allocation13_spill] sm:$0xff] %v16448_v62  ;;  %v11250_v22 = vadd.f32 %v11249_v52, %v11248_v3  ;;  %v16452_v59 = vpop.f32.mrf.mxu0 }
 0x4fb   : > { %17389 = vst [vmem:[#allocation16_spill] sm:$0xff] %v16452_v59  ;;  %v11251_v5 = vpop.f32.mrf.mxu1 }
 0x4fc   : > { %v16455_v16 = vadd.f32 %v11250_v22, %v16177_v45  ;;  %v16457_v50 = vpop.f32.mrf.mxu0 }
 0x4fd   : > { %17391 = vst [vmem:[#allocation27_spill] sm:$0xff] %v16457_v50  ;;  %v11252_v35 = vpop.f32.mrf.mxu1 }
 0x4fe   : > { %17390 = vst [vmem:[#allocation23_spill] sm:$0xff] %v16455_v16  ;;  %v11253_v0 = vadd.f32 %v11252_v35, %v11251_v5  ;;  %v16459_v38 = vpop.f32.mrf.mxu0 }
 0x4ff   : > { %v11254_v29 = vpop.f32.mrf.mxu1 }
 0x500   : > { %v16462_v1 = vadd.f32 %v11253_v0, %v16181_v11  ;;  %v16464_v43 = vpop.f32.mrf.mxu0 }
 0x501   : > { %17393 = vst [vmem:[#allocation15_spill] sm:$0xff] %v16464_v43  ;;  %v11255_v62 = vpop.f32.mrf.mxu1 }
 0x502   : > { %17392 = vst [vmem:[#allocation18_spill] sm:$0xff] %v16462_v1  ;;  %v11256_v3 = vadd.f32 %v11255_v62, %v11254_v29  ;;  %v16469_v45 = vpop.f32.mrf.mxu0 }
 0x503   : > { %v11257_v52 = vpop.f32.mrf.mxu1 }
 0x504   : > { %v16467_v59 = vadd.f32 %v11256_v3, %v16201_v53  ;;  %v16474_v35 = vpop.f32.mrf.mxu0 }
 0x505   : > { %v11258_v22 = vpop.f32.mrf.mxu1 }
 0x506   : > { %17394 = vst [vmem:[#allocation25_spill] sm:$0xff] %v16467_v59  ;;  %v11259_v50 = vadd.f32 %v11258_v22, %v11257_v52  ;;  %v16479_v29 = vpop.f32.mrf.mxu0 }
 0x507   : > { %v11260_v16 = vpop.f32.mrf.mxu1 }
 0x508   : > { %v16472_v5 = vadd.f32 %v11259_v50, %v16211_v13  ;;  %v16484_v52 = vpop.f32.mrf.mxu0 }
 0x509   : > { %v11261_v11 = vpop.f32.mrf.mxu1 }
 0x50a   : > { %17395 = vst [vmem:[#allocation20_spill] sm:$0xff] %v16472_v5  ;;  %v11262_v0 = vadd.f32 %v11261_v11, %v11260_v16  ;;  %v16486_v5 = vpop.f32.mrf.mxu0 }
 0x50b   : > { %v11263_v1 = vpop.f32.mrf.mxu1 }
 0x50c   : > { %v16477_v43 = vadd.f32 %v11262_v0, %v16220_v49  ;;  %v16491_v0 = vpop.f32.mrf.mxu0 }
 0x50d   : > { %v11264_v53 = vpop.f32.mrf.mxu1 }
 0x50e   : > { %17396 = vst [vmem:[#allocation19_spill] sm:$0xff] %v16477_v43  ;;  %v11265_v62 = vadd.f32 %v11264_v53, %v11263_v1  ;;  %v16496_v53 = vpop.f32.mrf.mxu0 }
 0x50f   : > { %17400 = vst [vmem:[#allocation46_spill] sm:$0xff] %v16496_v53 }
 0x510   : > { %v16482_v3 = vadd.f32 %v11265_v62, %v16224_v42 }
 0x511   : > { %v11266_v22 = vpop.f32.mrf.mxu1 }
 0x512   : > { %17397 = vst [vmem:[#allocation14_spill] sm:$0xff] %v16482_v3 }
 0x513   : > { %v11267_v13 = vpop.f32.mrf.mxu1 }
 0x514   : > { %v11268_v50 = vadd.f32 %v11267_v13, %v11266_v22  ;;  %v16501_v13 = vpop.f32.mrf.mxu0 }
 0x515   : > { %v11269_v59 = vpop.f32.mrf.mxu1 }
 0x516   : > { %v16489_v16 = vadd.f32 %v11268_v50, %v16228_v30 }
 0x517   : > { %v11270_v49 = vpop.f32.mrf.mxu1 }
 0x518   : > { %17398 = vst [vmem:[#allocation32_spill] sm:$0xff] %v16489_v16  ;;  %v11271_v11 = vadd.f32 %v11270_v49, %v11269_v59  ;;  %v16506_v16 = vpop.f32.mrf.mxu0 }
 0x51a   : > { %v16494_v1 = vadd.f32 %v11271_v11, %v16230_v51  ;;  %v16508_v53 = vpop.f32.mrf.mxu0 }
 0x51b   : > { %v11272_v42 = vpop.f32.mrf.mxu1  ;;  %17403 = vst [vmem:[#allocation40_spill] sm:$0xff] %v16508_v53 }
 0x51c   : > { %17399 = vst [vmem:[#allocation38_spill] sm:$0xff] %v16494_v1 }
 0x51d   : > { %v11273_v62 = vpop.f32.mrf.mxu1 }
 0x51e   : > { %v11274_v3 = vadd.f32 %v11273_v62, %v11272_v42  ;;  %v16513_v62 = vpop.f32.mrf.mxu0 }
 0x51f   : > { %v11275_v43 = vpop.f32.mrf.mxu1 }
 0x520   : > { %v16499_v22 = vadd.f32 %v11274_v3, %v16240_v40 }
 0x521   : > { %v11276_v30 = vpop.f32.mrf.mxu1 }
 0x522   : > { %17401 = vst [vmem:[#allocation44_spill] sm:$0xff] %v16499_v22  ;;  %v11277_v50 = vadd.f32 %v11276_v30, %v11275_v43 }
 0x524   : > { %v16504_v59 = vadd.f32 %v11277_v50, %v16256_v24 }
 0x525   : > { %v11278_v49 = vpop.f32.mrf.mxu1 }
 0x526   : > { %17402 = vst [vmem:[#allocation29_spill] sm:$0xff] %v16504_v59  ;;  %v16518_v59 = vpop.f32.mrf.mxu0 }
 0x527   : > { %v11279_v51 = vpop.f32.mrf.mxu1 }
 0x528   : > { %v11280_v11 = vadd.f32 %v11279_v51, %v11278_v49 }
 0x529   : > { %v11281_v1 = vpop.f32.mrf.mxu1 }
 0x52a   : > { %v16511_v42 = vadd.f32 %v11280_v11, %v16273_v55  ;;  %v16523_v55 = vpop.f32.mrf.mxu0 }
 0x52b   : > { %v11282_v40 = vpop.f32.mrf.mxu1 }
 0x52c   : > { %17404 = vst [vmem:[#allocation33_spill] sm:$0xff] %v16511_v42  ;;  %v11283_v3 = vadd.f32 %v11282_v40, %v11281_v1  ;;  %v16528_v40 = vpop.f32.mrf.mxu0 }
 0x52e   : > { %v16516_v43 = vadd.f32 %v11283_v3, %v16291_v34  ;;  %v11284_v24 = vpop.f32.mrf.mxu1 }
 0x530   : > { %17405 = vst [vmem:[#allocation31_spill] sm:$0xff] %v16516_v43  ;;  %v11285_v30 = vpop.f32.mrf.mxu1 }
 0x531   : > { %v11286_v50 = vadd.f32 %v11285_v30, %v11284_v24  ;;  %v16533_v30 = vpop.f32.mrf.mxu0 }
 0x532   : > { %v11287_v22 = vpop.f32.mrf.mxu1 }
 0x533   : > { %v16521_v49 = vadd.f32 %v11286_v50, %v16321_v9 }
 0x534   : > { %v11288_v51 = vpop.f32.mrf.mxu1 }
 0x535   : > { %17406 = vst [vmem:[#allocation43_spill] sm:$0xff] %v16521_v49  ;;  %v11289_v53 = vadd.f32 %v11288_v51, %v11287_v22  ;;  %v16538_v49 = vpop.f32.mrf.mxu0 }
 0x537   : > { %v16526_v1 = vadd.f32 %v11289_v53, %v16330_v25  ;;  %v11290_v11 = vpop.f32.mrf.mxu1  ;;  %v16540_v42 = vpop.f32.mrf.mxu0 }
 0x538   : > { %17410 = vst [vmem:[#allocation26_spill] sm:$0xff] %v16540_v42 }
 0x539   : > { %17407 = vst [vmem:[#allocation36_spill] sm:$0xff] %v16526_v1  ;;  %v11291_v34 = vpop.f32.mrf.mxu1 }
 0x53a   : > { %v11292_v3 = vadd.f32 %v11291_v34, %v11290_v11 }
 0x53b   : > { %v11293_v43 = vpop.f32.mrf.mxu1 }
 0x53c   : > { %v16531_v24 = vadd.f32 %v11292_v3, %v16335_v36 }
 0x53d   : > { %v11294_v9 = vpop.f32.mrf.mxu1 }
 0x53e   : > { %17408 = vst [vmem:[#allocation37_spill] sm:$0xff] %v16531_v24  ;;  %v11295_v50 = vadd.f32 %v11294_v9, %v11293_v43  ;;  %v16545_v24 = vpop.f32.mrf.mxu0 }
 0x540   : > { %v16536_v22 = vadd.f32 %v11295_v50, %v16341_v12 }
 0x541   : > { %v11296_v51 = vpop.f32.mrf.mxu1 }
 0x542   : > { %17409 = vst [vmem:[#allocation45_spill] sm:$0xff] %v16536_v22  ;;  %v16550_v22 = vpop.f32.mrf.mxu0 }
 0x543   : > { %v11297_v25 = vpop.f32.mrf.mxu1 }
 0x544   : > { %v11298_v53 = vadd.f32 %v11297_v25, %v11296_v51 }
 0x545   : > { %v11299_v1 = vpop.f32.mrf.mxu1 }
 0x546   : > { %v16543_v11 = vadd.f32 %v11298_v53, %v16347_v26  ;;  %v16555_v53 = vpop.f32.mrf.mxu0 }
 0x547   : > { %v11300_v36 = vpop.f32.mrf.mxu1 }
 0x548   : > { %v11301_v34 = vadd.f32 %v11300_v36, %v11299_v1 }
 0x549   : > { %v11302_v3 = vpop.f32.mrf.mxu1 }
 0x54a   : > { %v16548_v43 = vadd.f32 %v11301_v34, %v16350_v2  ;;  %v11329_v2 = vadd.f32 %v16371_v17, %v16368_v27  ;;  %v11332_v34 = vadd.f32 %v16375_v41, %v16373_v21 }
 0x54b   : > { %v11303_v12 = vpop.f32.mrf.mxu1 }
 0x54c   : > { %v11304_v9 = vadd.f32 %v11303_v12, %v11302_v3  ;;  %v16566_v12 = vpop.f32.mrf.mxu0 }
 0x54d   : > { %v11305_v50 = vpop.f32.mrf.mxu1 }
 0x54e   : > { %v16553_v51 = vadd.f32 %v11304_v9, %v16362_v6  ;;  %v11335_v6 = vadd.f32 %v16382_v56, %v16380_v58  ;;  %v9151_v9 = vadd.f32 %v11332_v34, %v16385_v61 }
 0x54f   : > { %v11306_v25 = vpop.f32.mrf.mxu1 }
 0x550   : > { %v11307_v42 = vadd.f32 %v11306_v25, %v11305_v50  ;;  %v9154_v21 = vadd.f32 %v11335_v6, %v16394_v15  ;;  %v16581_v25 = vpop.f32.mrf.mxu0  ;;  %v11344_v15 = vadd.f32 %v16405_v32, %v16403_v20 }
 0x551   : > { %v11510_v26 = vpop.f32.mrf.mxu1 }
 0x552   : > { %v16558_v1 = vadd.f32 %v11307_v42, %v16366_v19  ;;  %v9146_v19 = vadd.f32 %v11329_v2, %v16378_v7  ;;  %v11338_v42 = vadd.f32 %v16391_v4, %v16389_v48  ;;  %v16575_v17 = vadd.f32 %v11510_v26, %v9151_v9 }
 0x553   : > { %v9303_v36 = vpop.f32.mrf.mxu1  ;;  %v11341_v4 = vadd.f32 %v16398_v31, %v16396_v37  ;;  %v9167_v6 = vadd.f32 %v11344_v15, %v16415_v54  ;;  %v17411_v15 = vld [vmem:[#allocation30_spill] sm:$0xff] }
 0x554   : > { %v16570_v50 = vadd.f32 %v9303_v36, %v16387_v47  ;;  %v9159_v56 = vadd.f32 %v11338_v42, %v16401_v57  ;;  %v9471_v26 = vmul.f32 %v16575_v17, %v16575_v17  ;;  %v11350_v42 = vadd.f32 %v16422_v39, %v16417_v18 }
 0x555   : > { %v11511_v3 = vpop.f32.mrf.mxu1  ;;  %v9162_v32 = vadd.f32 %v11341_v4, %v16408_v28 }
 0x556   : > { %v9469_v61 = vmul.f32 %v16570_v50, %v16570_v50  ;;  %v16585_v47 = vadd.f32 %v11511_v3, %v9154_v21  ;;  %v11347_v3 = vadd.f32 %v16412_v14, %v16410_v23 }
 0x557   : > { %v9306_v27 = vpop.f32.mrf.mxu1 }
 0x558   : > { %v16578_v41 = vadd.f32 %v9306_v27, %v9146_v19  ;;  %v16603_v19 = vpop.f32.mrf.mxu0  ;;  %v9472_v37 = vmul.f32 %v16585_v47, %v16585_v47  ;;  %v9170_v23 = vadd.f32 %v11347_v3, %v16420_v10 }
 0x559   : > { %v11514_v58 = vpop.f32.mrf.mxu1 }
 0x55a   : > { %v9432_v7 = vadd.f32 %v16578_v41, %v16570_v50  ;;  %v9470_v48 = vmul.f32 %v16578_v41, %v16578_v41  ;;  %v16611_v27 = vadd.f32 %v11514_v58, %v9167_v6  ;;  %v16620_v28 = vpop.f32.mrf.mxu0  ;;  %v11353_v58 = vadd.f32 %v16429_v60, %v16424_v63  ;;  %v17412_v6 = vld [vmem:[#allocation22_spill] sm:$0xff] }
 0x55b   : > { %v9319_v57 = vpop.f32.mrf.mxu1 }
 0x55c   : > { %v9433_v36 = vadd.f32 %v9432_v7, %v16575_v17  ;;  %v9501_v2 = vadd.f32 %v9470_v48, %v9469_v61  ;;  %v16598_v34 = vadd.f32 %v9319_v57, %v9159_v56  ;;  %v9175_v48 = vadd.f32 %v11350_v42, %v16427_v33  ;;  %v17414_v42 = vld [vmem:[#allocation34_spill] sm:$0xff] }
 0x55d   : > { %v11515_v9 = vpop.f32.mrf.mxu1  ;;  %v11356_v57 = vadd.f32 %v16436_v44, %v17411_v15  ;;  %v9475_v33 = vmul.f32 %v16611_v27, %v16611_v27 }
 0x55e   : > { %v9502_v31 = vadd.f32 %v9501_v2, %v9471_v26  ;;  %v9434_v20 = vadd.f32 %v9433_v36, %v16585_v47  ;;  %v9473_v21 = vmul.f32 %v16598_v34, %v16598_v34  ;;  %v16622_v18 = vadd.f32 %v11515_v9, %v9170_v23 }
 0x55f   : > { %v9322_v14 = vpop.f32.mrf.mxu1  ;;  %v11359_v9 = vadd.f32 %v16443_v46, %v17412_v6  ;;  %v9178_v23 = vadd.f32 %v11353_v58, %v17414_v42  ;;  %v17418_v6 = vld [vmem:[#allocation16_spill] sm:$0xff] }
 0x560   : > { %v9435_v54 = vadd.f32 %v9434_v20, %v16598_v34  ;;  %v9503_v56 = vadd.f32 %v9502_v31, %v9472_v37  ;;  %v16617_v61 = vadd.f32 %v9322_v14, %v9162_v32  ;;  %v17413_v37 = vld [vmem:[#allocation24_spill] sm:$0xff]  ;;  %v16639_v32 = vpop.f32.mrf.mxu0  ;;  %v9476_v63 = vmul.f32 %v16622_v18, %v16622_v18  ;;  %v17415_v14 = vld [vmem:[#allocation17_spill] sm:$0xff] }
 0x561   : > { %v11518_v7 = vpop.f32.mrf.mxu1  ;;  %v9183_v31 = vadd.f32 %v11356_v57, %v17413_v37 }
 0x562   : > { %v9504_v4 = vadd.f32 %v9503_v56, %v9473_v21  ;;  %v9436_v39 = vadd.f32 %v9435_v54, %v16617_v61  ;;  %v9474_v10 = vmul.f32 %v16617_v61, %v16617_v61  ;;  %v11362_v54 = vadd.f32 %v16450_v8, %v17415_v14  ;;  %v17416_v56 = vld [vmem:[#allocation13_spill] sm:$0xff]  ;;  %v16656_v58 = vpop.f32.mrf.mxu0 }
 0x563   : > { %v9335_v26 = vpop.f32.mrf.mxu1  ;;  %v16647_v21 = vadd.f32 %v11518_v7, %v9183_v31  ;;  %v9186_v46 = vadd.f32 %v11359_v9, %v17416_v56  ;;  %v17419_v9 = vld [vmem:[#allocation27_spill] sm:$0xff]  ;;  %v11371_v14 = vadd.f32 %v16474_v35, %v16469_v45 }
 0x564   : > { %v9437_v36 = vadd.f32 %v9436_v39, %v16611_v27  ;;  %v9505_v2 = vadd.f32 %v9504_v4, %v9474_v10  ;;  %v16634_v3 = vadd.f32 %v9335_v26, %v9175_v48  ;;  %v17417_v26 = vld [vmem:[#allocation23_spill] sm:$0xff]  ;;  %v11365_v37 = vadd.f32 %v17419_v9, %v17418_v6 }
 0x565   : > { %v11519_v20 = vpop.f32.mrf.mxu1  ;;  %v17420_v31 = vld [vmem:[#allocation15_spill] sm:$0xff] }
 0x566   : > { %v9506_v60 = vadd.f32 %v9505_v2, %v9475_v33  ;;  %v9438_v44 = vadd.f32 %v9437_v36, %v16622_v18  ;;  %v9477_v39 = vmul.f32 %v16634_v3, %v16634_v3  ;;  %v9191_v33 = vadd.f32 %v11362_v54, %v17417_v26  ;;  %v17421_v54 = vld [vmem:[#allocation25_spill] sm:$0xff] }
 0x567   : > { %v9338_v48 = vpop.f32.mrf.mxu1  ;;  %v16658_v8 = vadd.f32 %v11519_v20, %v9186_v46 }
 0x568   : > { %v9439_v4 = vadd.f32 %v9438_v44, %v16634_v3  ;;  %v9507_v10 = vadd.f32 %v9506_v60, %v9476_v63  ;;  %v16653_v15 = vadd.f32 %v9338_v48, %v9178_v23  ;;  %v11368_v63 = vadd.f32 %v17420_v31, %v16459_v38  ;;  %v16675_v48 = vpop.f32.mrf.mxu0 }
 0x569   : > { %v11522_v57 = vpop.f32.mrf.mxu1  ;;  %v9479_v44 = vmul.f32 %v16647_v21, %v16647_v21  ;;  %v9480_v38 = vmul.f32 %v16658_v8, %v16658_v8 }
 0x56a   : > { %v9508_v36 = vadd.f32 %v9507_v10, %v9477_v39  ;;  %v9440_v7 = vadd.f32 %v9439_v4, %v16653_v15  ;;  %v9478_v2 = vmul.f32 %v16653_v15, %v16653_v15  ;;  %v9199_v56 = vadd.f32 %v11368_v63, %v17421_v54  ;;  %v17422_v10 = vld [vmem:[#allocation18_spill] sm:$0xff] }
 0x56b   : > { %v9351_v60 = vpop.f32.mrf.mxu1  ;;  %v9194_v26 = vadd.f32 %v11365_v37, %v17422_v10  ;;  %v16692_v37 = vpop.f32.mrf.mxu0  ;;  %v17426_v10 = vld [vmem:[#allocation40_spill] sm:$0xff] }
 0x56c   : > { %v9441_v42 = vadd.f32 %v9440_v7, %v16647_v21  ;;  %v9509_v23 = vadd.f32 %v9508_v36, %v9478_v2  ;;  %v16670_v20 = vadd.f32 %v9351_v60, %v9191_v33  ;;  %v11374_v33 = vadd.f32 %v16484_v52, %v16479_v29  ;;  %v17423_v7 = vld [vmem:[#allocation20_spill] sm:$0xff]  ;;  %v17424_v60 = vld [vmem:[#allocation19_spill] sm:$0xff] }
 0x56d   : > { %v11523_v46 = vpop.f32.mrf.mxu1  ;;  %v16683_v36 = vadd.f32 %v11522_v57, %v9199_v56  ;;  %v9202_v45 = vadd.f32 %v11371_v14, %v17423_v7  ;;  %v17425_v14 = vld [vmem:[#allocation46_spill] sm:$0xff] }
 0x56e   : > { %v9510_v4 = vadd.f32 %v9509_v23, %v9479_v44  ;;  %v9442_v39 = vadd.f32 %v9441_v42, %v16658_v8  ;;  %v9481_v6 = vmul.f32 %v16670_v20, %v16670_v20  ;;  %v9207_v44 = vadd.f32 %v11374_v33, %v17424_v60  ;;  %v17427_v33 = vld [vmem:[#allocation32_spill] sm:$0xff] }
 0x56f   : > { %v9354_v35 = vpop.f32.mrf.mxu1  ;;  %v16694_v29 = vadd.f32 %v11523_v46, %v9202_v45  ;;  %v11377_v23 = vadd.f32 %v16491_v0, %v16486_v5  ;;  %v11380_v54 = vadd.f32 %v16501_v13, %v17425_v14 }
 0x570   : > { %v9443_v2 = vadd.f32 %v9442_v39, %v16670_v20  ;;  %v9511_v9 = vadd.f32 %v9510_v4, %v9480_v38  ;;  %v16689_v31 = vadd.f32 %v9354_v35, %v9194_v26  ;;  %v9483_v38 = vmul.f32 %v16683_v36, %v16683_v36  ;;  %v16711_v35 = vpop.f32.mrf.mxu0 }
 0x571   : > { %v11526_v63 = vpop.f32.mrf.mxu1  ;;  %v11383_v26 = vadd.f32 %v17426_v10, %v16506_v16  ;;  %v9215_v7 = vadd.f32 %v11380_v54, %v17427_v33  ;;  %v9484_v5 = vmul.f32 %v16694_v29, %v16694_v29  ;;  %v11389_v10 = vadd.f32 %v16528_v40, %v16523_v55 }
 0x572   : > { %v9512_v42 = vadd.f32 %v9511_v9, %v9481_v6  ;;  %v9444_v52 = vadd.f32 %v9443_v2, %v16689_v31  ;;  %v9482_v57 = vmul.f32 %v16689_v31, %v16689_v31  ;;  %v17428_v2 = vld [vmem:[#allocation14_spill] sm:$0xff]  ;;  %v11386_v9 = vadd.f32 %v16518_v59, %v16513_v62 }
 0x573   : > { %v9367_v56 = vpop.f32.mrf.mxu1  ;;  %v9210_v6 = vadd.f32 %v11377_v23, %v17428_v2  ;;  %v16719_v60 = vadd.f32 %v11526_v63, %v9215_v7  ;;  %v16728_v23 = vpop.f32.mrf.mxu0  ;;  %v17431_v2 = vld [vmem:[#allocation26_spill] sm:$0xff] }
 0x574   : > { %v9445_v4 = vadd.f32 %v9444_v52, %v16683_v36  ;;  %v9513_v39 = vadd.f32 %v9512_v42, %v9482_v57  ;;  %v16706_v46 = vadd.f32 %v9367_v56, %v9207_v44  ;;  %v17429_v44 = vld [vmem:[#allocation38_spill] sm:$0xff] }
 0x575   : > { %v11527_v45 = vpop.f32.mrf.mxu1  ;;  %v9218_v16 = vadd.f32 %v11383_v26, %v17429_v44  ;;  %v11392_v26 = vadd.f32 %v16538_v49, %v16533_v30  ;;  %v11414_v7 = vpop.f32.mrf.mxu0  ;;  %v17433_v30 = vld [vmem:[#allocation29_spill] sm:$0xff] }
 0x576   : > { %v9514_v0 = vadd.f32 %v9513_v39, %v9483_v38  ;;  %v9446_v13 = vadd.f32 %v9445_v4, %v16694_v29  ;;  %v9485_v57 = vmul.f32 %v16706_v46, %v16706_v46  ;;  %v17430_v38 = vld [vmem:[#allocation44_spill] sm:$0xff] }
 0x577   : > { %v9370_v42 = vpop.f32.mrf.mxu1  ;;  %v9223_v4 = vadd.f32 %v11386_v9, %v17430_v38  ;;  %v16730_v59 = vadd.f32 %v11527_v45, %v9218_v16  ;;  %v17432_v9 = vld [vmem:[#allocation33_spill] sm:$0xff] }
 0x578   : > { %v9447_v52 = vadd.f32 %v9446_v13, %v16706_v46  ;;  %v9515_v14 = vadd.f32 %v9514_v0, %v9484_v5  ;;  %v16725_v54 = vadd.f32 %v9370_v42, %v9210_v6  ;;  %v9487_v5 = vmul.f32 %v16719_v60, %v16719_v60 }
 0x579   : > { %v11530_v56 = vpop.f32.mrf.mxu1  ;;  %v11395_v6 = vadd.f32 %v16545_v24, %v17431_v2  ;;  %v9231_v44 = vadd.f32 %v11392_v26, %v17432_v9  ;;  %v9488_v55 = vmul.f32 %v16730_v59, %v16730_v59  ;;  %v9226_v42 = vadd.f32 %v11389_v10, %v17433_v30  ;;  %v11415_v24 = vpop.f32.mrf.mxu0  ;;  %v17436_v30 = vld [vmem:[#allocation37_spill] sm:$0xff] }
 0x57a   : > { %v9516_v39 = vadd.f32 %v9515_v14, %v9485_v57  ;;  %v9448_v62 = vadd.f32 %v9447_v52, %v16725_v54  ;;  %v9486_v63 = vmul.f32 %v16725_v54, %v16725_v54  ;;  %v11398_v52 = vadd.f32 %v16555_v53, %v16550_v22  ;;  %v17434_v14 = vld [vmem:[#allocation31_spill] sm:$0xff] }
 0x57b   : > { %v9383_v33 = vpop.f32.mrf.mxu1  ;;  %v16753_v57 = vadd.f32 %v11530_v56, %v9231_v44  ;;  %v9234_v38 = vadd.f32 %v11395_v6, %v17434_v14  ;;  %v11401_v56 = vadd.f32 %v16581_v25, %v16566_v12  ;;  %v11404_v2 = vadd.f32 %v16620_v28, %v16603_v19  ;;  %v11417_v9 = vpop.f32.mrf.mxu0  ;;  %v17437_v28 = vld [vmem:[#allocation36_spill] sm:$0xff] }
 0x57c   : > { %v9449_v0 = vadd.f32 %v9448_v62, %v16719_v60  ;;  %v9517_v45 = vadd.f32 %v9516_v39, %v9486_v63  ;;  %v16742_v13 = vadd.f32 %v9383_v33, %v9223_v4 }
 0x57d   : > { %v11531_v16 = vpop.f32.mrf.mxu1  ;;  %v9491_v44 = vmul.f32 %v16753_v57, %v16753_v57  ;;  %v9242_v14 = vadd.f32 %v11401_v56, %v17437_v28 }
 0x57e   : > { %v9518_v49 = vadd.f32 %v9517_v45, %v9487_v5  ;;  %v9450_v40 = vadd.f32 %v9449_v0, %v16730_v59  ;;  %v9489_v62 = vmul.f32 %v16742_v13, %v16742_v13  ;;  %v17435_v5 = vld [vmem:[#allocation43_spill] sm:$0xff]  ;;  %v16762_v45 = vadd.f32 %v11531_v16, %v9234_v38 }
 0x57f   : > { %v9386_v4 = vpop.f32.mrf.mxu1  ;;  %v9239_v10 = vadd.f32 %v11398_v52, %v17435_v5  ;;  %v11410_v38 = vadd.f32 %v16692_v37, %v16675_v48 }
 0x580   : > { %v9451_v39 = vadd.f32 %v9450_v40, %v16742_v13  ;;  %v9519_v63 = vadd.f32 %v9518_v49, %v9488_v55  ;;  %v16759_v26 = vadd.f32 %v9386_v4, %v9226_v42  ;;  %v11407_v40 = vadd.f32 %v16656_v58, %v16639_v32  ;;  %v11418_v32 = vpop.f32.mrf.mxu0 }
 0x581   : > { %v11534_v33 = vpop.f32.mrf.mxu1  ;;  %v9247_v42 = vadd.f32 %v11404_v2, %v17436_v30  ;;  %v9492_v12 = vmul.f32 %v16762_v45, %v16762_v45  ;;  %v9255_v56 = vadd.f32 %v11410_v38, %v16543_v11 }
 0x582   : > { %v9520_v0 = vadd.f32 %v9519_v63, %v9489_v62  ;;  %v9452_v22 = vadd.f32 %v9451_v39, %v16759_v26  ;;  %v9490_v53 = vmul.f32 %v16759_v26, %v16759_v26  ;;  %v17438_v39 = vld [vmem:[#allocation45_spill] sm:$0xff] }
 0x583   : > { %v9399_v6 = vpop.f32.mrf.mxu1  ;;  %v16785_v4 = vadd.f32 %v11534_v33, %v9247_v42  ;;  %v9250_v62 = vadd.f32 %v11407_v40, %v17438_v39 }
 0x584   : > { %v9453_v55 = vadd.f32 %v9452_v22, %v16753_v57  ;;  %v9521_v16 = vadd.f32 %v9520_v0, %v9490_v53  ;;  %v16774_v49 = vadd.f32 %v9399_v6, %v9239_v10  ;;  %v11416_v22 = vadd.f32 %v11415_v24, %v11414_v7 }
 0x585   : > { %v11535_v52 = vpop.f32.mrf.mxu1  ;;  %v11413_v6 = vadd.f32 %v16728_v23, %v16711_v35 }
 0x586   : > { %v9522_v25 = vadd.f32 %v9521_v16, %v9491_v44  ;;  %v9454_v19 = vadd.f32 %v9453_v55, %v16762_v45  ;;  %v9493_v5 = vmul.f32 %v16774_v49, %v16774_v49  ;;  %v16794_v48 = vadd.f32 %v11535_v52, %v9250_v62 }
 0x587   : > { %v9402_v63 = vpop.f32.mrf.mxu1  ;;  %v11419_v44 = vadd.f32 %v11418_v32, %v11417_v9  ;;  %v9495_v16 = vmul.f32 %v16785_v4, %v16785_v4  ;;  %v9263_v40 = vadd.f32 %v11416_v22, %v16553_v51  ;;  %v9258_v35 = vadd.f32 %v11413_v6, %v16548_v43 }
 0x588   : > { %v9455_v58 = vadd.f32 %v9454_v19, %v16774_v49  ;;  %v9523_v10 = vadd.f32 %v9522_v25, %v9492_v12  ;;  %v16791_v0 = vadd.f32 %v9402_v63, %v9242_v14  ;;  %v9496_v42 = vmul.f32 %v16794_v48, %v16794_v48 }
 0x589   : > { %v11538_v53 = vpop.f32.mrf.mxu1  ;;  %v9266_v9 = vadd.f32 %v11419_v44, %v16558_v1 }
 0x58a   : > { %v9524_v2 = vadd.f32 %v9523_v10, %v9493_v5  ;;  %v9456_v37 = vadd.f32 %v9455_v58, %v16791_v0  ;;  %v9494_v33 = vmul.f32 %v16791_v0, %v16791_v0  ;;  %v16811_v23 = vadd.f32 %v11538_v53, %v9263_v40 }
 0x58b   : > { %v9415_v55 = vpop.f32.mrf.mxu1 }
 0x58c   : > { %v9457_v7 = vadd.f32 %v9456_v37, %v16785_v4  ;;  %v9525_v24 = vadd.f32 %v9524_v2, %v9494_v33  ;;  %v16804_v11 = vadd.f32 %v9415_v55, %v9255_v56  ;;  %v9499_v43 = vmul.f32 %v16811_v23, %v16811_v23 }
 0x58d   : > { %v11539_v30 = vpop.f32.mrf.mxu1 }
 0x58e   : > { %v9526_v52 = vadd.f32 %v9525_v24, %v9495_v16  ;;  %v9458_v12 = vadd.f32 %v9457_v7, %v16794_v48  ;;  %v9497_v28 = vmul.f32 %v16804_v11, %v16804_v11  ;;  %v16817_v39 = vadd.f32 %v11539_v30, %v9266_v9 }
 0x58f   : > { %v9418_v25 = vpop.f32.mrf.mxu1 }
 0x590   : > { %v9459_v19 = vadd.f32 %v9458_v12, %v16804_v11  ;;  %v9527_v51 = vadd.f32 %v9526_v52, %v9496_v42  ;;  %v9419_v14 = vadd.f32 %v9418_v25, %v9258_v35  ;;  %v9500_v1 = vmul.f32 %v16817_v39, %v16817_v39  ;;  %v9430_v25 = vld [vmem:[%s17060_s5] sm:$0x1] }
 0x592   : > { %v9528_v38 = vadd.f32 %v9527_v51, %v9497_v28  ;;  %v9460_v62 = vadd.f32 %v9459_v19, %v9419_v14  ;;  %v9498_v63 = vmul.f32 %v9419_v14, %v9419_v14  ;;  %v9431_v51 = vld [vmem:[%s17061_s6] sm:$0x1] }
 0x594   : > { %v9461_v32 = vadd.f32 %v9460_v62, %v16811_v23  ;;  %v9529_v58 = vadd.f32 %v9528_v38, %v9498_v63  ;;  %v17439_v62 = vld [vmem:[#allocation21_spill] sm:$0xff] }
 0x596   : > { %v9462_v5 = vadd.f32 %v9461_v32, %v16817_v39  ;;  %v9530_v10 = vadd.f32 %v9529_v58, %v9499_v43 }
 0x598   : > { %v9463_v22 = vrot.slane %v9462_v5, 4  ;;  %v9531_v53 = vadd.f32 %v9530_v10, %v9500_v1 }
 0x59a   : > { %v9464_v56 = vadd.f32 %v9463_v22, %v9462_v5  ;;  %v9532_v2 = vrot.slane %v9531_v53, 4 }
 0x59c   : > { %v9465_v37 = vrot.slane %v9464_v56, 2  ;;  %v9533_v33 = vadd.f32 %v9532_v2, %v9531_v53 }
 0x59e   : > { %v9466_v6 = vadd.f32 %v9465_v37, %v9464_v56  ;;  %v9534_v44 = vrot.slane %v9533_v33, 2 }
 0x5a0   : > { %v9467_v55 = vrot.slane %v9466_v6, 1  ;;  %v9535_v16 = vadd.f32 %v9534_v44, %v9533_v33 }
 0x5a2   : > { %v9468_v7 = vadd.f32 %v9467_v55, %v9466_v6  ;;  %v9536_v24 = vrot.slane %v9535_v16, 1 }
 0x5a4   : > { %v9537_v40 = vadd.f32 %v9536_v24, %v9535_v16  ;;  %v9538_v30 = vmul.f32 0.00390625, %v9468_v7  ;;  %v9624_v24 = vld [vmem:[%s12270_s17 + $0x10] sm:$0xff] }
 0x5a6   : > { %v9539_v42 = vmul.f32 0.00390625, %v9537_v40  ;;  %v9540_v52 = vmul.f32 %v9538_v30, %v9538_v30  ;;  %v9622_v40 = vld [vmem:[%s12270_s17] sm:$0xff] }
 0x5a8   : > { %v9541_v12 = vsub.f32 %v9539_v42, %v9540_v52  ;;  %v9623_v42 = vld [vmem:[%s12270_s17 + $0x8] sm:$0xff] }
 0x5aa   : > { %v9542_v35 = vmax.f32 %v9541_v12, 0.0 }
 0x5ac   : > { %v9543_v9 = vadd.f32 1e-05, %v9542_v35 }
 0x5ae   : > { %11856 = vrsqrt.f32 %v9543_v9 }
 0x5bb   : > { %v11857_v19 = vpop.eup %11856 }
 0x5bc   : > { %v9545_v28 = vmul.f32 %v11857_v19, %v9430_v25  ;;  %v9628_v25 = vld [vmem:[%s12270_s17 + $0x30] sm:$0xff]  ;;  %v9626_v19 = vld [vmem:[%s12270_s17 + $0x20] sm:$0xff] }
 0x5be   : > { %v9546_v38 = vmul.f32 %v9545_v28, %v9538_v30  ;;  %v9551_v63 = vrot.slane %v9545_v28, %v17439_v62  ;;  %v9625_v30 = vld [vmem:[%s12270_s17 + $0x18] sm:$0xff] }
 0x5bf   : > { %v9629_v28 = vld [vmem:[%s12270_s17 + $0x38] sm:$0xff] }
 0x5c0   : > { %v9547_v43 = vsub.f32 %v9431_v51, %v9546_v38  ;;  %v9581_v32 = vmul.f32 %v9551_v63, %v9419_v14  ;;  %v9552_v58 = vmul.f32 %v9551_v63, %v16570_v50  ;;  %v9553_v1 = vmul.f32 %v9551_v63, %v16578_v41  ;;  %v9651_v50 = vld [vmem:[%s12270_s17 + $0xe8] sm:$0xff] }
 0x5c1   : > { %v9554_v5 = vmul.f32 %v9551_v63, %v16575_v17  ;;  %v9555_v10 = vmul.f32 %v9551_v63, %v16585_v47  ;;  %v9556_v22 = vmul.f32 %v9551_v63, %v16598_v34  ;;  %v9557_v53 = vmul.f32 %v9551_v63, %v16617_v61  ;;  %v9627_v51 = vld [vmem:[%s12270_s17 + $0x28] sm:$0xff] }
 0x5c2   : > { %v16839_v56 = vrot.slane %v9547_v43, %v17439_v62  ;;  %v9558_v2 = vmul.f32 %v9551_v63, %v16611_v27  ;;  %v9559_v37 = vmul.f32 %v9551_v63, %v16622_v18  ;;  %v9560_v14 = vmul.f32 %v9551_v63, %v16634_v3 }
 0x5c3   : > { %v9561_v41 = vmul.f32 %v9551_v63, %v16653_v15  ;;  %v9562_v17 = vmul.f32 %v9551_v63, %v16647_v21  ;;  %v9563_v47 = vmul.f32 %v9551_v63, %v16658_v8  ;;  %v9564_v34 = vmul.f32 %v9551_v63, %v16670_v20 }
 0x5c4   : > { %v9619_v61 = vadd.f32 %v16839_v56, %v9581_v32  ;;  %v9565_v33 = vmul.f32 %v9551_v63, %v16689_v31  ;;  %v9566_v27 = vmul.f32 %v9551_v63, %v16683_v36  ;;  %v9567_v18 = vmul.f32 %v9551_v63, %v16694_v29  ;;  %v9632_v32 = vld [vmem:[%s12270_s17 + $0x50] sm:$0xff] }
 0x5c5   : > { %v9568_v3 = vmul.f32 %v9551_v63, %v16706_v46  ;;  %v9569_v6 = vmul.f32 %v9551_v63, %v16725_v54  ;;  %v9570_v15 = vmul.f32 %v9551_v63, %v16719_v60  ;;  %v9571_v21 = vmul.f32 %v9551_v63, %v16730_v59 }
 0x5c6   : > { %v9683_v8 = vadd.f32 %v9651_v50, %v9619_v61  ;;  %v9572_v20 = vmul.f32 %v9551_v63, %v16742_v13  ;;  %v9573_v44 = vmul.f32 %v9551_v63, %v16759_v26  ;;  %v9574_v55 = vmul.f32 %v9551_v63, %v16753_v57  ;;  %v9635_v61 = vld [vmem:[%s12270_s17 + $0x68] sm:$0xff] }
 0x5c7   : > { %v9575_v31 = vmul.f32 %v9551_v63, %v16762_v45  ;;  %v9576_v36 = vmul.f32 %v9551_v63, %v16774_v49  ;;  %v9577_v29 = vmul.f32 %v9551_v63, %v16791_v0  ;;  %v9578_v46 = vmul.f32 %v9551_v63, %v16785_v4 }
 0x5c8   : > { %9715 = vst [vmem:[%s16866_s10 + $0xe8] sm:$0xff] %v9683_v8  ;;  %v9579_v60 = vmul.f32 %v9551_v63, %v16794_v48  ;;  %v9580_v54 = vmul.f32 %v9551_v63, %v16804_v11  ;;  %v9582_v59 = vmul.f32 %v9551_v63, %v16811_v23  ;;  %v9583_v13 = vmul.f32 %v9551_v63, %v16817_v39  ;;  %v9639_v8 = vld [vmem:[%s12270_s17 + $0x88] sm:$0xff] }
 0x5c9   : > { %v9590_v57 = vadd.f32 %v16839_v56, %v9552_v58  ;;  %v9591_v26 = vadd.f32 %v16839_v56, %v9553_v1  ;;  %v9592_v45 = vadd.f32 %v16839_v56, %v9554_v5  ;;  %v9593_v49 = vadd.f32 %v16839_v56, %v9555_v10  ;;  %v9630_v58 = vld [vmem:[%s12270_s17 + $0x40] sm:$0xff]  ;;  %v9633_v1 = vld [vmem:[%s12270_s17 + $0x58] sm:$0xff] }
 0x5ca   : > { %v9594_v4 = vadd.f32 %v16839_v56, %v9556_v22  ;;  %v9595_v0 = vadd.f32 %v16839_v56, %v9557_v53  ;;  %v9596_v48 = vadd.f32 %v16839_v56, %v9558_v2  ;;  %v9597_v11 = vadd.f32 %v16839_v56, %v9559_v37  ;;  %v9631_v2 = vld [vmem:[%s12270_s17 + $0x48] sm:$0xff]  ;;  %v9636_v37 = vld [vmem:[%s12270_s17 + $0x70] sm:$0xff] }
 0x5cb   : > { %v9598_v23 = vadd.f32 %v16839_v56, %v9560_v14  ;;  %v9599_v39 = vadd.f32 %v16839_v56, %v9561_v41  ;;  %v9600_v16 = vadd.f32 %v16839_v56, %v9562_v17  ;;  %v9601_v7 = vadd.f32 %v16839_v56, %v9563_v47  ;;  %v9634_v14 = vld [vmem:[%s12270_s17 + $0x60] sm:$0xff] }
 0x5cc   : > { %v9602_v52 = vadd.f32 %v16839_v56, %v9564_v34  ;;  %v9603_v12 = vadd.f32 %v16839_v56, %v9565_v33  ;;  %v9604_v35 = vadd.f32 %v16839_v56, %v9566_v27  ;;  %v9605_v9 = vadd.f32 %v16839_v56, %v9567_v18  ;;  %v9637_v34 = vld [vmem:[%s12270_s17 + $0x78] sm:$0xff]  ;;  %v9640_v33 = vld [vmem:[%s12270_s17 + $0x90] sm:$0xff] }
 0x5cd   : > { %v9606_v38 = vadd.f32 %v16839_v56, %v9568_v3  ;;  %v16899_v62 = vadd.f32 %v16839_v56, %v9569_v6  ;;  %v16902_v63 = vadd.f32 %v16839_v56, %v9570_v15  ;;  %v16905_v43 = vadd.f32 %v16839_v56, %v9571_v21  ;;  %v9638_v15 = vld [vmem:[%s12270_s17 + $0x80] sm:$0xff]  ;;  %v9641_v21 = vld [vmem:[%s12270_s17 + $0x98] sm:$0xff] }
 0x5ce   : > { %v9610_v5 = vadd.f32 %v16839_v56, %v9572_v20  ;;  %v16912_v10 = vadd.f32 %v16839_v56, %v9573_v44  ;;  %v16915_v22 = vadd.f32 %v16839_v56, %v9574_v55  ;;  %v16918_v53 = vadd.f32 %v16839_v56, %v9575_v31 }
 0x5cf   : > { %v16924_v50 = vadd.f32 %v16839_v56, %v9576_v36  ;;  %v16927_v41 = vadd.f32 %v16839_v56, %v9577_v29  ;;  %v16930_v17 = vadd.f32 %v16839_v56, %v9578_v46  ;;  %v16933_v47 = vadd.f32 %v16839_v56, %v9579_v60  ;;  %v9644_v36 = vld [vmem:[%s12270_s17 + $0xb0] sm:$0xff]  ;;  %v9642_v29 = vld [vmem:[%s12270_s17 + $0xa0] sm:$0xff]  ;;  %v9645_v46 = vld [vmem:[%s12270_s17 + $0xb8] sm:$0xff] }
 0x5d0   : > { %v16939_v27 = vadd.f32 %v16839_v56, %v9580_v54  ;;  %v16942_v18 = vadd.f32 %v16839_v56, %v9582_v59  ;;  %v16945_v3 = vadd.f32 %v16839_v56, %v9583_v13  ;;  %v9654_v6 = vadd.f32 %v9622_v40, %v9590_v57  ;;  %v9643_v13 = vld [vmem:[%s12270_s17 + $0xa8] sm:$0xff]  ;;  %v9648_v57 = vld [vmem:[%s12270_s17 + $0xd0] sm:$0xff] }
 0x5d1   : > { %v9655_v20 = vadd.f32 %v9623_v42, %v9591_v26  ;;  %v9656_v44 = vadd.f32 %v9624_v24, %v9592_v45  ;;  %v9657_v55 = vadd.f32 %v9625_v30, %v9593_v49  ;;  %v9658_v31 = vadd.f32 %v9626_v19, %v9594_v4  ;;  %v9646_v26 = vld [vmem:[%s12270_s17 + $0xc0] sm:$0xff]  ;;  %v9652_v40 = vld [vmem:[%s12270_s17 + $0xf0] sm:$0xff]  ;;  %v9653_v30 = vld [vmem:[%s12270_s17 + $0xf8] sm:$0xff] }
 0x5d2   : > { %v9659_v56 = vadd.f32 %v9627_v51, %v9595_v0  ;;  %v9660_v60 = vadd.f32 %v9628_v25, %v9596_v48  ;;  %v9661_v54 = vadd.f32 %v9629_v28, %v9597_v11  ;;  %v9662_v59 = vadd.f32 %v9630_v58, %v9598_v23  ;;  %9686 = vst [vmem:[%s16866_s10] sm:$0xff] %v9654_v6  ;;  %v9649_v0 = vld [vmem:[%s12270_s17 + $0xd8] sm:$0xff]  ;;  %v9647_v48 = vld [vmem:[%s12270_s17 + $0xc8] sm:$0xff]  ;;  %v9650_v11 = vld [vmem:[%s12270_s17 + $0xe0] sm:$0xff]  ;;  %s9719_s17 = scalar_lea.sflag [#allocation5], %s12264_s15 }
 0x5d3   : > { %v9663_v45 = vadd.f32 %v9631_v2, %v9599_v39  ;;  %v9664_v49 = vadd.f32 %v9632_v32, %v9600_v16  ;;  %v9665_v4 = vadd.f32 %v9633_v1, %v9601_v7  ;;  %v9666_v24 = vadd.f32 %v9634_v14, %v9602_v52  ;;  %9687 = vst [vmem:[%s16866_s10 + $0x8] sm:$0xff] %v9655_v20 }
 0x5d4   : > { %9688 = vst [vmem:[%s16866_s10 + $0x10] sm:$0xff] %v9656_v44  ;;  %9689 = vst [vmem:[%s16866_s10 + $0x18] sm:$0xff] %v9657_v55  ;;  %v9667_v23 = vadd.f32 %v9635_v61, %v9603_v12  ;;  %v9668_v39 = vadd.f32 %v9636_v37, %v9604_v35  ;;  %v9669_v16 = vadd.f32 %v9637_v34, %v9605_v9 }
 0x5d5   : > { %9690 = vst [vmem:[%s16866_s10 + $0x20] sm:$0xff] %v9658_v31  ;;  %v9670_v7 = vadd.f32 %v9638_v15, %v9606_v38  ;;  %9691 = vst [vmem:[%s16866_s10 + $0x28] sm:$0xff] %v9659_v56  ;;  %v9671_v42 = vadd.f32 %v9639_v8, %v16899_v62  ;;  %v9672_v52 = vadd.f32 %v9640_v33, %v16902_v63 }
 0x5d6   : > { %9692 = vst [vmem:[%s16866_s10 + $0x30] sm:$0xff] %v9660_v60  ;;  %9693 = vst [vmem:[%s16866_s10 + $0x38] sm:$0xff] %v9661_v54  ;;  %v9673_v12 = vadd.f32 %v9641_v21, %v16905_v43  ;;  %v9674_v35 = vadd.f32 %v9642_v29, %v9610_v5  ;;  %v9675_v9 = vadd.f32 %v9643_v13, %v16912_v10 }
 0x5d7   : > { %9694 = vst [vmem:[%s16866_s10 + $0x40] sm:$0xff] %v9662_v59  ;;  %9695 = vst [vmem:[%s16866_s10 + $0x48] sm:$0xff] %v9663_v45  ;;  %v9676_v25 = vadd.f32 %v9644_v36, %v16915_v22  ;;  %v9677_v19 = vadd.f32 %v9645_v46, %v16918_v53  ;;  %v9678_v28 = vadd.f32 %v9646_v26, %v16924_v50 }
 0x5d8   : > { %9696 = vst [vmem:[%s16866_s10 + $0x50] sm:$0xff] %v9664_v49  ;;  %9697 = vst [vmem:[%s16866_s10 + $0x58] sm:$0xff] %v9665_v4  ;;  %v9679_v51 = vadd.f32 %v9647_v48, %v16927_v41  ;;  %v9680_v38 = vadd.f32 %v9648_v57, %v16930_v17  ;;  %v9681_v62 = vadd.f32 %v9649_v0, %v16933_v47 }
 0x5d9   : > { %9698 = vst [vmem:[%s16866_s10 + $0x60] sm:$0xff] %v9666_v24  ;;  %9699 = vst [vmem:[%s16866_s10 + $0x68] sm:$0xff] %v9667_v23  ;;  %v9682_v63 = vadd.f32 %v9650_v11, %v16939_v27  ;;  %v9684_v43 = vadd.f32 %v9652_v40, %v16942_v18  ;;  %v9685_v32 = vadd.f32 %v9653_v30, %v16945_v3 }
 0x5da   : > { %9700 = vst [vmem:[%s16866_s10 + $0x70] sm:$0xff] %v9668_v39  ;;  %9701 = vst [vmem:[%s16866_s10 + $0x78] sm:$0xff] %v9669_v16 }
 0x5db   : > { %9702 = vst [vmem:[%s16866_s10 + $0x80] sm:$0xff] %v9670_v7  ;;  %9703 = vst [vmem:[%s16866_s10 + $0x88] sm:$0xff] %v9671_v42 }
 0x5dc   : > { %9704 = vst [vmem:[%s16866_s10 + $0x90] sm:$0xff] %v9672_v52  ;;  %9705 = vst [vmem:[%s16866_s10 + $0x98] sm:$0xff] %v9673_v12 }
 0x5dd   : > { %9706 = vst [vmem:[%s16866_s10 + $0xa0] sm:$0xff] %v9674_v35  ;;  %9707 = vst [vmem:[%s16866_s10 + $0xa8] sm:$0xff] %v9675_v9 }
 0x5de   : > { %9708 = vst [vmem:[%s16866_s10 + $0xb0] sm:$0xff] %v9676_v25  ;;  %9709 = vst [vmem:[%s16866_s10 + $0xb8] sm:$0xff] %v9677_v19 }
 0x5df   : > { %9710 = vst [vmem:[%s16866_s10 + $0xc0] sm:$0xff] %v9678_v28  ;;  %9711 = vst [vmem:[%s16866_s10 + $0xc8] sm:$0xff] %v9679_v51 }
 0x5e0   : > { %9712 = vst [vmem:[%s16866_s10 + $0xd0] sm:$0xff] %v9680_v38  ;;  %9713 = vst [vmem:[%s16866_s10 + $0xd8] sm:$0xff] %v9681_v62 }
 0x5e1   : > { %9714 = vst [vmem:[%s16866_s10 + $0xe0] sm:$0xff] %v9682_v63  ;;  %9716 = vst [vmem:[%s16866_s10 + $0xf0] sm:$0xff] %v9684_v43 }
 0x5e2   : > { %9717 = vst [vmem:[%s16866_s10 + $0xf8] sm:$0xff] %v9685_v32 }
 0x5e3   : > { %12029 = shalt.err (!%p12026_p9)
}
 0x5e4   : > { %s12030_s21 = scalar_lea.hbm %s16998_s16, 4096  ;;  %s12034_s19 = scalar_lea.hbm %s17062_s7, 8192 }
 0x5e5   : > { %p12031_p13 = scmp.ne.s32.totalorder %s16998_s16, %s12030_s21  ;;  %p12035_p4 = scmp.lt.s32.totalorder %s16998_s16, %s17062_s7 }
 0x5e6   : > { %p12036_p8 = scmp.lt.s32.totalorder %s12034_s19, %s12030_s21 }
 0x5e7   : > { %p12032_p5 = pnand %p12031_p13, %p17440_p10 }
 0x5e8   : > { %p12037_p3 = por %p12036_p8, %p12035_p4 }
 0x5e9   : > { %p12033_p0 = pneg %p12032_p5 }
 0x5eb   : > { %p12038_p11 = pnand %p12037_p3, %p12033_p0 }
 0x5ed   : > { %12041 = shalt.err (!%p12038_p11)
}
 0x5ee   : > { %s12095_s28 = smov 128   ;;  %s12096_s1 = smov 8  }
 0x5ef   : > { %11550 = dma.vmem_to_hbm [thread:$0]  (%p17440_p10), %s17000_s14, 4096, %s16998_s16, %s9719_s17, %s12095_s28, %s12095_s28, %s12096_s1  }
 0x5f0 PF: > { %s9747_s30 = sand.u32 1, %s12072_s24   ;;  %p17441_p1 = scmp.ne.s32.totalorder %s17101_s8, 0 }
 0x5f1   : > { %p17442_p2 = scmp.ge.s32.totalorder %s12084_s27, 2  ;;  %s9748_s9 = scalar_lea.sflag [#allocation5], %s9747_s30 }
 0x5f3   : > { %p11564_p6 = pnand %p17442_p2, %p17441_p1 }
 0x5f5   : > { %p11565_p12 = pneg %p11564_p6 }
 0x5f7   : > { %12067 = dma.done.wait (%p11565_p12), %s9748_s9, 4096  }
 0x5f8   : > { %12069 = vsyncadd (%p11565_p12), %s9748_s9, 4294963200  ;;  %p21_p7 = scmp.ge.s32.totalorder %s12209_s23, 4   ;;  %s17443_s24 = smov %s12076_s25 }
 0x5f9   : > { %s17444_s25 = smov %s12080_s26  ;;  %s17445_s26 = smov %s12225_s12 }
 0x5fa   : > { %s17446_s27 = smov %s12209_s23  ;;  %23 = sbr.rel (!%p21_p7) target bundleno = 8 (0x8), region = 104 }
 0x5ff   :  { %9753 = vsyncpa [#allocation4], 1 }
 0x600   :  { %9755 = vsyncpa [#allocation4 + $0x1], 1 }
 0x601   :  { %9756 = vsyncpa [#allocation7], 1 }
 0x602   :  { %9757 = vsyncpa [#allocation5], 1 }
 0x603   :  { %9759 = vsyncpa [#allocation5 + $0x1], 1 }

</bundles_post_ra>
